<compile_context>
chip_gen: v7x
topology: tpu7x:2x2x1
jax: 0.10.0
libtpu: 0.0.40
codegen_flags: <defaults>
</compile_context>

<pallas_src>
import functools

import numpy as np

import jax
import jax.numpy as jnp
from jax.experimental import pallas as pl
from jax.experimental.pallas import tpu as pltpu


L1 = L2 = L3 = L4 = 4  # channel constants from the module


# ---------------------------------------------------------------------------
# In-kernel building blocks (activations are (C, H*W) f32 values)
# ---------------------------------------------------------------------------
def _relu(v):
    return jnp.maximum(v, 0.0)


def _sigmoid(v):
    return 1.0 / (1.0 + jnp.exp(-v))


def _conv_flat(pad_ref, w_ref, b_ref, mask_ref, *, KH, KW, W, HW, Cout, act,
               residual=None):
    """'same'-padded KxK conv on a row-padded, flattened feature map.

    pad_ref  : VMEM scratch (Cin, pw + (H+2*ph)*W + pw); rows above/below and
               the two pw-sized caps are zero, interior holds the activation.
    w_ref    : VMEM (KH*KW, Cout, Cin)  -- per-tap weight tiles.
    b_ref    : VMEM (Cout, 1).
    mask_ref : VMEM (KW, HW) 0/1 masks that zero the columns that would wrap
               around a row boundary for off-centre kw taps.

    For tap (kh, kw) the shifted input is the contiguous flat slice starting
    at kh*W + kw; the Cin reduction runs on the MXU as a small matmul.
    """
    pw = KW // 2
    acc = jnp.zeros((Cout, HW), jnp.float32) + b_ref[...]
    if residual is not None:
        acc = acc + residual

    for kh in range(KH):
        for kw in range(KW):
            start = kh * W + kw
            xs = pad_ref[:, start:start + HW]                 # (Cin, HW)
            if kw != pw:
                xs = xs * mask_ref[kw:kw + 1, :]              # kill wrapped cols
            acc = acc + jnp.dot(w_ref[kh * KW + kw], xs,
                                preferred_element_type=jnp.float32)
    return act(acc)


# ---------------------------------------------------------------------------
# Fused whole-network kernel (one grid step == images_per_step batch elements)
# ---------------------------------------------------------------------------
def _fused_ae_kernel(x_ref,
                     w1, b1, m1,
                     w2a, b2a, w2b, b2b, m2,
                     w3, b3, w4a, b4a, w4b, b4b, w5, b5, m3,
                     up_ref,
                     o_ref,
                     padA, padB, padC,
                     *, C, H, W, b_tile):
    HW1 = H * W
    W2 = 2 * W
    HW2 = 4 * H * W
    offA = 3 * (W + 1)          # 7x7 stage: pw + ph*W = 3 + 3*W
    offB = W + 1                # 3x3 @ (H, W)
    offC = W2 + 1               # 3x3 @ (2H, 2W)
    LA = 2 * offA + HW1
    LB = 2 * offB + HW1
    LC = 2 * offC + HW2

    # Zero only the halo end-segments, once per grid step (interiors are
    # fully overwritten before every conv, so they never need re-zeroing).
    padA[:, 0:offA] = jnp.zeros((C, offA), jnp.float32)
    padA[:, offA + HW1:LA] = jnp.zeros((C, offA), jnp.float32)
    padB[:, 0:offB] = jnp.zeros((L2, offB), jnp.float32)
    padB[:, offB + HW1:LB] = jnp.zeros((L2, offB), jnp.float32)
    padC[:, 0:offC] = jnp.zeros((L4, offC), jnp.float32)
    padC[:, offC + HW2:LC] = jnp.zeros((L4, offC), jnp.float32)

    for b in range(b_tile):
        x = x_ref[b]                                           # (C, HW1)

        # conv1: 7x7, relu
        padA[:, offA:offA + HW1] = x
        h = _conv_flat(padA, w1, b1, m1, KH=7, KW=7, W=W, HW=HW1,
                       Cout=L1, act=_relu)

        # res2: two 3x3 convs, skip added before the second relu
        padB[:, offB:offB + HW1] = h
        t = _conv_flat(padB, w2a, b2a, m2, KH=3, KW=3, W=W, HW=HW1,
                       Cout=L2, act=_relu)
        padB[:, offB:offB + HW1] = t
        h = _conv_flat(padB, w2b, b2b, m2, KH=3, KW=3, W=W, HW=HW1,
                       Cout=L2, act=_relu, residual=h)

        # UpConv: nearest 2x (one MXU matmul with a hoisted 0/1 matrix) -> 3x3 relu
        u = jnp.dot(h, up_ref[...], preferred_element_type=jnp.float32)  # (L2, HW2)
        padC[:, offC:offC + HW2] = u
        h = _conv_flat(padC, w3, b3, m3, KH=3, KW=3, W=W2, HW=HW2,
                       Cout=L3, act=_relu)

        # res4
        padC[:, offC:offC + HW2] = h
        t = _conv_flat(padC, w4a, b4a, m3, KH=3, KW=3, W=W2, HW=HW2,
                       Cout=L4, act=_relu)
        padC[:, offC:offC + HW2] = t
        h = _conv_flat(padC, w4b, b4b, m3, KH=3, KW=3, W=W2, HW=HW2,
                       Cout=L4, act=_relu, residual=h)

        # conv5: 3x3, sigmoid
        padC[:, offC:offC + HW2] = h
        y = _conv_flat(padC, w5, b5, m3, KH=3, KW=3, W=W2, HW=HW2,
                       Cout=C, act=_sigmoid)

        o_ref[b] = y                                           # lane-dense store


# ---------------------------------------------------------------------------
# Host-side constant builders + wrapper
# ---------------------------------------------------------------------------
def _column_masks(KW, W, HW):
    """(KW, HW) 0/1 masks: mask[kw, y*W+x] = 1 iff 0 <= x + (kw - KW//2) < W."""
    pw = KW // 2
    xcol = np.arange(HW) % W
    rows = [((xcol + (kw - pw) >= 0) & (xcol + (kw - pw) < W)).astype(np.float32)
            for kw in range(KW)]
    return jnp.asarray(np.stack(rows, axis=0))


def _upsample_matrix(H, W):
    """(H*W, 4*H*W) 0/1 matrix M with (h_flat @ M) == nearest-2x(h) flattened."""
    HW1, W2, HW2 = H * W, 2 * W, 4 * H * W
    j = np.arange(HW2)
    src = (j // W2 // 2) * W + (j % W2) // 2
    M = np.zeros((HW1, HW2), np.float32)
    M[src, j] = 1.0
    return jnp.asarray(M)


def _prep_w(w):
    """HWIO (KH, KW, Cin, Cout) -> per-tap (KH*KW, Cout, Cin) f32."""
    KH, KW, Cin, Cout = w.shape
    return jnp.transpose(w.astype(jnp.float32), (0, 1, 3, 2)).reshape(
        KH * KW, Cout, Cin)


def _prep_b(b):
    return b.astype(jnp.float32).reshape(-1, 1)


def up_sampling_ae_forward(x_nchw, p, images_per_step=None):
    """x_nchw: (N, C, H, W) f32 -> (N, C, 2H, 2W) f32, all in one pallas_call."""
    N, C, H, W = x_nchw.shape
    Ho, Wo = 2 * H, 2 * W
    HW1, HW2 = H * W, Ho * Wo

    # Multiple images per grid step for large batches, while keeping an even
    # number (>=2) of parallel steps so both v7x TensorCores get work.
    if images_per_step is None:
        images_per_step = 1
        for cand in (8, 4, 2):
            if N % cand == 0 and N // cand >= 2:
                images_per_step = cand
                break
    assert N % images_per_step == 0, "batch must be divisible by images_per_step"
    bt = images_per_step
    steps = N // bt

    offA = 3 * (W + 1)
    offB = W + 1
    offC = Wo + 1

    x_flat = x_nchw.astype(jnp.float32).reshape(N, C, HW1)

    m1 = _column_masks(7, W, HW1)
    m2 = _column_masks(3, W, HW1)
    m3 = _column_masks(3, Wo, HW2)
    upm = _upsample_matrix(H, W)

    w1, b1 = _prep_w(p["w1"]), _prep_b(p["b1"])
    w2a, b2a = _prep_w(p["w2a"]), _prep_b(p["b2a"])
    w2b, b2b = _prep_w(p["w2b"]), _prep_b(p["b2b"])
    w3, b3 = _prep_w(p["w3"]), _prep_b(p["b3"])
    w4a, b4a = _prep_w(p["w4a"]), _prep_b(p["b4a"])
    w4b, b4b = _prep_w(p["w4b"]), _prep_b(p["b4b"])
    w5, b5 = _prep_w(p["w5"]), _prep_b(p["b5"])

    consts = (w1, b1, m1, w2a, b2a, w2b, b2b, m2,
              w3, b3, w4a, b4a, w4b, b4b, w5, b5, m3, upm)

    def full_spec(a):
        return pl.BlockSpec(a.shape, lambda n, nd=a.ndim: (0,) * nd)

    kernel = functools.partial(_fused_ae_kernel, C=C, H=H, W=W, b_tile=bt)

    y_flat = pl.pallas_call(
        kernel,
        out_shape=jax.ShapeDtypeStruct((N, C, HW2), jnp.float32),
        grid=(steps,),
        in_specs=[pl.BlockSpec((bt, C, HW1), lambda n: (n, 0, 0))]
                 + [full_spec(a) for a in consts],
        out_specs=pl.BlockSpec((bt, C, HW2), lambda n: (n, 0, 0)),
        scratch_shapes=[
            pltpu.VMEM((C, 2 * offA + HW1), jnp.float32),   # 7x7 pad buffer
            pltpu.VMEM((L2, 2 * offB + HW1), jnp.float32),  # 3x3 @ (H, W)
            pltpu.VMEM((L4, 2 * offC + HW2), jnp.float32),  # 3x3 @ (2H, 2W)
        ],
        compiler_params=pltpu.CompilerParams(
            dimension_semantics=("parallel",)),
    )(x_flat, *consts)

    return y_flat.reshape(N, C, Ho, Wo)


# ---------------------------------------------------------------------------
# Parameter init (weights stored HWIO) + pure-JAX reference for validation
# ---------------------------------------------------------------------------
def init_params(img_channels, key):
    def w(k, kh, kw, ci, co):
        return jax.random.normal(k, (kh, kw, ci, co), jnp.float32) * 0.1

    ks = jax.random.split(key, 14)
    p = {
        "w1": w(ks[0], 7, 7, img_channels, L1), "b1": jax.random.normal(ks[1], (L1,)) * 0.05,
        "w2a": w(ks[2], 3, 3, L1, L2),          "b2a": jax.random.normal(ks[3], (L2,)) * 0.05,
        "w2b": w(ks[4], 3, 3, L2, L2),          "b2b": jax.random.normal(ks[5], (L2,)) * 0.05,
        "w3": w(ks[6], 3, 3, L2, L3),           "b3": jax.random.normal(ks[7], (L3,)) * 0.05,
        "w4a": w(ks[8], 3, 3, L3, L4),          "b4a": jax.random.normal(ks[9], (L4,)) * 0.05,
        "w4b": w(ks[10], 3, 3, L4, L4),         "b4b": jax.random.normal(ks[11], (L4,)) * 0.05,
        "w5": w(ks[12], 3, 3, L4, img_channels),
        "b5": jax.random.normal(ks[13], (img_channels,)) * 0.05,
    }
    return {k: v.astype(jnp.float32) for k, v in p.items()}


def _ref_conv_nchw(x, w, b, act, residual=None):
    y = jax.lax.conv_general_dilated(
        x, w, window_strides=(1, 1), padding="SAME",
        dimension_numbers=("NCHW", "HWIO", "NCHW"))
    y = y + b.reshape(1, -1, 1, 1)
    if residual is not None:
        y = y + residual
    return act(y)


def ref_forward(x, p):
    h = _ref_conv_nchw(x, p["w1"], p["b1"], jax.nn.relu)
    t = _ref_conv_nchw(h, p["w2a"], p["b2a"], jax.nn.relu)
    h = _ref_conv_nchw(t, p["w2b"], p["b2b"], jax.nn.relu, residual=h)
    h = jnp.repeat(jnp.repeat(h, 2, axis=2), 2, axis=3)
    h = _ref_conv_nchw(h, p["w3"], p["b3"], jax.nn.relu)
    t = _ref_conv_nchw(h, p["w4a"], p["b4a"], jax.nn.relu)
    h = _ref_conv_nchw(t, p["w4b"], p["b4b"], jax.nn.relu, residual=h)
    y = _ref_conv_nchw(h, p["w5"], p["b5"], jax.nn.sigmoid)
    return y


if __name__ == "__main__":
    key = jax.random.PRNGKey(0)
    kx, kp = jax.random.split(key)

    batch, channels, height, width = 2, 4, 16, 16
    x = jax.random.uniform(kx, (batch, channels, height, width), jnp.float32)
    params = init_params(channels, kp)

    y = jax.block_until_ready(up_sampling_ae_forward(x, params))
    assert y.shape == (batch, channels, 2 * height, 2 * width), y.shape

    y_ref = jax.block_until_ready(ref_forward(x, params))
    max_err = float(jnp.max(jnp.abs(y - y_ref)))
    assert jnp.allclose(y, y_ref, atol=1e-3, rtol=1e-3), max_err

    print("KERNEL_OK")
</pallas_src>

<mosaic_0001>
module attributes {stable_mosaic.version = 11 : i64} {
  func.func @_fused_ae_kernel(%arg0: i32, %arg1: memref<1x4x256xf32, #tpu.memory_space<vmem>>, %arg2: memref<49x4x4xf32, #tpu.memory_space<vmem>>, %arg3: memref<4x1xf32, #tpu.memory_space<vmem>>, %arg4: memref<7x256xf32, #tpu.memory_space<vmem>>, %arg5: memref<9x4x4xf32, #tpu.memory_space<vmem>>, %arg6: memref<4x1xf32, #tpu.memory_space<vmem>>, %arg7: memref<9x4x4xf32, #tpu.memory_space<vmem>>, %arg8: memref<4x1xf32, #tpu.memory_space<vmem>>, %arg9: memref<3x256xf32, #tpu.memory_space<vmem>>, %arg10: memref<9x4x4xf32, #tpu.memory_space<vmem>>, %arg11: memref<4x1xf32, #tpu.memory_space<vmem>>, %arg12: memref<9x4x4xf32, #tpu.memory_space<vmem>>, %arg13: memref<4x1xf32, #tpu.memory_space<vmem>>, %arg14: memref<9x4x4xf32, #tpu.memory_space<vmem>>, %arg15: memref<4x1xf32, #tpu.memory_space<vmem>>, %arg16: memref<9x4x4xf32, #tpu.memory_space<vmem>>, %arg17: memref<4x1xf32, #tpu.memory_space<vmem>>, %arg18: memref<3x1024xf32, #tpu.memory_space<vmem>>, %arg19: memref<256x1024xf32, #tpu.memory_space<vmem>>, %arg20: memref<1x4x1024xf32, #tpu.memory_space<vmem>>, %arg21: memref<4x358xf32, #tpu.memory_space<vmem>>, %arg22: memref<4x290xf32, #tpu.memory_space<vmem>>, %arg23: memref<4x1090xf32, #tpu.memory_space<vmem>>) attributes {dimension_semantics = [#tpu.dimension_semantics<parallel>], iteration_bounds = array<i64: 2>, scalar_prefetch = 0 : i64, scratch_operands = 3 : i64, tpu.core_type = #tpu.core_type<tc>, window_params = [{transform_indices = @transform_0, window_bounds = array<i64: 1, 4, 256>}, {pipeline_mode = #tpu.pipeline_mode<synchronous>, transform_indices = @transform_1, window_bounds = array<i64: 49, 4, 4>}, {pipeline_mode = #tpu.pipeline_mode<synchronous>, transform_indices = @transform_2, window_bounds = array<i64: 4, 1>}, {pipeline_mode = #tpu.pipeline_mode<synchronous>, transform_indices = @transform_3, window_bounds = array<i64: 7, 256>}, {pipeline_mode = #tpu.pipeline_mode<synchronous>, transform_indices = @transform_4, window_bounds = array<i64: 9, 4, 4>}, {pipeline_mode = #tpu.pipeline_mode<synchronous>, transform_indices = @transform_5, window_bounds = array<i64: 4, 1>}, {pipeline_mode = #tpu.pipeline_mode<synchronous>, transform_indices = @transform_6, window_bounds = array<i64: 9, 4, 4>}, {pipeline_mode = #tpu.pipeline_mode<synchronous>, transform_indices = @transform_7, window_bounds = array<i64: 4, 1>}, {pipeline_mode = #tpu.pipeline_mode<synchronous>, transform_indices = @transform_8, window_bounds = array<i64: 3, 256>}, {pipeline_mode = #tpu.pipeline_mode<synchronous>, transform_indices = @transform_9, window_bounds = array<i64: 9, 4, 4>}, {pipeline_mode = #tpu.pipeline_mode<synchronous>, transform_indices = @transform_10, window_bounds = array<i64: 4, 1>}, {pipeline_mode = #tpu.pipeline_mode<synchronous>, transform_indices = @transform_11, window_bounds = array<i64: 9, 4, 4>}, {pipeline_mode = #tpu.pipeline_mode<synchronous>, transform_indices = @transform_12, window_bounds = array<i64: 4, 1>}, {pipeline_mode = #tpu.pipeline_mode<synchronous>, transform_indices = @transform_13, window_bounds = array<i64: 9, 4, 4>}, {pipeline_mode = #tpu.pipeline_mode<synchronous>, transform_indices = @transform_14, window_bounds = array<i64: 4, 1>}, {pipeline_mode = #tpu.pipeline_mode<synchronous>, transform_indices = @transform_15, window_bounds = array<i64: 9, 4, 4>}, {pipeline_mode = #tpu.pipeline_mode<synchronous>, transform_indices = @transform_16, window_bounds = array<i64: 4, 1>}, {pipeline_mode = #tpu.pipeline_mode<synchronous>, transform_indices = @transform_17, window_bounds = array<i64: 3, 1024>}, {pipeline_mode = #tpu.pipeline_mode<synchronous>, transform_indices = @transform_18, window_bounds = array<i64: 256, 1024>}, {transform_indices = @transform_19, window_bounds = array<i64: 1, 4, 1024>}]} {
    %cst = arith.constant 0.000000e+00 : f32
    %0 = vector.broadcast %cst : f32 to vector<4x51xf32>
    %c0 = arith.constant 0 : index
    %c0_0 = arith.constant 0 : index
    %1 = vector.load %arg21[%c0, %c0_0] : memref<4x358xf32, #tpu.memory_space<vmem>>, vector<4x51xf32>
    tpu.vector_store %arg21[%c0, %c0_0], %0 {strides = array<i32>} : memref<4x358xf32, #tpu.memory_space<vmem>>, vector<4x51xf32>,
    %cst_1 = arith.constant 0.000000e+00 : f32
    %2 = vector.broadcast %cst_1 : f32 to vector<4x51xf32>
    %c0_2 = arith.constant 0 : index
    %c307 = arith.constant 307 : index
    %3 = vector.load %arg21[%c0_2, %c307] : memref<4x358xf32, #tpu.memory_space<vmem>>, vector<4x51xf32>
    tpu.vector_store %arg21[%c0_2, %c307], %2 {strides = array<i32>} : memref<4x358xf32, #tpu.memory_space<vmem>>, vector<4x51xf32>,
    %cst_3 = arith.constant 0.000000e+00 : f32
    %4 = vector.broadcast %cst_3 : f32 to vector<4x17xf32>
    %c0_4 = arith.constant 0 : index
    %c0_5 = arith.constant 0 : index
    %5 = vector.load %arg22[%c0_4, %c0_5] : memref<4x290xf32, #tpu.memory_space<vmem>>, vector<4x17xf32>
    tpu.vector_store %arg22[%c0_4, %c0_5], %4 {strides = array<i32>} : memref<4x290xf32, #tpu.memory_space<vmem>>, vector<4x17xf32>,
    %cst_6 = arith.constant 0.000000e+00 : f32
    %6 = vector.broadcast %cst_6 : f32 to vector<4x17xf32>
    %c0_7 = arith.constant 0 : index
    %c273 = arith.constant 273 : index
    %7 = vector.load %arg22[%c0_7, %c273] : memref<4x290xf32, #tpu.memory_space<vmem>>, vector<4x17xf32>
    tpu.vector_store %arg22[%c0_7, %c273], %6 {strides = array<i32>} : memref<4x290xf32, #tpu.memory_space<vmem>>, vector<4x17xf32>,
    %cst_8 = arith.constant 0.000000e+00 : f32
    %8 = vector.broadcast %cst_8 : f32 to vector<4x33xf32>
    %c0_9 = arith.constant 0 : index
    %c0_10 = arith.constant 0 : index
    %9 = vector.load %arg23[%c0_9, %c0_10] : memref<4x1090xf32, #tpu.memory_space<vmem>>, vector<4x33xf32>
    tpu.vector_store %arg23[%c0_9, %c0_10], %8 {strides = array<i32>} : memref<4x1090xf32, #tpu.memory_space<vmem>>, vector<4x33xf32>,
    %cst_11 = arith.constant 0.000000e+00 : f32
    %10 = vector.broadcast %cst_11 : f32 to vector<4x33xf32>
    %c0_12 = arith.constant 0 : index
    %c1057 = arith.constant 1057 : index
    %11 = vector.load %arg23[%c0_12, %c1057] : memref<4x1090xf32, #tpu.memory_space<vmem>>, vector<4x33xf32>
    tpu.vector_store %arg23[%c0_12, %c1057], %10 {strides = array<i32>} : memref<4x1090xf32, #tpu.memory_space<vmem>>, vector<4x33xf32>,
    %c0_13 = arith.constant 0 : index
    %c0_14 = arith.constant 0 : index
    %c0_15 = arith.constant 0 : index
    %12 = vector.load %arg1[%c0_13, %c0_14, %c0_15] : memref<1x4x256xf32, #tpu.memory_space<vmem>>, vector<1x4x256xf32>
    %13 = vector.shape_cast %12 : vector<1x4x256xf32> to vector<4x256xf32>
    %c0_16 = arith.constant 0 : index
    %c51 = arith.constant 51 : index
    %14 = vector.load %arg21[%c0_16, %c51] : memref<4x358xf32, #tpu.memory_space<vmem>>, vector<4x256xf32>
    tpu.vector_store %arg21[%c0_16, %c51], %13 {strides = array<i32>} : memref<4x358xf32, #tpu.memory_space<vmem>>, vector<4x256xf32>,
    %cst_17 = arith.constant 0.000000e+00 : f32
    %15 = vector.broadcast %cst_17 : f32 to vector<4x256xf32>
    %c0_18 = arith.constant 0 : index
    %c0_19 = arith.constant 0 : index
    %16 = vector.load %arg3[%c0_18, %c0_19] : memref<4x1xf32, #tpu.memory_space<vmem>>, vector<4x1xf32>
    %17 = vector.broadcast %16 : vector<4x1xf32> to vector<4x256xf32>
    %18 = arith.addf %15, %17 : vector<4x256xf32>
    %c0_20 = arith.constant 0 : index
    %c0_21 = arith.constant 0 : index
    %19 = vector.load %arg21[%c0_20, %c0_21] : memref<4x358xf32, #tpu.memory_space<vmem>>, vector<4x256xf32>
    %c0_22 = arith.constant 0 : index
    %c0_23 = arith.constant 0 : index
    %20 = vector.load %arg4[%c0_22, %c0_23] : memref<7x256xf32, #tpu.memory_space<vmem>>, vector<1x256xf32>
    %21 = vector.broadcast %20 : vector<1x256xf32> to vector<4x256xf32>
    %22 = arith.mulf %19, %21 : vector<4x256xf32>
    %c0_24 = arith.constant 0 : index
    %c0_25 = arith.constant 0 : index
    %c0_26 = arith.constant 0 : index
    %23 = vector.load %arg2[%c0_24, %c0_25, %c0_26] : memref<49x4x4xf32, #tpu.memory_space<vmem>>, vector<1x4x4xf32>
    %24 = vector.shape_cast %23 : vector<1x4x4xf32> to vector<4x4xf32>
    %cst_27 = arith.constant dense<0.000000e+00> : vector<4x256xf32>
    %25 = tpu.matmul %24, %22, %cst_27 {dimension_numbers = #tpu.dot_dimension_numbers<[1], [0], [0], [1], [0, 0, 1, 1], [], []>} : vector<4x4xf32>, vector<4x256xf32>, vector<4x256xf32> -> vector<4x256xf32>
    %26 = arith.addf %18, %25 : vector<4x256xf32>
    %c0_28 = arith.constant 0 : index
    %c1 = arith.constant 1 : index
    %27 = vector.load %arg21[%c0_28, %c1] : memref<4x358xf32, #tpu.memory_space<vmem>>, vector<4x256xf32>
    %c1_29 = arith.constant 1 : index
    %c0_30 = arith.constant 0 : index
    %28 = vector.load %arg4[%c1_29, %c0_30] : memref<7x256xf32, #tpu.memory_space<vmem>>, vector<1x256xf32>
    %29 = vector.broadcast %28 : vector<1x256xf32> to vector<4x256xf32>
    %30 = arith.mulf %27, %29 : vector<4x256xf32>
    %c1_31 = arith.constant 1 : index
    %c0_32 = arith.constant 0 : index
    %c0_33 = arith.constant 0 : index
    %31 = vector.load %arg2[%c1_31, %c0_32, %c0_33] : memref<49x4x4xf32, #tpu.memory_space<vmem>>, vector<1x4x4xf32>
    %32 = vector.shape_cast %31 : vector<1x4x4xf32> to vector<4x4xf32>
    %cst_34 = arith.constant dense<0.000000e+00> : vector<4x256xf32>
    %33 = tpu.matmul %32, %30, %cst_34 {dimension_numbers = #tpu.dot_dimension_numbers<[1], [0], [0], [1], [0, 0, 1, 1], [], []>} : vector<4x4xf32>, vector<4x256xf32>, vector<4x256xf32> -> vector<4x256xf32>
    %34 = arith.addf %26, %33 : vector<4x256xf32>
    %c0_35 = arith.constant 0 : index
    %c2 = arith.constant 2 : index
    %35 = vector.load %arg21[%c0_35, %c2] : memref<4x358xf32, #tpu.memory_space<vmem>>, vector<4x256xf32>
    %c2_36 = arith.constant 2 : index
    %c0_37 = arith.constant 0 : index
    %36 = vector.load %arg4[%c2_36, %c0_37] : memref<7x256xf32, #tpu.memory_space<vmem>>, vector<1x256xf32>
    %37 = vector.broadcast %36 : vector<1x256xf32> to vector<4x256xf32>
    %38 = arith.mulf %35, %37 : vector<4x256xf32>
    %c2_38 = arith.constant 2 : index
    %c0_39 = arith.constant 0 : index
    %c0_40 = arith.constant 0 : index
    %39 = vector.load %arg2[%c2_38, %c0_39, %c0_40] : memref<49x4x4xf32, #tpu.memory_space<vmem>>, vector<1x4x4xf32>
    %40 = vector.shape_cast %39 : vector<1x4x4xf32> to vector<4x4xf32>
    %cst_41 = arith.constant dense<0.000000e+00> : vector<4x256xf32>
    %41 = tpu.matmul %40, %38, %cst_41 {dimension_numbers = #tpu.dot_dimension_numbers<[1], [0], [0], [1], [0, 0, 1, 1], [], []>} : vector<4x4xf32>, vector<4x256xf32>, vector<4x256xf32> -> vector<4x256xf32>
    %42 = arith.addf %34, %41 : vector<4x256xf32>
    %c0_42 = arith.constant 0 : index
    %c3 = arith.constant 3 : index
    %43 = vector.load %arg21[%c0_42, %c3] : memref<4x358xf32, #tpu.memory_space<vmem>>, vector<4x256xf32>
    %c3_43 = arith.constant 3 : index
    %c0_44 = arith.constant 0 : index
    %c0_45 = arith.constant 0 : index
    %44 = vector.load %arg2[%c3_43, %c0_44, %c0_45] : memref<49x4x4xf32, #tpu.memory_space<vmem>>, vector<1x4x4xf32>
    %45 = vector.shape_cast %44 : vector<1x4x4xf32> to vector<4x4xf32>
    %cst_46 = arith.constant dense<0.000000e+00> : vector<4x256xf32>
    %46 = tpu.matmul %45, %43, %cst_46 {dimension_numbers = #tpu.dot_dimension_numbers<[1], [0], [0], [1], [0, 0, 1, 1], [], []>} : vector<4x4xf32>, vector<4x256xf32>, vector<4x256xf32> -> vector<4x256xf32>
    %47 = arith.addf %42, %46 : vector<4x256xf32>
    %c0_47 = arith.constant 0 : index
    %c4 = arith.constant 4 : index
    %48 = vector.load %arg21[%c0_47, %c4] : memref<4x358xf32, #tpu.memory_space<vmem>>, vector<4x256xf32>
    %c4_48 = arith.constant 4 : index
    %c0_49 = arith.constant 0 : index
    %49 = vector.load %arg4[%c4_48, %c0_49] : memref<7x256xf32, #tpu.memory_space<vmem>>, vector<1x256xf32>
    %50 = vector.broadcast %49 : vector<1x256xf32> to vector<4x256xf32>
    %51 = arith.mulf %48, %50 : vector<4x256xf32>
    %c4_50 = arith.constant 4 : index
    %c0_51 = arith.constant 0 : index
    %c0_52 = arith.constant 0 : index
    %52 = vector.load %arg2[%c4_50, %c0_51, %c0_52] : memref<49x4x4xf32, #tpu.memory_space<vmem>>, vector<1x4x4xf32>
    %53 = vector.shape_cast %52 : vector<1x4x4xf32> to vector<4x4xf32>
    %cst_53 = arith.constant dense<0.000000e+00> : vector<4x256xf32>
    %54 = tpu.matmul %53, %51, %cst_53 {dimension_numbers = #tpu.dot_dimension_numbers<[1], [0], [0], [1], [0, 0, 1, 1], [], []>} : vector<4x4xf32>, vector<4x256xf32>, vector<4x256xf32> -> vector<4x256xf32>
    %55 = arith.addf %47, %54 : vector<4x256xf32>
    %c0_54 = arith.constant 0 : index
    %c5 = arith.constant 5 : index
    %56 = vector.load %arg21[%c0_54, %c5] : memref<4x358xf32, #tpu.memory_space<vmem>>, vector<4x256xf32>
    %c5_55 = arith.constant 5 : index
    %c0_56 = arith.constant 0 : index
    %57 = vector.load %arg4[%c5_55, %c0_56] : memref<7x256xf32, #tpu.memory_space<vmem>>, vector<1x256xf32>
    %58 = vector.broadcast %57 : vector<1x256xf32> to vector<4x256xf32>
    %59 = arith.mulf %56, %58 : vector<4x256xf32>
    %c5_57 = arith.constant 5 : index
    %c0_58 = arith.constant 0 : index
    %c0_59 = arith.constant 0 : index
    %60 = vector.load %arg2[%c5_57, %c0_58, %c0_59] : memref<49x4x4xf32, #tpu.memory_space<vmem>>, vector<1x4x4xf32>
    %61 = vector.shape_cast %60 : vector<1x4x4xf32> to vector<4x4xf32>
    %cst_60 = arith.constant dense<0.000000e+00> : vector<4x256xf32>
    %62 = tpu.matmul %61, %59, %cst_60 {dimension_numbers = #tpu.dot_dimension_numbers<[1], [0], [0], [1], [0, 0, 1, 1], [], []>} : vector<4x4xf32>, vector<4x256xf32>, vector<4x256xf32> -> vector<4x256xf32>
    %63 = arith.addf %55, %62 : vector<4x256xf32>
    %c0_61 = arith.constant 0 : index
    %c6 = arith.constant 6 : index
    %64 = vector.load %arg21[%c0_61, %c6] : memref<4x358xf32, #tpu.memory_space<vmem>>, vector<4x256xf32>
    %c6_62 = arith.constant 6 : index
    %c0_63 = arith.constant 0 : index
    %65 = vector.load %arg4[%c6_62, %c0_63] : memref<7x256xf32, #tpu.memory_space<vmem>>, vector<1x256xf32>
    %66 = vector.broadcast %65 : vector<1x256xf32> to vector<4x256xf32>
    %67 = arith.mulf %64, %66 : vector<4x256xf32>
    %c6_64 = arith.constant 6 : index
    %c0_65 = arith.constant 0 : index
    %c0_66 = arith.constant 0 : index
    %68 = vector.load %arg2[%c6_64, %c0_65, %c0_66] : memref<49x4x4xf32, #tpu.memory_space<vmem>>, vector<1x4x4xf32>
    %69 = vector.shape_cast %68 : vector<1x4x4xf32> to vector<4x4xf32>
    %cst_67 = arith.constant dense<0.000000e+00> : vector<4x256xf32>
    %70 = tpu.matmul %69, %67, %cst_67 {dimension_numbers = #tpu.dot_dimension_numbers<[1], [0], [0], [1], [0, 0, 1, 1], [], []>} : vector<4x4xf32>, vector<4x256xf32>, vector<4x256xf32> -> vector<4x256xf32>
    %71 = arith.addf %63, %70 : vector<4x256xf32>
    %c0_68 = arith.constant 0 : index
    %c16 = arith.constant 16 : index
    %72 = vector.load %arg21[%c0_68, %c16] : memref<4x358xf32, #tpu.memory_space<vmem>>, vector<4x256xf32>
    %c0_69 = arith.constant 0 : index
    %c0_70 = arith.constant 0 : index
    %73 = vector.load %arg4[%c0_69, %c0_70] : memref<7x256xf32, #tpu.memory_space<vmem>>, vector<1x256xf32>
    %74 = vector.broadcast %73 : vector<1x256xf32> to vector<4x256xf32>
    %75 = arith.mulf %72, %74 : vector<4x256xf32>
    %c7 = arith.constant 7 : index
    %c0_71 = arith.constant 0 : index
    %c0_72 = arith.constant 0 : index
    %76 = vector.load %arg2[%c7, %c0_71, %c0_72] : memref<49x4x4xf32, #tpu.memory_space<vmem>>, vector<1x4x4xf32>
    %77 = vector.shape_cast %76 : vector<1x4x4xf32> to vector<4x4xf32>
    %cst_73 = arith.constant dense<0.000000e+00> : vector<4x256xf32>
    %78 = tpu.matmul %77, %75, %cst_73 {dimension_numbers = #tpu.dot_dimension_numbers<[1], [0], [0], [1], [0, 0, 1, 1], [], []>} : vector<4x4xf32>, vector<4x256xf32>, vector<4x256xf32> -> vector<4x256xf32>
    %79 = arith.addf %71, %78 : vector<4x256xf32>
    %c0_74 = arith.constant 0 : index
    %c17 = arith.constant 17 : index
    %80 = vector.load %arg21[%c0_74, %c17] : memref<4x358xf32, #tpu.memory_space<vmem>>, vector<4x256xf32>
    %c1_75 = arith.constant 1 : index
    %c0_76 = arith.constant 0 : index
    %81 = vector.load %arg4[%c1_75, %c0_76] : memref<7x256xf32, #tpu.memory_space<vmem>>, vector<1x256xf32>
    %82 = vector.broadcast %81 : vector<1x256xf32> to vector<4x256xf32>
    %83 = arith.mulf %80, %82 : vector<4x256xf32>
    %c8 = arith.constant 8 : index
    %c0_77 = arith.constant 0 : index
    %c0_78 = arith.constant 0 : index
    %84 = vector.load %arg2[%c8, %c0_77, %c0_78] : memref<49x4x4xf32, #tpu.memory_space<vmem>>, vector<1x4x4xf32>
    %85 = vector.shape_cast %84 : vector<1x4x4xf32> to vector<4x4xf32>
    %cst_79 = arith.constant dense<0.000000e+00> : vector<4x256xf32>
    %86 = tpu.matmul %85, %83, %cst_79 {dimension_numbers = #tpu.dot_dimension_numbers<[1], [0], [0], [1], [0, 0, 1, 1], [], []>} : vector<4x4xf32>, vector<4x256xf32>, vector<4x256xf32> -> vector<4x256xf32>
    %87 = arith.addf %79, %86 : vector<4x256xf32>
    %c0_80 = arith.constant 0 : index
    %c18 = arith.constant 18 : index
    %88 = vector.load %arg21[%c0_80, %c18] : memref<4x358xf32, #tpu.memory_space<vmem>>, vector<4x256xf32>
    %c2_81 = arith.constant 2 : index
    %c0_82 = arith.constant 0 : index
    %89 = vector.load %arg4[%c2_81, %c0_82] : memref<7x256xf32, #tpu.memory_space<vmem>>, vector<1x256xf32>
    %90 = vector.broadcast %89 : vector<1x256xf32> to vector<4x256xf32>
    %91 = arith.mulf %88, %90 : vector<4x256xf32>
    %c9 = arith.constant 9 : index
    %c0_83 = arith.constant 0 : index
    %c0_84 = arith.constant 0 : index
    %92 = vector.load %arg2[%c9, %c0_83, %c0_84] : memref<49x4x4xf32, #tpu.memory_space<vmem>>, vector<1x4x4xf32>
    %93 = vector.shape_cast %92 : vector<1x4x4xf32> to vector<4x4xf32>
    %cst_85 = arith.constant dense<0.000000e+00> : vector<4x256xf32>
    %94 = tpu.matmul %93, %91, %cst_85 {dimension_numbers = #tpu.dot_dimension_numbers<[1], [0], [0], [1], [0, 0, 1, 1], [], []>} : vector<4x4xf32>, vector<4x256xf32>, vector<4x256xf32> -> vector<4x256xf32>
    %95 = arith.addf %87, %94 : vector<4x256xf32>
    %c0_86 = arith.constant 0 : index
    %c19 = arith.constant 19 : index
    %96 = vector.load %arg21[%c0_86, %c19] : memref<4x358xf32, #tpu.memory_space<vmem>>, vector<4x256xf32>
    %c10 = arith.constant 10 : index
    %c0_87 = arith.constant 0 : index
    %c0_88 = arith.constant 0 : index
    %97 = vector.load %arg2[%c10, %c0_87, %c0_88] : memref<49x4x4xf32, #tpu.memory_space<vmem>>, vector<1x4x4xf32>
    %98 = vector.shape_cast %97 : vector<1x4x4xf32> to vector<4x4xf32>
    %cst_89 = arith.constant dense<0.000000e+00> : vector<4x256xf32>
    %99 = tpu.matmul %98, %96, %cst_89 {dimension_numbers = #tpu.dot_dimension_numbers<[1], [0], [0], [1], [0, 0, 1, 1], [], []>} : vector<4x4xf32>, vector<4x256xf32>, vector<4x256xf32> -> vector<4x256xf32>
    %100 = arith.addf %95, %99 : vector<4x256xf32>
    %c0_90 = arith.constant 0 : index
    %c20 = arith.constant 20 : index
    %101 = vector.load %arg21[%c0_90, %c20] : memref<4x358xf32, #tpu.memory_space<vmem>>, vector<4x256xf32>
    %c4_91 = arith.constant 4 : index
    %c0_92 = arith.constant 0 : index
    %102 = vector.load %arg4[%c4_91, %c0_92] : memref<7x256xf32, #tpu.memory_space<vmem>>, vector<1x256xf32>
    %103 = vector.broadcast %102 : vector<1x256xf32> to vector<4x256xf32>
    %104 = arith.mulf %101, %103 : vector<4x256xf32>
    %c11 = arith.constant 11 : index
    %c0_93 = arith.constant 0 : index
    %c0_94 = arith.constant 0 : index
    %105 = vector.load %arg2[%c11, %c0_93, %c0_94] : memref<49x4x4xf32, #tpu.memory_space<vmem>>, vector<1x4x4xf32>
    %106 = vector.shape_cast %105 : vector<1x4x4xf32> to vector<4x4xf32>
    %cst_95 = arith.constant dense<0.000000e+00> : vector<4x256xf32>
    %107 = tpu.matmul %106, %104, %cst_95 {dimension_numbers = #tpu.dot_dimension_numbers<[1], [0], [0], [1], [0, 0, 1, 1], [], []>} : vector<4x4xf32>, vector<4x256xf32>, vector<4x256xf32> -> vector<4x256xf32>
    %108 = arith.addf %100, %107 : vector<4x256xf32>
    %c0_96 = arith.constant 0 : index
    %c21 = arith.constant 21 : index
    %109 = vector.load %arg21[%c0_96, %c21] : memref<4x358xf32, #tpu.memory_space<vmem>>, vector<4x256xf32>
    %c5_97 = arith.constant 5 : index
    %c0_98 = arith.constant 0 : index
    %110 = vector.load %arg4[%c5_97, %c0_98] : memref<7x256xf32, #tpu.memory_space<vmem>>, vector<1x256xf32>
    %111 = vector.broadcast %110 : vector<1x256xf32> to vector<4x256xf32>
    %112 = arith.mulf %109, %111 : vector<4x256xf32>
    %c12 = arith.constant 12 : index
    %c0_99 = arith.constant 0 : index
    %c0_100 = arith.constant 0 : index
    %113 = vector.load %arg2[%c12, %c0_99, %c0_100] : memref<49x4x4xf32, #tpu.memory_space<vmem>>, vector<1x4x4xf32>
    %114 = vector.shape_cast %113 : vector<1x4x4xf32> to vector<4x4xf32>
    %cst_101 = arith.constant dense<0.000000e+00> : vector<4x256xf32>
    %115 = tpu.matmul %114, %112, %cst_101 {dimension_numbers = #tpu.dot_dimension_numbers<[1], [0], [0], [1], [0, 0, 1, 1], [], []>} : vector<4x4xf32>, vector<4x256xf32>, vector<4x256xf32> -> vector<4x256xf32>
    %116 = arith.addf %108, %115 : vector<4x256xf32>
    %c0_102 = arith.constant 0 : index
    %c22 = arith.constant 22 : index
    %117 = vector.load %arg21[%c0_102, %c22] : memref<4x358xf32, #tpu.memory_space<vmem>>, vector<4x256xf32>
    %c6_103 = arith.constant 6 : index
    %c0_104 = arith.constant 0 : index
    %118 = vector.load %arg4[%c6_103, %c0_104] : memref<7x256xf32, #tpu.memory_space<vmem>>, vector<1x256xf32>
    %119 = vector.broadcast %118 : vector<1x256xf32> to vector<4x256xf32>
    %120 = arith.mulf %117, %119 : vector<4x256xf32>
    %c13 = arith.constant 13 : index
    %c0_105 = arith.constant 0 : index
    %c0_106 = arith.constant 0 : index
    %121 = vector.load %arg2[%c13, %c0_105, %c0_106] : memref<49x4x4xf32, #tpu.memory_space<vmem>>, vector<1x4x4xf32>
    %122 = vector.shape_cast %121 : vector<1x4x4xf32> to vector<4x4xf32>
    %cst_107 = arith.constant dense<0.000000e+00> : vector<4x256xf32>
    %123 = tpu.matmul %122, %120, %cst_107 {dimension_numbers = #tpu.dot_dimension_numbers<[1], [0], [0], [1], [0, 0, 1, 1], [], []>} : vector<4x4xf32>, vector<4x256xf32>, vector<4x256xf32> -> vector<4x256xf32>
    %124 = arith.addf %116, %123 : vector<4x256xf32>
    %c0_108 = arith.constant 0 : index
    %c32 = arith.constant 32 : index
    %125 = vector.load %arg21[%c0_108, %c32] : memref<4x358xf32, #tpu.memory_space<vmem>>, vector<4x256xf32>
    %c0_109 = arith.constant 0 : index
    %c0_110 = arith.constant 0 : index
    %126 = vector.load %arg4[%c0_109, %c0_110] : memref<7x256xf32, #tpu.memory_space<vmem>>, vector<1x256xf32>
    %127 = vector.broadcast %126 : vector<1x256xf32> to vector<4x256xf32>
    %128 = arith.mulf %125, %127 : vector<4x256xf32>
    %c14 = arith.constant 14 : index
    %c0_111 = arith.constant 0 : index
    %c0_112 = arith.constant 0 : index
    %129 = vector.load %arg2[%c14, %c0_111, %c0_112] : memref<49x4x4xf32, #tpu.memory_space<vmem>>, vector<1x4x4xf32>
    %130 = vector.shape_cast %129 : vector<1x4x4xf32> to vector<4x4xf32>
    %cst_113 = arith.constant dense<0.000000e+00> : vector<4x256xf32>
    %131 = tpu.matmul %130, %128, %cst_113 {dimension_numbers = #tpu.dot_dimension_numbers<[1], [0], [0], [1], [0, 0, 1, 1], [], []>} : vector<4x4xf32>, vector<4x256xf32>, vector<4x256xf32> -> vector<4x256xf32>
    %132 = arith.addf %124, %131 : vector<4x256xf32>
    %c0_114 = arith.constant 0 : index
    %c33 = arith.constant 33 : index
    %133 = vector.load %arg21[%c0_114, %c33] : memref<4x358xf32, #tpu.memory_space<vmem>>, vector<4x256xf32>
    %c1_115 = arith.constant 1 : index
    %c0_116 = arith.constant 0 : index
    %134 = vector.load %arg4[%c1_115, %c0_116] : memref<7x256xf32, #tpu.memory_space<vmem>>, vector<1x256xf32>
    %135 = vector.broadcast %134 : vector<1x256xf32> to vector<4x256xf32>
    %136 = arith.mulf %133, %135 : vector<4x256xf32>
    %c15 = arith.constant 15 : index
    %c0_117 = arith.constant 0 : index
    %c0_118 = arith.constant 0 : index
    %137 = vector.load %arg2[%c15, %c0_117, %c0_118] : memref<49x4x4xf32, #tpu.memory_space<vmem>>, vector<1x4x4xf32>
    %138 = vector.shape_cast %137 : vector<1x4x4xf32> to vector<4x4xf32>
    %cst_119 = arith.constant dense<0.000000e+00> : vector<4x256xf32>
    %139 = tpu.matmul %138, %136, %cst_119 {dimension_numbers = #tpu.dot_dimension_numbers<[1], [0], [0], [1], [0, 0, 1, 1], [], []>} : vector<4x4xf32>, vector<4x256xf32>, vector<4x256xf32> -> vector<4x256xf32>
    %140 = arith.addf %132, %139 : vector<4x256xf32>
    %c0_120 = arith.constant 0 : index
    %c34 = arith.constant 34 : index
    %141 = vector.load %arg21[%c0_120, %c34] : memref<4x358xf32, #tpu.memory_space<vmem>>, vector<4x256xf32>
    %c2_121 = arith.constant 2 : index
    %c0_122 = arith.constant 0 : index
    %142 = vector.load %arg4[%c2_121, %c0_122] : memref<7x256xf32, #tpu.memory_space<vmem>>, vector<1x256xf32>
    %143 = vector.broadcast %142 : vector<1x256xf32> to vector<4x256xf32>
    %144 = arith.mulf %141, %143 : vector<4x256xf32>
    %c16_123 = arith.constant 16 : index
    %c0_124 = arith.constant 0 : index
    %c0_125 = arith.constant 0 : index
    %145 = vector.load %arg2[%c16_123, %c0_124, %c0_125] : memref<49x4x4xf32, #tpu.memory_space<vmem>>, vector<1x4x4xf32>
    %146 = vector.shape_cast %145 : vector<1x4x4xf32> to vector<4x4xf32>
    %cst_126 = arith.constant dense<0.000000e+00> : vector<4x256xf32>
    %147 = tpu.matmul %146, %144, %cst_126 {dimension_numbers = #tpu.dot_dimension_numbers<[1], [0], [0], [1], [0, 0, 1, 1], [], []>} : vector<4x4xf32>, vector<4x256xf32>, vector<4x256xf32> -> vector<4x256xf32>
    %148 = arith.addf %140, %147 : vector<4x256xf32>
    %c0_127 = arith.constant 0 : index
    %c35 = arith.constant 35 : index
    %149 = vector.load %arg21[%c0_127, %c35] : memref<4x358xf32, #tpu.memory_space<vmem>>, vector<4x256xf32>
    %c17_128 = arith.constant 17 : index
    %c0_129 = arith.constant 0 : index
    %c0_130 = arith.constant 0 : index
    %150 = vector.load %arg2[%c17_128, %c0_129, %c0_130] : memref<49x4x4xf32, #tpu.memory_space<vmem>>, vector<1x4x4xf32>
    %151 = vector.shape_cast %150 : vector<1x4x4xf32> to vector<4x4xf32>
    %cst_131 = arith.constant dense<0.000000e+00> : vector<4x256xf32>
    %152 = tpu.matmul %151, %149, %cst_131 {dimension_numbers = #tpu.dot_dimension_numbers<[1], [0], [0], [1], [0, 0, 1, 1], [], []>} : vector<4x4xf32>, vector<4x256xf32>, vector<4x256xf32> -> vector<4x256xf32>
    %153 = arith.addf %148, %152 : vector<4x256xf32>
    %c0_132 = arith.constant 0 : index
    %c36 = arith.constant 36 : index
    %154 = vector.load %arg21[%c0_132, %c36] : memref<4x358xf32, #tpu.memory_space<vmem>>, vector<4x256xf32>
    %c4_133 = arith.constant 4 : index
    %c0_134 = arith.constant 0 : index
    %155 = vector.load %arg4[%c4_133, %c0_134] : memref<7x256xf32, #tpu.memory_space<vmem>>, vector<1x256xf32>
    %156 = vector.broadcast %155 : vector<1x256xf32> to vector<4x256xf32>
    %157 = arith.mulf %154, %156 : vector<4x256xf32>
    %c18_135 = arith.constant 18 : index
    %c0_136 = arith.constant 0 : index
    %c0_137 = arith.constant 0 : index
    %158 = vector.load %arg2[%c18_135, %c0_136, %c0_137] : memref<49x4x4xf32, #tpu.memory_space<vmem>>, vector<1x4x4xf32>
    %159 = vector.shape_cast %158 : vector<1x4x4xf32> to vector<4x4xf32>
    %cst_138 = arith.constant dense<0.000000e+00> : vector<4x256xf32>
    %160 = tpu.matmul %159, %157, %cst_138 {dimension_numbers = #tpu.dot_dimension_numbers<[1], [0], [0], [1], [0, 0, 1, 1], [], []>} : vector<4x4xf32>, vector<4x256xf32>, vector<4x256xf32> -> vector<4x256xf32>
    %161 = arith.addf %153, %160 : vector<4x256xf32>
    %c0_139 = arith.constant 0 : index
    %c37 = arith.constant 37 : index
    %162 = vector.load %arg21[%c0_139, %c37] : memref<4x358xf32, #tpu.memory_space<vmem>>, vector<4x256xf32>
    %c5_140 = arith.constant 5 : index
    %c0_141 = arith.constant 0 : index
    %163 = vector.load %arg4[%c5_140, %c0_141] : memref<7x256xf32, #tpu.memory_space<vmem>>, vector<1x256xf32>
    %164 = vector.broadcast %163 : vector<1x256xf32> to vector<4x256xf32>
    %165 = arith.mulf %162, %164 : vector<4x256xf32>
    %c19_142 = arith.constant 19 : index
    %c0_143 = arith.constant 0 : index
    %c0_144 = arith.constant 0 : index
    %166 = vector.load %arg2[%c19_142, %c0_143, %c0_144] : memref<49x4x4xf32, #tpu.memory_space<vmem>>, vector<1x4x4xf32>
    %167 = vector.shape_cast %166 : vector<1x4x4xf32> to vector<4x4xf32>
    %cst_145 = arith.constant dense<0.000000e+00> : vector<4x256xf32>
    %168 = tpu.matmul %167, %165, %cst_145 {dimension_numbers = #tpu.dot_dimension_numbers<[1], [0], [0], [1], [0, 0, 1, 1], [], []>} : vector<4x4xf32>, vector<4x256xf32>, vector<4x256xf32> -> vector<4x256xf32>
    %169 = arith.addf %161, %168 : vector<4x256xf32>
    %c0_146 = arith.constant 0 : index
    %c38 = arith.constant 38 : index
    %170 = vector.load %arg21[%c0_146, %c38] : memref<4x358xf32, #tpu.memory_space<vmem>>, vector<4x256xf32>
    %c6_147 = arith.constant 6 : index
    %c0_148 = arith.constant 0 : index
    %171 = vector.load %arg4[%c6_147, %c0_148] : memref<7x256xf32, #tpu.memory_space<vmem>>, vector<1x256xf32>
    %172 = vector.broadcast %171 : vector<1x256xf32> to vector<4x256xf32>
    %173 = arith.mulf %170, %172 : vector<4x256xf32>
    %c20_149 = arith.constant 20 : index
    %c0_150 = arith.constant 0 : index
    %c0_151 = arith.constant 0 : index
    %174 = vector.load %arg2[%c20_149, %c0_150, %c0_151] : memref<49x4x4xf32, #tpu.memory_space<vmem>>, vector<1x4x4xf32>
    %175 = vector.shape_cast %174 : vector<1x4x4xf32> to vector<4x4xf32>
    %cst_152 = arith.constant dense<0.000000e+00> : vector<4x256xf32>
    %176 = tpu.matmul %175, %173, %cst_152 {dimension_numbers = #tpu.dot_dimension_numbers<[1], [0], [0], [1], [0, 0, 1, 1], [], []>} : vector<4x4xf32>, vector<4x256xf32>, vector<4x256xf32> -> vector<4x256xf32>
    %177 = arith.addf %169, %176 : vector<4x256xf32>
    %c0_153 = arith.constant 0 : index
    %c48 = arith.constant 48 : index
    %178 = vector.load %arg21[%c0_153, %c48] : memref<4x358xf32, #tpu.memory_space<vmem>>, vector<4x256xf32>
    %c0_154 = arith.constant 0 : index
    %c0_155 = arith.constant 0 : index
    %179 = vector.load %arg4[%c0_154, %c0_155] : memref<7x256xf32, #tpu.memory_space<vmem>>, vector<1x256xf32>
    %180 = vector.broadcast %179 : vector<1x256xf32> to vector<4x256xf32>
    %181 = arith.mulf %178, %180 : vector<4x256xf32>
    %c21_156 = arith.constant 21 : index
    %c0_157 = arith.constant 0 : index
    %c0_158 = arith.constant 0 : index
    %182 = vector.load %arg2[%c21_156, %c0_157, %c0_158] : memref<49x4x4xf32, #tpu.memory_space<vmem>>, vector<1x4x4xf32>
    %183 = vector.shape_cast %182 : vector<1x4x4xf32> to vector<4x4xf32>
    %cst_159 = arith.constant dense<0.000000e+00> : vector<4x256xf32>
    %184 = tpu.matmul %183, %181, %cst_159 {dimension_numbers = #tpu.dot_dimension_numbers<[1], [0], [0], [1], [0, 0, 1, 1], [], []>} : vector<4x4xf32>, vector<4x256xf32>, vector<4x256xf32> -> vector<4x256xf32>
    %185 = arith.addf %177, %184 : vector<4x256xf32>
    %c0_160 = arith.constant 0 : index
    %c49 = arith.constant 49 : index
    %186 = vector.load %arg21[%c0_160, %c49] : memref<4x358xf32, #tpu.memory_space<vmem>>, vector<4x256xf32>
    %c1_161 = arith.constant 1 : index
    %c0_162 = arith.constant 0 : index
    %187 = vector.load %arg4[%c1_161, %c0_162] : memref<7x256xf32, #tpu.memory_space<vmem>>, vector<1x256xf32>
    %188 = vector.broadcast %187 : vector<1x256xf32> to vector<4x256xf32>
    %189 = arith.mulf %186, %188 : vector<4x256xf32>
    %c22_163 = arith.constant 22 : index
    %c0_164 = arith.constant 0 : index
    %c0_165 = arith.constant 0 : index
    %190 = vector.load %arg2[%c22_163, %c0_164, %c0_165] : memref<49x4x4xf32, #tpu.memory_space<vmem>>, vector<1x4x4xf32>
    %191 = vector.shape_cast %190 : vector<1x4x4xf32> to vector<4x4xf32>
    %cst_166 = arith.constant dense<0.000000e+00> : vector<4x256xf32>
    %192 = tpu.matmul %191, %189, %cst_166 {dimension_numbers = #tpu.dot_dimension_numbers<[1], [0], [0], [1], [0, 0, 1, 1], [], []>} : vector<4x4xf32>, vector<4x256xf32>, vector<4x256xf32> -> vector<4x256xf32>
    %193 = arith.addf %185, %192 : vector<4x256xf32>
    %c0_167 = arith.constant 0 : index
    %c50 = arith.constant 50 : index
    %194 = vector.load %arg21[%c0_167, %c50] : memref<4x358xf32, #tpu.memory_space<vmem>>, vector<4x256xf32>
    %c2_168 = arith.constant 2 : index
    %c0_169 = arith.constant 0 : index
    %195 = vector.load %arg4[%c2_168, %c0_169] : memref<7x256xf32, #tpu.memory_space<vmem>>, vector<1x256xf32>
    %196 = vector.broadcast %195 : vector<1x256xf32> to vector<4x256xf32>
    %197 = arith.mulf %194, %196 : vector<4x256xf32>
    %c23 = arith.constant 23 : index
    %c0_170 = arith.constant 0 : index
    %c0_171 = arith.constant 0 : index
    %198 = vector.load %arg2[%c23, %c0_170, %c0_171] : memref<49x4x4xf32, #tpu.memory_space<vmem>>, vector<1x4x4xf32>
    %199 = vector.shape_cast %198 : vector<1x4x4xf32> to vector<4x4xf32>
    %cst_172 = arith.constant dense<0.000000e+00> : vector<4x256xf32>
    %200 = tpu.matmul %199, %197, %cst_172 {dimension_numbers = #tpu.dot_dimension_numbers<[1], [0], [0], [1], [0, 0, 1, 1], [], []>} : vector<4x4xf32>, vector<4x256xf32>, vector<4x256xf32> -> vector<4x256xf32>
    %201 = arith.addf %193, %200 : vector<4x256xf32>
    %c0_173 = arith.constant 0 : index
    %c51_174 = arith.constant 51 : index
    %202 = vector.load %arg21[%c0_173, %c51_174] : memref<4x358xf32, #tpu.memory_space<vmem>>, vector<4x256xf32>
    %c24 = arith.constant 24 : index
    %c0_175 = arith.constant 0 : index
    %c0_176 = arith.constant 0 : index
    %203 = vector.load %arg2[%c24, %c0_175, %c0_176] : memref<49x4x4xf32, #tpu.memory_space<vmem>>, vector<1x4x4xf32>
    %204 = vector.shape_cast %203 : vector<1x4x4xf32> to vector<4x4xf32>
    %cst_177 = arith.constant dense<0.000000e+00> : vector<4x256xf32>
    %205 = tpu.matmul %204, %202, %cst_177 {dimension_numbers = #tpu.dot_dimension_numbers<[1], [0], [0], [1], [0, 0, 1, 1], [], []>} : vector<4x4xf32>, vector<4x256xf32>, vector<4x256xf32> -> vector<4x256xf32>
    %206 = arith.addf %201, %205 : vector<4x256xf32>
    %c0_178 = arith.constant 0 : index
    %c52 = arith.constant 52 : index
    %207 = vector.load %arg21[%c0_178, %c52] : memref<4x358xf32, #tpu.memory_space<vmem>>, vector<4x256xf32>
    %c4_179 = arith.constant 4 : index
    %c0_180 = arith.constant 0 : index
    %208 = vector.load %arg4[%c4_179, %c0_180] : memref<7x256xf32, #tpu.memory_space<vmem>>, vector<1x256xf32>
    %209 = vector.broadcast %208 : vector<1x256xf32> to vector<4x256xf32>
    %210 = arith.mulf %207, %209 : vector<4x256xf32>
    %c25 = arith.constant 25 : index
    %c0_181 = arith.constant 0 : index
    %c0_182 = arith.constant 0 : index
    %211 = vector.load %arg2[%c25, %c0_181, %c0_182] : memref<49x4x4xf32, #tpu.memory_space<vmem>>, vector<1x4x4xf32>
    %212 = vector.shape_cast %211 : vector<1x4x4xf32> to vector<4x4xf32>
    %cst_183 = arith.constant dense<0.000000e+00> : vector<4x256xf32>
    %213 = tpu.matmul %212, %210, %cst_183 {dimension_numbers = #tpu.dot_dimension_numbers<[1], [0], [0], [1], [0, 0, 1, 1], [], []>} : vector<4x4xf32>, vector<4x256xf32>, vector<4x256xf32> -> vector<4x256xf32>
    %214 = arith.addf %206, %213 : vector<4x256xf32>
    %c0_184 = arith.constant 0 : index
    %c53 = arith.constant 53 : index
    %215 = vector.load %arg21[%c0_184, %c53] : memref<4x358xf32, #tpu.memory_space<vmem>>, vector<4x256xf32>
    %c5_185 = arith.constant 5 : index
    %c0_186 = arith.constant 0 : index
    %216 = vector.load %arg4[%c5_185, %c0_186] : memref<7x256xf32, #tpu.memory_space<vmem>>, vector<1x256xf32>
    %217 = vector.broadcast %216 : vector<1x256xf32> to vector<4x256xf32>
    %218 = arith.mulf %215, %217 : vector<4x256xf32>
    %c26 = arith.constant 26 : index
    %c0_187 = arith.constant 0 : index
    %c0_188 = arith.constant 0 : index
    %219 = vector.load %arg2[%c26, %c0_187, %c0_188] : memref<49x4x4xf32, #tpu.memory_space<vmem>>, vector<1x4x4xf32>
    %220 = vector.shape_cast %219 : vector<1x4x4xf32> to vector<4x4xf32>
    %cst_189 = arith.constant dense<0.000000e+00> : vector<4x256xf32>
    %221 = tpu.matmul %220, %218, %cst_189 {dimension_numbers = #tpu.dot_dimension_numbers<[1], [0], [0], [1], [0, 0, 1, 1], [], []>} : vector<4x4xf32>, vector<4x256xf32>, vector<4x256xf32> -> vector<4x256xf32>
    %222 = arith.addf %214, %221 : vector<4x256xf32>
    %c0_190 = arith.constant 0 : index
    %c54 = arith.constant 54 : index
    %223 = vector.load %arg21[%c0_190, %c54] : memref<4x358xf32, #tpu.memory_space<vmem>>, vector<4x256xf32>
    %c6_191 = arith.constant 6 : index
    %c0_192 = arith.constant 0 : index
    %224 = vector.load %arg4[%c6_191, %c0_192] : memref<7x256xf32, #tpu.memory_space<vmem>>, vector<1x256xf32>
    %225 = vector.broadcast %224 : vector<1x256xf32> to vector<4x256xf32>
    %226 = arith.mulf %223, %225 : vector<4x256xf32>
    %c27 = arith.constant 27 : index
    %c0_193 = arith.constant 0 : index
    %c0_194 = arith.constant 0 : index
    %227 = vector.load %arg2[%c27, %c0_193, %c0_194] : memref<49x4x4xf32, #tpu.memory_space<vmem>>, vector<1x4x4xf32>
    %228 = vector.shape_cast %227 : vector<1x4x4xf32> to vector<4x4xf32>
    %cst_195 = arith.constant dense<0.000000e+00> : vector<4x256xf32>
    %229 = tpu.matmul %228, %226, %cst_195 {dimension_numbers = #tpu.dot_dimension_numbers<[1], [0], [0], [1], [0, 0, 1, 1], [], []>} : vector<4x4xf32>, vector<4x256xf32>, vector<4x256xf32> -> vector<4x256xf32>
    %230 = arith.addf %222, %229 : vector<4x256xf32>
    %c0_196 = arith.constant 0 : index
    %c64 = arith.constant 64 : index
    %231 = vector.load %arg21[%c0_196, %c64] : memref<4x358xf32, #tpu.memory_space<vmem>>, vector<4x256xf32>
    %c0_197 = arith.constant 0 : index
    %c0_198 = arith.constant 0 : index
    %232 = vector.load %arg4[%c0_197, %c0_198] : memref<7x256xf32, #tpu.memory_space<vmem>>, vector<1x256xf32>
    %233 = vector.broadcast %232 : vector<1x256xf32> to vector<4x256xf32>
    %234 = arith.mulf %231, %233 : vector<4x256xf32>
    %c28 = arith.constant 28 : index
    %c0_199 = arith.constant 0 : index
    %c0_200 = arith.constant 0 : index
    %235 = vector.load %arg2[%c28, %c0_199, %c0_200] : memref<49x4x4xf32, #tpu.memory_space<vmem>>, vector<1x4x4xf32>
    %236 = vector.shape_cast %235 : vector<1x4x4xf32> to vector<4x4xf32>
    %cst_201 = arith.constant dense<0.000000e+00> : vector<4x256xf32>
    %237 = tpu.matmul %236, %234, %cst_201 {dimension_numbers = #tpu.dot_dimension_numbers<[1], [0], [0], [1], [0, 0, 1, 1], [], []>} : vector<4x4xf32>, vector<4x256xf32>, vector<4x256xf32> -> vector<4x256xf32>
    %238 = arith.addf %230, %237 : vector<4x256xf32>
    %c0_202 = arith.constant 0 : index
    %c65 = arith.constant 65 : index
    %239 = vector.load %arg21[%c0_202, %c65] : memref<4x358xf32, #tpu.memory_space<vmem>>, vector<4x256xf32>
    %c1_203 = arith.constant 1 : index
    %c0_204 = arith.constant 0 : index
    %240 = vector.load %arg4[%c1_203, %c0_204] : memref<7x256xf32, #tpu.memory_space<vmem>>, vector<1x256xf32>
    %241 = vector.broadcast %240 : vector<1x256xf32> to vector<4x256xf32>
    %242 = arith.mulf %239, %241 : vector<4x256xf32>
    %c29 = arith.constant 29 : index
    %c0_205 = arith.constant 0 : index
    %c0_206 = arith.constant 0 : index
    %243 = vector.load %arg2[%c29, %c0_205, %c0_206] : memref<49x4x4xf32, #tpu.memory_space<vmem>>, vector<1x4x4xf32>
    %244 = vector.shape_cast %243 : vector<1x4x4xf32> to vector<4x4xf32>
    %cst_207 = arith.constant dense<0.000000e+00> : vector<4x256xf32>
    %245 = tpu.matmul %244, %242, %cst_207 {dimension_numbers = #tpu.dot_dimension_numbers<[1], [0], [0], [1], [0, 0, 1, 1], [], []>} : vector<4x4xf32>, vector<4x256xf32>, vector<4x256xf32> -> vector<4x256xf32>
    %246 = arith.addf %238, %245 : vector<4x256xf32>
    %c0_208 = arith.constant 0 : index
    %c66 = arith.constant 66 : index
    %247 = vector.load %arg21[%c0_208, %c66] : memref<4x358xf32, #tpu.memory_space<vmem>>, vector<4x256xf32>
    %c2_209 = arith.constant 2 : index
    %c0_210 = arith.constant 0 : index
    %248 = vector.load %arg4[%c2_209, %c0_210] : memref<7x256xf32, #tpu.memory_space<vmem>>, vector<1x256xf32>
    %249 = vector.broadcast %248 : vector<1x256xf32> to vector<4x256xf32>
    %250 = arith.mulf %247, %249 : vector<4x256xf32>
    %c30 = arith.constant 30 : index
    %c0_211 = arith.constant 0 : index
    %c0_212 = arith.constant 0 : index
    %251 = vector.load %arg2[%c30, %c0_211, %c0_212] : memref<49x4x4xf32, #tpu.memory_space<vmem>>, vector<1x4x4xf32>
    %252 = vector.shape_cast %251 : vector<1x4x4xf32> to vector<4x4xf32>
    %cst_213 = arith.constant dense<0.000000e+00> : vector<4x256xf32>
    %253 = tpu.matmul %252, %250, %cst_213 {dimension_numbers = #tpu.dot_dimension_numbers<[1], [0], [0], [1], [0, 0, 1, 1], [], []>} : vector<4x4xf32>, vector<4x256xf32>, vector<4x256xf32> -> vector<4x256xf32>
    %254 = arith.addf %246, %253 : vector<4x256xf32>
    %c0_214 = arith.constant 0 : index
    %c67 = arith.constant 67 : index
    %255 = vector.load %arg21[%c0_214, %c67] : memref<4x358xf32, #tpu.memory_space<vmem>>, vector<4x256xf32>
    %c31 = arith.constant 31 : index
    %c0_215 = arith.constant 0 : index
    %c0_216 = arith.constant 0 : index
    %256 = vector.load %arg2[%c31, %c0_215, %c0_216] : memref<49x4x4xf32, #tpu.memory_space<vmem>>, vector<1x4x4xf32>
    %257 = vector.shape_cast %256 : vector<1x4x4xf32> to vector<4x4xf32>
    %cst_217 = arith.constant dense<0.000000e+00> : vector<4x256xf32>
    %258 = tpu.matmul %257, %255, %cst_217 {dimension_numbers = #tpu.dot_dimension_numbers<[1], [0], [0], [1], [0, 0, 1, 1], [], []>} : vector<4x4xf32>, vector<4x256xf32>, vector<4x256xf32> -> vector<4x256xf32>
    %259 = arith.addf %254, %258 : vector<4x256xf32>
    %c0_218 = arith.constant 0 : index
    %c68 = arith.constant 68 : index
    %260 = vector.load %arg21[%c0_218, %c68] : memref<4x358xf32, #tpu.memory_space<vmem>>, vector<4x256xf32>
    %c4_219 = arith.constant 4 : index
    %c0_220 = arith.constant 0 : index
    %261 = vector.load %arg4[%c4_219, %c0_220] : memref<7x256xf32, #tpu.memory_space<vmem>>, vector<1x256xf32>
    %262 = vector.broadcast %261 : vector<1x256xf32> to vector<4x256xf32>
    %263 = arith.mulf %260, %262 : vector<4x256xf32>
    %c32_221 = arith.constant 32 : index
    %c0_222 = arith.constant 0 : index
    %c0_223 = arith.constant 0 : index
    %264 = vector.load %arg2[%c32_221, %c0_222, %c0_223] : memref<49x4x4xf32, #tpu.memory_space<vmem>>, vector<1x4x4xf32>
    %265 = vector.shape_cast %264 : vector<1x4x4xf32> to vector<4x4xf32>
    %cst_224 = arith.constant dense<0.000000e+00> : vector<4x256xf32>
    %266 = tpu.matmul %265, %263, %cst_224 {dimension_numbers = #tpu.dot_dimension_numbers<[1], [0], [0], [1], [0, 0, 1, 1], [], []>} : vector<4x4xf32>, vector<4x256xf32>, vector<4x256xf32> -> vector<4x256xf32>
    %267 = arith.addf %259, %266 : vector<4x256xf32>
    %c0_225 = arith.constant 0 : index
    %c69 = arith.constant 69 : index
    %268 = vector.load %arg21[%c0_225, %c69] : memref<4x358xf32, #tpu.memory_space<vmem>>, vector<4x256xf32>
    %c5_226 = arith.constant 5 : index
    %c0_227 = arith.constant 0 : index
    %269 = vector.load %arg4[%c5_226, %c0_227] : memref<7x256xf32, #tpu.memory_space<vmem>>, vector<1x256xf32>
    %270 = vector.broadcast %269 : vector<1x256xf32> to vector<4x256xf32>
    %271 = arith.mulf %268, %270 : vector<4x256xf32>
    %c33_228 = arith.constant 33 : index
    %c0_229 = arith.constant 0 : index
    %c0_230 = arith.constant 0 : index
    %272 = vector.load %arg2[%c33_228, %c0_229, %c0_230] : memref<49x4x4xf32, #tpu.memory_space<vmem>>, vector<1x4x4xf32>
    %273 = vector.shape_cast %272 : vector<1x4x4xf32> to vector<4x4xf32>
    %cst_231 = arith.constant dense<0.000000e+00> : vector<4x256xf32>
    %274 = tpu.matmul %273, %271, %cst_231 {dimension_numbers = #tpu.dot_dimension_numbers<[1], [0], [0], [1], [0, 0, 1, 1], [], []>} : vector<4x4xf32>, vector<4x256xf32>, vector<4x256xf32> -> vector<4x256xf32>
    %275 = arith.addf %267, %274 : vector<4x256xf32>
    %c0_232 = arith.constant 0 : index
    %c70 = arith.constant 70 : index
    %276 = vector.load %arg21[%c0_232, %c70] : memref<4x358xf32, #tpu.memory_space<vmem>>, vector<4x256xf32>
    %c6_233 = arith.constant 6 : index
    %c0_234 = arith.constant 0 : index
    %277 = vector.load %arg4[%c6_233, %c0_234] : memref<7x256xf32, #tpu.memory_space<vmem>>, vector<1x256xf32>
    %278 = vector.broadcast %277 : vector<1x256xf32> to vector<4x256xf32>
    %279 = arith.mulf %276, %278 : vector<4x256xf32>
    %c34_235 = arith.constant 34 : index
    %c0_236 = arith.constant 0 : index
    %c0_237 = arith.constant 0 : index
    %280 = vector.load %arg2[%c34_235, %c0_236, %c0_237] : memref<49x4x4xf32, #tpu.memory_space<vmem>>, vector<1x4x4xf32>
    %281 = vector.shape_cast %280 : vector<1x4x4xf32> to vector<4x4xf32>
    %cst_238 = arith.constant dense<0.000000e+00> : vector<4x256xf32>
    %282 = tpu.matmul %281, %279, %cst_238 {dimension_numbers = #tpu.dot_dimension_numbers<[1], [0], [0], [1], [0, 0, 1, 1], [], []>} : vector<4x4xf32>, vector<4x256xf32>, vector<4x256xf32> -> vector<4x256xf32>
    %283 = arith.addf %275, %282 : vector<4x256xf32>
    %c0_239 = arith.constant 0 : index
    %c80 = arith.constant 80 : index
    %284 = vector.load %arg21[%c0_239, %c80] : memref<4x358xf32, #tpu.memory_space<vmem>>, vector<4x256xf32>
    %c0_240 = arith.constant 0 : index
    %c0_241 = arith.constant 0 : index
    %285 = vector.load %arg4[%c0_240, %c0_241] : memref<7x256xf32, #tpu.memory_space<vmem>>, vector<1x256xf32>
    %286 = vector.broadcast %285 : vector<1x256xf32> to vector<4x256xf32>
    %287 = arith.mulf %284, %286 : vector<4x256xf32>
    %c35_242 = arith.constant 35 : index
    %c0_243 = arith.constant 0 : index
    %c0_244 = arith.constant 0 : index
    %288 = vector.load %arg2[%c35_242, %c0_243, %c0_244] : memref<49x4x4xf32, #tpu.memory_space<vmem>>, vector<1x4x4xf32>
    %289 = vector.shape_cast %288 : vector<1x4x4xf32> to vector<4x4xf32>
    %cst_245 = arith.constant dense<0.000000e+00> : vector<4x256xf32>
    %290 = tpu.matmul %289, %287, %cst_245 {dimension_numbers = #tpu.dot_dimension_numbers<[1], [0], [0], [1], [0, 0, 1, 1], [], []>} : vector<4x4xf32>, vector<4x256xf32>, vector<4x256xf32> -> vector<4x256xf32>
    %291 = arith.addf %283, %290 : vector<4x256xf32>
    %c0_246 = arith.constant 0 : index
    %c81 = arith.constant 81 : index
    %292 = vector.load %arg21[%c0_246, %c81] : memref<4x358xf32, #tpu.memory_space<vmem>>, vector<4x256xf32>
    %c1_247 = arith.constant 1 : index
    %c0_248 = arith.constant 0 : index
    %293 = vector.load %arg4[%c1_247, %c0_248] : memref<7x256xf32, #tpu.memory_space<vmem>>, vector<1x256xf32>
    %294 = vector.broadcast %293 : vector<1x256xf32> to vector<4x256xf32>
    %295 = arith.mulf %292, %294 : vector<4x256xf32>
    %c36_249 = arith.constant 36 : index
    %c0_250 = arith.constant 0 : index
    %c0_251 = arith.constant 0 : index
    %296 = vector.load %arg2[%c36_249, %c0_250, %c0_251] : memref<49x4x4xf32, #tpu.memory_space<vmem>>, vector<1x4x4xf32>
    %297 = vector.shape_cast %296 : vector<1x4x4xf32> to vector<4x4xf32>
    %cst_252 = arith.constant dense<0.000000e+00> : vector<4x256xf32>
    %298 = tpu.matmul %297, %295, %cst_252 {dimension_numbers = #tpu.dot_dimension_numbers<[1], [0], [0], [1], [0, 0, 1, 1], [], []>} : vector<4x4xf32>, vector<4x256xf32>, vector<4x256xf32> -> vector<4x256xf32>
    %299 = arith.addf %291, %298 : vector<4x256xf32>
    %c0_253 = arith.constant 0 : index
    %c82 = arith.constant 82 : index
    %300 = vector.load %arg21[%c0_253, %c82] : memref<4x358xf32, #tpu.memory_space<vmem>>, vector<4x256xf32>
    %c2_254 = arith.constant 2 : index
    %c0_255 = arith.constant 0 : index
    %301 = vector.load %arg4[%c2_254, %c0_255] : memref<7x256xf32, #tpu.memory_space<vmem>>, vector<1x256xf32>
    %302 = vector.broadcast %301 : vector<1x256xf32> to vector<4x256xf32>
    %303 = arith.mulf %300, %302 : vector<4x256xf32>
    %c37_256 = arith.constant 37 : index
    %c0_257 = arith.constant 0 : index
    %c0_258 = arith.constant 0 : index
    %304 = vector.load %arg2[%c37_256, %c0_257, %c0_258] : memref<49x4x4xf32, #tpu.memory_space<vmem>>, vector<1x4x4xf32>
    %305 = vector.shape_cast %304 : vector<1x4x4xf32> to vector<4x4xf32>
    %cst_259 = arith.constant dense<0.000000e+00> : vector<4x256xf32>
    %306 = tpu.matmul %305, %303, %cst_259 {dimension_numbers = #tpu.dot_dimension_numbers<[1], [0], [0], [1], [0, 0, 1, 1], [], []>} : vector<4x4xf32>, vector<4x256xf32>, vector<4x256xf32> -> vector<4x256xf32>
    %307 = arith.addf %299, %306 : vector<4x256xf32>
    %c0_260 = arith.constant 0 : index
    %c83 = arith.constant 83 : index
    %308 = vector.load %arg21[%c0_260, %c83] : memref<4x358xf32, #tpu.memory_space<vmem>>, vector<4x256xf32>
    %c38_261 = arith.constant 38 : index
    %c0_262 = arith.constant 0 : index
    %c0_263 = arith.constant 0 : index
    %309 = vector.load %arg2[%c38_261, %c0_262, %c0_263] : memref<49x4x4xf32, #tpu.memory_space<vmem>>, vector<1x4x4xf32>
    %310 = vector.shape_cast %309 : vector<1x4x4xf32> to vector<4x4xf32>
    %cst_264 = arith.constant dense<0.000000e+00> : vector<4x256xf32>
    %311 = tpu.matmul %310, %308, %cst_264 {dimension_numbers = #tpu.dot_dimension_numbers<[1], [0], [0], [1], [0, 0, 1, 1], [], []>} : vector<4x4xf32>, vector<4x256xf32>, vector<4x256xf32> -> vector<4x256xf32>
    %312 = arith.addf %307, %311 : vector<4x256xf32>
    %c0_265 = arith.constant 0 : index
    %c84 = arith.constant 84 : index
    %313 = vector.load %arg21[%c0_265, %c84] : memref<4x358xf32, #tpu.memory_space<vmem>>, vector<4x256xf32>
    %c4_266 = arith.constant 4 : index
    %c0_267 = arith.constant 0 : index
    %314 = vector.load %arg4[%c4_266, %c0_267] : memref<7x256xf32, #tpu.memory_space<vmem>>, vector<1x256xf32>
    %315 = vector.broadcast %314 : vector<1x256xf32> to vector<4x256xf32>
    %316 = arith.mulf %313, %315 : vector<4x256xf32>
    %c39 = arith.constant 39 : index
    %c0_268 = arith.constant 0 : index
    %c0_269 = arith.constant 0 : index
    %317 = vector.load %arg2[%c39, %c0_268, %c0_269] : memref<49x4x4xf32, #tpu.memory_space<vmem>>, vector<1x4x4xf32>
    %318 = vector.shape_cast %317 : vector<1x4x4xf32> to vector<4x4xf32>
    %cst_270 = arith.constant dense<0.000000e+00> : vector<4x256xf32>
    %319 = tpu.matmul %318, %316, %cst_270 {dimension_numbers = #tpu.dot_dimension_numbers<[1], [0], [0], [1], [0, 0, 1, 1], [], []>} : vector<4x4xf32>, vector<4x256xf32>, vector<4x256xf32> -> vector<4x256xf32>
    %320 = arith.addf %312, %319 : vector<4x256xf32>
    %c0_271 = arith.constant 0 : index
    %c85 = arith.constant 85 : index
    %321 = vector.load %arg21[%c0_271, %c85] : memref<4x358xf32, #tpu.memory_space<vmem>>, vector<4x256xf32>
    %c5_272 = arith.constant 5 : index
    %c0_273 = arith.constant 0 : index
    %322 = vector.load %arg4[%c5_272, %c0_273] : memref<7x256xf32, #tpu.memory_space<vmem>>, vector<1x256xf32>
    %323 = vector.broadcast %322 : vector<1x256xf32> to vector<4x256xf32>
    %324 = arith.mulf %321, %323 : vector<4x256xf32>
    %c40 = arith.constant 40 : index
    %c0_274 = arith.constant 0 : index
    %c0_275 = arith.constant 0 : index
    %325 = vector.load %arg2[%c40, %c0_274, %c0_275] : memref<49x4x4xf32, #tpu.memory_space<vmem>>, vector<1x4x4xf32>
    %326 = vector.shape_cast %325 : vector<1x4x4xf32> to vector<4x4xf32>
    %cst_276 = arith.constant dense<0.000000e+00> : vector<4x256xf32>
    %327 = tpu.matmul %326, %324, %cst_276 {dimension_numbers = #tpu.dot_dimension_numbers<[1], [0], [0], [1], [0, 0, 1, 1], [], []>} : vector<4x4xf32>, vector<4x256xf32>, vector<4x256xf32> -> vector<4x256xf32>
    %328 = arith.addf %320, %327 : vector<4x256xf32>
    %c0_277 = arith.constant 0 : index
    %c86 = arith.constant 86 : index
    %329 = vector.load %arg21[%c0_277, %c86] : memref<4x358xf32, #tpu.memory_space<vmem>>, vector<4x256xf32>
    %c6_278 = arith.constant 6 : index
    %c0_279 = arith.constant 0 : index
    %330 = vector.load %arg4[%c6_278, %c0_279] : memref<7x256xf32, #tpu.memory_space<vmem>>, vector<1x256xf32>
    %331 = vector.broadcast %330 : vector<1x256xf32> to vector<4x256xf32>
    %332 = arith.mulf %329, %331 : vector<4x256xf32>
    %c41 = arith.constant 41 : index
    %c0_280 = arith.constant 0 : index
    %c0_281 = arith.constant 0 : index
    %333 = vector.load %arg2[%c41, %c0_280, %c0_281] : memref<49x4x4xf32, #tpu.memory_space<vmem>>, vector<1x4x4xf32>
    %334 = vector.shape_cast %333 : vector<1x4x4xf32> to vector<4x4xf32>
    %cst_282 = arith.constant dense<0.000000e+00> : vector<4x256xf32>
    %335 = tpu.matmul %334, %332, %cst_282 {dimension_numbers = #tpu.dot_dimension_numbers<[1], [0], [0], [1], [0, 0, 1, 1], [], []>} : vector<4x4xf32>, vector<4x256xf32>, vector<4x256xf32> -> vector<4x256xf32>
    %336 = arith.addf %328, %335 : vector<4x256xf32>
    %c0_283 = arith.constant 0 : index
    %c96 = arith.constant 96 : index
    %337 = vector.load %arg21[%c0_283, %c96] : memref<4x358xf32, #tpu.memory_space<vmem>>, vector<4x256xf32>
    %c0_284 = arith.constant 0 : index
    %c0_285 = arith.constant 0 : index
    %338 = vector.load %arg4[%c0_284, %c0_285] : memref<7x256xf32, #tpu.memory_space<vmem>>, vector<1x256xf32>
    %339 = vector.broadcast %338 : vector<1x256xf32> to vector<4x256xf32>
    %340 = arith.mulf %337, %339 : vector<4x256xf32>
    %c42 = arith.constant 42 : index
    %c0_286 = arith.constant 0 : index
    %c0_287 = arith.constant 0 : index
    %341 = vector.load %arg2[%c42, %c0_286, %c0_287] : memref<49x4x4xf32, #tpu.memory_space<vmem>>, vector<1x4x4xf32>
    %342 = vector.shape_cast %341 : vector<1x4x4xf32> to vector<4x4xf32>
    %cst_288 = arith.constant dense<0.000000e+00> : vector<4x256xf32>
    %343 = tpu.matmul %342, %340, %cst_288 {dimension_numbers = #tpu.dot_dimension_numbers<[1], [0], [0], [1], [0, 0, 1, 1], [], []>} : vector<4x4xf32>, vector<4x256xf32>, vector<4x256xf32> -> vector<4x256xf32>
    %344 = arith.addf %336, %343 : vector<4x256xf32>
    %c0_289 = arith.constant 0 : index
    %c97 = arith.constant 97 : index
    %345 = vector.load %arg21[%c0_289, %c97] : memref<4x358xf32, #tpu.memory_space<vmem>>, vector<4x256xf32>
    %c1_290 = arith.constant 1 : index
    %c0_291 = arith.constant 0 : index
    %346 = vector.load %arg4[%c1_290, %c0_291] : memref<7x256xf32, #tpu.memory_space<vmem>>, vector<1x256xf32>
    %347 = vector.broadcast %346 : vector<1x256xf32> to vector<4x256xf32>
    %348 = arith.mulf %345, %347 : vector<4x256xf32>
    %c43 = arith.constant 43 : index
    %c0_292 = arith.constant 0 : index
    %c0_293 = arith.constant 0 : index
    %349 = vector.load %arg2[%c43, %c0_292, %c0_293] : memref<49x4x4xf32, #tpu.memory_space<vmem>>, vector<1x4x4xf32>
    %350 = vector.shape_cast %349 : vector<1x4x4xf32> to vector<4x4xf32>
    %cst_294 = arith.constant dense<0.000000e+00> : vector<4x256xf32>
    %351 = tpu.matmul %350, %348, %cst_294 {dimension_numbers = #tpu.dot_dimension_numbers<[1], [0], [0], [1], [0, 0, 1, 1], [], []>} : vector<4x4xf32>, vector<4x256xf32>, vector<4x256xf32> -> vector<4x256xf32>
    %352 = arith.addf %344, %351 : vector<4x256xf32>
    %c0_295 = arith.constant 0 : index
    %c98 = arith.constant 98 : index
    %353 = vector.load %arg21[%c0_295, %c98] : memref<4x358xf32, #tpu.memory_space<vmem>>, vector<4x256xf32>
    %c2_296 = arith.constant 2 : index
    %c0_297 = arith.constant 0 : index
    %354 = vector.load %arg4[%c2_296, %c0_297] : memref<7x256xf32, #tpu.memory_space<vmem>>, vector<1x256xf32>
    %355 = vector.broadcast %354 : vector<1x256xf32> to vector<4x256xf32>
    %356 = arith.mulf %353, %355 : vector<4x256xf32>
    %c44 = arith.constant 44 : index
    %c0_298 = arith.constant 0 : index
    %c0_299 = arith.constant 0 : index
    %357 = vector.load %arg2[%c44, %c0_298, %c0_299] : memref<49x4x4xf32, #tpu.memory_space<vmem>>, vector<1x4x4xf32>
    %358 = vector.shape_cast %357 : vector<1x4x4xf32> to vector<4x4xf32>
    %cst_300 = arith.constant dense<0.000000e+00> : vector<4x256xf32>
    %359 = tpu.matmul %358, %356, %cst_300 {dimension_numbers = #tpu.dot_dimension_numbers<[1], [0], [0], [1], [0, 0, 1, 1], [], []>} : vector<4x4xf32>, vector<4x256xf32>, vector<4x256xf32> -> vector<4x256xf32>
    %360 = arith.addf %352, %359 : vector<4x256xf32>
    %c0_301 = arith.constant 0 : index
    %c99 = arith.constant 99 : index
    %361 = vector.load %arg21[%c0_301, %c99] : memref<4x358xf32, #tpu.memory_space<vmem>>, vector<4x256xf32>
    %c45 = arith.constant 45 : index
    %c0_302 = arith.constant 0 : index
    %c0_303 = arith.constant 0 : index
    %362 = vector.load %arg2[%c45, %c0_302, %c0_303] : memref<49x4x4xf32, #tpu.memory_space<vmem>>, vector<1x4x4xf32>
    %363 = vector.shape_cast %362 : vector<1x4x4xf32> to vector<4x4xf32>
    %cst_304 = arith.constant dense<0.000000e+00> : vector<4x256xf32>
    %364 = tpu.matmul %363, %361, %cst_304 {dimension_numbers = #tpu.dot_dimension_numbers<[1], [0], [0], [1], [0, 0, 1, 1], [], []>} : vector<4x4xf32>, vector<4x256xf32>, vector<4x256xf32> -> vector<4x256xf32>
    %365 = arith.addf %360, %364 : vector<4x256xf32>
    %c0_305 = arith.constant 0 : index
    %c100 = arith.constant 100 : index
    %366 = vector.load %arg21[%c0_305, %c100] : memref<4x358xf32, #tpu.memory_space<vmem>>, vector<4x256xf32>
    %c4_306 = arith.constant 4 : index
    %c0_307 = arith.constant 0 : index
    %367 = vector.load %arg4[%c4_306, %c0_307] : memref<7x256xf32, #tpu.memory_space<vmem>>, vector<1x256xf32>
    %368 = vector.broadcast %367 : vector<1x256xf32> to vector<4x256xf32>
    %369 = arith.mulf %366, %368 : vector<4x256xf32>
    %c46 = arith.constant 46 : index
    %c0_308 = arith.constant 0 : index
    %c0_309 = arith.constant 0 : index
    %370 = vector.load %arg2[%c46, %c0_308, %c0_309] : memref<49x4x4xf32, #tpu.memory_space<vmem>>, vector<1x4x4xf32>
    %371 = vector.shape_cast %370 : vector<1x4x4xf32> to vector<4x4xf32>
    %cst_310 = arith.constant dense<0.000000e+00> : vector<4x256xf32>
    %372 = tpu.matmul %371, %369, %cst_310 {dimension_numbers = #tpu.dot_dimension_numbers<[1], [0], [0], [1], [0, 0, 1, 1], [], []>} : vector<4x4xf32>, vector<4x256xf32>, vector<4x256xf32> -> vector<4x256xf32>
    %373 = arith.addf %365, %372 : vector<4x256xf32>
    %c0_311 = arith.constant 0 : index
    %c101 = arith.constant 101 : index
    %374 = vector.load %arg21[%c0_311, %c101] : memref<4x358xf32, #tpu.memory_space<vmem>>, vector<4x256xf32>
    %c5_312 = arith.constant 5 : index
    %c0_313 = arith.constant 0 : index
    %375 = vector.load %arg4[%c5_312, %c0_313] : memref<7x256xf32, #tpu.memory_space<vmem>>, vector<1x256xf32>
    %376 = vector.broadcast %375 : vector<1x256xf32> to vector<4x256xf32>
    %377 = arith.mulf %374, %376 : vector<4x256xf32>
    %c47 = arith.constant 47 : index
    %c0_314 = arith.constant 0 : index
    %c0_315 = arith.constant 0 : index
    %378 = vector.load %arg2[%c47, %c0_314, %c0_315] : memref<49x4x4xf32, #tpu.memory_space<vmem>>, vector<1x4x4xf32>
    %379 = vector.shape_cast %378 : vector<1x4x4xf32> to vector<4x4xf32>
    %cst_316 = arith.constant dense<0.000000e+00> : vector<4x256xf32>
    %380 = tpu.matmul %379, %377, %cst_316 {dimension_numbers = #tpu.dot_dimension_numbers<[1], [0], [0], [1], [0, 0, 1, 1], [], []>} : vector<4x4xf32>, vector<4x256xf32>, vector<4x256xf32> -> vector<4x256xf32>
    %381 = arith.addf %373, %380 : vector<4x256xf32>
    %c0_317 = arith.constant 0 : index
    %c102 = arith.constant 102 : index
    %382 = vector.load %arg21[%c0_317, %c102] : memref<4x358xf32, #tpu.memory_space<vmem>>, vector<4x256xf32>
    %c6_318 = arith.constant 6 : index
    %c0_319 = arith.constant 0 : index
    %383 = vector.load %arg4[%c6_318, %c0_319] : memref<7x256xf32, #tpu.memory_space<vmem>>, vector<1x256xf32>
    %384 = vector.broadcast %383 : vector<1x256xf32> to vector<4x256xf32>
    %385 = arith.mulf %382, %384 : vector<4x256xf32>
    %c48_320 = arith.constant 48 : index
    %c0_321 = arith.constant 0 : index
    %c0_322 = arith.constant 0 : index
    %386 = vector.load %arg2[%c48_320, %c0_321, %c0_322] : memref<49x4x4xf32, #tpu.memory_space<vmem>>, vector<1x4x4xf32>
    %387 = vector.shape_cast %386 : vector<1x4x4xf32> to vector<4x4xf32>
    %cst_323 = arith.constant dense<0.000000e+00> : vector<4x256xf32>
    %388 = tpu.matmul %387, %385, %cst_323 {dimension_numbers = #tpu.dot_dimension_numbers<[1], [0], [0], [1], [0, 0, 1, 1], [], []>} : vector<4x4xf32>, vector<4x256xf32>, vector<4x256xf32> -> vector<4x256xf32>
    %389 = arith.addf %381, %388 : vector<4x256xf32>
    %cst_324 = arith.constant 0.000000e+00 : f32
    %390 = vector.broadcast %cst_324 : f32 to vector<4x256xf32>
    %391 = arith.maximumf %389, %390 : vector<4x256xf32>
    %c0_325 = arith.constant 0 : index
    %c17_326 = arith.constant 17 : index
    %392 = vector.load %arg22[%c0_325, %c17_326] : memref<4x290xf32, #tpu.memory_space<vmem>>, vector<4x256xf32>
    tpu.vector_store %arg22[%c0_325, %c17_326], %391 {strides = array<i32>} : memref<4x290xf32, #tpu.memory_space<vmem>>, vector<4x256xf32>,
    %cst_327 = arith.constant 0.000000e+00 : f32
    %393 = vector.broadcast %cst_327 : f32 to vector<4x256xf32>
    %c0_328 = arith.constant 0 : index
    %c0_329 = arith.constant 0 : index
    %394 = vector.load %arg6[%c0_328, %c0_329] : memref<4x1xf32, #tpu.memory_space<vmem>>, vector<4x1xf32>
    %395 = vector.broadcast %394 : vector<4x1xf32> to vector<4x256xf32>
    %396 = arith.addf %393, %395 : vector<4x256xf32>
    %c0_330 = arith.constant 0 : index
    %c0_331 = arith.constant 0 : index
    %397 = vector.load %arg22[%c0_330, %c0_331] : memref<4x290xf32, #tpu.memory_space<vmem>>, vector<4x256xf32>
    %c0_332 = arith.constant 0 : index
    %c0_333 = arith.constant 0 : index
    %398 = vector.load %arg9[%c0_332, %c0_333] : memref<3x256xf32, #tpu.memory_space<vmem>>, vector<1x256xf32>
    %399 = vector.broadcast %398 : vector<1x256xf32> to vector<4x256xf32>
    %400 = arith.mulf %397, %399 : vector<4x256xf32>
    %c0_334 = arith.constant 0 : index
    %c0_335 = arith.constant 0 : index
    %c0_336 = arith.constant 0 : index
    %401 = vector.load %arg5[%c0_334, %c0_335, %c0_336] : memref<9x4x4xf32, #tpu.memory_space<vmem>>, vector<1x4x4xf32>
    %402 = vector.shape_cast %401 : vector<1x4x4xf32> to vector<4x4xf32>
    %cst_337 = arith.constant dense<0.000000e+00> : vector<4x256xf32>
    %403 = tpu.matmul %402, %400, %cst_337 {dimension_numbers = #tpu.dot_dimension_numbers<[1], [0], [0], [1], [0, 0, 1, 1], [], []>} : vector<4x4xf32>, vector<4x256xf32>, vector<4x256xf32> -> vector<4x256xf32>
    %404 = arith.addf %396, %403 : vector<4x256xf32>
    %c0_338 = arith.constant 0 : index
    %c1_339 = arith.constant 1 : index
    %405 = vector.load %arg22[%c0_338, %c1_339] : memref<4x290xf32, #tpu.memory_space<vmem>>, vector<4x256xf32>
    %c1_340 = arith.constant 1 : index
    %c0_341 = arith.constant 0 : index
    %c0_342 = arith.constant 0 : index
    %406 = vector.load %arg5[%c1_340, %c0_341, %c0_342] : memref<9x4x4xf32, #tpu.memory_space<vmem>>, vector<1x4x4xf32>
    %407 = vector.shape_cast %406 : vector<1x4x4xf32> to vector<4x4xf32>
    %cst_343 = arith.constant dense<0.000000e+00> : vector<4x256xf32>
    %408 = tpu.matmul %407, %405, %cst_343 {dimension_numbers = #tpu.dot_dimension_numbers<[1], [0], [0], [1], [0, 0, 1, 1], [], []>} : vector<4x4xf32>, vector<4x256xf32>, vector<4x256xf32> -> vector<4x256xf32>
    %409 = arith.addf %404, %408 : vector<4x256xf32>
    %c0_344 = arith.constant 0 : index
    %c2_345 = arith.constant 2 : index
    %410 = vector.load %arg22[%c0_344, %c2_345] : memref<4x290xf32, #tpu.memory_space<vmem>>, vector<4x256xf32>
    %c2_346 = arith.constant 2 : index
    %c0_347 = arith.constant 0 : index
    %411 = vector.load %arg9[%c2_346, %c0_347] : memref<3x256xf32, #tpu.memory_space<vmem>>, vector<1x256xf32>
    %412 = vector.broadcast %411 : vector<1x256xf32> to vector<4x256xf32>
    %413 = arith.mulf %410, %412 : vector<4x256xf32>
    %c2_348 = arith.constant 2 : index
    %c0_349 = arith.constant 0 : index
    %c0_350 = arith.constant 0 : index
    %414 = vector.load %arg5[%c2_348, %c0_349, %c0_350] : memref<9x4x4xf32, #tpu.memory_space<vmem>>, vector<1x4x4xf32>
    %415 = vector.shape_cast %414 : vector<1x4x4xf32> to vector<4x4xf32>
    %cst_351 = arith.constant dense<0.000000e+00> : vector<4x256xf32>
    %416 = tpu.matmul %415, %413, %cst_351 {dimension_numbers = #tpu.dot_dimension_numbers<[1], [0], [0], [1], [0, 0, 1, 1], [], []>} : vector<4x4xf32>, vector<4x256xf32>, vector<4x256xf32> -> vector<4x256xf32>
    %417 = arith.addf %409, %416 : vector<4x256xf32>
    %c0_352 = arith.constant 0 : index
    %c16_353 = arith.constant 16 : index
    %418 = vector.load %arg22[%c0_352, %c16_353] : memref<4x290xf32, #tpu.memory_space<vmem>>, vector<4x256xf32>
    %c0_354 = arith.constant 0 : index
    %c0_355 = arith.constant 0 : index
    %419 = vector.load %arg9[%c0_354, %c0_355] : memref<3x256xf32, #tpu.memory_space<vmem>>, vector<1x256xf32>
    %420 = vector.broadcast %419 : vector<1x256xf32> to vector<4x256xf32>
    %421 = arith.mulf %418, %420 : vector<4x256xf32>
    %c3_356 = arith.constant 3 : index
    %c0_357 = arith.constant 0 : index
    %c0_358 = arith.constant 0 : index
    %422 = vector.load %arg5[%c3_356, %c0_357, %c0_358] : memref<9x4x4xf32, #tpu.memory_space<vmem>>, vector<1x4x4xf32>
    %423 = vector.shape_cast %422 : vector<1x4x4xf32> to vector<4x4xf32>
    %cst_359 = arith.constant dense<0.000000e+00> : vector<4x256xf32>
    %424 = tpu.matmul %423, %421, %cst_359 {dimension_numbers = #tpu.dot_dimension_numbers<[1], [0], [0], [1], [0, 0, 1, 1], [], []>} : vector<4x4xf32>, vector<4x256xf32>, vector<4x256xf32> -> vector<4x256xf32>
    %425 = arith.addf %417, %424 : vector<4x256xf32>
    %c0_360 = arith.constant 0 : index
    %c17_361 = arith.constant 17 : index
    %426 = vector.load %arg22[%c0_360, %c17_361] : memref<4x290xf32, #tpu.memory_space<vmem>>, vector<4x256xf32>
    %c4_362 = arith.constant 4 : index
    %c0_363 = arith.constant 0 : index
    %c0_364 = arith.constant 0 : index
    %427 = vector.load %arg5[%c4_362, %c0_363, %c0_364] : memref<9x4x4xf32, #tpu.memory_space<vmem>>, vector<1x4x4xf32>
    %428 = vector.shape_cast %427 : vector<1x4x4xf32> to vector<4x4xf32>
    %cst_365 = arith.constant dense<0.000000e+00> : vector<4x256xf32>
    %429 = tpu.matmul %428, %426, %cst_365 {dimension_numbers = #tpu.dot_dimension_numbers<[1], [0], [0], [1], [0, 0, 1, 1], [], []>} : vector<4x4xf32>, vector<4x256xf32>, vector<4x256xf32> -> vector<4x256xf32>
    %430 = arith.addf %425, %429 : vector<4x256xf32>
    %c0_366 = arith.constant 0 : index
    %c18_367 = arith.constant 18 : index
    %431 = vector.load %arg22[%c0_366, %c18_367] : memref<4x290xf32, #tpu.memory_space<vmem>>, vector<4x256xf32>
    %c2_368 = arith.constant 2 : index
    %c0_369 = arith.constant 0 : index
    %432 = vector.load %arg9[%c2_368, %c0_369] : memref<3x256xf32, #tpu.memory_space<vmem>>, vector<1x256xf32>
    %433 = vector.broadcast %432 : vector<1x256xf32> to vector<4x256xf32>
    %434 = arith.mulf %431, %433 : vector<4x256xf32>
    %c5_370 = arith.constant 5 : index
    %c0_371 = arith.constant 0 : index
    %c0_372 = arith.constant 0 : index
    %435 = vector.load %arg5[%c5_370, %c0_371, %c0_372] : memref<9x4x4xf32, #tpu.memory_space<vmem>>, vector<1x4x4xf32>
    %436 = vector.shape_cast %435 : vector<1x4x4xf32> to vector<4x4xf32>
    %cst_373 = arith.constant dense<0.000000e+00> : vector<4x256xf32>
    %437 = tpu.matmul %436, %434, %cst_373 {dimension_numbers = #tpu.dot_dimension_numbers<[1], [0], [0], [1], [0, 0, 1, 1], [], []>} : vector<4x4xf32>, vector<4x256xf32>, vector<4x256xf32> -> vector<4x256xf32>
    %438 = arith.addf %430, %437 : vector<4x256xf32>
    %c0_374 = arith.constant 0 : index
    %c32_375 = arith.constant 32 : index
    %439 = vector.load %arg22[%c0_374, %c32_375] : memref<4x290xf32, #tpu.memory_space<vmem>>, vector<4x256xf32>
    %c0_376 = arith.constant 0 : index
    %c0_377 = arith.constant 0 : index
    %440 = vector.load %arg9[%c0_376, %c0_377] : memref<3x256xf32, #tpu.memory_space<vmem>>, vector<1x256xf32>
    %441 = vector.broadcast %440 : vector<1x256xf32> to vector<4x256xf32>
    %442 = arith.mulf %439, %441 : vector<4x256xf32>
    %c6_378 = arith.constant 6 : index
    %c0_379 = arith.constant 0 : index
    %c0_380 = arith.constant 0 : index
    %443 = vector.load %arg5[%c6_378, %c0_379, %c0_380] : memref<9x4x4xf32, #tpu.memory_space<vmem>>, vector<1x4x4xf32>
    %444 = vector.shape_cast %443 : vector<1x4x4xf32> to vector<4x4xf32>
    %cst_381 = arith.constant dense<0.000000e+00> : vector<4x256xf32>
    %445 = tpu.matmul %444, %442, %cst_381 {dimension_numbers = #tpu.dot_dimension_numbers<[1], [0], [0], [1], [0, 0, 1, 1], [], []>} : vector<4x4xf32>, vector<4x256xf32>, vector<4x256xf32> -> vector<4x256xf32>
    %446 = arith.addf %438, %445 : vector<4x256xf32>
    %c0_382 = arith.constant 0 : index
    %c33_383 = arith.constant 33 : index
    %447 = vector.load %arg22[%c0_382, %c33_383] : memref<4x290xf32, #tpu.memory_space<vmem>>, vector<4x256xf32>
    %c7_384 = arith.constant 7 : index
    %c0_385 = arith.constant 0 : index
    %c0_386 = arith.constant 0 : index
    %448 = vector.load %arg5[%c7_384, %c0_385, %c0_386] : memref<9x4x4xf32, #tpu.memory_space<vmem>>, vector<1x4x4xf32>
    %449 = vector.shape_cast %448 : vector<1x4x4xf32> to vector<4x4xf32>
    %cst_387 = arith.constant dense<0.000000e+00> : vector<4x256xf32>
    %450 = tpu.matmul %449, %447, %cst_387 {dimension_numbers = #tpu.dot_dimension_numbers<[1], [0], [0], [1], [0, 0, 1, 1], [], []>} : vector<4x4xf32>, vector<4x256xf32>, vector<4x256xf32> -> vector<4x256xf32>
    %451 = arith.addf %446, %450 : vector<4x256xf32>
    %c0_388 = arith.constant 0 : index
    %c34_389 = arith.constant 34 : index
    %452 = vector.load %arg22[%c0_388, %c34_389] : memref<4x290xf32, #tpu.memory_space<vmem>>, vector<4x256xf32>
    %c2_390 = arith.constant 2 : index
    %c0_391 = arith.constant 0 : index
    %453 = vector.load %arg9[%c2_390, %c0_391] : memref<3x256xf32, #tpu.memory_space<vmem>>, vector<1x256xf32>
    %454 = vector.broadcast %453 : vector<1x256xf32> to vector<4x256xf32>
    %455 = arith.mulf %452, %454 : vector<4x256xf32>
    %c8_392 = arith.constant 8 : index
    %c0_393 = arith.constant 0 : index
    %c0_394 = arith.constant 0 : index
    %456 = vector.load %arg5[%c8_392, %c0_393, %c0_394] : memref<9x4x4xf32, #tpu.memory_space<vmem>>, vector<1x4x4xf32>
    %457 = vector.shape_cast %456 : vector<1x4x4xf32> to vector<4x4xf32>
    %cst_395 = arith.constant dense<0.000000e+00> : vector<4x256xf32>
    %458 = tpu.matmul %457, %455, %cst_395 {dimension_numbers = #tpu.dot_dimension_numbers<[1], [0], [0], [1], [0, 0, 1, 1], [], []>} : vector<4x4xf32>, vector<4x256xf32>, vector<4x256xf32> -> vector<4x256xf32>
    %459 = arith.addf %451, %458 : vector<4x256xf32>
    %cst_396 = arith.constant 0.000000e+00 : f32
    %460 = vector.broadcast %cst_396 : f32 to vector<4x256xf32>
    %461 = arith.maximumf %459, %460 : vector<4x256xf32>
    %c0_397 = arith.constant 0 : index
    %c17_398 = arith.constant 17 : index
    %462 = vector.load %arg22[%c0_397, %c17_398] : memref<4x290xf32, #tpu.memory_space<vmem>>, vector<4x256xf32>
    tpu.vector_store %arg22[%c0_397, %c17_398], %461 {strides = array<i32>} : memref<4x290xf32, #tpu.memory_space<vmem>>, vector<4x256xf32>,
    %cst_399 = arith.constant 0.000000e+00 : f32
    %463 = vector.broadcast %cst_399 : f32 to vector<4x256xf32>
    %c0_400 = arith.constant 0 : index
    %c0_401 = arith.constant 0 : index
    %464 = vector.load %arg8[%c0_400, %c0_401] : memref<4x1xf32, #tpu.memory_space<vmem>>, vector<4x1xf32>
    %465 = vector.broadcast %464 : vector<4x1xf32> to vector<4x256xf32>
    %466 = arith.addf %463, %465 : vector<4x256xf32>
    %467 = arith.addf %466, %391 : vector<4x256xf32>
    %c0_402 = arith.constant 0 : index
    %c0_403 = arith.constant 0 : index
    %468 = vector.load %arg22[%c0_402, %c0_403] : memref<4x290xf32, #tpu.memory_space<vmem>>, vector<4x256xf32>
    %c0_404 = arith.constant 0 : index
    %c0_405 = arith.constant 0 : index
    %469 = vector.load %arg9[%c0_404, %c0_405] : memref<3x256xf32, #tpu.memory_space<vmem>>, vector<1x256xf32>
    %470 = vector.broadcast %469 : vector<1x256xf32> to vector<4x256xf32>
    %471 = arith.mulf %468, %470 : vector<4x256xf32>
    %c0_406 = arith.constant 0 : index
    %c0_407 = arith.constant 0 : index
    %c0_408 = arith.constant 0 : index
    %472 = vector.load %arg7[%c0_406, %c0_407, %c0_408] : memref<9x4x4xf32, #tpu.memory_space<vmem>>, vector<1x4x4xf32>
    %473 = vector.shape_cast %472 : vector<1x4x4xf32> to vector<4x4xf32>
    %cst_409 = arith.constant dense<0.000000e+00> : vector<4x256xf32>
    %474 = tpu.matmul %473, %471, %cst_409 {dimension_numbers = #tpu.dot_dimension_numbers<[1], [0], [0], [1], [0, 0, 1, 1], [], []>} : vector<4x4xf32>, vector<4x256xf32>, vector<4x256xf32> -> vector<4x256xf32>
    %475 = arith.addf %467, %474 : vector<4x256xf32>
    %c0_410 = arith.constant 0 : index
    %c1_411 = arith.constant 1 : index
    %476 = vector.load %arg22[%c0_410, %c1_411] : memref<4x290xf32, #tpu.memory_space<vmem>>, vector<4x256xf32>
    %c1_412 = arith.constant 1 : index
    %c0_413 = arith.constant 0 : index
    %c0_414 = arith.constant 0 : index
    %477 = vector.load %arg7[%c1_412, %c0_413, %c0_414] : memref<9x4x4xf32, #tpu.memory_space<vmem>>, vector<1x4x4xf32>
    %478 = vector.shape_cast %477 : vector<1x4x4xf32> to vector<4x4xf32>
    %cst_415 = arith.constant dense<0.000000e+00> : vector<4x256xf32>
    %479 = tpu.matmul %478, %476, %cst_415 {dimension_numbers = #tpu.dot_dimension_numbers<[1], [0], [0], [1], [0, 0, 1, 1], [], []>} : vector<4x4xf32>, vector<4x256xf32>, vector<4x256xf32> -> vector<4x256xf32>
    %480 = arith.addf %475, %479 : vector<4x256xf32>
    %c0_416 = arith.constant 0 : index
    %c2_417 = arith.constant 2 : index
    %481 = vector.load %arg22[%c0_416, %c2_417] : memref<4x290xf32, #tpu.memory_space<vmem>>, vector<4x256xf32>
    %c2_418 = arith.constant 2 : index
    %c0_419 = arith.constant 0 : index
    %482 = vector.load %arg9[%c2_418, %c0_419] : memref<3x256xf32, #tpu.memory_space<vmem>>, vector<1x256xf32>
    %483 = vector.broadcast %482 : vector<1x256xf32> to vector<4x256xf32>
    %484 = arith.mulf %481, %483 : vector<4x256xf32>
    %c2_420 = arith.constant 2 : index
    %c0_421 = arith.constant 0 : index
    %c0_422 = arith.constant 0 : index
    %485 = vector.load %arg7[%c2_420, %c0_421, %c0_422] : memref<9x4x4xf32, #tpu.memory_space<vmem>>, vector<1x4x4xf32>
    %486 = vector.shape_cast %485 : vector<1x4x4xf32> to vector<4x4xf32>
    %cst_423 = arith.constant dense<0.000000e+00> : vector<4x256xf32>
    %487 = tpu.matmul %486, %484, %cst_423 {dimension_numbers = #tpu.dot_dimension_numbers<[1], [0], [0], [1], [0, 0, 1, 1], [], []>} : vector<4x4xf32>, vector<4x256xf32>, vector<4x256xf32> -> vector<4x256xf32>
    %488 = arith.addf %480, %487 : vector<4x256xf32>
    %c0_424 = arith.constant 0 : index
    %c16_425 = arith.constant 16 : index
    %489 = vector.load %arg22[%c0_424, %c16_425] : memref<4x290xf32, #tpu.memory_space<vmem>>, vector<4x256xf32>
    %c0_426 = arith.constant 0 : index
    %c0_427 = arith.constant 0 : index
    %490 = vector.load %arg9[%c0_426, %c0_427] : memref<3x256xf32, #tpu.memory_space<vmem>>, vector<1x256xf32>
    %491 = vector.broadcast %490 : vector<1x256xf32> to vector<4x256xf32>
    %492 = arith.mulf %489, %491 : vector<4x256xf32>
    %c3_428 = arith.constant 3 : index
    %c0_429 = arith.constant 0 : index
    %c0_430 = arith.constant 0 : index
    %493 = vector.load %arg7[%c3_428, %c0_429, %c0_430] : memref<9x4x4xf32, #tpu.memory_space<vmem>>, vector<1x4x4xf32>
    %494 = vector.shape_cast %493 : vector<1x4x4xf32> to vector<4x4xf32>
    %cst_431 = arith.constant dense<0.000000e+00> : vector<4x256xf32>
    %495 = tpu.matmul %494, %492, %cst_431 {dimension_numbers = #tpu.dot_dimension_numbers<[1], [0], [0], [1], [0, 0, 1, 1], [], []>} : vector<4x4xf32>, vector<4x256xf32>, vector<4x256xf32> -> vector<4x256xf32>
    %496 = arith.addf %488, %495 : vector<4x256xf32>
    %c0_432 = arith.constant 0 : index
    %c17_433 = arith.constant 17 : index
    %497 = vector.load %arg22[%c0_432, %c17_433] : memref<4x290xf32, #tpu.memory_space<vmem>>, vector<4x256xf32>
    %c4_434 = arith.constant 4 : index
    %c0_435 = arith.constant 0 : index
    %c0_436 = arith.constant 0 : index
    %498 = vector.load %arg7[%c4_434, %c0_435, %c0_436] : memref<9x4x4xf32, #tpu.memory_space<vmem>>, vector<1x4x4xf32>
    %499 = vector.shape_cast %498 : vector<1x4x4xf32> to vector<4x4xf32>
    %cst_437 = arith.constant dense<0.000000e+00> : vector<4x256xf32>
    %500 = tpu.matmul %499, %497, %cst_437 {dimension_numbers = #tpu.dot_dimension_numbers<[1], [0], [0], [1], [0, 0, 1, 1], [], []>} : vector<4x4xf32>, vector<4x256xf32>, vector<4x256xf32> -> vector<4x256xf32>
    %501 = arith.addf %496, %500 : vector<4x256xf32>
    %c0_438 = arith.constant 0 : index
    %c18_439 = arith.constant 18 : index
    %502 = vector.load %arg22[%c0_438, %c18_439] : memref<4x290xf32, #tpu.memory_space<vmem>>, vector<4x256xf32>
    %c2_440 = arith.constant 2 : index
    %c0_441 = arith.constant 0 : index
    %503 = vector.load %arg9[%c2_440, %c0_441] : memref<3x256xf32, #tpu.memory_space<vmem>>, vector<1x256xf32>
    %504 = vector.broadcast %503 : vector<1x256xf32> to vector<4x256xf32>
    %505 = arith.mulf %502, %504 : vector<4x256xf32>
    %c5_442 = arith.constant 5 : index
    %c0_443 = arith.constant 0 : index
    %c0_444 = arith.constant 0 : index
    %506 = vector.load %arg7[%c5_442, %c0_443, %c0_444] : memref<9x4x4xf32, #tpu.memory_space<vmem>>, vector<1x4x4xf32>
    %507 = vector.shape_cast %506 : vector<1x4x4xf32> to vector<4x4xf32>
    %cst_445 = arith.constant dense<0.000000e+00> : vector<4x256xf32>
    %508 = tpu.matmul %507, %505, %cst_445 {dimension_numbers = #tpu.dot_dimension_numbers<[1], [0], [0], [1], [0, 0, 1, 1], [], []>} : vector<4x4xf32>, vector<4x256xf32>, vector<4x256xf32> -> vector<4x256xf32>
    %509 = arith.addf %501, %508 : vector<4x256xf32>
    %c0_446 = arith.constant 0 : index
    %c32_447 = arith.constant 32 : index
    %510 = vector.load %arg22[%c0_446, %c32_447] : memref<4x290xf32, #tpu.memory_space<vmem>>, vector<4x256xf32>
    %c0_448 = arith.constant 0 : index
    %c0_449 = arith.constant 0 : index
    %511 = vector.load %arg9[%c0_448, %c0_449] : memref<3x256xf32, #tpu.memory_space<vmem>>, vector<1x256xf32>
    %512 = vector.broadcast %511 : vector<1x256xf32> to vector<4x256xf32>
    %513 = arith.mulf %510, %512 : vector<4x256xf32>
    %c6_450 = arith.constant 6 : index
    %c0_451 = arith.constant 0 : index
    %c0_452 = arith.constant 0 : index
    %514 = vector.load %arg7[%c6_450, %c0_451, %c0_452] : memref<9x4x4xf32, #tpu.memory_space<vmem>>, vector<1x4x4xf32>
    %515 = vector.shape_cast %514 : vector<1x4x4xf32> to vector<4x4xf32>
    %cst_453 = arith.constant dense<0.000000e+00> : vector<4x256xf32>
    %516 = tpu.matmul %515, %513, %cst_453 {dimension_numbers = #tpu.dot_dimension_numbers<[1], [0], [0], [1], [0, 0, 1, 1], [], []>} : vector<4x4xf32>, vector<4x256xf32>, vector<4x256xf32> -> vector<4x256xf32>
    %517 = arith.addf %509, %516 : vector<4x256xf32>
    %c0_454 = arith.constant 0 : index
    %c33_455 = arith.constant 33 : index
    %518 = vector.load %arg22[%c0_454, %c33_455] : memref<4x290xf32, #tpu.memory_space<vmem>>, vector<4x256xf32>
    %c7_456 = arith.constant 7 : index
    %c0_457 = arith.constant 0 : index
    %c0_458 = arith.constant 0 : index
    %519 = vector.load %arg7[%c7_456, %c0_457, %c0_458] : memref<9x4x4xf32, #tpu.memory_space<vmem>>, vector<1x4x4xf32>
    %520 = vector.shape_cast %519 : vector<1x4x4xf32> to vector<4x4xf32>
    %cst_459 = arith.constant dense<0.000000e+00> : vector<4x256xf32>
    %521 = tpu.matmul %520, %518, %cst_459 {dimension_numbers = #tpu.dot_dimension_numbers<[1], [0], [0], [1], [0, 0, 1, 1], [], []>} : vector<4x4xf32>, vector<4x256xf32>, vector<4x256xf32> -> vector<4x256xf32>
    %522 = arith.addf %517, %521 : vector<4x256xf32>
    %c0_460 = arith.constant 0 : index
    %c34_461 = arith.constant 34 : index
    %523 = vector.load %arg22[%c0_460, %c34_461] : memref<4x290xf32, #tpu.memory_space<vmem>>, vector<4x256xf32>
    %c2_462 = arith.constant 2 : index
    %c0_463 = arith.constant 0 : index
    %524 = vector.load %arg9[%c2_462, %c0_463] : memref<3x256xf32, #tpu.memory_space<vmem>>, vector<1x256xf32>
    %525 = vector.broadcast %524 : vector<1x256xf32> to vector<4x256xf32>
    %526 = arith.mulf %523, %525 : vector<4x256xf32>
    %c8_464 = arith.constant 8 : index
    %c0_465 = arith.constant 0 : index
    %c0_466 = arith.constant 0 : index
    %527 = vector.load %arg7[%c8_464, %c0_465, %c0_466] : memref<9x4x4xf32, #tpu.memory_space<vmem>>, vector<1x4x4xf32>
    %528 = vector.shape_cast %527 : vector<1x4x4xf32> to vector<4x4xf32>
    %cst_467 = arith.constant dense<0.000000e+00> : vector<4x256xf32>
    %529 = tpu.matmul %528, %526, %cst_467 {dimension_numbers = #tpu.dot_dimension_numbers<[1], [0], [0], [1], [0, 0, 1, 1], [], []>} : vector<4x4xf32>, vector<4x256xf32>, vector<4x256xf32> -> vector<4x256xf32>
    %530 = arith.addf %522, %529 : vector<4x256xf32>
    %cst_468 = arith.constant 0.000000e+00 : f32
    %531 = vector.broadcast %cst_468 : f32 to vector<4x256xf32>
    %532 = arith.maximumf %530, %531 : vector<4x256xf32>
    %c0_469 = arith.constant 0 : index
    %c0_470 = arith.constant 0 : index
    %533 = vector.load %arg19[%c0_469, %c0_470] : memref<256x1024xf32, #tpu.memory_space<vmem>>, vector<256x1024xf32>
    %cst_471 = arith.constant dense<0.000000e+00> : vector<4x1024xf32>
    %534 = tpu.matmul %532, %533, %cst_471 {dimension_numbers = #tpu.dot_dimension_numbers<[1], [0], [0], [1], [0, 0, 1, 1], [], []>} : vector<4x256xf32>, vector<256x1024xf32>, vector<4x1024xf32> -> vector<4x1024xf32>
    %c0_472 = arith.constant 0 : index
    %c33_473 = arith.constant 33 : index
    %535 = vector.load %arg23[%c0_472, %c33_473] : memref<4x1090xf32, #tpu.memory_space<vmem>>, vector<4x1024xf32>
    tpu.vector_store %arg23[%c0_472, %c33_473], %534 {strides = array<i32>} : memref<4x1090xf32, #tpu.memory_space<vmem>>, vector<4x1024xf32>,
    %cst_474 = arith.constant 0.000000e+00 : f32
    %536 = vector.broadcast %cst_474 : f32 to vector<4x1024xf32>
    %c0_475 = arith.constant 0 : index
    %c0_476 = arith.constant 0 : index
    %537 = vector.load %arg11[%c0_475, %c0_476] : memref<4x1xf32, #tpu.memory_space<vmem>>, vector<4x1xf32>
    %538 = vector.broadcast %537 : vector<4x1xf32> to vector<4x1024xf32>
    %539 = arith.addf %536, %538 : vector<4x1024xf32>
    %c0_477 = arith.constant 0 : index
    %c0_478 = arith.constant 0 : index
    %540 = vector.load %arg23[%c0_477, %c0_478] : memref<4x1090xf32, #tpu.memory_space<vmem>>, vector<4x1024xf32>
    %c0_479 = arith.constant 0 : index
    %c0_480 = arith.constant 0 : index
    %541 = vector.load %arg18[%c0_479, %c0_480] : memref<3x1024xf32, #tpu.memory_space<vmem>>, vector<1x1024xf32>
    %542 = vector.broadcast %541 : vector<1x1024xf32> to vector<4x1024xf32>
    %543 = arith.mulf %540, %542 : vector<4x1024xf32>
    %c0_481 = arith.constant 0 : index
    %c0_482 = arith.constant 0 : index
    %c0_483 = arith.constant 0 : index
    %544 = vector.load %arg10[%c0_481, %c0_482, %c0_483] : memref<9x4x4xf32, #tpu.memory_space<vmem>>, vector<1x4x4xf32>
    %545 = vector.shape_cast %544 : vector<1x4x4xf32> to vector<4x4xf32>
    %cst_484 = arith.constant dense<0.000000e+00> : vector<4x1024xf32>
    %546 = tpu.matmul %545, %543, %cst_484 {dimension_numbers = #tpu.dot_dimension_numbers<[1], [0], [0], [1], [0, 0, 1, 1], [], []>} : vector<4x4xf32>, vector<4x1024xf32>, vector<4x1024xf32> -> vector<4x1024xf32>
    %547 = arith.addf %539, %546 : vector<4x1024xf32>
    %c0_485 = arith.constant 0 : index
    %c1_486 = arith.constant 1 : index
    %548 = vector.load %arg23[%c0_485, %c1_486] : memref<4x1090xf32, #tpu.memory_space<vmem>>, vector<4x1024xf32>
    %c1_487 = arith.constant 1 : index
    %c0_488 = arith.constant 0 : index
    %c0_489 = arith.constant 0 : index
    %549 = vector.load %arg10[%c1_487, %c0_488, %c0_489] : memref<9x4x4xf32, #tpu.memory_space<vmem>>, vector<1x4x4xf32>
    %550 = vector.shape_cast %549 : vector<1x4x4xf32> to vector<4x4xf32>
    %cst_490 = arith.constant dense<0.000000e+00> : vector<4x1024xf32>
    %551 = tpu.matmul %550, %548, %cst_490 {dimension_numbers = #tpu.dot_dimension_numbers<[1], [0], [0], [1], [0, 0, 1, 1], [], []>} : vector<4x4xf32>, vector<4x1024xf32>, vector<4x1024xf32> -> vector<4x1024xf32>
    %552 = arith.addf %547, %551 : vector<4x1024xf32>
    %c0_491 = arith.constant 0 : index
    %c2_492 = arith.constant 2 : index
    %553 = vector.load %arg23[%c0_491, %c2_492] : memref<4x1090xf32, #tpu.memory_space<vmem>>, vector<4x1024xf32>
    %c2_493 = arith.constant 2 : index
    %c0_494 = arith.constant 0 : index
    %554 = vector.load %arg18[%c2_493, %c0_494] : memref<3x1024xf32, #tpu.memory_space<vmem>>, vector<1x1024xf32>
    %555 = vector.broadcast %554 : vector<1x1024xf32> to vector<4x1024xf32>
    %556 = arith.mulf %553, %555 : vector<4x1024xf32>
    %c2_495 = arith.constant 2 : index
    %c0_496 = arith.constant 0 : index
    %c0_497 = arith.constant 0 : index
    %557 = vector.load %arg10[%c2_495, %c0_496, %c0_497] : memref<9x4x4xf32, #tpu.memory_space<vmem>>, vector<1x4x4xf32>
    %558 = vector.shape_cast %557 : vector<1x4x4xf32> to vector<4x4xf32>
    %cst_498 = arith.constant dense<0.000000e+00> : vector<4x1024xf32>
    %559 = tpu.matmul %558, %556, %cst_498 {dimension_numbers = #tpu.dot_dimension_numbers<[1], [0], [0], [1], [0, 0, 1, 1], [], []>} : vector<4x4xf32>, vector<4x1024xf32>, vector<4x1024xf32> -> vector<4x1024xf32>
    %560 = arith.addf %552, %559 : vector<4x1024xf32>
    %c0_499 = arith.constant 0 : index
    %c32_500 = arith.constant 32 : index
    %561 = vector.load %arg23[%c0_499, %c32_500] : memref<4x1090xf32, #tpu.memory_space<vmem>>, vector<4x1024xf32>
    %c0_501 = arith.constant 0 : index
    %c0_502 = arith.constant 0 : index
    %562 = vector.load %arg18[%c0_501, %c0_502] : memref<3x1024xf32, #tpu.memory_space<vmem>>, vector<1x1024xf32>
    %563 = vector.broadcast %562 : vector<1x1024xf32> to vector<4x1024xf32>
    %564 = arith.mulf %561, %563 : vector<4x1024xf32>
    %c3_503 = arith.constant 3 : index
    %c0_504 = arith.constant 0 : index
    %c0_505 = arith.constant 0 : index
    %565 = vector.load %arg10[%c3_503, %c0_504, %c0_505] : memref<9x4x4xf32, #tpu.memory_space<vmem>>, vector<1x4x4xf32>
    %566 = vector.shape_cast %565 : vector<1x4x4xf32> to vector<4x4xf32>
    %cst_506 = arith.constant dense<0.000000e+00> : vector<4x1024xf32>
    %567 = tpu.matmul %566, %564, %cst_506 {dimension_numbers = #tpu.dot_dimension_numbers<[1], [0], [0], [1], [0, 0, 1, 1], [], []>} : vector<4x4xf32>, vector<4x1024xf32>, vector<4x1024xf32> -> vector<4x1024xf32>
    %568 = arith.addf %560, %567 : vector<4x1024xf32>
    %c0_507 = arith.constant 0 : index
    %c33_508 = arith.constant 33 : index
    %569 = vector.load %arg23[%c0_507, %c33_508] : memref<4x1090xf32, #tpu.memory_space<vmem>>, vector<4x1024xf32>
    %c4_509 = arith.constant 4 : index
    %c0_510 = arith.constant 0 : index
    %c0_511 = arith.constant 0 : index
    %570 = vector.load %arg10[%c4_509, %c0_510, %c0_511] : memref<9x4x4xf32, #tpu.memory_space<vmem>>, vector<1x4x4xf32>
    %571 = vector.shape_cast %570 : vector<1x4x4xf32> to vector<4x4xf32>
    %cst_512 = arith.constant dense<0.000000e+00> : vector<4x1024xf32>
    %572 = tpu.matmul %571, %569, %cst_512 {dimension_numbers = #tpu.dot_dimension_numbers<[1], [0], [0], [1], [0, 0, 1, 1], [], []>} : vector<4x4xf32>, vector<4x1024xf32>, vector<4x1024xf32> -> vector<4x1024xf32>
    %573 = arith.addf %568, %572 : vector<4x1024xf32>
    %c0_513 = arith.constant 0 : index
    %c34_514 = arith.constant 34 : index
    %574 = vector.load %arg23[%c0_513, %c34_514] : memref<4x1090xf32, #tpu.memory_space<vmem>>, vector<4x1024xf32>
    %c2_515 = arith.constant 2 : index
    %c0_516 = arith.constant 0 : index
    %575 = vector.load %arg18[%c2_515, %c0_516] : memref<3x1024xf32, #tpu.memory_space<vmem>>, vector<1x1024xf32>
    %576 = vector.broadcast %575 : vector<1x1024xf32> to vector<4x1024xf32>
    %577 = arith.mulf %574, %576 : vector<4x1024xf32>
    %c5_517 = arith.constant 5 : index
    %c0_518 = arith.constant 0 : index
    %c0_519 = arith.constant 0 : index
    %578 = vector.load %arg10[%c5_517, %c0_518, %c0_519] : memref<9x4x4xf32, #tpu.memory_space<vmem>>, vector<1x4x4xf32>
    %579 = vector.shape_cast %578 : vector<1x4x4xf32> to vector<4x4xf32>
    %cst_520 = arith.constant dense<0.000000e+00> : vector<4x1024xf32>
    %580 = tpu.matmul %579, %577, %cst_520 {dimension_numbers = #tpu.dot_dimension_numbers<[1], [0], [0], [1], [0, 0, 1, 1], [], []>} : vector<4x4xf32>, vector<4x1024xf32>, vector<4x1024xf32> -> vector<4x1024xf32>
    %581 = arith.addf %573, %580 : vector<4x1024xf32>
    %c0_521 = arith.constant 0 : index
    %c64_522 = arith.constant 64 : index
    %582 = vector.load %arg23[%c0_521, %c64_522] : memref<4x1090xf32, #tpu.memory_space<vmem>>, vector<4x1024xf32>
    %c0_523 = arith.constant 0 : index
    %c0_524 = arith.constant 0 : index
    %583 = vector.load %arg18[%c0_523, %c0_524] : memref<3x1024xf32, #tpu.memory_space<vmem>>, vector<1x1024xf32>
    %584 = vector.broadcast %583 : vector<1x1024xf32> to vector<4x1024xf32>
    %585 = arith.mulf %582, %584 : vector<4x1024xf32>
    %c6_525 = arith.constant 6 : index
    %c0_526 = arith.constant 0 : index
    %c0_527 = arith.constant 0 : index
    %586 = vector.load %arg10[%c6_525, %c0_526, %c0_527] : memref<9x4x4xf32, #tpu.memory_space<vmem>>, vector<1x4x4xf32>
    %587 = vector.shape_cast %586 : vector<1x4x4xf32> to vector<4x4xf32>
    %cst_528 = arith.constant dense<0.000000e+00> : vector<4x1024xf32>
    %588 = tpu.matmul %587, %585, %cst_528 {dimension_numbers = #tpu.dot_dimension_numbers<[1], [0], [0], [1], [0, 0, 1, 1], [], []>} : vector<4x4xf32>, vector<4x1024xf32>, vector<4x1024xf32> -> vector<4x1024xf32>
    %589 = arith.addf %581, %588 : vector<4x1024xf32>
    %c0_529 = arith.constant 0 : index
    %c65_530 = arith.constant 65 : index
    %590 = vector.load %arg23[%c0_529, %c65_530] : memref<4x1090xf32, #tpu.memory_space<vmem>>, vector<4x1024xf32>
    %c7_531 = arith.constant 7 : index
    %c0_532 = arith.constant 0 : index
    %c0_533 = arith.constant 0 : index
    %591 = vector.load %arg10[%c7_531, %c0_532, %c0_533] : memref<9x4x4xf32, #tpu.memory_space<vmem>>, vector<1x4x4xf32>
    %592 = vector.shape_cast %591 : vector<1x4x4xf32> to vector<4x4xf32>
    %cst_534 = arith.constant dense<0.000000e+00> : vector<4x1024xf32>
    %593 = tpu.matmul %592, %590, %cst_534 {dimension_numbers = #tpu.dot_dimension_numbers<[1], [0], [0], [1], [0, 0, 1, 1], [], []>} : vector<4x4xf32>, vector<4x1024xf32>, vector<4x1024xf32> -> vector<4x1024xf32>
    %594 = arith.addf %589, %593 : vector<4x1024xf32>
    %c0_535 = arith.constant 0 : index
    %c66_536 = arith.constant 66 : index
    %595 = vector.load %arg23[%c0_535, %c66_536] : memref<4x1090xf32, #tpu.memory_space<vmem>>, vector<4x1024xf32>
    %c2_537 = arith.constant 2 : index
    %c0_538 = arith.constant 0 : index
    %596 = vector.load %arg18[%c2_537, %c0_538] : memref<3x1024xf32, #tpu.memory_space<vmem>>, vector<1x1024xf32>
    %597 = vector.broadcast %596 : vector<1x1024xf32> to vector<4x1024xf32>
    %598 = arith.mulf %595, %597 : vector<4x1024xf32>
    %c8_539 = arith.constant 8 : index
    %c0_540 = arith.constant 0 : index
    %c0_541 = arith.constant 0 : index
    %599 = vector.load %arg10[%c8_539, %c0_540, %c0_541] : memref<9x4x4xf32, #tpu.memory_space<vmem>>, vector<1x4x4xf32>
    %600 = vector.shape_cast %599 : vector<1x4x4xf32> to vector<4x4xf32>
    %cst_542 = arith.constant dense<0.000000e+00> : vector<4x1024xf32>
    %601 = tpu.matmul %600, %598, %cst_542 {dimension_numbers = #tpu.dot_dimension_numbers<[1], [0], [0], [1], [0, 0, 1, 1], [], []>} : vector<4x4xf32>, vector<4x1024xf32>, vector<4x1024xf32> -> vector<4x1024xf32>
    %602 = arith.addf %594, %601 : vector<4x1024xf32>
    %cst_543 = arith.constant 0.000000e+00 : f32
    %603 = vector.broadcast %cst_543 : f32 to vector<4x1024xf32>
    %604 = arith.maximumf %602, %603 : vector<4x1024xf32>
    %c0_544 = arith.constant 0 : index
    %c33_545 = arith.constant 33 : index
    %605 = vector.load %arg23[%c0_544, %c33_545] : memref<4x1090xf32, #tpu.memory_space<vmem>>, vector<4x1024xf32>
    tpu.vector_store %arg23[%c0_544, %c33_545], %604 {strides = array<i32>} : memref<4x1090xf32, #tpu.memory_space<vmem>>, vector<4x1024xf32>,
    %cst_546 = arith.constant 0.000000e+00 : f32
    %606 = vector.broadcast %cst_546 : f32 to vector<4x1024xf32>
    %c0_547 = arith.constant 0 : index
    %c0_548 = arith.constant 0 : index
    %607 = vector.load %arg13[%c0_547, %c0_548] : memref<4x1xf32, #tpu.memory_space<vmem>>, vector<4x1xf32>
    %608 = vector.broadcast %607 : vector<4x1xf32> to vector<4x1024xf32>
    %609 = arith.addf %606, %608 : vector<4x1024xf32>
    %c0_549 = arith.constant 0 : index
    %c0_550 = arith.constant 0 : index
    %610 = vector.load %arg23[%c0_549, %c0_550] : memref<4x1090xf32, #tpu.memory_space<vmem>>, vector<4x1024xf32>
    %c0_551 = arith.constant 0 : index
    %c0_552 = arith.constant 0 : index
    %611 = vector.load %arg18[%c0_551, %c0_552] : memref<3x1024xf32, #tpu.memory_space<vmem>>, vector<1x1024xf32>
    %612 = vector.broadcast %611 : vector<1x1024xf32> to vector<4x1024xf32>
    %613 = arith.mulf %610, %612 : vector<4x1024xf32>
    %c0_553 = arith.constant 0 : index
    %c0_554 = arith.constant 0 : index
    %c0_555 = arith.constant 0 : index
    %614 = vector.load %arg12[%c0_553, %c0_554, %c0_555] : memref<9x4x4xf32, #tpu.memory_space<vmem>>, vector<1x4x4xf32>
    %615 = vector.shape_cast %614 : vector<1x4x4xf32> to vector<4x4xf32>
    %cst_556 = arith.constant dense<0.000000e+00> : vector<4x1024xf32>
    %616 = tpu.matmul %615, %613, %cst_556 {dimension_numbers = #tpu.dot_dimension_numbers<[1], [0], [0], [1], [0, 0, 1, 1], [], []>} : vector<4x4xf32>, vector<4x1024xf32>, vector<4x1024xf32> -> vector<4x1024xf32>
    %617 = arith.addf %609, %616 : vector<4x1024xf32>
    %c0_557 = arith.constant 0 : index
    %c1_558 = arith.constant 1 : index
    %618 = vector.load %arg23[%c0_557, %c1_558] : memref<4x1090xf32, #tpu.memory_space<vmem>>, vector<4x1024xf32>
    %c1_559 = arith.constant 1 : index
    %c0_560 = arith.constant 0 : index
    %c0_561 = arith.constant 0 : index
    %619 = vector.load %arg12[%c1_559, %c0_560, %c0_561] : memref<9x4x4xf32, #tpu.memory_space<vmem>>, vector<1x4x4xf32>
    %620 = vector.shape_cast %619 : vector<1x4x4xf32> to vector<4x4xf32>
    %cst_562 = arith.constant dense<0.000000e+00> : vector<4x1024xf32>
    %621 = tpu.matmul %620, %618, %cst_562 {dimension_numbers = #tpu.dot_dimension_numbers<[1], [0], [0], [1], [0, 0, 1, 1], [], []>} : vector<4x4xf32>, vector<4x1024xf32>, vector<4x1024xf32> -> vector<4x1024xf32>
    %622 = arith.addf %617, %621 : vector<4x1024xf32>
    %c0_563 = arith.constant 0 : index
    %c2_564 = arith.constant 2 : index
    %623 = vector.load %arg23[%c0_563, %c2_564] : memref<4x1090xf32, #tpu.memory_space<vmem>>, vector<4x1024xf32>
    %c2_565 = arith.constant 2 : index
    %c0_566 = arith.constant 0 : index
    %624 = vector.load %arg18[%c2_565, %c0_566] : memref<3x1024xf32, #tpu.memory_space<vmem>>, vector<1x1024xf32>
    %625 = vector.broadcast %624 : vector<1x1024xf32> to vector<4x1024xf32>
    %626 = arith.mulf %623, %625 : vector<4x1024xf32>
    %c2_567 = arith.constant 2 : index
    %c0_568 = arith.constant 0 : index
    %c0_569 = arith.constant 0 : index
    %627 = vector.load %arg12[%c2_567, %c0_568, %c0_569] : memref<9x4x4xf32, #tpu.memory_space<vmem>>, vector<1x4x4xf32>
    %628 = vector.shape_cast %627 : vector<1x4x4xf32> to vector<4x4xf32>
    %cst_570 = arith.constant dense<0.000000e+00> : vector<4x1024xf32>
    %629 = tpu.matmul %628, %626, %cst_570 {dimension_numbers = #tpu.dot_dimension_numbers<[1], [0], [0], [1], [0, 0, 1, 1], [], []>} : vector<4x4xf32>, vector<4x1024xf32>, vector<4x1024xf32> -> vector<4x1024xf32>
    %630 = arith.addf %622, %629 : vector<4x1024xf32>
    %c0_571 = arith.constant 0 : index
    %c32_572 = arith.constant 32 : index
    %631 = vector.load %arg23[%c0_571, %c32_572] : memref<4x1090xf32, #tpu.memory_space<vmem>>, vector<4x1024xf32>
    %c0_573 = arith.constant 0 : index
    %c0_574 = arith.constant 0 : index
    %632 = vector.load %arg18[%c0_573, %c0_574] : memref<3x1024xf32, #tpu.memory_space<vmem>>, vector<1x1024xf32>
    %633 = vector.broadcast %632 : vector<1x1024xf32> to vector<4x1024xf32>
    %634 = arith.mulf %631, %633 : vector<4x1024xf32>
    %c3_575 = arith.constant 3 : index
    %c0_576 = arith.constant 0 : index
    %c0_577 = arith.constant 0 : index
    %635 = vector.load %arg12[%c3_575, %c0_576, %c0_577] : memref<9x4x4xf32, #tpu.memory_space<vmem>>, vector<1x4x4xf32>
    %636 = vector.shape_cast %635 : vector<1x4x4xf32> to vector<4x4xf32>
    %cst_578 = arith.constant dense<0.000000e+00> : vector<4x1024xf32>
    %637 = tpu.matmul %636, %634, %cst_578 {dimension_numbers = #tpu.dot_dimension_numbers<[1], [0], [0], [1], [0, 0, 1, 1], [], []>} : vector<4x4xf32>, vector<4x1024xf32>, vector<4x1024xf32> -> vector<4x1024xf32>
    %638 = arith.addf %630, %637 : vector<4x1024xf32>
    %c0_579 = arith.constant 0 : index
    %c33_580 = arith.constant 33 : index
    %639 = vector.load %arg23[%c0_579, %c33_580] : memref<4x1090xf32, #tpu.memory_space<vmem>>, vector<4x1024xf32>
    %c4_581 = arith.constant 4 : index
    %c0_582 = arith.constant 0 : index
    %c0_583 = arith.constant 0 : index
    %640 = vector.load %arg12[%c4_581, %c0_582, %c0_583] : memref<9x4x4xf32, #tpu.memory_space<vmem>>, vector<1x4x4xf32>
    %641 = vector.shape_cast %640 : vector<1x4x4xf32> to vector<4x4xf32>
    %cst_584 = arith.constant dense<0.000000e+00> : vector<4x1024xf32>
    %642 = tpu.matmul %641, %639, %cst_584 {dimension_numbers = #tpu.dot_dimension_numbers<[1], [0], [0], [1], [0, 0, 1, 1], [], []>} : vector<4x4xf32>, vector<4x1024xf32>, vector<4x1024xf32> -> vector<4x1024xf32>
    %643 = arith.addf %638, %642 : vector<4x1024xf32>
    %c0_585 = arith.constant 0 : index
    %c34_586 = arith.constant 34 : index
    %644 = vector.load %arg23[%c0_585, %c34_586] : memref<4x1090xf32, #tpu.memory_space<vmem>>, vector<4x1024xf32>
    %c2_587 = arith.constant 2 : index
    %c0_588 = arith.constant 0 : index
    %645 = vector.load %arg18[%c2_587, %c0_588] : memref<3x1024xf32, #tpu.memory_space<vmem>>, vector<1x1024xf32>
    %646 = vector.broadcast %645 : vector<1x1024xf32> to vector<4x1024xf32>
    %647 = arith.mulf %644, %646 : vector<4x1024xf32>
    %c5_589 = arith.constant 5 : index
    %c0_590 = arith.constant 0 : index
    %c0_591 = arith.constant 0 : index
    %648 = vector.load %arg12[%c5_589, %c0_590, %c0_591] : memref<9x4x4xf32, #tpu.memory_space<vmem>>, vector<1x4x4xf32>
    %649 = vector.shape_cast %648 : vector<1x4x4xf32> to vector<4x4xf32>
    %cst_592 = arith.constant dense<0.000000e+00> : vector<4x1024xf32>
    %650 = tpu.matmul %649, %647, %cst_592 {dimension_numbers = #tpu.dot_dimension_numbers<[1], [0], [0], [1], [0, 0, 1, 1], [], []>} : vector<4x4xf32>, vector<4x1024xf32>, vector<4x1024xf32> -> vector<4x1024xf32>
    %651 = arith.addf %643, %650 : vector<4x1024xf32>
    %c0_593 = arith.constant 0 : index
    %c64_594 = arith.constant 64 : index
    %652 = vector.load %arg23[%c0_593, %c64_594] : memref<4x1090xf32, #tpu.memory_space<vmem>>, vector<4x1024xf32>
    %c0_595 = arith.constant 0 : index
    %c0_596 = arith.constant 0 : index
    %653 = vector.load %arg18[%c0_595, %c0_596] : memref<3x1024xf32, #tpu.memory_space<vmem>>, vector<1x1024xf32>
    %654 = vector.broadcast %653 : vector<1x1024xf32> to vector<4x1024xf32>
    %655 = arith.mulf %652, %654 : vector<4x1024xf32>
    %c6_597 = arith.constant 6 : index
    %c0_598 = arith.constant 0 : index
    %c0_599 = arith.constant 0 : index
    %656 = vector.load %arg12[%c6_597, %c0_598, %c0_599] : memref<9x4x4xf32, #tpu.memory_space<vmem>>, vector<1x4x4xf32>
    %657 = vector.shape_cast %656 : vector<1x4x4xf32> to vector<4x4xf32>
    %cst_600 = arith.constant dense<0.000000e+00> : vector<4x1024xf32>
    %658 = tpu.matmul %657, %655, %cst_600 {dimension_numbers = #tpu.dot_dimension_numbers<[1], [0], [0], [1], [0, 0, 1, 1], [], []>} : vector<4x4xf32>, vector<4x1024xf32>, vector<4x1024xf32> -> vector<4x1024xf32>
    %659 = arith.addf %651, %658 : vector<4x1024xf32>
    %c0_601 = arith.constant 0 : index
    %c65_602 = arith.constant 65 : index
    %660 = vector.load %arg23[%c0_601, %c65_602] : memref<4x1090xf32, #tpu.memory_space<vmem>>, vector<4x1024xf32>
    %c7_603 = arith.constant 7 : index
    %c0_604 = arith.constant 0 : index
    %c0_605 = arith.constant 0 : index
    %661 = vector.load %arg12[%c7_603, %c0_604, %c0_605] : memref<9x4x4xf32, #tpu.memory_space<vmem>>, vector<1x4x4xf32>
    %662 = vector.shape_cast %661 : vector<1x4x4xf32> to vector<4x4xf32>
    %cst_606 = arith.constant dense<0.000000e+00> : vector<4x1024xf32>
    %663 = tpu.matmul %662, %660, %cst_606 {dimension_numbers = #tpu.dot_dimension_numbers<[1], [0], [0], [1], [0, 0, 1, 1], [], []>} : vector<4x4xf32>, vector<4x1024xf32>, vector<4x1024xf32> -> vector<4x1024xf32>
    %664 = arith.addf %659, %663 : vector<4x1024xf32>
    %c0_607 = arith.constant 0 : index
    %c66_608 = arith.constant 66 : index
    %665 = vector.load %arg23[%c0_607, %c66_608] : memref<4x1090xf32, #tpu.memory_space<vmem>>, vector<4x1024xf32>
    %c2_609 = arith.constant 2 : index
    %c0_610 = arith.constant 0 : index
    %666 = vector.load %arg18[%c2_609, %c0_610] : memref<3x1024xf32, #tpu.memory_space<vmem>>, vector<1x1024xf32>
    %667 = vector.broadcast %666 : vector<1x1024xf32> to vector<4x1024xf32>
    %668 = arith.mulf %665, %667 : vector<4x1024xf32>
    %c8_611 = arith.constant 8 : index
    %c0_612 = arith.constant 0 : index
    %c0_613 = arith.constant 0 : index
    %669 = vector.load %arg12[%c8_611, %c0_612, %c0_613] : memref<9x4x4xf32, #tpu.memory_space<vmem>>, vector<1x4x4xf32>
    %670 = vector.shape_cast %669 : vector<1x4x4xf32> to vector<4x4xf32>
    %cst_614 = arith.constant dense<0.000000e+00> : vector<4x1024xf32>
    %671 = tpu.matmul %670, %668, %cst_614 {dimension_numbers = #tpu.dot_dimension_numbers<[1], [0], [0], [1], [0, 0, 1, 1], [], []>} : vector<4x4xf32>, vector<4x1024xf32>, vector<4x1024xf32> -> vector<4x1024xf32>
    %672 = arith.addf %664, %671 : vector<4x1024xf32>
    %cst_615 = arith.constant 0.000000e+00 : f32
    %673 = vector.broadcast %cst_615 : f32 to vector<4x1024xf32>
    %674 = arith.maximumf %672, %673 : vector<4x1024xf32>
    %c0_616 = arith.constant 0 : index
    %c33_617 = arith.constant 33 : index
    %675 = vector.load %arg23[%c0_616, %c33_617] : memref<4x1090xf32, #tpu.memory_space<vmem>>, vector<4x1024xf32>
    tpu.vector_store %arg23[%c0_616, %c33_617], %674 {strides = array<i32>} : memref<4x1090xf32, #tpu.memory_space<vmem>>, vector<4x1024xf32>,
    %cst_618 = arith.constant 0.000000e+00 : f32
    %676 = vector.broadcast %cst_618 : f32 to vector<4x1024xf32>
    %c0_619 = arith.constant 0 : index
    %c0_620 = arith.constant 0 : index
    %677 = vector.load %arg15[%c0_619, %c0_620] : memref<4x1xf32, #tpu.memory_space<vmem>>, vector<4x1xf32>
    %678 = vector.broadcast %677 : vector<4x1xf32> to vector<4x1024xf32>
    %679 = arith.addf %676, %678 : vector<4x1024xf32>
    %680 = arith.addf %679, %604 : vector<4x1024xf32>
    %c0_621 = arith.constant 0 : index
    %c0_622 = arith.constant 0 : index
    %681 = vector.load %arg23[%c0_621, %c0_622] : memref<4x1090xf32, #tpu.memory_space<vmem>>, vector<4x1024xf32>
    %c0_623 = arith.constant 0 : index
    %c0_624 = arith.constant 0 : index
    %682 = vector.load %arg18[%c0_623, %c0_624] : memref<3x1024xf32, #tpu.memory_space<vmem>>, vector<1x1024xf32>
    %683 = vector.broadcast %682 : vector<1x1024xf32> to vector<4x1024xf32>
    %684 = arith.mulf %681, %683 : vector<4x1024xf32>
    %c0_625 = arith.constant 0 : index
    %c0_626 = arith.constant 0 : index
    %c0_627 = arith.constant 0 : index
    %685 = vector.load %arg14[%c0_625, %c0_626, %c0_627] : memref<9x4x4xf32, #tpu.memory_space<vmem>>, vector<1x4x4xf32>
    %686 = vector.shape_cast %685 : vector<1x4x4xf32> to vector<4x4xf32>
    %cst_628 = arith.constant dense<0.000000e+00> : vector<4x1024xf32>
    %687 = tpu.matmul %686, %684, %cst_628 {dimension_numbers = #tpu.dot_dimension_numbers<[1], [0], [0], [1], [0, 0, 1, 1], [], []>} : vector<4x4xf32>, vector<4x1024xf32>, vector<4x1024xf32> -> vector<4x1024xf32>
    %688 = arith.addf %680, %687 : vector<4x1024xf32>
    %c0_629 = arith.constant 0 : index
    %c1_630 = arith.constant 1 : index
    %689 = vector.load %arg23[%c0_629, %c1_630] : memref<4x1090xf32, #tpu.memory_space<vmem>>, vector<4x1024xf32>
    %c1_631 = arith.constant 1 : index
    %c0_632 = arith.constant 0 : index
    %c0_633 = arith.constant 0 : index
    %690 = vector.load %arg14[%c1_631, %c0_632, %c0_633] : memref<9x4x4xf32, #tpu.memory_space<vmem>>, vector<1x4x4xf32>
    %691 = vector.shape_cast %690 : vector<1x4x4xf32> to vector<4x4xf32>
    %cst_634 = arith.constant dense<0.000000e+00> : vector<4x1024xf32>
    %692 = tpu.matmul %691, %689, %cst_634 {dimension_numbers = #tpu.dot_dimension_numbers<[1], [0], [0], [1], [0, 0, 1, 1], [], []>} : vector<4x4xf32>, vector<4x1024xf32>, vector<4x1024xf32> -> vector<4x1024xf32>
    %693 = arith.addf %688, %692 : vector<4x1024xf32>
    %c0_635 = arith.constant 0 : index
    %c2_636 = arith.constant 2 : index
    %694 = vector.load %arg23[%c0_635, %c2_636] : memref<4x1090xf32, #tpu.memory_space<vmem>>, vector<4x1024xf32>
    %c2_637 = arith.constant 2 : index
    %c0_638 = arith.constant 0 : index
    %695 = vector.load %arg18[%c2_637, %c0_638] : memref<3x1024xf32, #tpu.memory_space<vmem>>, vector<1x1024xf32>
    %696 = vector.broadcast %695 : vector<1x1024xf32> to vector<4x1024xf32>
    %697 = arith.mulf %694, %696 : vector<4x1024xf32>
    %c2_639 = arith.constant 2 : index
    %c0_640 = arith.constant 0 : index
    %c0_641 = arith.constant 0 : index
    %698 = vector.load %arg14[%c2_639, %c0_640, %c0_641] : memref<9x4x4xf32, #tpu.memory_space<vmem>>, vector<1x4x4xf32>
    %699 = vector.shape_cast %698 : vector<1x4x4xf32> to vector<4x4xf32>
    %cst_642 = arith.constant dense<0.000000e+00> : vector<4x1024xf32>
    %700 = tpu.matmul %699, %697, %cst_642 {dimension_numbers = #tpu.dot_dimension_numbers<[1], [0], [0], [1], [0, 0, 1, 1], [], []>} : vector<4x4xf32>, vector<4x1024xf32>, vector<4x1024xf32> -> vector<4x1024xf32>
    %701 = arith.addf %693, %700 : vector<4x1024xf32>
    %c0_643 = arith.constant 0 : index
    %c32_644 = arith.constant 32 : index
    %702 = vector.load %arg23[%c0_643, %c32_644] : memref<4x1090xf32, #tpu.memory_space<vmem>>, vector<4x1024xf32>
    %c0_645 = arith.constant 0 : index
    %c0_646 = arith.constant 0 : index
    %703 = vector.load %arg18[%c0_645, %c0_646] : memref<3x1024xf32, #tpu.memory_space<vmem>>, vector<1x1024xf32>
    %704 = vector.broadcast %703 : vector<1x1024xf32> to vector<4x1024xf32>
    %705 = arith.mulf %702, %704 : vector<4x1024xf32>
    %c3_647 = arith.constant 3 : index
    %c0_648 = arith.constant 0 : index
    %c0_649 = arith.constant 0 : index
    %706 = vector.load %arg14[%c3_647, %c0_648, %c0_649] : memref<9x4x4xf32, #tpu.memory_space<vmem>>, vector<1x4x4xf32>
    %707 = vector.shape_cast %706 : vector<1x4x4xf32> to vector<4x4xf32>
    %cst_650 = arith.constant dense<0.000000e+00> : vector<4x1024xf32>
    %708 = tpu.matmul %707, %705, %cst_650 {dimension_numbers = #tpu.dot_dimension_numbers<[1], [0], [0], [1], [0, 0, 1, 1], [], []>} : vector<4x4xf32>, vector<4x1024xf32>, vector<4x1024xf32> -> vector<4x1024xf32>
    %709 = arith.addf %701, %708 : vector<4x1024xf32>
    %c0_651 = arith.constant 0 : index
    %c33_652 = arith.constant 33 : index
    %710 = vector.load %arg23[%c0_651, %c33_652] : memref<4x1090xf32, #tpu.memory_space<vmem>>, vector<4x1024xf32>
    %c4_653 = arith.constant 4 : index
    %c0_654 = arith.constant 0 : index
    %c0_655 = arith.constant 0 : index
    %711 = vector.load %arg14[%c4_653, %c0_654, %c0_655] : memref<9x4x4xf32, #tpu.memory_space<vmem>>, vector<1x4x4xf32>
    %712 = vector.shape_cast %711 : vector<1x4x4xf32> to vector<4x4xf32>
    %cst_656 = arith.constant dense<0.000000e+00> : vector<4x1024xf32>
    %713 = tpu.matmul %712, %710, %cst_656 {dimension_numbers = #tpu.dot_dimension_numbers<[1], [0], [0], [1], [0, 0, 1, 1], [], []>} : vector<4x4xf32>, vector<4x1024xf32>, vector<4x1024xf32> -> vector<4x1024xf32>
    %714 = arith.addf %709, %713 : vector<4x1024xf32>
    %c0_657 = arith.constant 0 : index
    %c34_658 = arith.constant 34 : index
    %715 = vector.load %arg23[%c0_657, %c34_658] : memref<4x1090xf32, #tpu.memory_space<vmem>>, vector<4x1024xf32>
    %c2_659 = arith.constant 2 : index
    %c0_660 = arith.constant 0 : index
    %716 = vector.load %arg18[%c2_659, %c0_660] : memref<3x1024xf32, #tpu.memory_space<vmem>>, vector<1x1024xf32>
    %717 = vector.broadcast %716 : vector<1x1024xf32> to vector<4x1024xf32>
    %718 = arith.mulf %715, %717 : vector<4x1024xf32>
    %c5_661 = arith.constant 5 : index
    %c0_662 = arith.constant 0 : index
    %c0_663 = arith.constant 0 : index
    %719 = vector.load %arg14[%c5_661, %c0_662, %c0_663] : memref<9x4x4xf32, #tpu.memory_space<vmem>>, vector<1x4x4xf32>
    %720 = vector.shape_cast %719 : vector<1x4x4xf32> to vector<4x4xf32>
    %cst_664 = arith.constant dense<0.000000e+00> : vector<4x1024xf32>
    %721 = tpu.matmul %720, %718, %cst_664 {dimension_numbers = #tpu.dot_dimension_numbers<[1], [0], [0], [1], [0, 0, 1, 1], [], []>} : vector<4x4xf32>, vector<4x1024xf32>, vector<4x1024xf32> -> vector<4x1024xf32>
    %722 = arith.addf %714, %721 : vector<4x1024xf32>
    %c0_665 = arith.constant 0 : index
    %c64_666 = arith.constant 64 : index
    %723 = vector.load %arg23[%c0_665, %c64_666] : memref<4x1090xf32, #tpu.memory_space<vmem>>, vector<4x1024xf32>
    %c0_667 = arith.constant 0 : index
    %c0_668 = arith.constant 0 : index
    %724 = vector.load %arg18[%c0_667, %c0_668] : memref<3x1024xf32, #tpu.memory_space<vmem>>, vector<1x1024xf32>
    %725 = vector.broadcast %724 : vector<1x1024xf32> to vector<4x1024xf32>
    %726 = arith.mulf %723, %725 : vector<4x1024xf32>
    %c6_669 = arith.constant 6 : index
    %c0_670 = arith.constant 0 : index
    %c0_671 = arith.constant 0 : index
    %727 = vector.load %arg14[%c6_669, %c0_670, %c0_671] : memref<9x4x4xf32, #tpu.memory_space<vmem>>, vector<1x4x4xf32>
    %728 = vector.shape_cast %727 : vector<1x4x4xf32> to vector<4x4xf32>
    %cst_672 = arith.constant dense<0.000000e+00> : vector<4x1024xf32>
    %729 = tpu.matmul %728, %726, %cst_672 {dimension_numbers = #tpu.dot_dimension_numbers<[1], [0], [0], [1], [0, 0, 1, 1], [], []>} : vector<4x4xf32>, vector<4x1024xf32>, vector<4x1024xf32> -> vector<4x1024xf32>
    %730 = arith.addf %722, %729 : vector<4x1024xf32>
    %c0_673 = arith.constant 0 : index
    %c65_674 = arith.constant 65 : index
    %731 = vector.load %arg23[%c0_673, %c65_674] : memref<4x1090xf32, #tpu.memory_space<vmem>>, vector<4x1024xf32>
    %c7_675 = arith.constant 7 : index
    %c0_676 = arith.constant 0 : index
    %c0_677 = arith.constant 0 : index
    %732 = vector.load %arg14[%c7_675, %c0_676, %c0_677] : memref<9x4x4xf32, #tpu.memory_space<vmem>>, vector<1x4x4xf32>
    %733 = vector.shape_cast %732 : vector<1x4x4xf32> to vector<4x4xf32>
    %cst_678 = arith.constant dense<0.000000e+00> : vector<4x1024xf32>
    %734 = tpu.matmul %733, %731, %cst_678 {dimension_numbers = #tpu.dot_dimension_numbers<[1], [0], [0], [1], [0, 0, 1, 1], [], []>} : vector<4x4xf32>, vector<4x1024xf32>, vector<4x1024xf32> -> vector<4x1024xf32>
    %735 = arith.addf %730, %734 : vector<4x1024xf32>
    %c0_679 = arith.constant 0 : index
    %c66_680 = arith.constant 66 : index
    %736 = vector.load %arg23[%c0_679, %c66_680] : memref<4x1090xf32, #tpu.memory_space<vmem>>, vector<4x1024xf32>
    %c2_681 = arith.constant 2 : index
    %c0_682 = arith.constant 0 : index
    %737 = vector.load %arg18[%c2_681, %c0_682] : memref<3x1024xf32, #tpu.memory_space<vmem>>, vector<1x1024xf32>
    %738 = vector.broadcast %737 : vector<1x1024xf32> to vector<4x1024xf32>
    %739 = arith.mulf %736, %738 : vector<4x1024xf32>
    %c8_683 = arith.constant 8 : index
    %c0_684 = arith.constant 0 : index
    %c0_685 = arith.constant 0 : index
    %740 = vector.load %arg14[%c8_683, %c0_684, %c0_685] : memref<9x4x4xf32, #tpu.memory_space<vmem>>, vector<1x4x4xf32>
    %741 = vector.shape_cast %740 : vector<1x4x4xf32> to vector<4x4xf32>
    %cst_686 = arith.constant dense<0.000000e+00> : vector<4x1024xf32>
    %742 = tpu.matmul %741, %739, %cst_686 {dimension_numbers = #tpu.dot_dimension_numbers<[1], [0], [0], [1], [0, 0, 1, 1], [], []>} : vector<4x4xf32>, vector<4x1024xf32>, vector<4x1024xf32> -> vector<4x1024xf32>
    %743 = arith.addf %735, %742 : vector<4x1024xf32>
    %cst_687 = arith.constant 0.000000e+00 : f32
    %744 = vector.broadcast %cst_687 : f32 to vector<4x1024xf32>
    %745 = arith.maximumf %743, %744 : vector<4x1024xf32>
    %c0_688 = arith.constant 0 : index
    %c33_689 = arith.constant 33 : index
    %746 = vector.load %arg23[%c0_688, %c33_689] : memref<4x1090xf32, #tpu.memory_space<vmem>>, vector<4x1024xf32>
    tpu.vector_store %arg23[%c0_688, %c33_689], %745 {strides = array<i32>} : memref<4x1090xf32, #tpu.memory_space<vmem>>, vector<4x1024xf32>,
    %cst_690 = arith.constant 0.000000e+00 : f32
    %747 = vector.broadcast %cst_690 : f32 to vector<4x1024xf32>
    %c0_691 = arith.constant 0 : index
    %c0_692 = arith.constant 0 : index
    %748 = vector.load %arg17[%c0_691, %c0_692] : memref<4x1xf32, #tpu.memory_space<vmem>>, vector<4x1xf32>
    %749 = vector.broadcast %748 : vector<4x1xf32> to vector<4x1024xf32>
    %750 = arith.addf %747, %749 : vector<4x1024xf32>
    %c0_693 = arith.constant 0 : index
    %c0_694 = arith.constant 0 : index
    %751 = vector.load %arg23[%c0_693, %c0_694] : memref<4x1090xf32, #tpu.memory_space<vmem>>, vector<4x1024xf32>
    %c0_695 = arith.constant 0 : index
    %c0_696 = arith.constant 0 : index
    %752 = vector.load %arg18[%c0_695, %c0_696] : memref<3x1024xf32, #tpu.memory_space<vmem>>, vector<1x1024xf32>
    %753 = vector.broadcast %752 : vector<1x1024xf32> to vector<4x1024xf32>
    %754 = arith.mulf %751, %753 : vector<4x1024xf32>
    %c0_697 = arith.constant 0 : index
    %c0_698 = arith.constant 0 : index
    %c0_699 = arith.constant 0 : index
    %755 = vector.load %arg16[%c0_697, %c0_698, %c0_699] : memref<9x4x4xf32, #tpu.memory_space<vmem>>, vector<1x4x4xf32>
    %756 = vector.shape_cast %755 : vector<1x4x4xf32> to vector<4x4xf32>
    %cst_700 = arith.constant dense<0.000000e+00> : vector<4x1024xf32>
    %757 = tpu.matmul %756, %754, %cst_700 {dimension_numbers = #tpu.dot_dimension_numbers<[1], [0], [0], [1], [0, 0, 1, 1], [], []>} : vector<4x4xf32>, vector<4x1024xf32>, vector<4x1024xf32> -> vector<4x1024xf32>
    %758 = arith.addf %750, %757 : vector<4x1024xf32>
    %c0_701 = arith.constant 0 : index
    %c1_702 = arith.constant 1 : index
    %759 = vector.load %arg23[%c0_701, %c1_702] : memref<4x1090xf32, #tpu.memory_space<vmem>>, vector<4x1024xf32>
    %c1_703 = arith.constant 1 : index
    %c0_704 = arith.constant 0 : index
    %c0_705 = arith.constant 0 : index
    %760 = vector.load %arg16[%c1_703, %c0_704, %c0_705] : memref<9x4x4xf32, #tpu.memory_space<vmem>>, vector<1x4x4xf32>
    %761 = vector.shape_cast %760 : vector<1x4x4xf32> to vector<4x4xf32>
    %cst_706 = arith.constant dense<0.000000e+00> : vector<4x1024xf32>
    %762 = tpu.matmul %761, %759, %cst_706 {dimension_numbers = #tpu.dot_dimension_numbers<[1], [0], [0], [1], [0, 0, 1, 1], [], []>} : vector<4x4xf32>, vector<4x1024xf32>, vector<4x1024xf32> -> vector<4x1024xf32>
    %763 = arith.addf %758, %762 : vector<4x1024xf32>
    %c0_707 = arith.constant 0 : index
    %c2_708 = arith.constant 2 : index
    %764 = vector.load %arg23[%c0_707, %c2_708] : memref<4x1090xf32, #tpu.memory_space<vmem>>, vector<4x1024xf32>
    %c2_709 = arith.constant 2 : index
    %c0_710 = arith.constant 0 : index
    %765 = vector.load %arg18[%c2_709, %c0_710] : memref<3x1024xf32, #tpu.memory_space<vmem>>, vector<1x1024xf32>
    %766 = vector.broadcast %765 : vector<1x1024xf32> to vector<4x1024xf32>
    %767 = arith.mulf %764, %766 : vector<4x1024xf32>
    %c2_711 = arith.constant 2 : index
    %c0_712 = arith.constant 0 : index
    %c0_713 = arith.constant 0 : index
    %768 = vector.load %arg16[%c2_711, %c0_712, %c0_713] : memref<9x4x4xf32, #tpu.memory_space<vmem>>, vector<1x4x4xf32>
    %769 = vector.shape_cast %768 : vector<1x4x4xf32> to vector<4x4xf32>
    %cst_714 = arith.constant dense<0.000000e+00> : vector<4x1024xf32>
    %770 = tpu.matmul %769, %767, %cst_714 {dimension_numbers = #tpu.dot_dimension_numbers<[1], [0], [0], [1], [0, 0, 1, 1], [], []>} : vector<4x4xf32>, vector<4x1024xf32>, vector<4x1024xf32> -> vector<4x1024xf32>
    %771 = arith.addf %763, %770 : vector<4x1024xf32>
    %c0_715 = arith.constant 0 : index
    %c32_716 = arith.constant 32 : index
    %772 = vector.load %arg23[%c0_715, %c32_716] : memref<4x1090xf32, #tpu.memory_space<vmem>>, vector<4x1024xf32>
    %c0_717 = arith.constant 0 : index
    %c0_718 = arith.constant 0 : index
    %773 = vector.load %arg18[%c0_717, %c0_718] : memref<3x1024xf32, #tpu.memory_space<vmem>>, vector<1x1024xf32>
    %774 = vector.broadcast %773 : vector<1x1024xf32> to vector<4x1024xf32>
    %775 = arith.mulf %772, %774 : vector<4x1024xf32>
    %c3_719 = arith.constant 3 : index
    %c0_720 = arith.constant 0 : index
    %c0_721 = arith.constant 0 : index
    %776 = vector.load %arg16[%c3_719, %c0_720, %c0_721] : memref<9x4x4xf32, #tpu.memory_space<vmem>>, vector<1x4x4xf32>
    %777 = vector.shape_cast %776 : vector<1x4x4xf32> to vector<4x4xf32>
    %cst_722 = arith.constant dense<0.000000e+00> : vector<4x1024xf32>
    %778 = tpu.matmul %777, %775, %cst_722 {dimension_numbers = #tpu.dot_dimension_numbers<[1], [0], [0], [1], [0, 0, 1, 1], [], []>} : vector<4x4xf32>, vector<4x1024xf32>, vector<4x1024xf32> -> vector<4x1024xf32>
    %779 = arith.addf %771, %778 : vector<4x1024xf32>
    %c0_723 = arith.constant 0 : index
    %c33_724 = arith.constant 33 : index
    %780 = vector.load %arg23[%c0_723, %c33_724] : memref<4x1090xf32, #tpu.memory_space<vmem>>, vector<4x1024xf32>
    %c4_725 = arith.constant 4 : index
    %c0_726 = arith.constant 0 : index
    %c0_727 = arith.constant 0 : index
    %781 = vector.load %arg16[%c4_725, %c0_726, %c0_727] : memref<9x4x4xf32, #tpu.memory_space<vmem>>, vector<1x4x4xf32>
    %782 = vector.shape_cast %781 : vector<1x4x4xf32> to vector<4x4xf32>
    %cst_728 = arith.constant dense<0.000000e+00> : vector<4x1024xf32>
    %783 = tpu.matmul %782, %780, %cst_728 {dimension_numbers = #tpu.dot_dimension_numbers<[1], [0], [0], [1], [0, 0, 1, 1], [], []>} : vector<4x4xf32>, vector<4x1024xf32>, vector<4x1024xf32> -> vector<4x1024xf32>
    %784 = arith.addf %779, %783 : vector<4x1024xf32>
    %c0_729 = arith.constant 0 : index
    %c34_730 = arith.constant 34 : index
    %785 = vector.load %arg23[%c0_729, %c34_730] : memref<4x1090xf32, #tpu.memory_space<vmem>>, vector<4x1024xf32>
    %c2_731 = arith.constant 2 : index
    %c0_732 = arith.constant 0 : index
    %786 = vector.load %arg18[%c2_731, %c0_732] : memref<3x1024xf32, #tpu.memory_space<vmem>>, vector<1x1024xf32>
    %787 = vector.broadcast %786 : vector<1x1024xf32> to vector<4x1024xf32>
    %788 = arith.mulf %785, %787 : vector<4x1024xf32>
    %c5_733 = arith.constant 5 : index
    %c0_734 = arith.constant 0 : index
    %c0_735 = arith.constant 0 : index
    %789 = vector.load %arg16[%c5_733, %c0_734, %c0_735] : memref<9x4x4xf32, #tpu.memory_space<vmem>>, vector<1x4x4xf32>
    %790 = vector.shape_cast %789 : vector<1x4x4xf32> to vector<4x4xf32>
    %cst_736 = arith.constant dense<0.000000e+00> : vector<4x1024xf32>
    %791 = tpu.matmul %790, %788, %cst_736 {dimension_numbers = #tpu.dot_dimension_numbers<[1], [0], [0], [1], [0, 0, 1, 1], [], []>} : vector<4x4xf32>, vector<4x1024xf32>, vector<4x1024xf32> -> vector<4x1024xf32>
    %792 = arith.addf %784, %791 : vector<4x1024xf32>
    %c0_737 = arith.constant 0 : index
    %c64_738 = arith.constant 64 : index
    %793 = vector.load %arg23[%c0_737, %c64_738] : memref<4x1090xf32, #tpu.memory_space<vmem>>, vector<4x1024xf32>
    %c0_739 = arith.constant 0 : index
    %c0_740 = arith.constant 0 : index
    %794 = vector.load %arg18[%c0_739, %c0_740] : memref<3x1024xf32, #tpu.memory_space<vmem>>, vector<1x1024xf32>
    %795 = vector.broadcast %794 : vector<1x1024xf32> to vector<4x1024xf32>
    %796 = arith.mulf %793, %795 : vector<4x1024xf32>
    %c6_741 = arith.constant 6 : index
    %c0_742 = arith.constant 0 : index
    %c0_743 = arith.constant 0 : index
    %797 = vector.load %arg16[%c6_741, %c0_742, %c0_743] : memref<9x4x4xf32, #tpu.memory_space<vmem>>, vector<1x4x4xf32>
    %798 = vector.shape_cast %797 : vector<1x4x4xf32> to vector<4x4xf32>
    %cst_744 = arith.constant dense<0.000000e+00> : vector<4x1024xf32>
    %799 = tpu.matmul %798, %796, %cst_744 {dimension_numbers = #tpu.dot_dimension_numbers<[1], [0], [0], [1], [0, 0, 1, 1], [], []>} : vector<4x4xf32>, vector<4x1024xf32>, vector<4x1024xf32> -> vector<4x1024xf32>
    %800 = arith.addf %792, %799 : vector<4x1024xf32>
    %c0_745 = arith.constant 0 : index
    %c65_746 = arith.constant 65 : index
    %801 = vector.load %arg23[%c0_745, %c65_746] : memref<4x1090xf32, #tpu.memory_space<vmem>>, vector<4x1024xf32>
    %c7_747 = arith.constant 7 : index
    %c0_748 = arith.constant 0 : index
    %c0_749 = arith.constant 0 : index
    %802 = vector.load %arg16[%c7_747, %c0_748, %c0_749] : memref<9x4x4xf32, #tpu.memory_space<vmem>>, vector<1x4x4xf32>
    %803 = vector.shape_cast %802 : vector<1x4x4xf32> to vector<4x4xf32>
    %cst_750 = arith.constant dense<0.000000e+00> : vector<4x1024xf32>
    %804 = tpu.matmul %803, %801, %cst_750 {dimension_numbers = #tpu.dot_dimension_numbers<[1], [0], [0], [1], [0, 0, 1, 1], [], []>} : vector<4x4xf32>, vector<4x1024xf32>, vector<4x1024xf32> -> vector<4x1024xf32>
    %805 = arith.addf %800, %804 : vector<4x1024xf32>
    %c0_751 = arith.constant 0 : index
    %c66_752 = arith.constant 66 : index
    %806 = vector.load %arg23[%c0_751, %c66_752] : memref<4x1090xf32, #tpu.memory_space<vmem>>, vector<4x1024xf32>
    %c2_753 = arith.constant 2 : index
    %c0_754 = arith.constant 0 : index
    %807 = vector.load %arg18[%c2_753, %c0_754] : memref<3x1024xf32, #tpu.memory_space<vmem>>, vector<1x1024xf32>
    %808 = vector.broadcast %807 : vector<1x1024xf32> to vector<4x1024xf32>
    %809 = arith.mulf %806, %808 : vector<4x1024xf32>
    %c8_755 = arith.constant 8 : index
    %c0_756 = arith.constant 0 : index
    %c0_757 = arith.constant 0 : index
    %810 = vector.load %arg16[%c8_755, %c0_756, %c0_757] : memref<9x4x4xf32, #tpu.memory_space<vmem>>, vector<1x4x4xf32>
    %811 = vector.shape_cast %810 : vector<1x4x4xf32> to vector<4x4xf32>
    %cst_758 = arith.constant dense<0.000000e+00> : vector<4x1024xf32>
    %812 = tpu.matmul %811, %809, %cst_758 {dimension_numbers = #tpu.dot_dimension_numbers<[1], [0], [0], [1], [0, 0, 1, 1], [], []>} : vector<4x4xf32>, vector<4x1024xf32>, vector<4x1024xf32> -> vector<4x1024xf32>
    %813 = arith.addf %805, %812 : vector<4x1024xf32>
    %cst_759 = arith.constant 0.000000e+00 : f32
    %814 = vector.broadcast %cst_759 : f32 to vector<4x1024xf32>
    %815 = arith.subf %814, %813 : vector<4x1024xf32>
    %816 = math.exp %815 : vector<4x1024xf32>
    %cst_760 = arith.constant 1.000000e+00 : f32
    %817 = vector.broadcast %cst_760 : f32 to vector<4x1024xf32>
    %818 = arith.addf %817, %816 : vector<4x1024xf32>
    %cst_761 = arith.constant 1.000000e+00 : f32
    %819 = vector.broadcast %cst_761 : f32 to vector<4x1024xf32>
    %820 = arith.divf %819, %818 : vector<4x1024xf32>
    %c0_762 = arith.constant 0 : index
    %c0_763 = arith.constant 0 : index
    %c0_764 = arith.constant 0 : index
    %821 = vector.load %arg20[%c0_762, %c0_763, %c0_764] : memref<1x4x1024xf32, #tpu.memory_space<vmem>>, vector<1x4x1024xf32>
    %822 = vector.shape_cast %821 : vector<1x4x1024xf32> to vector<4x1024xf32>
    %823 = vector.shape_cast %820 : vector<4x1024xf32> to vector<1x4x1024xf32>
    tpu.vector_store %arg20[%c0_762, %c0_763, %c0_764], %823 {strides = array<i32>} : memref<1x4x1024xf32, #tpu.memory_space<vmem>>, vector<1x4x1024xf32>,
    return
  }
  func.func @transform_0(%arg0: i32) -> (i32, i32, i32) {
    %c0_i32 = arith.constant 0 : i32
    %c0_i32_0 = arith.constant 0 : i32
    %c0_i32_1 = arith.constant 0 : i32
    return %arg0, %c0_i32, %c0_i32_0 : i32, i32, i32
  }
  func.func @transform_1(%arg0: i32) -> (i32, i32, i32) {
    %c0_i32 = arith.constant 0 : i32
    %c0_i32_0 = arith.constant 0 : i32
    %c0_i32_1 = arith.constant 0 : i32
    %c0_i32_2 = arith.constant 0 : i32
    return %c0_i32, %c0_i32_0, %c0_i32_1 : i32, i32, i32
  }
  func.func @transform_2(%arg0: i32) -> (i32, i32) {
    %c0_i32 = arith.constant 0 : i32
    %c0_i32_0 = arith.constant 0 : i32
    %c0_i32_1 = arith.constant 0 : i32
    return %c0_i32, %c0_i32_0 : i32, i32
  }
  func.func @transform_3(%arg0: i32) -> (i32, i32) {
    %c0_i32 = arith.constant 0 : i32
    %c0_i32_0 = arith.constant 0 : i32
    %c0_i32_1 = arith.constant 0 : i32
    return %c0_i32, %c0_i32_0 : i32, i32
  }
  func.func @transform_4(%arg0: i32) -> (i32, i32, i32) {
    %c0_i32 = arith.constant 0 : i32
    %c0_i32_0 = arith.constant 0 : i32
    %c0_i32_1 = arith.constant 0 : i32
    %c0_i32_2 = arith.constant 0 : i32
    return %c0_i32, %c0_i32_0, %c0_i32_1 : i32, i32, i32
  }
  func.func @transform_5(%arg0: i32) -> (i32, i32) {
    %c0_i32 = arith.constant 0 : i32
    %c0_i32_0 = arith.constant 0 : i32
    %c0_i32_1 = arith.constant 0 : i32
    return %c0_i32, %c0_i32_0 : i32, i32
  }
  func.func @transform_6(%arg0: i32) -> (i32, i32, i32) {
    %c0_i32 = arith.constant 0 : i32
    %c0_i32_0 = arith.constant 0 : i32
    %c0_i32_1 = arith.constant 0 : i32
    %c0_i32_2 = arith.constant 0 : i32
    return %c0_i32, %c0_i32_0, %c0_i32_1 : i32, i32, i32
  }
  func.func @transform_7(%arg0: i32) -> (i32, i32) {
    %c0_i32 = arith.constant 0 : i32
    %c0_i32_0 = arith.constant 0 : i32
    %c0_i32_1 = arith.constant 0 : i32
    return %c0_i32, %c0_i32_0 : i32, i32
  }
  func.func @transform_8(%arg0: i32) -> (i32, i32) {
    %c0_i32 = arith.constant 0 : i32
    %c0_i32_0 = arith.constant 0 : i32
    %c0_i32_1 = arith.constant 0 : i32
    return %c0_i32, %c0_i32_0 : i32, i32
  }
  func.func @transform_9(%arg0: i32) -> (i32, i32, i32) {
    %c0_i32 = arith.constant 0 : i32
    %c0_i32_0 = arith.constant 0 : i32
    %c0_i32_1 = arith.constant 0 : i32
    %c0_i32_2 = arith.constant 0 : i32
    return %c0_i32, %c0_i32_0, %c0_i32_1 : i32, i32, i32
  }
  func.func @transform_10(%arg0: i32) -> (i32, i32) {
    %c0_i32 = arith.constant 0 : i32
    %c0_i32_0 = arith.constant 0 : i32
    %c0_i32_1 = arith.constant 0 : i32
    return %c0_i32, %c0_i32_0 : i32, i32
  }
  func.func @transform_11(%arg0: i32) -> (i32, i32, i32) {
    %c0_i32 = arith.constant 0 : i32
    %c0_i32_0 = arith.constant 0 : i32
    %c0_i32_1 = arith.constant 0 : i32
    %c0_i32_2 = arith.constant 0 : i32
    return %c0_i32, %c0_i32_0, %c0_i32_1 : i32, i32, i32
  }
  func.func @transform_12(%arg0: i32) -> (i32, i32) {
    %c0_i32 = arith.constant 0 : i32
    %c0_i32_0 = arith.constant 0 : i32
    %c0_i32_1 = arith.constant 0 : i32
    return %c0_i32, %c0_i32_0 : i32, i32
  }
  func.func @transform_13(%arg0: i32) -> (i32, i32, i32) {
    %c0_i32 = arith.constant 0 : i32
    %c0_i32_0 = arith.constant 0 : i32
    %c0_i32_1 = arith.constant 0 : i32
    %c0_i32_2 = arith.constant 0 : i32
    return %c0_i32, %c0_i32_0, %c0_i32_1 : i32, i32, i32
  }
  func.func @transform_14(%arg0: i32) -> (i32, i32) {
    %c0_i32 = arith.constant 0 : i32
    %c0_i32_0 = arith.constant 0 : i32
    %c0_i32_1 = arith.constant 0 : i32
    return %c0_i32, %c0_i32_0 : i32, i32
  }
  func.func @transform_15(%arg0: i32) -> (i32, i32, i32) {
    %c0_i32 = arith.constant 0 : i32
    %c0_i32_0 = arith.constant 0 : i32
    %c0_i32_1 = arith.constant 0 : i32
    %c0_i32_2 = arith.constant 0 : i32
    return %c0_i32, %c0_i32_0, %c0_i32_1 : i32, i32, i32
  }
  func.func @transform_16(%arg0: i32) -> (i32, i32) {
    %c0_i32 = arith.constant 0 : i32
    %c0_i32_0 = arith.constant 0 : i32
    %c0_i32_1 = arith.constant 0 : i32
    return %c0_i32, %c0_i32_0 : i32, i32
  }
  func.func @transform_17(%arg0: i32) -> (i32, i32) {
    %c0_i32 = arith.constant 0 : i32
    %c0_i32_0 = arith.constant 0 : i32
    %c0_i32_1 = arith.constant 0 : i32
    return %c0_i32, %c0_i32_0 : i32, i32
  }
  func.func @transform_18(%arg0: i32) -> (i32, i32) {
    %c0_i32 = arith.constant 0 : i32
    %c0_i32_0 = arith.constant 0 : i32
    %c0_i32_1 = arith.constant 0 : i32
    return %c0_i32, %c0_i32_0 : i32, i32
  }
  func.func @transform_19(%arg0: i32) -> (i32, i32, i32) {
    %c0_i32 = arith.constant 0 : i32
    %c0_i32_0 = arith.constant 0 : i32
    %c0_i32_1 = arith.constant 0 : i32
    return %arg0, %c0_i32, %c0_i32_0 : i32, i32, i32
  }
}

</mosaic_0001>

<bundles_post_ra>
// kernel: tpu_custom_call.1
= control target key start
LH: loop header
LB: loop body
LE: loop exit
PB: predicated region body
PF: predicated region fallthrough
CT: control target
= control target key end

     0   :  { %s27538_s0 = inlined_call_operand.vmem [shape: f32[2,4,256], index: 0, kind: input, shape index: {}]   ;;  %s27539_s1 = inlined_call_operand.vmem [shape: f32[49,4,4], index: 1, kind: input, shape index: {}]   ;;  %s27540_s2 = inlined_call_operand.vmem [shape: f32[4,1], index: 2, kind: input, shape index: {}]   ;;  %s27541_s3 = inlined_call_operand.vmem [shape: f32[7,256], index: 3, kind: input, shape index: {}]   ;;  %s27542_s4 = inlined_call_operand.vmem [shape: f32[9,4,4], index: 4, kind: input, shape index: {}]   ;;  %s27543_s5 = inlined_call_operand.vmem [shape: f32[4,1], index: 5, kind: input, shape index: {}]   ;;  %s27544_s6 = inlined_call_operand.vmem [shape: f32[9,4,4], index: 6, kind: input, shape index: {}]   ;;  %s27545_s7 = inlined_call_operand.vmem [shape: f32[4,1], index: 7, kind: input, shape index: {}]   ;;  %s27546_s8 = inlined_call_operand.vmem [shape: f32[3,256], index: 8, kind: input, shape index: {}]   ;;  %s27547_s9 = inlined_call_operand.vmem [shape: f32[9,4,4], index: 9, kind: input, shape index: {}]   ;;  %s27548_s10 = inlined_call_operand.vmem [shape: f32[4,1], index: 10, kind: input, shape index: {}]   ;;  %s27549_s11 = inlined_call_operand.vmem [shape: f32[9,4,4], index: 11, kind: input, shape index: {}]   ;;  %s27550_s12 = inlined_call_operand.vmem [shape: f32[4,1], index: 12, kind: input, shape index: {}]   ;;  %s27551_s13 = inlined_call_operand.vmem [shape: f32[9,4,4], index: 13, kind: input, shape index: {}]   ;;  %s27552_s14 = inlined_call_operand.vmem [shape: f32[4,1], index: 14, kind: input, shape index: {}]   ;;  %s27553_s15 = inlined_call_operand.vmem [shape: f32[9,4,4], index: 15, kind: input, shape index: {}]   ;;  %s27554_s16 = inlined_call_operand.vmem [shape: f32[4,1], index: 16, kind: input, shape index: {}]   ;;  %s27555_s17 = inlined_call_operand.vmem [shape: f32[3,1024], index: 17, kind: input, shape index: {}]   ;;  %s27556_s18 = inlined_call_operand.hbm [shape: f32[256,1024], index: 18, kind: input, shape index: {}]   ;;  %s27557_s19 = inlined_call_operand.hbm [shape: f32[2,4,1024], index: 19, kind: output, shape index: {}]  }
   0x1   :  { %27623 = sst [smem:[#allocation18_spill]] %s27538_s0 }
   0x2   :  { %27624 = sst [smem:[#allocation19_spill]] %s27539_s1 }
   0x3   :  { %27625 = sst [smem:[#allocation20_spill]] %s27540_s2 }
   0x4   :  { %27626 = sst [smem:[#allocation21_spill]] %s27541_s3 }
   0x5   :  { %27627 = sst [smem:[#allocation22_spill]] %s27543_s5 }
   0x6   :  { %27628 = sst [smem:[#allocation23_spill]] %s27556_s18 }
   0x7   :  { %27629 = sst [smem:[#allocation24_spill]] %s27557_s19 }
   0x8   :  { %24 = vsyncpa [#allocation6], 0 }
   0x9   :  { %25 = vsyncpa [#allocation7], 0 }
   0xa   :  { %27 = vsyncpa [#allocation7 + $0x1], 0  ;;  %s23973_s0 = smov 0   ;;  %s23975_s30 = smov 0  }
   0xb   :  { %s23977_s20 = smov 0   ;;  %s23979_s21 = smov 0  }
   0xc LB: > { %27630 = sst [smem:[#allocation11_spill]] %s23768_s0  ;;  %s23994_s1 = sadd.s32 4294967295, %s23780_s21   ;;  %s23780_s21 = sphi %s23979_s21, %s27904_s21   ;;  %s23776_s20 = sphi %s23977_s20, %s27906_s20   ;;  %s23772_s30 = sphi %s23975_s30, %s27908_s30   ;;  %s23768_s0 = sphi %s23973_s0, %s27907_s0  }
   0xd   : > { %27631 = sst [smem:[#allocation12_spill]] %s23776_s20  ;;  %s22071_s22 = sadd.s32 4294967294, %s23780_s21  }
   0xe   : > { %27632 = sst [smem:[#allocation13_spill]] %s23780_s21  ;;  %s23998_s2 = sadd.s32 1, %s23780_s21  }
   0xf   : > { %27633 = sst [smem:[#allocation14_spill]] %s23998_s2  ;;  %s444_s23 = sadd.s32 1, %s23776_s20 }
  0x10   : > { %s441_s24 = ssub.s32 %s23780_s21, %s23998_s2  ;;  %p454_p0 = scmp.ne.s32.totalorder %s23776_s20, %s23772_s30 }
  0x11   : > { %p442_p1 = scmp.eq.s32.totalorder %s441_s24, 0  ;;  %p455_p2 = scmp.eq.s32.totalorder %s23994_s1, 1 }
  0x12   : > { %p460_p3 = scmp.ne.s32.totalorder %s23772_s30, %s23768_s0  ;;  %p461_p4 = scmp.eq.s32.totalorder %s22071_s22, 1 }
  0x13   : > { %s24009_s25 = scalar_select %p442_p1, %s23776_s20, %s444_s23  }
  0x14   : > { %p24011_p5 = por %p455_p2, %p454_p0  ;;  %p24015_p6 = por %p461_p4, %p460_p3 }
  0x15   : > { %27634 = sst [smem:[#allocation15_spill]] %s24009_s25  ;;  %p22072_p7 = scmp.ge.s32.totalorder %s23780_s21, 1 }
  0x16   : > { %s27635_s3 = scalar_select %p24011_p5, 1, 0 }
  0x17   : > { %s27637_s26 = scalar_select %p24015_p6, 1, 0 }
  0x18   : > { %27636 = sst [smem:[#allocation16_spill]] %s27635_s3  ;;  %p468_p8 = scmp.lt.s32.totalorder %s23780_s21, 3 }
  0x19   : > { %27638 = sst [smem:[#allocation17_spill]] %s27637_s26  ;;  %p27565_p9 = scmp.eq.s32.totalorder %s23994_s1, 0 }
  0x1a   : > { %p24022_p10 = pnand %p22072_p7, %p468_p8  ;;  %s23782_s28 = smov [#allocation5]  }
  0x1b   : > { %s531_s29 = sshll.u32 %s23782_s28, 4  ;;  %s27641_s18 = sld [smem:[#allocation23_spill]]  ;;  %s532_s29 = int_to_ptr.vmem [resolvable:$true] %s531_s29 }
  0x1c   : > { %s27639_s27 = scalar_select %p24022_p10, 1, 0 }
  0x1d   : > { %p23511_p11 = pneg %p24022_p10 }
  0x1f   : > { %p24030_p12 = pnand %p27565_p9, %p23511_p11 }
  0x21   : > { %s23686_s25 = scalar_lea.hbm %s27641_s18, 32768  ;;  %p23688_p0 = pneg %p24030_p12 }
  0x22   : > { %p23687_p13 = scmp.ne.s32.totalorder %s27641_s18, %s23686_s25  ;;  %p23693_p3 = scmp.lt.u32.totalorder %s23686_s25, %s27641_s18 }
  0x24   : > { %p23689_p1 = pnand %p23688_p0, %p23687_p13 }
  0x26   : > { %p23690_p2 = pneg %p23689_p1 }
  0x28   : > { %p23695_p4 = pnand %p23693_p3, %p23690_p2 }
  0x2a   : > { %23698 = shalt.err (!%p23695_p4)
}
  0x2b   : > { %s23699_s0 = scalar_lea.vmem %s532_s29, 32768  ;;  %p23707_p9 = scmp.lt.s32.totalorder %s532_s29, %s532_s29 }
  0x2c   : > { %p23700_p7 = scmp.ne.s32.totalorder %s532_s29, %s23699_s0  ;;  %p23708_p6 = scmp.lt.s32.totalorder %s23699_s0, %s23699_s0 }
  0x2e   : > { %p23702_p8 = pnand %p23700_p7, %p23688_p0  ;;  %p23709_p5 = por %p23708_p6, %p23707_p9 }
  0x30   : > { %p23703_p11 = pneg %p23702_p8 }
  0x32   : > { %p23710_p10 = pnand %p23709_p5, %p23703_p11 }
  0x34   : > { %23713 = shalt.err (!%p23710_p10)
}
  0x35   : > { %s23783_s20 = smov 1024   ;;  %s23784_s2 = smov 64  }
  0x36   : > { %23514 = dma.hbm_to_vmem [thread:$0]  (!%p24030_p12), %s27641_s18, 32768, %s532_s29, [#allocation6], %s23783_s20, %s23783_s20, %s23784_s2  }
  0x37   : > { %p27642_p13 = scmp.ne.s32.totalorder %s27639_s27, 0 }
  0x38   : > { %p27643_p1 = scmp.eq.s32.totalorder (!%p27642_p13), %s23994_s1, 0 }
  0x39   : > { %555 = sbr.rel (%p27642_p13) target bundleno = 5006 (0x138e), region = 96 }
  0x40   : > { %23759 = dma.done.wait (%p27643_p1), [#allocation6], 32768   ;;  %p27644_p0 = pmov %p27643_p1 }
  0x41   : > { %p611_p5 = scmp.lt.s32.totalorder %s23994_s1, 1  ;;  %v652_v0 = vlaneseq  ;;  %vm616_vm0 = vcmask 412672   ;;  %vm618_vm1 = vcmask 830872   ;;  %v23785_v1 = vmov 0.0   ;;  %s27645_s29 = sld [smem:[#allocation18_spill]] }
  0x42   : > { %23761 = vsyncadd (%p27644_p0), [#allocation6], 4294934528  ;;  %617 = vst.msk [vmem:[#allocation2] sm:$0xf] %vm616_vm0, %v23785_v1  ;;  %1419 = vmatprep.mubr.f32.mxu0 %v23785_v1  ;;  %739 = vmatprep.mubr.f32.mxu1 %v23785_v1  ;;  %s27646_s2 = sld [smem:[#allocation21_spill]]  ;;  %s23786_s23 = smov 51  }
  0x43   : > { %s612_s0 = scalar_select %p611_p5, %s23994_s1, 1  ;;  %v24062_v2 = vshrl.u32 %v652_v0, 7  ;;  %619 = vst.msk [vmem:[#allocation2 + $0x8] sm:$0xf] %vm618_vm1, %v23785_v1  ;;  %vm637_vm2 = vcmask 1043864   ;;  %vm27620_vm3 = vcmask 1047556  }
  0x44   : > { %s23788_s28 = smov 6   ;;  %s27585_s20 = smov 17   ;;  %vm633_vm4 = vcmask 416768   ;;  %vm639_vm5 = vmor %vm27620_vm3, %vm637_vm2  ;;  %vm1328_vm6 = vcmask 48128   ;;  %vm1433_vm7 = vcmask 130048   ;;  %vm670_vm8 = vcmask 1043456  }
  0x45   : > { %s22825_s25 = sshll.u32 %s612_s0, 3  ;;  %v24066_v3 = vsub.s32 0, %v24062_v2  ;;  %v24069_v4 = vsub.s32 1, %v24062_v2  ;;  %s23791_s24 = smov 20   ;;  %vm1538_vm9 = vcmask 138240   ;;  %vm1643_vm10 = vcmask 146432  }
  0x46   : > { %s23792_s0 = smov 21   ;;  %s27612_s26 = smov 32   ;;  %vm1844_vm11 = vcmask 162816   ;;  %vm1949_vm12 = vcmask 171008   ;;  %vm2054_vm13 = vcmask 179200   ;;  %vm2159_vm14 = vcmask 261120  }
  0x47   : > { %s615_s22 = scalar_lea.vmem %s27645_s29, %s22825_s25  ;;  %s23793_s25 = smov 22   ;;  %vm27591_vm15 = vcmask 269312   ;;  %vm1345_vm1 = vcmask 998400   ;;  %vm666_vm2 = vcmask 31744  }
  0x48   : > { %v628_v5 = vld [vmem:[%s615_s22] sm:$0xff]  ;;  %s27587_s22 = smov 16   ;;  %s27569_s27 = smov 33  }
  0x49   : > { %v650_v6 = vld [vmem:[%s27646_s2] ss:$8 sm:$0x3]  ;;  %630 = vrot.lane.b32.xlu0 %v628_v5, %s23786_s23  ;;  %v22107_v9 = vld [vmem:[%s27646_s2 + $0x6] ss:$8 sm:$0x3] }
  0x4a   : > { %v655_v7 = vrot.slane %v650_v6, %v24066_v3  ;;  %v659_v8 = vrot.slane %v650_v6, %v24069_v4  ;;  %v22083_v10 = vld [vmem:[%s27646_s2 + $0x1] ss:$8 sm:$0x3]  ;;  %v1319_v11 = vrot.slane %v22107_v9, %v24066_v3  ;;  %v1323_v12 = vrot.slane %v22107_v9, %v24069_v4  ;;  %v22088_v15 = vld [vmem:[%s27646_s2 + $0x2] ss:$8 sm:$0x3] }
  0x4b   : > { %v756_v13 = vrot.slane %v22083_v10, %v24066_v3  ;;  %v760_v14 = vrot.slane %v22083_v10, %v24069_v4  ;;  %v22097_v16 = vld [vmem:[%s27646_s2 + $0x4] ss:$8 sm:$0x3]  ;;  %v873_v18 = vrot.slane %v22088_v15, %v24066_v3  ;;  %v877_v19 = vrot.slane %v22088_v15, %v24069_v4  ;;  %v22102_v20 = vld [vmem:[%s27646_s2 + $0x5] ss:$8 sm:$0x3] }
  0x4c   : > { %v24095_v17 = vcombine.low %v655_v7, %v659_v8  ;;  %v24102_v21 = vcombine.low %v1319_v11, %v1323_v12  ;;  %v1086_v23 = vrot.slane %v22097_v16, %v24066_v3  ;;  %v1090_v24 = vrot.slane %v22097_v16, %v24069_v4  ;;  %s27583_s23 = smov 18   ;;  %s27577_s29 = smov 34  }
  0x4d   : > { %v24106_v22 = vcombine.low %v756_v13, %v760_v14  ;;  %v24111_v25 = vcombine.low %v873_v18, %v877_v19  ;;  %v1202_v26 = vrot.slane %v22102_v20, %v24066_v3  ;;  %v1206_v27 = vrot.slane %v22102_v20, %v24069_v4  ;;  %s23797_s18 = smov 122   ;;  %s27575_s21 = smov 112  }
  0x4e   : > { %1430 = vrot.lane.b32.xlu1 %v24095_v17, %s27587_s22  ;;  %1325 = vrot.lane.b32.xlu0 %v24102_v21, %s23788_s28  ;;  %v24117_v28 = vcombine.low %v1086_v23, %v1090_v24  ;;  %s27573_s28 = smov 111   ;;  %s23827_s22 = smov 77  }
  0x4f   : > { %v24121_v29 = vcombine.low %v1202_v26, %v1206_v27  ;;  %s27661_s5 = sld [smem:[#allocation22_spill]]  ;;  %s27674_s3 = smov 127  }
  0x50   : > { %s27700_s19 = smov 63  }
  0x52   : > { %1535 = vrot.lane.b32.xlu1 %v24106_v22, %s27585_s20  ;;  %1640 = vrot.lane.b32.xlu0 %v24111_v25, %s27583_s23  ;;  %s23821_s23 = smov 90   ;;  %s27589_s20 = smov 66  }
  0x56   : > { %1841 = vrot.lane.b32.xlu1 %v24117_v28, %s23791_s24  ;;  %1946 = vrot.lane.b32.xlu0 %v24121_v29, %s23792_s0  ;;  %s27571_s24 = smov 110   ;;  %s23801_s0 = smov 109  }
  0x5a   : > { %2051 = vrot.lane.b32.xlu1 %v24102_v21, %s23793_s25  ;;  %2156 = vrot.lane.b32.xlu0 %v24095_v17, %s27612_s26  ;;  %s23802_s25 = smov 108  }
  0x5e   : > { %2261 = vrot.lane.b32.xlu0 %v24106_v22, %s27569_s27  ;;  %s23804_s27 = smov 107  }
  0x62   : > { %2366 = vrot.lane.b32.xlu0 %v24111_v25, %s27577_s29  ;;  %s23814_s29 = smov 50  }
  0xbb   : > { %v631_v30 = vpop.permute.xlu0 %630 }
  0xbc   : > { %v632_v31 = vrot.slane %v631_v30, 4 }
  0xbe   : > { %v634_v32 = vsel %vm633_vm4, %v632_v31, %v631_v30  ;;  %641 = vst.msk [vmem:[#allocation2 + $0x8] sm:$0xf] %vm616_vm0, %v632_v31  ;;  %vm2369_vm0 = vcmask 277504   ;;  %vm27597_vm4 = vcmask 916480  }
  0xbf   : > { %640 = vst.msk [vmem:[#allocation2] sm:$0xff] %vm639_vm5, %v634_v32  ;;  %vm2570_vm5 = vcmask 293888  }
  0xc0   : > { %v1431_v33 = vpop.permute.xlu1 %1430  ;;  %v1326_v34 = vpop.permute.xlu0 %1325 }
  0xc1   : > { %v1327_v35 = vrot.slane %v1326_v34, 4  ;;  %v1432_v36 = vrot.slane %v1431_v33, 4 }
  0xc3   : > { %v1329_v39 = vsel %vm1328_vm6, %v1327_v35, %v1326_v34  ;;  %v1434_v45 = vsel %vm1433_vm7, %v1432_v36, %v1431_v33  ;;  %vm27596_vm6 = vcmask 908288  }
  0xc4   : > { %v1536_v37 = vpop.permute.xlu1 %1535  ;;  %v1641_v47 = vpop.permute.xlu0 %1640 }
  0xc5   : > { %v1312_v38 = vld [vmem:[#allocation2 + $0x8] sm:$0xf]  ;;  %v1537_v46 = vrot.slane %v1536_v37, 4  ;;  %v1642_v50 = vrot.slane %v1641_v47, 4 }
  0xc6   : > { %v1333_v40 = vmul.f32 %v1327_v35, %v1312_v38  ;;  %v24134_v41 = vld [vmem:[#allocation2] sm:$0xff]  ;;  %v1429_v44 = vld [vmem:[#allocation2 + $0x8] sm:$0xf] }
  0xc7   : > { %v1332_v42 = vmul.f32 %v1329_v39, %v24134_v41  ;;  %v662_v43 = vmul.f32 %v24134_v41, %v24095_v17  ;;  %v1438_v49 = vmul.f32 %v1432_v36, %v1429_v44  ;;  %v1437_v51 = vmul.f32 %v1434_v45, %v24134_v41  ;;  %v1534_v52 = vld [vmem:[#allocation2 + $0x8] sm:$0xf] }
  0xc8   : > { %1343 = vrot.lane.b32.xlu0 %v1333_v40, %s23797_s18  ;;  %v1539_v53 = vsel %vm1538_vm9, %v1537_v46, %v1536_v37  ;;  %v1543_v54 = vmul.f32 %v1537_v46, %v1534_v52  ;;  %v1644_v55 = vsel %vm1643_vm10, %v1642_v50, %v1641_v47  ;;  %v1842_v59 = vpop.permute.xlu1 %1841  ;;  %v1639_v60 = vld [vmem:[#allocation2 + $0x8] sm:$0xf]  ;;  %v24154_v61 = vcombine.high %v24134_v41, %v24134_v41  ;;  %v1947_v6 = vpop.permute.xlu0 %1946 }
  0xc9   : > { %1339 = vrot.lane.b32.xlu1 %v1332_v42, %s23797_s18  ;;  %v665_v48 = vcombine.high %v662_v43, %v662_v43  ;;  %v1542_v56 = vmul.f32 %v1539_v53, %v24134_v41  ;;  %v1647_v57 = vmul.f32 %v1644_v55, %v24134_v41  ;;  %v1338_v58 = vcombine.high %v1332_v42, %v1332_v42  ;;  %v1744_v19 = vld [vmem:[#allocation2 + $0x8] sm:$0xf] }
  0xca   : > { %v1843_v62 = vrot.slane %v1842_v59, 4  ;;  %v1648_v63 = vmul.f32 %v1642_v50, %v1639_v60  ;;  %v1443_v5 = vcombine.high %v1437_v51, %v1437_v51  ;;  %v1948_v8 = vrot.slane %v1947_v6, 4  ;;  %v1840_v27 = vld [vmem:[#allocation2 + $0x8] sm:$0xf] }
  0xcb   : > { %22080 = vmatprep.subr.msk.mxu1 %vm670_vm8, %v665_v48  ;;  %v1653_v10 = vcombine.high %v1647_v57, %v1647_v57  ;;  %v1548_v13 = vcombine.high %v1542_v56, %v1542_v56  ;;  %v1945_v35 = vld [vmem:[#allocation2 + $0x8] sm:$0xf] }
  0xcc   : > { %1448 = vrot.lane.b32.xlu0 %v1438_v49, %s27575_s21  ;;  %22081 = vmatpush1.msk.msra.mxu1 %vm670_vm8, %v662_v43  ;;  %v1845_v0 = vsel %vm1844_vm11, %v1843_v62, %v1842_v59  ;;  %v2052_v9 = vpop.permute.xlu1 %2051  ;;  %v1950_v11 = vsel %vm1949_vm12, %v1948_v8, %v1947_v6  ;;  %v2157_v14 = vpop.permute.xlu0 %2156  ;;  %v1849_v31 = vmul.f32 %v1843_v62, %v1840_v27  ;;  %v2365_v40 = vld [vmem:[#allocation2 + $0x8] sm:$0xf]  ;;  %vm27594_vm11 = vcmask 900096  }
  0xcd   : > { %1444 = vrot.lane.b32.xlu1 %v1437_v51, %s27575_s21  ;;  %v1848_v7 = vmul.f32 %v1845_v0, %v24134_v41  ;;  %v2053_v12 = vrot.slane %v2052_v9, 4  ;;  %v1953_v15 = vmul.f32 %v1950_v11, %v24134_v41  ;;  %v2158_v18 = vrot.slane %v2157_v14, 4  ;;  %v2050_v43 = vld [vmem:[#allocation2 + $0x8] sm:$0xf] }
  0xce   : > { %v1954_v37 = vmul.f32 %v1948_v8, %v1945_v35  ;;  %v2155_v46 = vld [vmem:[#allocation2 + $0x8] sm:$0xf]  ;;  %vm1756_vm12 = vcmask 891904  }
  0xcf   : > { %v2055_v16 = vsel %vm2054_vm13, %v2053_v12, %v2052_v9  ;;  %v2160_v23 = vsel %vm2159_vm14, %v2158_v18, %v2157_v14  ;;  %v1854_v32 = vcombine.high %v1848_v7, %v1848_v7  ;;  %v1959_v39 = vcombine.high %v1953_v15, %v1953_v15  ;;  %v2260_v49 = vld [vmem:[#allocation2 + $0x8] sm:$0xf] }
  0xd0   : > { %1553 = vrot.lane.b32.xlu0 %v1543_v54, %s27573_s28  ;;  %v2058_v20 = vmul.f32 %v2055_v16, %v24134_v41  ;;  %v2262_v24 = vpop.permute.xlu0 %2261  ;;  %v2163_v26 = vmul.f32 %v2160_v23, %v24134_v41  ;;  %v2059_v44 = vmul.f32 %v2053_v12, %v2050_v43  ;;  %v2164_v47 = vmul.f32 %v2158_v18, %v2155_v46  ;;  %v2470_v50 = vld [vmem:[#allocation2 + $0x8] sm:$0xf] }
  0xd1   : > { %1549 = vrot.lane.b32.xlu1 %v1542_v56, %s27573_s28  ;;  %v2263_v30 = vrot.slane %v2262_v24, 4  ;;  %v2566_v18 = vld [vmem:[#allocation2 + $0x8] sm:$0xf]  ;;  %vm2675_vm13 = vcmask 302080  }
  0xd2   : > { %v2064_v45 = vcombine.high %v2058_v20, %v2058_v20  ;;  %v2169_v48 = vcombine.high %v2163_v26, %v2163_v26  ;;  %v2671_v43 = vld [vmem:[#allocation2 + $0x8] sm:$0xf] }
  0xd3   : > { %v2265_v33 = vsel %vm27591_vm15, %v2263_v30, %v2262_v24  ;;  %v2269_v51 = vmul.f32 %v2263_v30, %v2260_v49  ;;  %vm3095_vm15 = vcmask 408576  }
  0xd4   : > { %1654 = vrot.lane.b32.xlu0 %v1647_v57, %s27571_s24  ;;  %v2268_v34 = vmul.f32 %v2265_v33, %v24134_v41  ;;  %v2367_v36 = vpop.permute.xlu0 %2366 }
  0xd5   : > { %1341 = vrot.lane.b32.xlu1 %v1338_v58, %s23797_s18  ;;  %s23803_s18 = smov 36   ;;  %v2368_v38 = vrot.slane %v2367_v36, 4 }
  0xd6   : > { %v2274_v53 = vcombine.high %v2268_v34, %v2268_v34 }
  0xd7   : > { %v2374_v42 = vmul.f32 %v2368_v38, %v2365_v40  ;;  %v2370_v52 = vsel %vm2369_vm0, %v2368_v38, %v2367_v36 }
  0xd8   : > { %1752 = vrot.lane.b32.xlu0 %v24154_v61, %s23801_s0  ;;  %v24197_v54 = vmul.f32 %v2370_v52, %v24134_v41 }
  0xd9   : > { %1658 = vrot.lane.b32.xlu1 %v1648_v63, %s27571_s24 }
  0xda   : > { %v2379_v36 = vcombine.high %v24197_v54, %v24197_v54 }
  0xdc   : > { %1750 = vrot.lane.b32.xlu0 %v24134_v41, %s23801_s0 }
  0xdd   : > { %1446 = vrot.lane.b32.xlu1 %v1443_v5, %s27575_s21  ;;  %s23810_s21 = smov 48  }
  0xe0   : > { %1855 = vrot.lane.b32.xlu0 %v1848_v7, %s23802_s25 }
  0xe1   : > { %2567 = vrot.lane.b32.xlu1 %v24117_v28, %s23803_s18  ;;  %s23805_s18 = smov 106  }
  0xe4   : > { %1656 = vrot.lane.b32.xlu0 %v1653_v10, %s27571_s24  ;;  %s23806_s24 = smov 37  }
  0xe5   : > { %1551 = vrot.lane.b32.xlu1 %v1548_v13, %s27573_s28  ;;  %s27604_s28 = smov 96  }
  0xe8   : > { %1960 = vrot.lane.b32.xlu0 %v1953_v15, %s23804_s27 }
  0xe9   : > { %1754 = vrot.lane.b32.xlu1 %v1744_v19, %s23801_s0  ;;  %s23808_s0 = smov 38  }
  0xec   : > { %2065 = vrot.lane.b32.xlu0 %v2058_v20, %s23805_s18 }
  0xed   : > { %2672 = vrot.lane.b32.xlu1 %v24121_v29, %s23806_s24  ;;  %s27579_s24 = smov 95  }
  0xf0   : > { %2170 = vrot.lane.b32.xlu0 %v2163_v26, %s27604_s28 }
  0xf1   : > { %1859 = vrot.lane.b32.xlu1 %v1849_v31, %s23802_s25 }
  0xf4   : > { %1857 = vrot.lane.b32.xlu0 %v1854_v32, %s23802_s25  ;;  %s27581_s25 = smov 94  }
  0xf5   : > { %2777 = vrot.lane.b32.xlu1 %v24102_v21, %s23808_s0  ;;  %s23812_s0 = smov 49  }
  0xf8   : > { %2275 = vrot.lane.b32.xlu0 %v2268_v34, %s27579_s24 }
  0xf9   : > { %1964 = vrot.lane.b32.xlu1 %v1954_v37, %s23804_s27 }
  0xfc   : > { %1962 = vrot.lane.b32.xlu0 %v1959_v39, %s23804_s27  ;;  %s23813_s27 = smov 52  }
  0xfd   : > { %2882 = vrot.lane.b32.xlu1 %v24095_v17, %s23810_s21 }
 0x100   : > { %2384 = vrot.lane.b32.xlu0 %v2374_v42, %s27581_s25 }
 0x101   : > { %2069 = vrot.lane.b32.xlu1 %v2059_v44, %s23805_s18 }
 0x104   : > { %2067 = vrot.lane.b32.xlu0 %v2064_v45, %s23805_s18  ;;  %s23815_s18 = smov 93  }
 0x105   : > { %2987 = vrot.lane.b32.xlu1 %v24106_v22, %s23812_s0  ;;  %s23816_s0 = smov 53  }
 0x108   : > { %3293 = vrot.lane.b32.xlu0 %v24117_v28, %s23813_s27  ;;  %s27602_s27 = smov 64  }
 0x109   : > { %2174 = vrot.lane.b32.xlu1 %v2164_v47, %s27604_s28 }
 0x10c   : > { %2172 = vrot.lane.b32.xlu0 %v2169_v48, %s27604_s28 }
 0x10d   : > { %3092 = vrot.lane.b32.xlu1 %v24111_v25, %s23814_s29  ;;  %s23817_s29 = smov 92  }
 0x110   : > { %2480 = vrot.lane.b32.xlu0 %v2470_v50, %s23815_s18 }
 0x111   : > { %2279 = vrot.lane.b32.xlu1 %v2269_v51, %s27579_s24 }
 0x114   : > { %2277 = vrot.lane.b32.xlu0 %v2274_v53, %s27579_s24  ;;  %s27647_s24 = sld [smem:[#allocation19_spill]] }
 0x115   : > { %2380 = vrot.lane.b32.xlu1 %v24197_v54, %s27581_s25 }
 0x118   : > { %3398 = vrot.lane.b32.xlu0 %v24121_v29, %s23816_s0  ;;  %s23818_s0 = smov 54  }
 0x119   : > { %2478 = vrot.lane.b32.xlu1 %v24154_v61, %s23815_s18 }
 0x11a   : > { %v22108_v6 = vld [vmem:[%s27647_s24 + $0x18] sm:$0xf]  ;;  %v22112_v13 = vld [vmem:[%s27647_s24 + $0x1c] sm:$0xf]  ;;  %v22116_v31 = vld [vmem:[%s27647_s24 + $0x20] sm:$0xf] }
 0x11b   : > { %v22120_v42 = vld [vmem:[%s27647_s24 + $0x24] sm:$0xf]  ;;  %v22124_v54 = vld [vmem:[%s27647_s24 + $0x28] sm:$0xf] }
 0x11d   : > { %2476 = vrot.lane.b32.xlu1 %v24134_v41, %s23815_s18  ;;  %s23829_s18 = smov 76  }
 0x13a   : > { %v1344_v55 = vpop.permute.xlu0 %1343 }
 0x13b   : > { %v1340_v56 = vpop.permute.xlu1 %1339 }
 0x13e   : > { %v1449_v57 = vpop.permute.xlu0 %1448 }
 0x13f   : > { %v1445_v58 = vpop.permute.xlu1 %1444 }
 0x142   : > { %v1554_v59 = vpop.permute.xlu0 %1553 }
 0x143   : > { %v1550_v60 = vpop.permute.xlu1 %1549 }
 0x146   : > { %v1655_v62 = vpop.permute.xlu0 %1654 }
 0x147   : > { %v1342_v63 = vpop.permute.xlu1 %1341 }
 0x148   : > { %v1347_v0 = vsel %vm1345_vm1, %v1342_v63, %v1344_v55  ;;  %v1346_v5 = vsel %vm1345_vm1, %v1340_v56, %v1342_v63  ;;  %vm1861_vm1 = vcmask 883712   ;;  %v2776_v55 = vld [vmem:[#allocation2 + $0x8] sm:$0xf] }
 0x149   : > { %22109 = vmatprep.subr.msk.mxu0 %vm670_vm8, %v1347_v0 }
 0x14a   : > { %v1753_v7 = vpop.permute.xlu0 %1752  ;;  %22110 = vmatpush1.msk.msra.mxu0 %vm670_vm8, %v1346_v5 }
 0x14b   : > { %22111 = vmatmul.mubr.msk.f32.vlgmr.msra.gmra.mrb[0].mxu0 %vm666_vm2, %v22108_v6  ;;  %v1659_v8 = vpop.permute.xlu1 %1658 }
 0x14c   : > { %1524 = vmatprep.mubr.f32.mxu0 %v23785_v1 }
 0x14e   : > { %v1751_v9 = vpop.permute.xlu0 %1750 }
 0x14f   : > { %v1447_v10 = vpop.permute.xlu1 %1446  ;;  %v1757_v47 = vsel %vm1756_vm12, %v1751_v9, %v1753_v7 }
 0x150   : > { %v1451_v11 = vsel %vm27597_vm4, %v1445_v58, %v1447_v10  ;;  %v1452_v12 = vsel %vm27597_vm4, %v1447_v10, %v1449_v57  ;;  %vm4126_vm4 = vcmask 564224  }
 0x151   : > { %22113 = vmatprep.subr.msk.mxu0 %vm670_vm8, %v1452_v12 }
 0x152   : > { %v24218_v14 = vpop.permute.xlu0 %1855  ;;  %22114 = vmatpush1.msk.msra.mxu0 %vm670_vm8, %v1451_v11 }
 0x153   : > { %22115 = vmatmul.mubr.msk.f32.vlgmr.msra.gmra.mrb[0].mxu0 %vm666_vm2, %v22112_v13  ;;  %v2568_v15 = vpop.permute.xlu1 %2567 }
 0x154   : > { %v2569_v16 = vrot.slane %v2568_v15, 4  ;;  %1629 = vmatprep.mubr.f32.mxu0 %v23785_v1 }
 0x156   : > { %v2571_v19 = vsel %vm2570_vm5, %v2569_v16, %v2568_v15  ;;  %v1657_v20 = vpop.permute.xlu0 %1656  ;;  %v2575_v23 = vmul.f32 %v2569_v16, %v2566_v18  ;;  %vm2780_vm5 = vcmask 310272  }
 0x157   : > { %v1552_v24 = vpop.permute.xlu1 %1551  ;;  %v24224_v26 = vmul.f32 %v2571_v19, %v24134_v41  ;;  %v1662_v33 = vsel %vm27594_vm11, %v1657_v20, %v1659_v8  ;;  %v1661_v34 = vsel %vm27594_vm11, %v1655_v62, %v1657_v20  ;;  %v2881_v8 = vld [vmem:[#allocation2 + $0x8] sm:$0xf]  ;;  %vm27595_vm11 = vcmask 539648  }
 0x158   : > { %v1556_v27 = vsel %vm27596_vm6, %v1550_v60, %v1552_v24  ;;  %2585 = vrot.lane.b32.xlu0 %v2575_v23, %s23817_s29  ;;  %v1557_v30 = vsel %vm27596_vm6, %v1552_v24, %v1554_v59  ;;  %v22132_v23 = vld [vmem:[%s27647_s24 + $0x30] sm:$0xf]  ;;  %v2986_v24 = vld [vmem:[#allocation2 + $0x8] sm:$0xf]  ;;  %vm4021_vm6 = vcmask 556032  }
 0x159   : > { %2581 = vrot.lane.b32.xlu1 %v24224_v26, %s23817_s29  ;;  %22117 = vmatprep.subr.msk.mxu0 %vm670_vm8, %v1557_v30  ;;  %v2580_v19 = vcombine.high %v24224_v26, %v24224_v26 }
 0x15a   : > { %v24235_v32 = vpop.permute.xlu0 %1960  ;;  %22118 = vmatpush1.msk.msra.mxu0 %vm670_vm8, %v1556_v27 }
 0x15b   : > { %22119 = vmatmul.mubr.msk.f32.vlgmr.msra.gmra.mrb[0].mxu0 %vm666_vm2, %v22116_v31  ;;  %22121 = vmatprep.subr.msk.mxu0 %vm670_vm8, %v1662_v33  ;;  %v1755_v35 = vpop.permute.xlu1 %1754 }
 0x15c   : > { %v1758_v37 = vsel %vm1756_vm12, %v1753_v7, %v1755_v35  ;;  %3503 = vrot.lane.b32.xlu0 %v24102_v21, %s23818_s0  ;;  %22122 = vmatpush1.msk.msra.mxu0 %vm670_vm8, %v1661_v34  ;;  %s23819_s0 = smov 91   ;;  %vm1966_vm12 = vcmask 875520   ;;  %v22128_v7 = vld [vmem:[%s27647_s24 + $0x2c] sm:$0xf] }
 0x15d   : > { %2382 = vrot.lane.b32.xlu1 %v2379_v36, %s27581_s25  ;;  %22125 = vmatprep.subr.msk.mxu0 %vm670_vm8, %v1758_v37  ;;  %s23822_s25 = smov 65  }
 0x15e   : > { %v24249_v38 = vpop.permute.xlu0 %2065  ;;  %1734 = vmatprep.mubr.f32.mxu0 %v23785_v1 }
 0x15f   : > { %v2673_v39 = vpop.permute.xlu1 %2672 }
 0x160   : > { %v2674_v40 = vrot.slane %v2673_v39, 4 }
 0x162   : > { %v2676_v44 = vsel %vm2675_vm13, %v2674_v40, %v2673_v39  ;;  %v24255_v45 = vpop.permute.xlu0 %2170  ;;  %v2680_v46 = vmul.f32 %v2674_v40, %v2671_v43  ;;  %vm2885_vm13 = vcmask 392192   ;;  %v22136_v39 = vld [vmem:[%s27647_s24 + $0x34] sm:$0xf] }
 0x163   : > { %22123 = vmatmul.mubr.msk.f32.vlgmr.msra.gmra.mrb[0].mxu0 %vm666_vm2, %v22120_v42  ;;  %v1860_v48 = vpop.permute.xlu1 %1859  ;;  %v24260_v49 = vmul.f32 %v2676_v44, %v24134_v41 }
 0x164   : > { %22126 = vmatpush1.msk.msra.mxu0 %vm670_vm8, %v1757_v47  ;;  %2690 = vrot.lane.b32.xlu0 %v2680_v46, %s23819_s0 }
 0x165   : > { %2686 = vrot.lane.b32.xlu1 %v24260_v49, %s23819_s0  ;;  %1830 = vmatprep.mubr.f32.mxu0 %v23785_v1 }
 0x166   : > { %v1858_v50 = vpop.permute.xlu0 %1857 }
 0x167   : > { %v2778_v51 = vpop.permute.xlu1 %2777  ;;  %v1863_v52 = vsel %vm1861_vm1, %v1858_v50, %v1860_v48  ;;  %v1862_v59 = vsel %vm1861_vm1, %v24218_v14, %v1858_v50  ;;  %vm2071_vm1 = vcmask 867328  }
 0x168   : > { %v2779_v53 = vrot.slane %v2778_v51, 4  ;;  %3608 = vrot.lane.b32.xlu0 %v24095_v17, %s27602_s27  ;;  %22129 = vmatprep.subr.msk.mxu0 %vm670_vm8, %v1863_v52  ;;  %v22140_v52 = vld [vmem:[%s27647_s24 + $0x38] sm:$0xf] }
 0x16a   : > { %v2781_v56 = vsel %vm2780_vm5, %v2779_v53, %v2778_v51  ;;  %v24274_v57 = vpop.permute.xlu0 %2275  ;;  %v2785_v58 = vmul.f32 %v2779_v53, %v2776_v55  ;;  %vm2176_vm5 = vcmask 785408  }
 0x16b   : > { %22127 = vmatmul.mubr.msk.f32.vlgmr.msra.gmra.mrb[0].mxu0 %vm666_vm2, %v22124_v54  ;;  %v1965_v60 = vpop.permute.xlu1 %1964  ;;  %v24280_v62 = vmul.f32 %v2781_v56, %v24134_v41  ;;  %v3091_v56 = vld [vmem:[#allocation2 + $0x8] sm:$0xf] }
 0x16c   : > { %22130 = vmatpush1.msk.msra.mxu0 %vm670_vm8, %v1862_v59  ;;  %2795 = vrot.lane.b32.xlu0 %v2785_v58, %s23821_s23 }
 0x16d   : > { %2791 = vrot.lane.b32.xlu1 %v24280_v62, %s23821_s23  ;;  %1935 = vmatprep.mubr.f32.mxu0 %v23785_v1  ;;  %v2790_v36 = vcombine.high %v24280_v62, %v24280_v62 }
 0x16e   : > { %v1963_v63 = vpop.permute.xlu0 %1962 }
 0x16f   : > { %v2883_v0 = vpop.permute.xlu1 %2882  ;;  %v1968_v5 = vsel %vm1966_vm12, %v1963_v63, %v1965_v60  ;;  %v1967_v12 = vsel %vm1966_vm12, %v24235_v32, %v1963_v63  ;;  %v2685_v32 = vcombine.high %v24260_v49, %v24260_v49  ;;  %vm2990_vm12 = vcmask 400384  }
 0x170   : > { %v2884_v6 = vrot.slane %v2883_v0, 4  ;;  %3712 = vrot.lane.b32.xlu0 %v24106_v22, %s23822_s25  ;;  %22133 = vmatprep.subr.msk.mxu0 %vm670_vm8, %v1968_v5  ;;  %s23823_s25 = smov 80   ;;  %v3196_v5 = vld [vmem:[#allocation2 + $0x8] sm:$0xf] }
 0x172   : > { %v2886_v9 = vsel %vm2885_vm13, %v2884_v6, %v2883_v0  ;;  %v24294_v10 = vpop.permute.xlu0 %2384  ;;  %v2890_v11 = vmul.f32 %v2884_v6, %v2881_v8  ;;  %v3292_v8 = vld [vmem:[#allocation2 + $0x8] sm:$0xf] }
 0x173   : > { %22131 = vmatmul.mubr.msk.f32.vlgmr.msra.gmra.mrb[0].mxu0 %vm666_vm2, %v22128_v7  ;;  %v2070_v13 = vpop.permute.xlu1 %2069  ;;  %v2889_v14 = vmul.f32 %v2886_v9, %v24134_v41 }
 0x174   : > { %22134 = vmatpush1.msk.msra.mxu0 %vm670_vm8, %v1967_v12  ;;  %2900 = vrot.lane.b32.xlu0 %v2890_v11, %s23823_s25  ;;  %v3397_v11 = vld [vmem:[#allocation2 + $0x8] sm:$0xf] }
 0x175   : > { %2896 = vrot.lane.b32.xlu1 %v2889_v14, %s23823_s25  ;;  %2040 = vmatprep.mubr.f32.mxu0 %v23785_v1  ;;  %v2895_v47 = vcombine.high %v2889_v14, %v2889_v14 }
 0x176   : > { %v2068_v15 = vpop.permute.xlu0 %2067 }
 0x177   : > { %v2988_v16 = vpop.permute.xlu1 %2987  ;;  %v2073_v18 = vsel %vm2071_vm1, %v2068_v15, %v2070_v13  ;;  %v2072_v26 = vsel %vm2071_vm1, %v24249_v38, %v2068_v15  ;;  %vm27592_vm1 = vcmask 777216  }
 0x178   : > { %v2989_v20 = vrot.slane %v2988_v16, 4  ;;  %3817 = vrot.lane.b32.xlu0 %v24111_v25, %s27589_s20  ;;  %22137 = vmatprep.subr.msk.mxu0 %vm670_vm8, %v2073_v18  ;;  %s23825_s20 = smov 79  }
 0x179   : > { %2583 = vrot.lane.b32.xlu1 %v2580_v19, %s23817_s29  ;;  %s23831_s29 = smov 75  }
 0x17a   : > { %v24314_v27 = vpop.permute.xlu0 %3293  ;;  %v2995_v30 = vmul.f32 %v2989_v20, %v2986_v24  ;;  %v2991_v37 = vsel %vm2990_vm12, %v2989_v20, %v2988_v16  ;;  %vm3401_vm12 = vcmask 433152  }
 0x17b   : > { %22135 = vmatmul.mubr.msk.f32.vlgmr.msra.gmra.mrb[0].mxu0 %vm666_vm2, %v22132_v23  ;;  %v2175_v31 = vpop.permute.xlu1 %2174  ;;  %v2994_v43 = vmul.f32 %v2991_v37, %v24134_v41  ;;  %v3295_v53 = vrot.slane %v24314_v27, 4  ;;  %v22152_v37 = vld [vmem:[%s27647_s24 + $0x44] sm:$0xf] }
 0x17c   : > { %22138 = vmatpush1.msk.msra.mxu0 %vm670_vm8, %v2072_v26  ;;  %3005 = vrot.lane.b32.xlu0 %v2995_v30, %s23825_s20  ;;  %v3502_v30 = vld [vmem:[#allocation2 + $0x8] sm:$0xf] }
 0x17d   : > { %2688 = vrot.lane.b32.xlu1 %v2685_v32, %s23819_s0  ;;  %2145 = vmatprep.mubr.f32.mxu0 %v23785_v1  ;;  %v3301_v9 = vmul.f32 %v3295_v53, %v3292_v8  ;;  %s23832_s0 = smov 70   ;;  %v22148_v32 = vld [vmem:[%s27647_s24 + $0x40] sm:$0xf] }
 0x17e   : > { %v2173_v33 = vpop.permute.xlu0 %2172 }
 0x17f   : > { %v3093_v34 = vpop.permute.xlu1 %3092  ;;  %v2178_v35 = vsel %vm2176_vm5, %v2173_v33, %v2175_v31  ;;  %v2177_v44 = vsel %vm2176_vm5, %v24255_v45, %v2173_v33  ;;  %v3000_v45 = vcombine.high %v2994_v43, %v2994_v43 }
 0x180   : > { %v3094_v38 = vrot.slane %v3093_v34, 4  ;;  %22141 = vmatprep.subr.msk.mxu0 %vm670_vm8, %v2178_v35 }
 0x181   : > { %2793 = vrot.lane.b32.xlu1 %v2790_v36, %s23821_s23  ;;  %s23826_s23 = smov 78  }
 0x182   : > { %v3096_v40 = vsel %vm3095_vm15, %v3094_v38, %v3093_v34  ;;  %v24333_v42 = vpop.permute.xlu0 %2480  ;;  %vm3296_vm15 = vcmask 424960   ;;  %v3100_v59 = vmul.f32 %v3094_v38, %v3091_v56 }
 0x183   : > { %v3099_v46 = vmul.f32 %v3096_v40, %v24134_v41  ;;  %22139 = vmatmul.mubr.msk.f32.vlgmr.msra.gmra.mrb[0].mxu0 %vm666_vm2, %v22136_v39  ;;  %v2280_v49 = vpop.permute.xlu1 %2279  ;;  %v3297_v55 = vsel %vm3296_vm15, %v3295_v53, %v24314_v27  ;;  %vm27593_vm15 = vcmask 769024   ;;  %v3607_v40 = vld [vmem:[#allocation2 + $0x8] sm:$0xf] }
 0x184   : > { %22142 = vmatpush1.msk.msra.mxu0 %vm670_vm8, %v2177_v44  ;;  %2250 = vmatprep.mubr.f32.mxu0 %v23785_v1  ;;  %v3300_v60 = vmul.f32 %v3297_v55, %v24134_v41 }
 0x185   : > { %2898 = vrot.lane.b32.xlu1 %v2895_v47, %s23823_s25  ;;  %v3105_v48 = vcombine.high %v3099_v46, %v3099_v46 }
 0x186   : > { %v2278_v50 = vpop.permute.xlu0 %2277  ;;  %v3306_v63 = vcombine.high %v3300_v60, %v3300_v60 }
 0x187   : > { %3108 = vrot.lane.b32.xlu0 %v3105_v48, %s23826_s23  ;;  %v2283_v51 = vsel %vm27592_vm1, %v2278_v50, %v2280_v49  ;;  %v2282_v54 = vsel %vm27592_vm1, %v24274_v57, %v2278_v50  ;;  %v22144_v57 = vld [vmem:[%s27647_s24 + $0x3c] sm:$0xf]  ;;  %v2381_v13 = vpop.permute.xlu1 %2380  ;;  %vm2482_vm1 = vcmask 760832  }
 0x188   : > { %22145 = vmatprep.subr.msk.mxu0 %vm670_vm8, %v2283_v51 }
 0x189   : > { %3003 = vrot.lane.b32.xlu1 %v3000_v45, %s23825_s20  ;;  %v3711_v45 = vld [vmem:[#allocation2 + $0x8] sm:$0xf] }
 0x18a   : > { %v3399_v58 = vpop.permute.xlu0 %3398 }
 0x18b   : > { %22143 = vmatmul.mubr.msk.f32.vlgmr.msra.gmra.mrb[0].mxu0 %vm666_vm2, %v22140_v52  ;;  %3106 = vrot.lane.b32.xlu0 %v3099_v46, %s23826_s23  ;;  %v3400_v62 = vrot.slane %v3399_v58, 4  ;;  %v2479_v14 = vpop.permute.xlu1 %2478 }
 0x18c   : > { %22146 = vmatpush1.msk.msra.mxu0 %vm670_vm8, %v2282_v54  ;;  %2355 = vmatprep.mubr.f32.mxu0 %v23785_v1  ;;  %v2484_v34 = vsel %vm2482_vm1, %v2479_v14, %v24333_v42 }
 0x18d   : > { %3001 = vrot.lane.b32.xlu1 %v2994_v43, %s23825_s20  ;;  %s23828_s20 = smov 68   ;;  %v3402_v0 = vsel %vm3401_vm12, %v3400_v62, %v3399_v58  ;;  %v3406_v12 = vmul.f32 %v3400_v62, %v3397_v11  ;;  %vm3506_vm12 = vcmask 441344  }
 0x18e   : > { %v3405_v6 = vmul.f32 %v3402_v0, %v24134_v41  ;;  %v22156_v0 = vld [vmem:[%s27647_s24 + $0x48] sm:$0xf] }
 0x18f   : > { %3204 = vrot.lane.b32.xlu0 %v24154_v61, %s23827_s22  ;;  %v2477_v15 = vpop.permute.xlu1 %2476 }
 0x190   : > { %v3411_v7 = vcombine.high %v3405_v6, %v3405_v6 }
 0x191   : > { %3110 = vrot.lane.b32.xlu1 %v3100_v59, %s23826_s23  ;;  %s23830_s23 = smov 69  }
 0x193   : > { %3202 = vrot.lane.b32.xlu0 %v24134_v41, %s23827_s22  ;;  %22147 = vmatmul.mubr.msk.f32.vlgmr.msra.gmra.mrb[0].mxu0 %vm666_vm2, %v22144_v57 }
 0x194   : > { %2460 = vmatprep.mubr.f32.mxu0 %v23785_v1 }
 0x195   : > { %4018 = vrot.lane.b32.xlu1 %v24117_v28, %s23828_s20  ;;  %s23833_s20 = smov 74  }
 0x197   : > { %3309 = vrot.lane.b32.xlu0 %v3306_v63, %s23829_s18 }
 0x199   : > { %3206 = vrot.lane.b32.xlu1 %v3196_v5, %s23827_s22  ;;  %s23839_s22 = smov 61  }
 0x19b   : > { %3307 = vrot.lane.b32.xlu0 %v3300_v60, %s23829_s18 }
 0x19d   : > { %4123 = vrot.lane.b32.xlu1 %v24121_v29, %s23830_s23  ;;  %s23846_s23 = smov 1  }
 0x19f   : > { %3414 = vrot.lane.b32.xlu0 %v3411_v7, %s23831_s29  ;;  %v3816_v7 = vld [vmem:[#allocation2 + $0x8] sm:$0xf] }
 0x1a1   : > { %3311 = vrot.lane.b32.xlu1 %v3301_v9, %s23829_s18  ;;  %s23834_s18 = smov 81  }
 0x1a3   : > { %3412 = vrot.lane.b32.xlu0 %v3405_v6, %s23831_s29 }
 0x1a5   : > { %4228 = vrot.lane.b32.xlu1 %v24102_v21, %s23832_s0  ;;  %s23835_s0 = smov 82  }
 0x1a9   : > { %3416 = vrot.lane.b32.xlu1 %v3406_v12, %s23831_s29  ;;  %s23840_s29 = smov 85  }
 0x1ad   : > { %4333 = vrot.lane.b32.xlu1 %v24095_v17, %s23823_s25  ;;  %s27600_s25 = smov 63  }
 0x1ca   : > { %v24371_v16 = vpop.permute.xlu0 %2585 }
 0x1cb   : > { %v24373_v18 = vpop.permute.xlu1 %2581 }
 0x1ce   : > { %v3504_v19 = vpop.permute.xlu0 %3503 }
 0x1cf   : > { %v3505_v20 = vrot.slane %v3504_v19, 4  ;;  %v2383_v23 = vpop.permute.xlu1 %2382 }
 0x1d0   : > { %v2387_v24 = vsel %vm27593_vm15, %v2381_v13, %v2383_v23  ;;  %v2388_v27 = vsel %vm27593_vm15, %v2383_v23, %v24294_v10  ;;  %v2483_v10 = vsel %vm2482_vm1, %v2477_v15, %v2479_v14  ;;  %vm3715_vm1 = vcmask 531456  }
 0x1d1   : > { %v3507_v26 = vsel %vm3506_vm12, %v3505_v20, %v3504_v19  ;;  %22149 = vmatprep.subr.msk.mxu0 %vm670_vm8, %v2388_v27  ;;  %v3511_v31 = vmul.f32 %v3505_v20, %v3502_v30  ;;  %vm27619_vm12 = vcmask 523264   ;;  %vm2587_vm15 = vcmask 752640  }
 0x1d2   : > { %v3510_v33 = vmul.f32 %v3507_v26, %v24134_v41  ;;  %22150 = vmatpush1.msk.msra.mxu0 %vm670_vm8, %v2387_v24  ;;  %v3921_v24 = vld [vmem:[#allocation2 + $0x8] sm:$0xf]  ;;  %v22164_v26 = vld [vmem:[%s27647_s24 + $0x50] sm:$0xf] }
 0x1d3   : > { %3521 = vrot.lane.b32.xlu1 %v3511_v31, %s23833_s20  ;;  %22153 = vmatprep.subr.msk.mxu0 %vm670_vm8, %v2484_v34 }
 0x1d4   : > { %22151 = vmatmul.mubr.msk.f32.vlgmr.msra.gmra.mrb[0].mxu0 %vm666_vm2, %v22148_v32  ;;  %v3516_v35 = vcombine.high %v3510_v33, %v3510_v33 }
 0x1d5   : > { %22154 = vmatpush1.msk.msra.mxu0 %vm670_vm8, %v2483_v10  ;;  %2556 = vmatprep.mubr.f32.mxu0 %v23785_v1 }
 0x1d6   : > { %v2691_v36 = vpop.permute.xlu0 %2690  ;;  %3519 = vrot.lane.b32.xlu0 %v3516_v35, %s23833_s20 }
 0x1d7   : > { %4436 = vrot.lane.b32.xlu1 %v24106_v22, %s23834_s18  ;;  %v2687_v47 = vpop.permute.xlu1 %2686  ;;  %s27598_s18 = smov 62  }
 0x1da   : > { %v3609_v38 = vpop.permute.xlu0 %3608  ;;  %3517 = vrot.lane.b32.xlu0 %v3510_v33, %s23833_s20  ;;  %s23841_s20 = smov 60  }
 0x1db   : > { %v3610_v39 = vrot.slane %v3609_v38, 4 }
 0x1dc   : > { %22155 = vmatmul.mubr.msk.f32.vlgmr.msra.gmra.mrb[0].mxu0 %vm666_vm2, %v22152_v37 }
 0x1dd   : > { %v3612_v42 = vsel %vm27619_vm12, %v3610_v39, %v3609_v38  ;;  %v3616_v43 = vmul.f32 %v3610_v39, %v3607_v40  ;;  %2661 = vmatprep.mubr.f32.mxu0 %v23785_v1  ;;  %v4017_v39 = vld [vmem:[#allocation2 + $0x8] sm:$0xf]  ;;  %v24454_v40 = vld [vmem:[#allocation2] sm:$0xff] }
 0x1de   : > { %v3615_v44 = vmul.f32 %v3612_v42, %v24134_v41  ;;  %v2796_v46 = vpop.permute.xlu0 %2795 }
 0x1df   : > { %3626 = vrot.lane.b32.xlu1 %v3616_v43, %s27602_s27  ;;  %v2792_v50 = vpop.permute.xlu1 %2791 }
 0x1e0   : > { %v3621_v48 = vcombine.high %v3615_v44, %v3615_v44 }
 0x1e2   : > { %v3713_v49 = vpop.permute.xlu0 %3712  ;;  %3624 = vrot.lane.b32.xlu0 %v3621_v48, %s27602_s27  ;;  %v22172_v48 = vld [vmem:[%s27647_s24 + $0x58] sm:$0xf] }
 0x1e3   : > { %v3714_v51 = vrot.slane %v3713_v49, 4  ;;  %4541 = vrot.lane.b32.xlu1 %v24111_v25, %s23835_s0  ;;  %s23838_s0 = smov 84  }
 0x1e5   : > { %v3716_v52 = vsel %vm3715_vm1, %v3714_v51, %v3713_v49  ;;  %v3720_v53 = vmul.f32 %v3714_v51, %v3711_v45  ;;  %vm2692_vm1 = vcmask 744448  }
 0x1e6   : > { %v3719_v54 = vmul.f32 %v3716_v52, %v24134_v41  ;;  %v2901_v55 = vpop.permute.xlu0 %2900  ;;  %3622 = vrot.lane.b32.xlu0 %v3615_v44, %s27602_s27  ;;  %s27652_s27 = smov 34  }
 0x1e7   : > { %3730 = vrot.lane.b32.xlu1 %v3720_v53, %s27600_s25  ;;  %v2897_v56 = vpop.permute.xlu1 %2896  ;;  %v4122_v53 = vld [vmem:[#allocation2 + $0x8] sm:$0xf] }
 0x1e8   : > { %v3725_v58 = vcombine.high %v3719_v54, %v3719_v54 }
 0x1ea   : > { %v3818_v59 = vpop.permute.xlu0 %3817  ;;  %3728 = vrot.lane.b32.xlu0 %v3725_v58, %s27600_s25 }
 0x1eb   : > { %v3819_v57 = vrot.slane %v3818_v59, 4  ;;  %v2584_v60 = vpop.permute.xlu1 %2583 }
 0x1ec   : > { %v2588_v62 = vsel %vm2587_vm15, %v24373_v18, %v2584_v60  ;;  %v2589_v63 = vsel %vm2587_vm15, %v2584_v60, %v24371_v16  ;;  %vm2797_vm15 = vcmask 736256   ;;  %v22160_v16 = vld [vmem:[%s27647_s24 + $0x4c] sm:$0xf] }
 0x1ed   : > { %v3821_v5 = vsel %vm27595_vm11, %v3819_v57, %v3818_v59  ;;  %22157 = vmatprep.subr.msk.mxu0 %vm670_vm8, %v2589_v63  ;;  %v3825_v9 = vmul.f32 %v3819_v57, %v3816_v7  ;;  %vm3112_vm11 = vcmask 637952   ;;  %v22176_v57 = vld [vmem:[%s27647_s24 + $0x5c] sm:$0xf]  ;;  %v4227_v7 = vld [vmem:[#allocation2 + $0x8] sm:$0xf] }
 0x1ee   : > { %v3824_v6 = vmul.f32 %v3821_v5, %v24134_v41  ;;  %3726 = vrot.lane.b32.xlu0 %v3719_v54, %s27600_s25  ;;  %22158 = vmatpush1.msk.msra.mxu0 %vm670_vm8, %v2588_v62  ;;  %v3006_v18 = vpop.permute.xlu0 %3005  ;;  %s27648_s25 = sld [smem:[#allocation20_spill]] }
 0x1ef   : > { %22159 = vmatmul.mubr.msk.f32.vlgmr.msra.gmra.mrb[0].mxu0 %vm666_vm2, %v22156_v0  ;;  %v2689_v8 = vpop.permute.xlu1 %2688 }
 0x1f0   : > { %v3830_v11 = vcombine.high %v3824_v6, %v3824_v6  ;;  %v2693_v12 = vsel %vm2692_vm1, %v2687_v47, %v2689_v8  ;;  %v2694_v13 = vsel %vm2692_vm1, %v2689_v8, %v2691_v36  ;;  %2766 = vmatprep.mubr.f32.mxu0 %v23785_v1  ;;  %vm2902_vm1 = vcmask 654336  }
 0x1f1   : > { %22161 = vmatprep.subr.msk.mxu0 %vm670_vm8, %v2694_v13  ;;  %v22180_v13 = vld [vmem:[%s27647_s24 + $0x60] sm:$0xf] }
 0x1f2   : > { %3833 = vrot.lane.b32.xlu1 %v3830_v11, %s27598_s18  ;;  %3835 = vrot.lane.b32.xlu0 %v3825_v9, %s27598_s18 }
 0x1f3   : > { %22162 = vmatpush1.msk.msra.mxu0 %vm670_vm8, %v2693_v12  ;;  %v2794_v14 = vpop.permute.xlu1 %2793 }
 0x1f4   : > { %v2799_v15 = vsel %vm2797_vm15, %v2794_v14, %v2796_v46  ;;  %v2798_v19 = vsel %vm2797_vm15, %v2792_v50, %v2794_v14  ;;  %vm3007_vm15 = vcmask 646144  }
 0x1f5   : > { %22165 = vmatprep.subr.msk.mxu0 %vm670_vm8, %v2799_v15 }
 0x1f6   : > { %3831 = vrot.lane.b32.xlu1 %v3824_v6, %s27598_s18  ;;  %4742 = vrot.lane.b32.xlu0 %v24117_v28, %s23838_s0  ;;  %s23842_s0 = smov 86   ;;  %s23865_s18 = smov 125  }
 0x1f7   : > { %22163 = vmatmul.mubr.msk.f32.vlgmr.msra.gmra.mrb[0].mxu0 %vm666_vm2, %v22160_v16  ;;  %v2899_v20 = vpop.permute.xlu1 %2898 }
 0x1f8   : > { %22166 = vmatpush1.msk.msra.mxu0 %vm670_vm8, %v2798_v19  ;;  %v2904_v23 = vsel %vm2902_vm1, %v2899_v20, %v2901_v55  ;;  %2871 = vmatprep.mubr.f32.mxu0 %v23785_v1  ;;  %v2903_v31 = vsel %vm2902_vm1, %v2897_v56, %v2899_v20  ;;  %v4332_v20 = vld [vmem:[#allocation2 + $0x8] sm:$0xf] }
 0x1f9   : > { %22169 = vmatprep.subr.msk.mxu0 %vm670_vm8, %v2904_v23  ;;  %v3109_v27 = vpop.permute.xlu0 %3108 }
 0x1fa   : > { %3929 = vrot.lane.b32.xlu1 %v24154_v61, %s23839_s22  ;;  %3931 = vrot.lane.b32.xlu0 %v3921_v24, %s23839_s22 }
 0x1fb   : > { %v3004_v30 = vpop.permute.xlu1 %3003 }
 0x1fc   : > { %v3009_v61 = vsel %vm3007_vm15, %v3004_v30, %v3006_v18 }
 0x1fd   : > { %v3107_v33 = vpop.permute.xlu0 %3106 }
 0x1fe   : > { %3927 = vrot.lane.b32.xlu1 %v24134_v41, %s23839_s22  ;;  %4847 = vrot.lane.b32.xlu0 %v24121_v29, %s23840_s29  ;;  %v22168_v41 = vld [vmem:[%s27647_s24 + $0x54] sm:$0xf]  ;;  %v3113_v50 = vsel %vm3112_vm11, %v3107_v33, %v3109_v27  ;;  %s23843_s22 = smov 59   ;;  %v22188_v33 = vld [vmem:[%s27647_s24 + $0x68] sm:$0xf]  ;;  %s23847_s29 = smov 98  }
 0x1ff   : > { %22167 = vmatmul.mubr.msk.f32.vlgmr.msra.gmra.mrb[0].mxu0 %vm666_vm2, %v22164_v26  ;;  %v3002_v32 = vpop.permute.xlu1 %3001  ;;  %v22184_v26 = vld [vmem:[%s27647_s24 + $0x64] sm:$0xf] }
 0x200   : > { %22170 = vmatpush1.msk.msra.mxu0 %vm670_vm8, %v2903_v31  ;;  %2976 = vmatprep.mubr.f32.mxu0 %v23785_v1  ;;  %v3008_v35 = vsel %vm3007_vm15, %v3002_v32, %v3004_v30  ;;  %vm3208_vm15 = vcmask 629760  }
 0x201   : > { %22173 = vmatprep.subr.msk.mxu0 %vm670_vm8, %v3009_v61  ;;  %v3205_v10 = vpop.permute.xlu0 %3204 }
 0x203   : > { %v3111_v34 = vpop.permute.xlu1 %3110 }
 0x204   : > { %v3114_v37 = vsel %vm3112_vm11, %v3109_v27, %v3111_v34  ;;  %vm4231_vm11 = vcmask 572416  }
 0x205   : > { %v3203_v47 = vpop.permute.xlu0 %3202 }
 0x206   : > { %v3209_v62 = vsel %vm3208_vm15, %v3203_v47, %v3205_v10 }
 0x207   : > { %22171 = vmatmul.mubr.msk.f32.vlgmr.msra.gmra.mrb[0].mxu0 %vm666_vm2, %v22168_v41  ;;  %v4019_v36 = vpop.permute.xlu1 %4018 }
 0x208   : > { %22174 = vmatpush1.msk.msra.mxu0 %vm670_vm8, %v3008_v35  ;;  %v4020_v38 = vrot.slane %v4019_v36, 4  ;;  %3081 = vmatprep.mubr.f32.mxu0 %v23785_v1  ;;  %v4435_v35 = vld [vmem:[#allocation2 + $0x8] sm:$0xf] }
 0x209   : > { %22177 = vmatprep.subr.msk.mxu0 %vm670_vm8, %v3114_v37  ;;  %v3310_v54 = vpop.permute.xlu0 %3309 }
 0x20a   : > { %v4022_v42 = vsel %vm4021_vm6, %v4020_v38, %v4019_v36  ;;  %v4026_v43 = vmul.f32 %v4020_v38, %v4017_v39  ;;  %vm3313_vm6 = vcmask 621568   ;;  %v22192_v39 = vld [vmem:[%s27647_s24 + $0x6c] sm:$0xf] }
 0x20b   : > { %v4025_v44 = vmul.f32 %v4022_v42, %v24454_v40  ;;  %v3207_v46 = vpop.permute.xlu1 %3206 }
 0x20c   : > { %4036 = vrot.lane.b32.xlu0 %v4026_v43, %s23841_s20  ;;  %v3210_v45 = vsel %vm3208_vm15, %v3205_v10, %v3207_v46  ;;  %vm4439_vm15 = vcmask 662528  }
 0x20d   : > { %v4031_v49 = vcombine.high %v4025_v44, %v4025_v44  ;;  %v3308_v0 = vpop.permute.xlu0 %3307 }
 0x20f   : > { %22175 = vmatmul.mubr.msk.f32.vlgmr.msra.gmra.mrb[0].mxu0 %vm666_vm2, %v22172_v48  ;;  %4034 = vrot.lane.b32.xlu1 %v4031_v49, %s23841_s20  ;;  %v4124_v51 = vpop.permute.xlu1 %4123 }
 0x210   : > { %22178 = vmatpush1.msk.msra.mxu0 %vm670_vm8, %v3113_v50  ;;  %v4125_v52 = vrot.slane %v4124_v51, 4  ;;  %4952 = vrot.lane.b32.xlu0 %v24102_v21, %s23842_s0  ;;  %s23851_s0 = smov 100  }
 0x211   : > { %22181 = vmatprep.subr.msk.mxu0 %vm670_vm8, %v3210_v45  ;;  %3186 = vmatprep.mubr.f32.mxu0 %v23785_v1  ;;  %v3415_v15 = vpop.permute.xlu0 %3414 }
 0x212   : > { %v4127_v55 = vsel %vm4126_vm4, %v4125_v52, %v4124_v51  ;;  %v4131_v56 = vmul.f32 %v4125_v52, %v4122_v53  ;;  %vm3418_vm4 = vcmask 613376   ;;  %v4540_v51 = vld [vmem:[#allocation2 + $0x8] sm:$0xf] }
 0x213   : > { %v4130_v58 = vmul.f32 %v4127_v55, %v24454_v40  ;;  %4032 = vrot.lane.b32.xlu1 %v4025_v44, %s23841_s20  ;;  %v3312_v59 = vpop.permute.xlu1 %3311  ;;  %s23844_s20 = smov 58  }
 0x214   : > { %4141 = vrot.lane.b32.xlu0 %v4131_v56, %s23843_s22  ;;  %v3315_v5 = vsel %vm3313_vm6, %v3310_v54, %v3312_v59 }
 0x215   : > { %v4136_v60 = vcombine.high %v4130_v58, %v4130_v58  ;;  %v3413_v30 = vpop.permute.xlu0 %3412 }
 0x216   : > { %v3419_v32 = vsel %vm3418_vm4, %v3413_v30, %v3415_v15  ;;  %v22208_v30 = vld [vmem:[%s27647_s24 + $0x7c] sm:$0xf] }
 0x217   : > { %22179 = vmatmul.mubr.msk.f32.vlgmr.msra.gmra.mrb[0].mxu0 %vm666_vm2, %v22176_v57  ;;  %4139 = vrot.lane.b32.xlu1 %v4136_v60, %s23843_s22  ;;  %v4229_v63 = vpop.permute.xlu1 %4228 }
 0x218   : > { %22182 = vmatpush1.msk.msra.mxu0 %vm670_vm8, %v3209_v62  ;;  %v4230_v6 = vrot.slane %v4229_v63, 4  ;;  %5057 = vrot.lane.b32.xlu0 %v24095_v17, %s27604_s28  ;;  %v3314_v17 = vsel %vm3313_vm6, %v3308_v0, %v3310_v54  ;;  %vm4544_vm6 = vcmask 670720   ;;  %v22196_v54 = vld [vmem:[%s27647_s24 + $0x70] sm:$0xf]  ;;  %v22200_v62 = vld [vmem:[%s27647_s24 + $0x74] sm:$0xf] }
 0x219   : > { %22185 = vmatprep.subr.msk.mxu0 %vm670_vm8, %v3315_v5  ;;  %3282 = vmatprep.mubr.f32.mxu0 %v23785_v1  ;;  %v4645_v0 = vld [vmem:[#allocation2 + $0x8] sm:$0xf]  ;;  %v24539_v5 = vcombine.high %v24454_v40, %v24454_v40  ;;  %s27651_s28 = smov 18  }
 0x21a   : > { %v4232_v8 = vsel %vm4231_vm11, %v4230_v6, %v4229_v63  ;;  %v4236_v9 = vmul.f32 %v4230_v6, %v4227_v7  ;;  %vm27607_vm11 = vcmask 515072  }
 0x21b   : > { %v4235_v11 = vmul.f32 %v4232_v8, %v24454_v40  ;;  %4137 = vrot.lane.b32.xlu1 %v4130_v58, %s23843_s22  ;;  %v3417_v12 = vpop.permute.xlu1 %3416  ;;  %s23845_s22 = smov 97  }
 0x21c   : > { %4246 = vrot.lane.b32.xlu0 %v4236_v9, %s23844_s20  ;;  %v3420_v18 = vsel %vm3418_vm4, %v3415_v15, %v3417_v12  ;;  %vm27606_vm4 = vcmask 506880   ;;  %v22204_v12 = vld [vmem:[%s27647_s24 + $0x78] sm:$0xf] }
 0x21d   : > { %v4241_v14 = vcombine.high %v4235_v11, %v4235_v11 }
 0x21f   : > { %22183 = vmatmul.mubr.msk.f32.vlgmr.msra.gmra.mrb[0].mxu0 %vm666_vm2, %v22180_v13  ;;  %4244 = vrot.lane.b32.xlu1 %v4241_v14, %s23844_s20  ;;  %v4334_v16 = vpop.permute.xlu1 %4333 }
 0x220   : > { %22186 = vmatpush1.msk.msra.mxu0 %vm670_vm8, %v3314_v17  ;;  %v4335_v19 = vrot.slane %v4334_v16, 4  ;;  %5160 = vrot.lane.b32.xlu0 %v24106_v22, %s23845_s22  ;;  %s23854_s22 = smov 101  }
 0x221   : > { %22189 = vmatprep.subr.msk.mxu0 %vm670_vm8, %v3420_v18  ;;  %3387 = vmatprep.mubr.f32.mxu0 %v23785_v1 }
 0x222   : > { %v4336_v23 = vsel %vm2902_vm1, %v4335_v19, %v4334_v16  ;;  %v4340_v24 = vmul.f32 %v4335_v19, %v4332_v20  ;;  %vm3523_vm1 = vcmask 605184   ;;  %v4741_v19 = vld [vmem:[#allocation2 + $0x8] sm:$0xf] }
 0x223   : > { %v4339_v27 = vmul.f32 %v4336_v23, %v24454_v40  ;;  %4242 = vrot.lane.b32.xlu1 %v4235_v11, %s23844_s20  ;;  %s27614_s20 = smov 2  }
 0x224   : > { %4350 = vrot.lane.b32.xlu0 %v4340_v24, %s23810_s21 }
 0x225   : > { %v4345_v31 = vcombine.high %v4339_v27, %v4339_v27 }
 0x227   : > { %22187 = vmatmul.mubr.msk.f32.vlgmr.msra.gmra.mrb[0].mxu0 %vm666_vm2, %v22184_v26  ;;  %4348 = vrot.lane.b32.xlu1 %v4345_v31, %s23810_s21 }
 0x228   : > { %22190 = vmatpush1.msk.msra.mxu0 %vm670_vm8, %v3419_v32  ;;  %762 = vrot.lane.b32.xlu0 %v24106_v22, %s23846_s23  ;;  %s23848_s23 = smov 47  }
 0x229   : > { %3492 = vmatprep.mubr.f32.mxu0 %v23785_v1 }
 0x22b   : > { %4346 = vrot.lane.b32.xlu1 %v4339_v27, %s23810_s21  ;;  %s23850_s21 = smov 46  }
 0x22f   : > { %5265 = vrot.lane.b32.xlu1 %v24111_v25, %s23847_s29  ;;  %22191 = vmatmul.mubr.msk.f32.vlgmr.msra.gmra.mrb[0].mxu0 %vm666_vm2, %v22188_v33  ;;  %s23852_s29 = smov 45  }
 0x230   : > { %3597 = vmatprep.mubr.f32.mxu0 %v23785_v1 }
 0x245   : > { %v3522_v61 = vpop.permute.xlu1 %3521 }
 0x248   : > { %v3520_v34 = vpop.permute.xlu0 %3519 }
 0x249   : > { %v4437_v22 = vpop.permute.xlu1 %4436  ;;  %v3525_v41 = vsel %vm3523_vm1, %v3520_v34, %v3522_v61 }
 0x24a   : > { %v4438_v10 = vrot.slane %v4437_v22, 4  ;;  %22193 = vmatprep.subr.msk.mxu0 %vm670_vm8, %v3525_v41 }
 0x24c   : > { %v4440_v36 = vsel %vm4439_vm15, %v4438_v10, %v4437_v22  ;;  %v4444_v37 = vmul.f32 %v4438_v10, %v4435_v35  ;;  %v3518_v38 = vpop.permute.xlu0 %3517  ;;  %vm3933_vm15 = vcmask 498688  }
 0x24d   : > { %v4443_v42 = vmul.f32 %v4440_v36, %v24454_v40  ;;  %v3524_v43 = vsel %vm3523_vm1, %v3518_v38, %v3520_v34  ;;  %vm4745_vm1 = vcmask 687104   ;;  %v4846_v34 = vld [vmem:[#allocation2 + $0x8] sm:$0xf] }
 0x24e   : > { %22194 = vmatpush1.msk.msra.mxu0 %vm670_vm8, %v3524_v43  ;;  %4454 = vrot.lane.b32.xlu1 %v4444_v37, %s23848_s23 }
 0x24f   : > { %v4449_v44 = vcombine.high %v4443_v42, %v4443_v42  ;;  %22195 = vmatmul.mubr.msk.f32.vlgmr.msra.gmra.mrb[0].mxu0 %vm666_vm2, %v22192_v39 }
 0x250   : > { %3701 = vmatprep.mubr.f32.mxu0 %v23785_v1 }
 0x251   : > { %4452 = vrot.lane.b32.xlu0 %v4449_v44, %s23848_s23  ;;  %v3627_v46 = vpop.permute.xlu1 %3626 }
 0x252   : > { %879 = vrot.lane.b32.xlu1 %v24111_v25, %s27614_s20 }
 0x254   : > { %v3625_v47 = vpop.permute.xlu0 %3624 }
 0x255   : > { %4450 = vrot.lane.b32.xlu0 %v4443_v42, %s23848_s23  ;;  %v4542_v48 = vpop.permute.xlu1 %4541  ;;  %v3629_v49 = vsel %vm27619_vm12, %v3625_v47, %v3627_v46  ;;  %s23856_s23 = smov 5  }
 0x256   : > { %v4543_v50 = vrot.slane %v4542_v48, 4  ;;  %22197 = vmatprep.subr.msk.mxu0 %vm670_vm8, %v3629_v49 }
 0x258   : > { %v4545_v45 = vsel %vm4544_vm6, %v4543_v50, %v4542_v48  ;;  %v4549_v52 = vmul.f32 %v4543_v50, %v4540_v51  ;;  %v3623_v53 = vpop.permute.xlu0 %3622  ;;  %vm4850_vm6 = vcmask 695296  }
 0x259   : > { %v4548_v55 = vmul.f32 %v4545_v45, %v24454_v40  ;;  %v3628_v25 = vsel %vm27619_vm12, %v3623_v53, %v3625_v47  ;;  %v3731_v58 = vpop.permute.xlu1 %3730  ;;  %v22216_v53 = vld [vmem:[%s27647_s24 + $0x84] sm:$0xf] }
 0x25a   : > { %22198 = vmatpush1.msk.msra.mxu0 %vm670_vm8, %v3628_v25  ;;  %4559 = vrot.lane.b32.xlu1 %v4549_v52, %s23850_s21 }
 0x25b   : > { %v4554_v56 = vcombine.high %v4548_v55, %v4548_v55  ;;  %22199 = vmatmul.mubr.msk.f32.vlgmr.msra.gmra.mrb[0].mxu0 %vm666_vm2, %v22196_v54 }
 0x25c   : > { %v3729_v59 = vpop.permute.xlu0 %3728  ;;  %3806 = vmatprep.mubr.f32.mxu0 %v23785_v1 }
 0x25d   : > { %4557 = vrot.lane.b32.xlu0 %v4554_v56, %s23850_s21  ;;  %v3734_v57 = vsel %vm27607_vm11, %v3729_v59, %v3731_v58  ;;  %v5056_v56 = vld [vmem:[#allocation2 + $0x8] sm:$0xf] }
 0x25e   : > { %5466 = vrot.lane.b32.xlu1 %v24117_v28, %s23851_s0  ;;  %22201 = vmatprep.subr.msk.mxu0 %vm670_vm8, %v3734_v57  ;;  %s27608_s0 = smov 126  }
 0x260   : > { %v3727_v60 = vpop.permute.xlu0 %3726 }
 0x261   : > { %v3733_v63 = vsel %vm27607_vm11, %v3727_v60, %v3729_v59  ;;  %4555 = vrot.lane.b32.xlu0 %v4548_v55, %s23850_s21  ;;  %s23853_s21 = smov 4   ;;  %vm1111_vm11 = vcmask 1014784  }
 0x262   : > { %4655 = vrot.lane.b32.xlu1 %v4645_v0, %s23852_s29  ;;  %22202 = vmatpush1.msk.msra.mxu0 %vm670_vm8, %v3733_v63 }
 0x263   : > { %22203 = vmatmul.mubr.msk.f32.vlgmr.msra.gmra.mrb[0].mxu0 %vm666_vm2, %v22200_v62 }
 0x264   : > { %v3836_v6 = vpop.permute.xlu0 %3835  ;;  %v3834_v7 = vpop.permute.xlu1 %3833  ;;  %3911 = vmatprep.mubr.f32.mxu0 %v23785_v1 }
 0x265   : > { %4653 = vrot.lane.b32.xlu0 %v24539_v5, %s23852_s29  ;;  %v3839_v8 = vsel %vm27606_vm4, %v3834_v7, %v3836_v6 }
 0x266   : > { %1092 = vrot.lane.b32.xlu1 %v24117_v28, %s23853_s21  ;;  %22205 = vmatprep.subr.msk.mxu0 %vm670_vm8, %v3839_v8  ;;  %s23858_s21 = smov 43  }
 0x268   : > { %v4743_v9 = vpop.permute.xlu0 %4742  ;;  %v3832_v11 = vpop.permute.xlu1 %3831 }
 0x269   : > { %v4744_v13 = vrot.slane %v4743_v9, 4  ;;  %v3838_v14 = vsel %vm27606_vm4, %v3832_v11, %v3834_v7  ;;  %4651 = vrot.lane.b32.xlu0 %v24454_v40, %s23852_s29  ;;  %s23855_s29 = smov 44   ;;  %v22220_v7 = vld [vmem:[%s27647_s24 + $0x88] sm:$0xf]  ;;  %vm995_vm4 = vcmask 1022976  }
 0x26a   : > { %22206 = vmatpush1.msk.msra.mxu0 %vm670_vm8, %v3838_v14 }
 0x26b   : > { %v4746_v15 = vsel %vm4745_vm1, %v4744_v13, %v4743_v9  ;;  %22207 = vmatmul.mubr.msk.f32.vlgmr.msra.gmra.mrb[0].mxu0 %vm666_vm2, %v22204_v12  ;;  %v4750_v23 = vmul.f32 %v4744_v13, %v4741_v19  ;;  %vm4038_vm1 = vcmask 490496   ;;  %v5159_v12 = vld [vmem:[#allocation2 + $0x8] sm:$0xf] }
 0x26c   : > { %v4749_v28 = vmul.f32 %v4746_v15, %v24454_v40  ;;  %v3932_v17 = vpop.permute.xlu0 %3931  ;;  %v3930_v16 = vpop.permute.xlu1 %3929  ;;  %4007 = vmatprep.mubr.f32.mxu0 %v23785_v1 }
 0x26d   : > { %5571 = vrot.lane.b32.xlu0 %v24121_v29, %s23854_s22  ;;  %v3935_v18 = vsel %vm3933_vm15, %v3930_v16, %v3932_v17  ;;  %s23857_s22 = smov 102  }
 0x26e   : > { %v4755_v20 = vcombine.high %v4749_v28, %v4749_v28  ;;  %22209 = vmatprep.subr.msk.mxu0 %vm670_vm8, %v3935_v18 }
 0x270   : > { %v4848_v24 = vpop.permute.xlu0 %4847  ;;  %4758 = vrot.lane.b32.xlu1 %v4755_v20, %s23855_s29  ;;  %v3928_v27 = vpop.permute.xlu1 %3927 }
 0x271   : > { %v4849_v26 = vrot.slane %v4848_v24, 4  ;;  %v3934_v31 = vsel %vm3933_vm15, %v3928_v27, %v3930_v16  ;;  %4760 = vrot.lane.b32.xlu0 %v4750_v23, %s23855_s29  ;;  %vm4955_vm15 = vcmask 703488   ;;  %v22224_v23 = vld [vmem:[%s27647_s24 + $0x8c] sm:$0xf] }
 0x272   : > { %22210 = vmatpush1.msk.msra.mxu0 %vm670_vm8, %v3934_v31 }
 0x273   : > { %v4851_v32 = vsel %vm4850_vm6, %v4849_v26, %v4848_v24  ;;  %22211 = vmatmul.mubr.msk.f32.vlgmr.msra.gmra.mrb[0].mxu0 %vm666_vm2, %v22208_v30  ;;  %v4855_v22 = vmul.f32 %v4849_v26, %v4846_v34  ;;  %vm4143_vm6 = vcmask 482304   ;;  %v749_v30 = vld [vmem:[#allocation2 + $0x8] sm:$0xf] }
 0x274   : > { %v4854_v33 = vmul.f32 %v4851_v32, %v24454_v40  ;;  %4756 = vrot.lane.b32.xlu1 %v4749_v28, %s23855_s29  ;;  %4112 = vmatprep.mubr.f32.mxu0 %v23785_v1  ;;  %v663_v28 = vld [vmem:[%s27647_s24] sm:$0xf]  ;;  %s27657_s29 = smov 110  }
 0x275   : > { %1208 = vrot.lane.b32.xlu0 %v24121_v29, %s23856_s23  ;;  %v4951_v29 = vld [vmem:[#allocation2 + $0x8] sm:$0xf]  ;;  %s23859_s23 = smov 42   ;;  %22082 = vmatmul.mubr.msk.f32.vlgmr.msra.gmra.mrb[0].mxu1 %vm666_vm2, %v663_v28 }
 0x276   : > { %v4860_v61 = vcombine.high %v4854_v33, %v4854_v33  ;;  %856 = vmatprep.mubr.f32.mxu1 %v23785_v1 }
 0x278   : > { %5676 = vrot.lane.b32.xlu1 %v24102_v21, %s23857_s22  ;;  %v22212_v21 = vld [vmem:[%s27647_s24 + $0x80] sm:$0xf]  ;;  %s23862_s22 = smov 30  }
 0x279   : > { %4863 = vrot.lane.b32.xlu0 %v4860_v61, %s23858_s21 }
 0x27c   : > { %4865 = vrot.lane.b32.xlu1 %v4855_v22, %s23858_s21  ;;  %v5264_v22 = vld [vmem:[#allocation2 + $0x8] sm:$0xf] }
 0x27d   : > { %4861 = vrot.lane.b32.xlu0 %v4854_v33, %s23858_s21  ;;  %s23860_s21 = smov 31  }
 0x27e   : > { %v4037_v41 = vpop.permute.xlu0 %4036 }
 0x281   : > { %v4035_v10 = vpop.permute.xlu1 %4034 }
 0x282   : > { %v4953_v35 = vpop.permute.xlu0 %4952  ;;  %v4040_v36 = vsel %vm4038_vm1, %v4035_v10, %v4037_v41 }
 0x283   : > { %v4954_v37 = vrot.slane %v4953_v35, 4  ;;  %22213 = vmatprep.subr.msk.mxu0 %vm670_vm8, %v4040_v36 }
 0x285   : > { %v4956_v38 = vsel %vm4955_vm15, %v4954_v37, %v4953_v35  ;;  %v4960_v39 = vmul.f32 %v4954_v37, %v4951_v29  ;;  %v4033_v42 = vpop.permute.xlu1 %4032  ;;  %vm5163_vm15 = vcmask 793600  }
 0x286   : > { %v4959_v43 = vmul.f32 %v4956_v38, %v24454_v40  ;;  %v4039_v44 = vsel %vm4038_vm1, %v4033_v42, %v4035_v10  ;;  %v4142_v46 = vpop.permute.xlu0 %4141  ;;  %vm4248_vm1 = vcmask 474112  }
 0x287   : > { %4970 = vrot.lane.b32.xlu0 %v4960_v39, %s23859_s23  ;;  %22214 = vmatpush1.msk.msra.mxu0 %vm670_vm8, %v4039_v44  ;;  %v866_v39 = vld [vmem:[#allocation2 + $0x8] sm:$0xf]  ;;  %v22228_v44 = vld [vmem:[%s27647_s24 + $0x90] sm:$0xf] }
 0x288   : > { %v4965_v47 = vcombine.high %v4959_v43, %v4959_v43  ;;  %22215 = vmatmul.mubr.msk.f32.vlgmr.msra.gmra.mrb[0].mxu0 %vm666_vm2, %v22212_v21 }
 0x289   : > { %v4140_v48 = vpop.permute.xlu1 %4139  ;;  %4217 = vmatprep.mubr.f32.mxu0 %v23785_v1 }
 0x28a   : > { %v5058_v49 = vpop.permute.xlu0 %5057  ;;  %4968 = vrot.lane.b32.xlu1 %v4965_v47, %s23859_s23  ;;  %v4145_v50 = vsel %vm4143_vm6, %v4140_v48, %v4142_v46 }
 0x28b   : > { %v5059_v51 = vrot.slane %v5058_v49, 4  ;;  %22217 = vmatprep.subr.msk.mxu0 %vm670_vm8, %v4145_v50 }
 0x28d   : > { %v5060_v45 = vsel %vm2176_vm5, %v5059_v51, %v5058_v49  ;;  %v4138_v52 = vpop.permute.xlu1 %4137  ;;  %v5064_v58 = vmul.f32 %v5059_v51, %v5056_v56 }
 0x28e   : > { %v5063_v54 = vmul.f32 %v5060_v45, %v24454_v40  ;;  %v4144_v55 = vsel %vm4143_vm6, %v4138_v52, %v4140_v48  ;;  %v4247_v25 = vpop.permute.xlu0 %4246  ;;  %4966 = vrot.lane.b32.xlu1 %v4959_v43, %s23859_s23  ;;  %vm765_vm6 = vcmask 7168   ;;  %s27610_s23 = smov 127  }
 0x28f   : > { %22218 = vmatpush1.msk.msra.mxu0 %vm670_vm8, %v4144_v55  ;;  %v5369_v55 = vld [vmem:[#allocation2 + $0x8] sm:$0xf] }
 0x290   : > { %v5069_v59 = vcombine.high %v5063_v54, %v5063_v54  ;;  %22219 = vmatmul.mubr.msk.f32.vlgmr.msra.gmra.mrb[0].mxu0 %vm666_vm2, %v22216_v53 }
 0x291   : > { %v4245_v57 = vpop.permute.xlu1 %4244  ;;  %4322 = vmatprep.mubr.f32.mxu0 %v23785_v1 }
 0x292   : > { %v5161_v60 = vpop.permute.xlu0 %5160  ;;  %5074 = vrot.lane.b32.xlu1 %v5064_v58, %s27612_s26  ;;  %5072 = vrot.lane.b32.xlu0 %v5069_v59, %s27612_s26  ;;  %v4250_v62 = vsel %vm4248_vm1, %v4245_v57, %v4247_v25  ;;  %v22232_v25 = vld [vmem:[%s27647_s24 + $0x94] sm:$0xf] }
 0x293   : > { %v5162_v63 = vrot.slane %v5161_v60, 4  ;;  %22221 = vmatprep.subr.msk.mxu0 %vm670_vm8, %v4250_v62 }
 0x295   : > { %v5164_v0 = vsel %vm5163_vm15, %v5162_v63, %v5161_v60  ;;  %v4243_v6 = vpop.permute.xlu1 %4242  ;;  %v5168_v13 = vmul.f32 %v5162_v63, %v5159_v12  ;;  %vm882_vm15 = vcmask 15360   ;;  %v5465_v12 = vld [vmem:[#allocation2 + $0x8] sm:$0xf] }
 0x296   : > { %v5167_v8 = vmul.f32 %v5164_v0, %v24454_v40  ;;  %v4249_v9 = vsel %vm4248_vm1, %v4243_v6, %v4245_v57  ;;  %v4351_v11 = vpop.permute.xlu0 %4350  ;;  %5070 = vrot.lane.b32.xlu0 %v5063_v54, %s27612_s26  ;;  %vm5268_vm1 = vcmask 801792   ;;  %v983_v57 = vld [vmem:[#allocation2 + $0x8] sm:$0xf] }
 0x297   : > { %22222 = vmatpush1.msk.msra.mxu0 %vm670_vm8, %v4249_v9  ;;  %v22236_v9 = vld [vmem:[%s27647_s24 + $0x98] sm:$0xf] }
 0x298   : > { %v5173_v14 = vcombine.high %v5167_v8, %v5167_v8  ;;  %22223 = vmatmul.mubr.msk.f32.vlgmr.msra.gmra.mrb[0].mxu0 %vm666_vm2, %v22220_v7 }
 0x299   : > { %v4349_v15 = vpop.permute.xlu1 %4348  ;;  %4425 = vmatprep.mubr.f32.mxu0 %v23785_v1 }
 0x29a   : > { %v763_v17 = vpop.permute.xlu0 %762  ;;  %5176 = vrot.lane.b32.xlu1 %v5173_v14, %s23860_s21  ;;  %5178 = vrot.lane.b32.xlu0 %v5168_v13, %s23860_s21  ;;  %v4353_v16 = vsel %vm2885_vm13, %v4349_v15, %v4351_v11  ;;  %v1079_v13 = vld [vmem:[#allocation2 + $0x8] sm:$0xf] }
 0x29b   : > { %v764_v18 = vrot.slane %v763_v17, 4  ;;  %22225 = vmatprep.subr.msk.mxu0 %vm670_vm8, %v4353_v16 }
 0x29d   : > { %v766_v19 = vsel %vm765_vm6, %v764_v18, %v763_v17  ;;  %v4347_v20 = vpop.permute.xlu1 %4346  ;;  %v770_v26 = vmul.f32 %v764_v18, %v749_v30  ;;  %vm4561_vm6 = vcmask 375808  }
 0x29e   : > { %v769_v24 = vmul.f32 %v24454_v40, %v766_v19  ;;  %v4352_v27 = vsel %vm2885_vm13, %v4347_v20, %v4349_v15  ;;  %5174 = vrot.lane.b32.xlu1 %v5167_v8, %s23860_s21  ;;  %vm4456_vm13 = vcmask 384000   ;;  %s23866_s21 = smov 28  }
 0x29f   : > { %22226 = vmatpush1.msk.msra.mxu0 %vm670_vm8, %v4352_v27 }
 0x2a0   : > { %v775_v31 = vcombine.high %v769_v24, %v769_v24  ;;  %22227 = vmatmul.mubr.msk.f32.vlgmr.msra.gmra.mrb[0].mxu0 %vm666_vm2, %v22224_v23 }
 0x2a1   : > { %v5266_v32 = vpop.permute.xlu1 %5265  ;;  %4530 = vmatprep.mubr.f32.mxu0 %v23785_v1 }
 0x2a2   : > { %v5267_v33 = vrot.slane %v5266_v32, 4  ;;  %780 = vrot.lane.b32.xlu1 %v770_v26, %s27610_s23  ;;  %778 = vrot.lane.b32.xlu0 %v775_v31, %s27610_s23  ;;  %v22240_v26 = vld [vmem:[%s27647_s24 + $0x9c] sm:$0xf] }
 0x2a4   : > { %v5269_v61 = vsel %vm5268_vm1, %v5267_v33, %v5266_v32  ;;  %v5273_v10 = vmul.f32 %v5267_v33, %v5264_v22  ;;  %vm5469_vm1 = vcmask 818176  }
 0x2a5   : > { %v5272_v34 = vmul.f32 %v5269_v61, %v24454_v40  ;;  %v5570_v61 = vld [vmem:[#allocation2 + $0x8] sm:$0xf] }
 0x2a6   : > { %776 = vrot.lane.b32.xlu0 %v769_v24, %s27610_s23 }
 0x2a7   : > { %v5278_v41 = vcombine.high %v5272_v34, %v5272_v34 }
 0x2a9   : > { %5281 = vrot.lane.b32.xlu1 %v5278_v41, %s23862_s22 }
 0x2aa   : > { %5283 = vrot.lane.b32.xlu0 %v5273_v10, %s23862_s22 }
 0x2ad   : > { %5279 = vrot.lane.b32.xlu1 %v5272_v34, %s23862_s22  ;;  %s23864_s22 = smov 29  }
 0x2c0   : > { %v4455_v35 = vpop.permute.xlu1 %4454 }
 0x2c3   : > { %v4453_v36 = vpop.permute.xlu0 %4452 }
 0x2c4   : > { %v880_v37 = vpop.permute.xlu1 %879  ;;  %v4458_v29 = vsel %vm4456_vm13, %v4453_v36, %v4455_v35 }
 0x2c5   : > { %v881_v38 = vrot.slane %v880_v37, 4  ;;  %22229 = vmatprep.subr.msk.mxu0 %vm670_vm8, %v4458_v29 }
 0x2c7   : > { %v883_v42 = vsel %vm882_vm15, %v881_v38, %v880_v37  ;;  %v887_v21 = vmul.f32 %v881_v38, %v866_v39  ;;  %v4451_v43 = vpop.permute.xlu0 %4450  ;;  %v1195_v37 = vld [vmem:[#allocation2 + $0x8] sm:$0xf] }
 0x2c8   : > { %v886_v46 = vmul.f32 %v24454_v40, %v883_v42  ;;  %v4457_v47 = vsel %vm4456_vm13, %v4451_v43, %v4453_v36  ;;  %vm4657_vm13 = vcmask 367616  }
 0x2c9   : > { %22230 = vmatpush1.msk.msra.mxu0 %vm670_vm8, %v4457_v47  ;;  %897 = vrot.lane.b32.xlu1 %v887_v21, %s27608_s0  ;;  %v23870_v47 = vmov 0  }
 0x2ca   : > { %v892_v48 = vcombine.high %v886_v46, %v886_v46  ;;  %22231 = vmatmul.mubr.msk.f32.vlgmr.msra.gmra.mrb[0].mxu0 %vm666_vm2, %v22228_v44  ;;  %23644 = vset.pattern.permute.xlu0 %v23870_v47 }
 0x2cb   : > { %4635 = vmatprep.mubr.f32.mxu0 %v23785_v1  ;;  %23645 = vset.pattern.permute.xlu1 %v23870_v47 }
 0x2cc   : > { %v4560_v49 = vpop.permute.xlu1 %4559  ;;  %895 = vrot.lane.b32.xlu0 %v892_v48, %s27608_s0 }
 0x2cd   : > { %5377 = vrot.lane.b32.xlu1 %v24539_v5, %s23864_s22 }
 0x2cf   : > { %v4558_v50 = vpop.permute.xlu0 %4557 }
 0x2d0   : > { %v5467_v51 = vpop.permute.xlu1 %5466  ;;  %893 = vrot.lane.b32.xlu0 %v886_v46, %s27608_s0  ;;  %v4563_v45 = vsel %vm4561_vm6, %v4558_v50, %v4560_v49  ;;  %v22244_v46 = vld [vmem:[%s27647_s24 + $0xa0] sm:$0xf] }
 0x2d1   : > { %v5468_v52 = vrot.slane %v5467_v51, 4  ;;  %5375 = vrot.lane.b32.xlu1 %v24454_v40, %s23864_s22  ;;  %22233 = vmatprep.subr.msk.mxu0 %vm670_vm8, %v4563_v45 }
 0x2d3   : > { %v5470_v53 = vsel %vm5469_vm1, %v5468_v52, %v5467_v51  ;;  %v4556_v54 = vpop.permute.xlu0 %4555  ;;  %vm4762_vm1 = vcmask 359424   ;;  %v642_v51 = vld [vmem:[%s27648_s25] sm:$0xf]  ;;  %s27655_s25 = smov 112  }
 0x2d4   : > { %v5473_v56 = vmul.f32 %v5470_v53, %v24454_v40  ;;  %v4562_v58 = vsel %vm4561_vm6, %v4556_v54, %v4558_v50  ;;  %v4656_v59 = vpop.permute.xlu1 %4655  ;;  %5379 = vrot.lane.b32.xlu0 %v5369_v55, %s23864_s22  ;;  %vm5574_vm6 = vcmask 826368   ;;  %s23867_s22 = smov 124   ;;  %v22248_v55 = vld [vmem:[%s27647_s24 + $0xa4] sm:$0xf] }
 0x2d5   : > { %993 = vrot.lane.b32.xlu1 %v983_v57, %s23865_s18  ;;  %22234 = vmatpush1.msk.msra.mxu0 %vm670_vm8, %v4562_v58 }
 0x2d6   : > { %v5479_v60 = vcombine.high %v5473_v56, %v5473_v56  ;;  %22235 = vmatmul.mubr.msk.f32.vlgmr.msra.gmra.mrb[0].mxu0 %vm666_vm2, %v22232_v25 }
 0x2d7   : > { %v4654_v62 = vpop.permute.xlu0 %4653  ;;  %4731 = vmatprep.mubr.f32.mxu0 %v23785_v1 }
 0x2d8   : > { %v1093_v63 = vpop.permute.xlu1 %1092  ;;  %991 = vrot.lane.b32.xlu0 %v24539_v5, %s23865_s18  ;;  %v4659_v0 = vsel %vm4657_vm13, %v4654_v62, %v4656_v59  ;;  %v5474_v5 = vmul.f32 %v5468_v52, %v5465_v12 }
 0x2d9   : > { %v1094_v6 = vrot.slane %v1093_v63, 4  ;;  %5482 = vrot.lane.b32.xlu1 %v5479_v60, %s23866_s21  ;;  %22237 = vmatprep.subr.msk.mxu0 %vm670_vm8, %v4659_v0  ;;  %v22252_v60 = vld [vmem:[%s27647_s24 + $0xa8] sm:$0xf] }
 0x2db   : > { %v1095_v7 = vsel %vm666_vm2, %v1094_v6, %v1093_v63  ;;  %v4652_v8 = vpop.permute.xlu0 %4651  ;;  %v1099_v15 = vmul.f32 %v1094_v6, %v1079_v13 }
 0x2dc   : > { %v4658_v11 = vsel %vm4657_vm13, %v4652_v8, %v4654_v62  ;;  %989 = vrot.lane.b32.xlu0 %v24454_v40, %s23865_s18  ;;  %v1098_v14 = vmul.f32 %v24454_v40, %v1095_v7  ;;  %vm1211_vm13 = vcmask 39936   ;;  %v22256_v8 = vld [vmem:[%s27647_s24 + $0xac] sm:$0xf]  ;;  %s27649_s18 = smov 16  }
 0x2dd   : > { %5480 = vrot.lane.b32.xlu1 %v5473_v56, %s23866_s21  ;;  %22238 = vmatpush1.msk.msra.mxu0 %vm670_vm8, %v4658_v11 }
 0x2de   : > { %22239 = vmatmul.mubr.msk.f32.vlgmr.msra.gmra.mrb[0].mxu0 %vm666_vm2, %v22236_v9  ;;  %v1104_v16 = vcombine.high %v1098_v14, %v1098_v14 }
 0x2df   : > { %v5572_v28 = vpop.permute.xlu0 %5571  ;;  %4836 = vmatprep.mubr.f32.mxu0 %v23785_v1 }
 0x2e0   : > { %v5573_v17 = vrot.slane %v5572_v28, 4  ;;  %5484 = vrot.lane.b32.xlu0 %v5474_v5, %s23866_s21  ;;  %s23868_s21 = smov 27  }
 0x2e1   : > { %1109 = vrot.lane.b32.xlu1 %v1099_v15, %s23867_s22 }
 0x2e2   : > { %v5575_v18 = vsel %vm5574_vm6, %v5573_v17, %v5572_v28  ;;  %v4759_v19 = vpop.permute.xlu1 %4758  ;;  %v5579_v34 = vmul.f32 %v5573_v17, %v5570_v61  ;;  %vm5679_vm6 = vcmask 834560  }
 0x2e3   : > { %v5578_v20 = vmul.f32 %v5575_v18, %v24454_v40  ;;  %v4761_v23 = vpop.permute.xlu0 %4760 }
 0x2e4   : > { %v4764_v24 = vsel %vm4762_vm1, %v4759_v19, %v4761_v23  ;;  %1107 = vrot.lane.b32.xlu0 %v1104_v16, %s23867_s22 }
 0x2e5   : > { %v5584_v27 = vcombine.high %v5578_v20, %v5578_v20  ;;  %22241 = vmatprep.subr.msk.mxu0 %vm670_vm8, %v4764_v24 }
 0x2e6   : > { %v4757_v30 = vpop.permute.xlu1 %4756 }
 0x2e7   : > { %v4763_v31 = vsel %vm4762_vm1, %v4757_v30, %v4759_v19  ;;  %v1209_v32 = vpop.permute.xlu0 %1208  ;;  %5587 = vrot.lane.b32.xlu1 %v5584_v27, %s23868_s21  ;;  %vm4867_vm1 = vcmask 351232   ;;  %v22260_v19 = vld [vmem:[%s27647_s24 + $0xb0] sm:$0xf] }
 0x2e8   : > { %v1210_v33 = vrot.slane %v1209_v32, 4  ;;  %22242 = vmatpush1.msk.msra.mxu0 %vm670_vm8, %v4763_v31  ;;  %1105 = vrot.lane.b32.xlu0 %v1098_v14, %s23867_s22  ;;  %s23869_s22 = smov 123   ;;  %v22084_v14 = vld [vmem:[%s27647_s24 + $0x4] sm:$0xf]  ;;  %v22089_v31 = vld [vmem:[%s27647_s24 + $0x8] sm:$0xf] }
 0x2e9   : > { %22243 = vmatmul.mubr.msk.f32.vlgmr.msra.gmra.mrb[0].mxu0 %vm666_vm2, %v22240_v26 }
 0x2ea   : > { %v1212_v22 = vsel %vm1211_vm13, %v1210_v33, %v1209_v32  ;;  %v5677_v41 = vpop.permute.xlu1 %5676  ;;  %4941 = vmatprep.mubr.f32.mxu0 %v23785_v1  ;;  %v1216_v29 = vmul.f32 %v1210_v33, %v1195_v37  ;;  %vm4972_vm13 = vcmask 343040  }
 0x2eb   : > { %v1215_v10 = vmul.f32 %v24454_v40, %v1212_v22  ;;  %v5678_v35 = vrot.slane %v5677_v41, 4  ;;  %v4864_v36 = vpop.permute.xlu0 %4863  ;;  %5585 = vrot.lane.b32.xlu1 %v5578_v20, %s23868_s21 }
 0x2ec   : > { %5589 = vrot.lane.b32.xlu0 %v5579_v34, %s23868_s21  ;;  %s23871_s21 = smov 26  }
 0x2ed   : > { %v1221_v38 = vcombine.high %v1215_v10, %v1215_v10  ;;  %v5680_v39 = vsel %vm5679_vm6, %v5678_v35, %v5677_v41  ;;  %vm5180_vm6 = vcmask 252928   ;;  %v22264_v41 = vld [vmem:[%s27647_s24 + $0xb4] sm:$0xf] }
 0x2ee   : > { %v5683_v42 = vmul.f32 %v5680_v39, %v24454_v40  ;;  %v4866_v21 = vpop.permute.xlu1 %4865  ;;  %v5675_v40 = vld [vmem:[#allocation2 + $0x8] sm:$0xf] }
 0x2ef   : > { %v4869_v43 = vsel %vm4867_vm1, %v4864_v36, %v4866_v21  ;;  %v4862_v44 = vpop.permute.xlu0 %4861  ;;  %1226 = vrot.lane.b32.xlu1 %v1216_v29, %s23869_s22  ;;  %v5684_v50 = vmul.f32 %v5678_v35, %v5675_v40 }
 0x2f0   : > { %v5689_v48 = vcombine.high %v5683_v42, %v5683_v42  ;;  %v4868_v49 = vsel %vm4867_vm1, %v4862_v44, %v4864_v36  ;;  %22245 = vmatprep.subr.msk.mxu0 %vm670_vm8, %v4869_v43  ;;  %1224 = vrot.lane.b32.xlu0 %v1221_v38, %s23869_s22  ;;  %vm782_vm1 = vcmask 1039360   ;;  %v22093_v38 = vld [vmem:[%s27647_s24 + $0xc] sm:$0xf]  ;;  %v22268_v44 = vld [vmem:[%s27647_s24 + $0xb8] sm:$0xf] }
 0x2f1   : > { %22246 = vmatpush1.msk.msra.mxu0 %vm670_vm8, %v4868_v49 }
 0x2f2   : > { %22247 = vmatmul.mubr.msk.f32.vlgmr.msra.gmra.mrb[0].mxu0 %vm666_vm2, %v22244_v46 }
 0x2f3   : > { %5692 = vrot.lane.b32.xlu1 %v5689_v48, %s23871_s21  ;;  %5046 = vmatprep.mubr.f32.mxu0 %v23785_v1 }
 0x2f4   : > { %1222 = vrot.lane.b32.xlu0 %v1215_v10, %s23869_s22  ;;  %s27650_s22 = smov 17  }
 0x2f7   : > { %5690 = vrot.lane.b32.xlu1 %v5683_v42, %s23871_s21 }
 0x2f8   : > { %5694 = vrot.lane.b32.xlu0 %v5684_v50, %s23871_s21  ;;  %s27656_s21 = smov 111  }
 0x2f9   : > { %v4971_v45 = vpop.permute.xlu0 %4970 }
 0x2fc   : > { %v4969_v52 = vpop.permute.xlu1 %4968  ;;  %645 = vperm.xlu0 %23644, %v642_v51   ;;  %v22098_v51 = vld [vmem:[%s27647_s24 + $0x10] sm:$0xf] }
 0x2fd   : > { %v4974_v53 = vsel %vm4972_vm13, %v4969_v52, %v4971_v45 }
 0x2fe   : > { %22249 = vmatprep.subr.msk.mxu0 %vm670_vm8, %v4974_v53 }
 0x300   : > { %v4967_v54 = vpop.permute.xlu1 %4966 }
 0x301   : > { %v4973_v25 = vsel %vm4972_vm13, %v4967_v54, %v4969_v52  ;;  %vm5285_vm13 = vcmask 244736  }
 0x302   : > { %22250 = vmatpush1.msk.msra.mxu0 %vm670_vm8, %v4973_v25 }
 0x303   : > { %22251 = vmatmul.mubr.msk.f32.vlgmr.msra.gmra.mrb[0].mxu0 %vm666_vm2, %v22248_v55  ;;  %v22272_v55 = vld [vmem:[%s27647_s24 + $0xbc] sm:$0xf] }
 0x304   : > { %v5073_v56 = vpop.permute.xlu0 %5072  ;;  %v5075_v58 = vpop.permute.xlu1 %5074  ;;  %5149 = vmatprep.mubr.f32.mxu0 %v23785_v1 }
 0x305   : > { %v5077_v59 = vsel %vm2159_vm14, %v5073_v56, %v5075_v58 }
 0x306   : > { %22253 = vmatprep.subr.msk.mxu0 %vm670_vm8, %v5077_v59 }
 0x308   : > { %v5071_v57 = vpop.permute.xlu0 %5070 }
 0x309   : > { %v5076_v62 = vsel %vm2159_vm14, %v5071_v57, %v5073_v56 }
 0x30a   : > { %22254 = vmatpush1.msk.msra.mxu0 %vm670_vm8, %v5076_v62  ;;  %v22103_v62 = vld [vmem:[%s27647_s24 + $0x14] sm:$0xf] }
 0x30b   : > { %22255 = vmatmul.mubr.msk.f32.vlgmr.msra.gmra.mrb[0].mxu0 %vm666_vm2, %v22252_v60 }
 0x30c   : > { %v5179_v63 = vpop.permute.xlu0 %5178  ;;  %v5177_v0 = vpop.permute.xlu1 %5176  ;;  %5254 = vmatprep.mubr.f32.mxu0 %v23785_v1 }
 0x30d   : > { %v5182_v6 = vsel %vm5180_vm6, %v5177_v0, %v5179_v63 }
 0x30e   : > { %22257 = vmatprep.subr.msk.mxu0 %vm670_vm8, %v5182_v6 }
 0x310   : > { %v5175_v7 = vpop.permute.xlu1 %5174 }
 0x311   : > { %v5181_v9 = vsel %vm5180_vm6, %v5175_v7, %v5177_v0  ;;  %vm899_vm6 = vcmask 1031168  }
 0x312   : > { %22258 = vmatpush1.msk.msra.mxu0 %vm670_vm8, %v5181_v9 }
 0x313   : > { %22259 = vmatmul.mubr.msk.f32.vlgmr.msra.gmra.mrb[0].mxu0 %vm666_vm2, %v22256_v8  ;;  %v22276_v8 = vld [vmem:[%s27647_s24 + $0xc0] sm:$0xf]  ;;  %s27672_s24 = smov 2  }
 0x314   : > { %v781_v11 = vpop.permute.xlu1 %780  ;;  %v779_v12 = vpop.permute.xlu0 %778  ;;  %5359 = vmatprep.mubr.f32.mxu0 %v23785_v1 }
 0x315   : > { %v784_v5 = vsel %vm782_vm1, %v779_v12, %v781_v11  ;;  %v5802_v11 = vld [vmem:[%s27546_s8] ss:$4 sm:$0x3] }
 0x316   : > { %22085 = vmatprep.subr.msk.mxu1 %vm670_vm8, %v784_v5  ;;  %v5811_v5 = vrot.slane %v5802_v11, %v24069_v4 }
 0x318   : > { %v777_v13 = vpop.permute.xlu0 %776 }
 0x319   : > { %v783_v15 = vsel %vm782_vm1, %v777_v13, %v779_v12  ;;  %v5807_v12 = vrot.slane %v5802_v11, %v24066_v3 }
 0x31a   : > { %22086 = vmatpush1.msk.msra.mxu1 %vm670_vm8, %v783_v15 }
 0x31b   : > { %v5282_v28 = vpop.permute.xlu1 %5281  ;;  %22087 = vmatmul.mubr.msk.f32.vlgmr.msra.gmra.mrb[0].mxu1 %vm666_vm2, %v22084_v14  ;;  %v5812_v13 = vcombine.low %v5807_v12, %v5811_v5 }
 0x31c   : > { %v5284_v17 = vpop.permute.xlu0 %5283  ;;  %973 = vmatprep.mubr.f32.mxu1 %v23785_v1 }
 0x31d   : > { %v5287_v16 = vsel %vm5285_vm13, %v5282_v28, %v5284_v17  ;;  %6110 = vrot.lane.b32.xlu0 %v5812_v13, %s27649_s18 }
 0x31e   : > { %22261 = vmatprep.subr.msk.mxu0 %vm670_vm8, %v5287_v16 }
 0x31f   : > { %v5280_v18 = vpop.permute.xlu1 %5279 }
 0x320   : > { %v5286_v20 = vsel %vm5285_vm13, %v5280_v18, %v5282_v28  ;;  %vm5381_vm13 = vcmask 236544  }
 0x321   : > { %22262 = vmatpush1.msk.msra.mxu0 %vm670_vm8, %v5286_v20  ;;  %6411 = vrot.lane.b32.xlu0 %v5812_v13, %s27612_s26  ;;  %s27660_s26 = smov 94  }
 0x322   : > { %22263 = vmatmul.mubr.msk.f32.vlgmr.msra.gmra.mrb[0].mxu0 %vm666_vm2, %v22260_v19 }
 0x323   : > { %5455 = vmatprep.mubr.f32.mxu0 %v23785_v1 }
 0x33b   : > { %v898_v23 = vpop.permute.xlu1 %897 }
 0x33e   : > { %v896_v24 = vpop.permute.xlu0 %895 }
 0x33f   : > { %v5378_v27 = vpop.permute.xlu1 %5377  ;;  %v901_v30 = vsel %vm899_vm6, %v896_v24, %v898_v23  ;;  %v22287_v23 = vld [vmem:[%s27546_s8 + $0x2] ss:$4 sm:$0x3] }
 0x340   : > { %22090 = vmatprep.subr.msk.mxu1 %vm670_vm8, %v901_v30 }
 0x342   : > { %v894_v26 = vpop.permute.xlu0 %893 }
 0x343   : > { %v900_v32 = vsel %vm899_vm6, %v894_v26, %v896_v24  ;;  %v5376_v33 = vpop.permute.xlu1 %5375  ;;  %v6001_v26 = vrot.slane %v22287_v23, %v24066_v3 }
 0x344   : > { %22091 = vmatpush1.msk.msra.mxu1 %vm670_vm8, %v900_v32  ;;  %v5382_v10 = vsel %vm5381_vm13, %v5376_v33, %v5378_v27 }
 0x345   : > { %22092 = vmatmul.mubr.msk.f32.vlgmr.msra.gmra.mrb[0].mxu1 %vm666_vm2, %v22089_v31  ;;  %v6005_v31 = vrot.slane %v22287_v23, %v24069_v4 }
 0x346   : > { %v5380_v61 = vpop.permute.xlu0 %5379  ;;  %1069 = vmatprep.mubr.f32.mxu1 %v23785_v1 }
 0x347   : > { %v5383_v34 = vsel %vm5381_vm13, %v5378_v27, %v5380_v61  ;;  %v994_v22 = vpop.permute.xlu1 %993  ;;  %vm5486_vm13 = vcmask 228352   ;;  %v6006_v33 = vcombine.low %v6001_v26, %v6005_v31  ;;  %v22283_v31 = vld [vmem:[%s27542_s4 + $0x4] sm:$0xf] }
 0x348   : > { %22265 = vmatprep.subr.msk.mxu0 %vm670_vm8, %v5383_v34 }
 0x349   : > { %22266 = vmatpush1.msk.msra.mxu0 %vm670_vm8, %v5382_v10 }
 0x34a   : > { %v992_v35 = vpop.permute.xlu0 %991  ;;  %22267 = vmatmul.mubr.msk.f32.vlgmr.msra.gmra.mrb[0].mxu0 %vm666_vm2, %v22264_v41 }
 0x34b   : > { %v5483_v36 = vpop.permute.xlu1 %5482  ;;  %v997_v37 = vsel %vm995_vm4, %v992_v35, %v994_v22  ;;  %5560 = vmatprep.mubr.f32.mxu0 %v23785_v1 }
 0x34c   : > { %22094 = vmatprep.subr.msk.mxu1 %vm670_vm8, %v997_v37 }
 0x34e   : > { %v990_v29 = vpop.permute.xlu0 %989 }
 0x34f   : > { %v996_v39 = vsel %vm995_vm4, %v990_v29, %v992_v35  ;;  %v5481_v42 = vpop.permute.xlu1 %5480  ;;  %vm5591_vm4 = vcmask 220160  }
 0x350   : > { %22095 = vmatpush1.msk.msra.mxu1 %vm670_vm8, %v996_v39  ;;  %v5487_v46 = vsel %vm5486_vm13, %v5481_v42, %v5483_v36 }
 0x351   : > { %22096 = vmatmul.mubr.msk.f32.vlgmr.msra.gmra.mrb[0].mxu1 %vm666_vm2, %v22093_v38 }
 0x352   : > { %v5485_v21 = vpop.permute.xlu0 %5484  ;;  %1185 = vmatprep.mubr.f32.mxu1 %v23785_v1 }
 0x353   : > { %v5488_v43 = vsel %vm5486_vm13, %v5483_v36, %v5485_v21  ;;  %v1110_v47 = vpop.permute.xlu1 %1109  ;;  %vm1228_vm13 = vcmask 1006592  }
 0x354   : > { %22269 = vmatprep.subr.msk.mxu0 %vm670_vm8, %v5488_v43 }
 0x355   : > { %22270 = vmatpush1.msk.msra.mxu0 %vm670_vm8, %v5487_v46 }
 0x356   : > { %v1108_v48 = vpop.permute.xlu0 %1107  ;;  %22271 = vmatmul.mubr.msk.f32.vlgmr.msra.gmra.mrb[0].mxu0 %vm666_vm2, %v22268_v44 }
 0x357   : > { %v1113_v49 = vsel %vm1111_vm11, %v1108_v48, %v1110_v47  ;;  %5665 = vmatprep.mubr.f32.mxu0 %v23785_v1  ;;  %v5815_v47 = vld [vmem:[%s27542_s4] sm:$0xf] }
 0x358   : > { %22099 = vmatprep.subr.msk.mxu1 %vm670_vm8, %v1113_v49 }
 0x359   : > { %v5588_v40 = vpop.permute.xlu1 %5587 }
 0x35a   : > { %v1106_v50 = vpop.permute.xlu0 %1105 }
 0x35b   : > { %v1112_v45 = vsel %vm1111_vm11, %v1106_v50, %v1108_v48  ;;  %vm5696_vm11 = vcmask 211968  }
 0x35c   : > { %22100 = vmatpush1.msk.msra.mxu1 %vm670_vm8, %v1112_v45 }
 0x35d   : > { %v5586_v52 = vpop.permute.xlu1 %5585  ;;  %22101 = vmatmul.mubr.msk.f32.vlgmr.msra.gmra.mrb[0].mxu1 %vm666_vm2, %v22098_v51 }
 0x35e   : > { %v5590_v53 = vpop.permute.xlu0 %5589  ;;  %1302 = vmatprep.mubr.f32.mxu1 %v23785_v1  ;;  %v5592_v25 = vsel %vm5591_vm4, %v5586_v52, %v5588_v40 }
 0x35f   : > { %v5593_v54 = vsel %vm5591_vm4, %v5588_v40, %v5590_v53  ;;  %vm620_vm4 = vcmask 134144  }
 0x360   : > { %22273 = vmatprep.subr.msk.mxu0 %vm670_vm8, %v5593_v54  ;;  %621 = vst.msk [vmem:[#allocation3] sm:$0xf] %vm620_vm4, %v23785_v1 }
 0x361   : > { %v1227_v56 = vpop.permute.xlu1 %1226  ;;  %22274 = vmatpush1.msk.msra.mxu0 %vm670_vm8, %v5592_v25 }
 0x362   : > { %v1225_v58 = vpop.permute.xlu0 %1224  ;;  %22275 = vmatmul.mubr.msk.f32.vlgmr.msra.gmra.mrb[0].mxu0 %vm666_vm2, %v22272_v55 }
 0x363   : > { %v1230_v59 = vsel %vm1228_vm13, %v1225_v58, %v1227_v56  ;;  %5770 = vmatprep.mubr.f32.mxu0 %v23785_v1 }
 0x364   : > { %22104 = vmatprep.subr.msk.mxu1 %vm670_vm8, %v1230_v59 }
 0x365   : > { %v5693_v57 = vpop.permute.xlu1 %5692 }
 0x366   : > { %v1223_v60 = vpop.permute.xlu0 %1222 }
 0x367   : > { %v1229_v63 = vsel %vm1228_vm13, %v1223_v60, %v1225_v58  ;;  %vm622_vm13 = vcmask 273544  }
 0x368   : > { %22105 = vmatpush1.msk.msra.mxu1 %vm670_vm8, %v1229_v63  ;;  %623 = vst.msk [vmem:[#allocation3 + $0x8] sm:$0xf] %vm622_vm13, %v23785_v1 }
 0x369   : > { %v5691_v0 = vpop.permute.xlu1 %5690  ;;  %22106 = vmatmul.mubr.msk.f32.vlgmr.msra.gmra.mrb[0].mxu1 %vm666_vm2, %v22103_v62 }
 0x36a   : > { %v5695_v6 = vpop.permute.xlu0 %5694  ;;  %5889 = vmatprep.mubr.f32.mxu1 %v23785_v1  ;;  %v5697_v9 = vsel %vm5696_vm11, %v5691_v0, %v5693_v57 }
 0x36b   : > { %v5698_v7 = vsel %vm5696_vm11, %v5693_v57, %v5695_v6  ;;  %vm5790_vm11 = vcmask 1043592  }
 0x36c   : > { %22277 = vmatprep.subr.msk.mxu0 %vm670_vm8, %v5698_v7  ;;  %vm24797_vm13 = vmor %vm27620_vm3, %vm5790_vm11  ;;  %vm27662_vm11 = vcmask 916480   ;;  %vm27664_vm3 = vcmask 908288  }
 0x36d   : > { %22278 = vmatpush1.msk.msra.mxu0 %vm670_vm8, %v5697_v9  ;;  %vm27663_vm12 = vmmov %vm27662_vm11 }
 0x36e   : > { %22279 = vmatmul.mubr.msk.f32.vlgmr.msra.gmra.mrb[0].mxu0 %vm666_vm2, %v22276_v8 }
 0x37b   : > { %v646_v15 = vpop.permute.xlu0 %645 }
 0x38f   : > { %v6111_v39 = vpop.permute.xlu0 %6110 }
 0x390   : > { %v6112_v43 = vrot.slane %v6111_v39, 4 }
 0x392   : > { %v6113_v48 = vsel %vm1433_vm7, %v6112_v43, %v6111_v39 }
 0x393   : > { %v6412_v53 = vpop.permute.xlu0 %6411 }
 0x394   : > { %v6413_v25 = vrot.slane %v6412_v53, 4 }
 0x396   : > { %v6414_v58 = vsel %vm2159_vm14, %v6413_v25, %v6412_v53 }
 0x43c   : > { %v1304_v14 = vpop.f32.mrb[0].mxu1 }
 0x43d   : > { %v1306_v28 = vpop.f32.mrb[1].mxu1  ;;  %v23083_v17 = vadd.f32 %v1304_v14, %v646_v15 }
 0x43e   : > { %v23085_v16 = vadd.f32 %v1306_v28, %v646_v15 }
 0x441   : > { %v5772_v18 = vpop.f32.mrb[0].mxu0 }
 0x442   : > { %v24777_v19 = vadd.f32 %v23083_v17, %v5772_v18  ;;  %v5774_v20 = vpop.f32.mrb[1].mxu0  ;;  %v5794_v17 = vld [vmem:[%s27661_s5] sm:$0xf]  ;;  %s27673_s5 = smov 32  }
 0x443   : > { %v24782_v24 = vadd.f32 %v23085_v16, %v5774_v20 }
 0x444   : > { %v5779_v27 = vmax.f32 %v24777_v19, 0.0  ;;  %v7662_v19 = vld [vmem:[#allocation5 + $0xa0] sm:$0xff] }
 0x445   : > { %v5780_v30 = vmax.f32 %v24782_v24, 0.0  ;;  %v7664_v24 = vld [vmem:[#allocation5 + $0xb0] sm:$0xff] }
 0x447   : > { %v5783_v32 = vcombine.low %v5779_v27, %v5780_v30 }
 0x449   : > { %5784 = vrot.lane.b32.xlu1 %v5783_v32, %s27650_s22 }
 0x44d   : > { %6007 = vrot.lane.b32.xlu1 %v6006_v33, %s27614_s20 }
 0x451   : > { %6308 = vrot.lane.b32.xlu1 %v6006_v33, %s27651_s28 }
 0x455   : > { %6609 = vrot.lane.b32.xlu1 %v6006_v33, %s27652_s27 }
 0x4bb   : > { %v5785_v61 = vpop.permute.xlu1 %5784 }
 0x4bc   : > { %v5786_v22 = vrot.slane %v5785_v61, 4 }
 0x4be   : > { %v5787_v41 = vsel %vm1538_vm9, %v5786_v22, %v5785_v61  ;;  %5793 = vst.msk [vmem:[#allocation3 + $0x8] sm:$0xf] %vm620_vm4, %v5786_v22 }
 0x4bf   : > { %5792 = vst.msk [vmem:[#allocation3] sm:$0xff] %vm24797_vm13, %v5787_v41  ;;  %v6008_v10 = vpop.permute.xlu1 %6007 }
 0x4c0   : > { %v6009_v35 = vrot.slane %v6008_v10, 4 }
 0x4c2   : > { %v6010_v36 = vsel %vm882_vm15, %v6009_v35, %v6008_v10 }
 0x4c3   : > { %v6309_v52 = vpop.permute.xlu1 %6308 }
 0x4c4   : > { %v6310_v55 = vrot.slane %v6309_v52, 4 }
 0x4c5   : > { %v5899_v29 = vld [vmem:[#allocation3 + $0x8] sm:$0xf] }
 0x4c6   : > { %v6108_v37 = vld [vmem:[#allocation3] sm:$0xff]  ;;  %5909 = vrot.lane.b32.xlu1 %v5899_v29, %s27610_s23  ;;  %v5994_v49 = vld [vmem:[#allocation3 + $0x8] sm:$0xf]  ;;  %v6311_v56 = vsel %vm1643_vm10, %v6310_v55, %v6309_v52 }
 0x4c7   : > { %v6013_v38 = vmul.f32 %v6108_v37, %v6010_v36  ;;  %v5904_v42 = vcombine.high %v6108_v37, %v6108_v37  ;;  %v5814_v21 = vmul.f32 %v6108_v37, %v5812_v13  ;;  %v6109_v40 = vld [vmem:[#allocation3 + $0x8] sm:$0xf]  ;;  %v6116_v50 = vmul.f32 %v6113_v48, %v6108_v37  ;;  %v6610_v0 = vpop.permute.xlu1 %6609  ;;  %v22288_v36 = vld [vmem:[%s27542_s4 + $0x8] sm:$0xf] }
 0x4c8   : > { %v6014_v51 = vmul.f32 %v6009_v35, %v5994_v49  ;;  %v6117_v45 = vmul.f32 %v6112_v43, %v6109_v40  ;;  %v6307_v59 = vld [vmem:[#allocation3 + $0x8] sm:$0xf]  ;;  %v6314_v57 = vmul.f32 %v6311_v56, %v6108_v37  ;;  %v6417_v60 = vmul.f32 %v6414_v58, %v6108_v37  ;;  %v22292_v43 = vld [vmem:[%s27542_s4 + $0xc] sm:$0xf] }
 0x4c9   : > { %v6019_v44 = vcombine.high %v6013_v38, %v6013_v38  ;;  %5907 = vrot.lane.b32.xlu0 %v5904_v42, %s27610_s23  ;;  %v5817_v46 = vcombine.high %v5814_v21, %v5814_v21  ;;  %v6122_v54 = vcombine.high %v6116_v50, %v6116_v50  ;;  %v6315_v62 = vmul.f32 %v6310_v55, %v6307_v59  ;;  %v6212_v63 = vld [vmem:[#allocation3 + $0x8] sm:$0xf] }
 0x4ca   : > { %v6320_v6 = vcombine.high %v6314_v57, %v6314_v57  ;;  %v6423_v7 = vcombine.high %v6417_v60, %v6417_v60  ;;  %v6611_v8 = vrot.slane %v6610_v0, 4  ;;  %v6410_v9 = vld [vmem:[#allocation3 + $0x8] sm:$0xf] }
 0x4cb   : > { %6022 = vrot.lane.b32.xlu1 %v6019_v44, %s27608_s0  ;;  %22280 = vmatprep.subr.msk.mxu1 %vm670_vm8, %v5817_v46  ;;  %v6418_v12 = vmul.f32 %v6413_v25, %v6410_v9  ;;  %v6513_v13 = vld [vmem:[#allocation3 + $0x8] sm:$0xf] }
 0x4cc   : > { %22281 = vmatpush1.msk.msra.mxu1 %vm670_vm8, %v5814_v21  ;;  %v6612_v11 = vsel %vm2369_vm0, %v6611_v8, %v6610_v0  ;;  %v6608_v15 = vld [vmem:[#allocation3 + $0x8] sm:$0xf] }
 0x4cd   : > { %5905 = vrot.lane.b32.xlu0 %v6108_v37, %s27610_s23  ;;  %22282 = vmatmul.mubr.msk.f32.vlgmr.msra.gmra.mrb[2].mxu1 %vm666_vm2, %v5815_v47  ;;  %v6615_v5 = vmul.f32 %v6612_v11, %v6108_v37  ;;  %s27659_s23 = smov 95   ;;  %v6616_v28 = vmul.f32 %v6611_v8, %v6608_v15  ;;  %v22300_v25 = vld [vmem:[%s27542_s4 + $0x14] sm:$0xf]  ;;  %v22308_v8 = vld [vmem:[%s27542_s4 + $0x1c] sm:$0xf] }
 0x4ce   : > { %5984 = vmatprep.mubr.f32.mxu1 %v23785_v1  ;;  %v22312_v11 = vld [vmem:[%s27542_s4 + $0x20] sm:$0xf] }
 0x4cf   : > { %6020 = vrot.lane.b32.xlu1 %v6013_v38, %s27608_s0  ;;  %v6621_v14 = vcombine.high %v6615_v5, %v6615_v5 }
 0x4d1   : > { %6024 = vrot.lane.b32.xlu0 %v6014_v51, %s27608_s0  ;;  %s27658_s0 = smov 96   ;;  %v22296_v51 = vld [vmem:[%s27542_s4 + $0x10] sm:$0xf] }
 0x4d3   : > { %6127 = vrot.lane.b32.xlu1 %v6117_v45, %s27655_s25 }
 0x4d5   : > { %6125 = vrot.lane.b32.xlu0 %v6122_v54, %s27655_s25 }
 0x4d7   : > { %6220 = vrot.lane.b32.xlu1 %v5904_v42, %s27656_s21 }
 0x4d9   : > { %6123 = vrot.lane.b32.xlu0 %v6116_v50, %s27655_s25 }
 0x4db   : > { %6218 = vrot.lane.b32.xlu1 %v6108_v37, %s27656_s21 }
 0x4dd   : > { %6222 = vrot.lane.b32.xlu0 %v6212_v63, %s27656_s21 }
 0x4df   : > { %6325 = vrot.lane.b32.xlu1 %v6315_v62, %s27657_s29 }
 0x4e1   : > { %6323 = vrot.lane.b32.xlu0 %v6320_v6, %s27657_s29 }
 0x4e3   : > { %6426 = vrot.lane.b32.xlu1 %v6423_v7, %s27658_s0 }
 0x4e5   : > { %6321 = vrot.lane.b32.xlu0 %v6314_v57, %s27657_s29 }
 0x4e7   : > { %6424 = vrot.lane.b32.xlu1 %v6417_v60, %s27658_s0  ;;  %v22304_v60 = vld [vmem:[%s27542_s4 + $0x18] sm:$0xf] }
 0x4e9   : > { %6428 = vrot.lane.b32.xlu0 %v6418_v12, %s27658_s0  ;;  %v22323_v12 = vld [vmem:[%s27546_s8 + $0x2] ss:$4 sm:$0x3] }
 0x4eb   : > { %6523 = vrot.lane.b32.xlu1 %v6513_v13, %s27659_s23  ;;  %v6935_v13 = vrot.slane %v22323_v12, %v24069_v4 }
 0x4ed   : > { %6521 = vrot.lane.b32.xlu0 %v5904_v42, %s27659_s23 }
 0x4ef   : > { %6624 = vrot.lane.b32.xlu1 %v6621_v14, %s27660_s26 }
 0x4f1   : > { %6519 = vrot.lane.b32.xlu0 %v6108_v37, %s27659_s23 }
 0x4f3   : > { %6622 = vrot.lane.b32.xlu1 %v6615_v5, %s27660_s26  ;;  %v6931_v5 = vrot.slane %v22323_v12, %v24066_v3 }
 0x4f5   : > { %6626 = vrot.lane.b32.xlu0 %v6616_v28, %s27660_s26  ;;  %v6936_v14 = vcombine.low %v6931_v5, %v6935_v13 }
 0x4f9   : > { %5797 = vperm.xlu0 %23644, %v5794_v17  }
 0x4fd   : > { %6937 = vrot.lane.b32.xlu0 %v6936_v14, %s27672_s24 }
 0x501   : > { %7238 = vrot.lane.b32.xlu0 %v6936_v14, %s27651_s28  ;;  %s27675_s28 = smov 126  }
 0x505   : > { %7539 = vrot.lane.b32.xlu0 %v6936_v14, %s27652_s27 }
 0x538   : > { %v5910_v16 = vpop.permute.xlu1 %5909 }
 0x53b   : > { %v5908_v18 = vpop.permute.xlu0 %5907 }
 0x53c   : > { %v5912_v20 = vsel %vm782_vm1, %v5908_v18, %v5910_v16 }
 0x53d   : > { %v6023_v23 = vpop.permute.xlu1 %6022  ;;  %22284 = vmatprep.subr.msk.mxu1 %vm670_vm8, %v5912_v20 }
 0x53f   : > { %v5906_v26 = vpop.permute.xlu0 %5905 }
 0x540   : > { %v5911_v32 = vsel %vm782_vm1, %v5906_v26, %v5908_v18  ;;  %v6733_v18 = vld [vmem:[%s27546_s8] ss:$4 sm:$0x3] }
 0x541   : > { %v6021_v33 = vpop.permute.xlu1 %6020  ;;  %22285 = vmatpush1.msk.msra.mxu1 %vm670_vm8, %v5911_v32  ;;  %v6742_v32 = vrot.slane %v6733_v18, %v24069_v4 }
 0x542   : > { %22286 = vmatmul.mubr.msk.f32.vlgmr.msra.gmra.mrb[2].mxu1 %vm666_vm2, %v22283_v31  ;;  %v6026_v10 = vsel %vm899_vm6, %v6021_v33, %v6023_v23  ;;  %v6738_v31 = vrot.slane %v6733_v18, %v24066_v3  ;;  %v7651_v18 = vld [vmem:[#allocation5 + $0x48] sm:$0xff] }
 0x543   : > { %v6025_v61 = vpop.permute.xlu0 %6024  ;;  %6099 = vmatprep.mubr.f32.mxu1 %v23785_v1 }
 0x544   : > { %v6027_v22 = vsel %vm899_vm6, %v6023_v23, %v6025_v61  ;;  %v6743_v61 = vcombine.low %v6738_v31, %v6742_v32  ;;  %v7659_v32 = vld [vmem:[#allocation5 + $0x88] sm:$0xff] }
 0x545   : > { %v6128_v41 = vpop.permute.xlu1 %6127  ;;  %22289 = vmatprep.subr.msk.mxu1 %vm670_vm8, %v6027_v22 }
 0x546   : > { %22290 = vmatpush1.msk.msra.mxu1 %vm670_vm8, %v6026_v10 }
 0x547   : > { %v6126_v35 = vpop.permute.xlu0 %6125 }
 0x548   : > { %v6130_v37 = vsel %vm27662_vm11, %v6126_v35, %v6128_v41  ;;  %vm27665_vm11 = vmmov %vm27664_vm3 }
 0x549   : > { %v6221_v29 = vpop.permute.xlu1 %6220  ;;  %22293 = vmatprep.subr.msk.mxu1 %vm670_vm8, %v6130_v37 }
 0x54a   : > { %22291 = vmatmul.mubr.msk.f32.vlgmr.msra.gmra.mrb[2].mxu1 %vm666_vm2, %v22288_v36 }
 0x54b   : > { %v6124_v38 = vpop.permute.xlu0 %6123  ;;  %6202 = vmatprep.mubr.f32.mxu1 %v23785_v1 }
 0x54c   : > { %v6129_v39 = vsel %vm27663_vm12, %v6124_v38, %v6126_v35  ;;  %vm27666_vm12 = vcmask 900096  }
 0x54d   : > { %v6219_v42 = vpop.permute.xlu1 %6218  ;;  %22294 = vmatpush1.msk.msra.mxu1 %vm670_vm8, %v6129_v39 }
 0x54e   : > { %v6224_v47 = vsel %vm27665_vm11, %v6219_v42, %v6221_v29  ;;  %vm27668_vm11 = vcmask 777216  }
 0x54f   : > { %v6223_v21 = vpop.permute.xlu0 %6222 }
 0x550   : > { %v6225_v44 = vsel %vm27664_vm3, %v6221_v29, %v6223_v21  ;;  %vm27667_vm3 = vmmov %vm27666_vm12 }
 0x551   : > { %v6326_v46 = vpop.permute.xlu1 %6325  ;;  %22297 = vmatprep.subr.msk.mxu1 %vm670_vm8, %v6225_v44 }
 0x552   : > { %22295 = vmatmul.mubr.msk.f32.vlgmr.msra.gmra.mrb[2].mxu1 %vm666_vm2, %v22292_v43 }
 0x553   : > { %22298 = vmatpush1.msk.msra.mxu1 %vm670_vm8, %v6224_v47  ;;  %v6324_v48 = vpop.permute.xlu0 %6323  ;;  %6297 = vmatprep.mubr.f32.mxu1 %v23785_v1  ;;  %v6746_v47 = vld [vmem:[%s27544_s6] sm:$0xf] }
 0x554   : > { %v6328_v49 = vsel %vm27666_vm12, %v6324_v48, %v6326_v46  ;;  %vm27669_vm12 = vmmov %vm27668_vm11 }
 0x555   : > { %22301 = vmatprep.subr.msk.mxu1 %vm670_vm8, %v6328_v49  ;;  %v6427_v40 = vpop.permute.xlu1 %6426 }
 0x557   : > { %v6322_v50 = vpop.permute.xlu0 %6321 }
 0x558   : > { %v6327_v45 = vsel %vm27667_vm3, %v6322_v50, %v6324_v48  ;;  %vm27670_vm3 = vcmask 769024  }
 0x559   : > { %v6425_v53 = vpop.permute.xlu1 %6424 }
 0x55a   : > { %22299 = vmatmul.mubr.msk.f32.vlgmr.msra.gmra.mrb[2].mxu1 %vm666_vm2, %v22296_v51  ;;  %v6430_v56 = vsel %vm2176_vm5, %v6425_v53, %v6427_v40 }
 0x55b   : > { %22302 = vmatpush1.msk.msra.mxu1 %vm670_vm8, %v6327_v45  ;;  %v6429_v52 = vpop.permute.xlu0 %6428  ;;  %6400 = vmatprep.mubr.f32.mxu1 %v23785_v1 }
 0x55c   : > { %v6431_v54 = vsel %vm2176_vm5, %v6427_v40, %v6429_v52 }
 0x55d   : > { %22305 = vmatprep.subr.msk.mxu1 %vm670_vm8, %v6431_v54  ;;  %v6524_v58 = vpop.permute.xlu1 %6523 }
 0x55f   : > { %v6522_v55 = vpop.permute.xlu0 %6521 }
 0x560   : > { %v6526_v57 = vsel %vm27668_vm11, %v6522_v55, %v6524_v58  ;;  %vm27671_vm11 = vmmov %vm27670_vm3 }
 0x561   : > { %v6625_v63 = vpop.permute.xlu1 %6624 }
 0x562   : > { %22303 = vmatmul.mubr.msk.f32.vlgmr.msra.gmra.mrb[2].mxu1 %vm666_vm2, %v22300_v25 }
 0x563   : > { %22306 = vmatpush1.msk.msra.mxu1 %vm670_vm8, %v6430_v56  ;;  %v6520_v59 = vpop.permute.xlu0 %6519  ;;  %6503 = vmatprep.mubr.f32.mxu1 %v23785_v1 }
 0x564   : > { %22309 = vmatprep.subr.msk.mxu1 %vm670_vm8, %v6526_v57  ;;  %v6525_v0 = vsel %vm27669_vm12, %v6520_v59, %v6522_v55 }
 0x565   : > { %v6623_v7 = vpop.permute.xlu1 %6622 }
 0x566   : > { %v6628_v9 = vsel %vm27671_vm11, %v6623_v7, %v6625_v63 }
 0x567   : > { %v6627_v62 = vpop.permute.xlu0 %6626 }
 0x568   : > { %v6629_v6 = vsel %vm27670_vm3, %v6625_v63, %v6627_v62  ;;  %vm27682_vm3 = vcmask 777216  }
 0x569   : > { %vm27683_vm11 = vmmov %vm27682_vm3 }
 0x56a   : > { %22307 = vmatmul.mubr.msk.f32.vlgmr.msra.gmra.mrb[2].mxu1 %vm666_vm2, %v22304_v60 }
 0x56b   : > { %22310 = vmatpush1.msk.msra.mxu1 %vm670_vm8, %v6525_v0  ;;  %6598 = vmatprep.mubr.f32.mxu1 %v23785_v1 }
 0x56c   : > { %22313 = vmatprep.subr.msk.mxu1 %vm670_vm8, %v6629_v6 }
 0x572   : > { %22311 = vmatmul.mubr.msk.f32.vlgmr.msra.gmra.mrb[2].mxu1 %vm666_vm2, %v22308_v8 }
 0x573   : > { %22314 = vmatpush1.msk.msra.mxu1 %vm670_vm8, %v6628_v9  ;;  %6701 = vmatprep.mubr.f32.mxu1 %v23785_v1 }
 0x578   : > { %v5798_v15 = vpop.permute.xlu0 %5797 }
 0x57a   : > { %22315 = vmatmul.mubr.msk.f32.vlgmr.msra.gmra.mrb[2].mxu1 %vm666_vm2, %v22312_v11 }
 0x57b   : > { %6820 = vmatprep.mubr.f32.mxu1 %v23785_v1 }
 0x57c   : > { %v6938_v35 = vpop.permute.xlu0 %6937 }
 0x57d   : > { %v6939_v36 = vrot.slane %v6938_v35, 4 }
 0x57f   : > { %v6940_v37 = vsel %vm882_vm15, %v6939_v36, %v6938_v35  ;;  %v7675_v35 = vld [vmem:[#allocation5 + $0x108] sm:$0xff] }
 0x580   : > { %v7239_v52 = vpop.permute.xlu0 %7238 }
 0x581   : > { %v7240_v55 = vrot.slane %v7239_v52, 4 }
 0x583   : > { %v7241_v56 = vsel %vm1643_vm10, %v7240_v55, %v7239_v52  ;;  %v7731_v52 = vld [vmem:[#allocation5 + $0x2c8] sm:$0xff]  ;;  %vm27678_vm10 = vcmask 908288  }
 0x584   : > { %v7540_v6 = vpop.permute.xlu0 %7539 }
 0x585   : > { %v7541_v8 = vrot.slane %v7540_v6, 4 }
 0x587   : > { %v7542_v11 = vsel %vm2369_vm0, %v7541_v8, %v7540_v6 }
 0x64d   : > { %v6703_v28 = vpop.f32.mrb[2].mxu1 }
 0x64e   : > { %v23087_v17 = vadd.f32 %v6703_v28, %v5798_v15  ;;  %v6705_v16 = vpop.f32.mrb[3].mxu1 }
 0x64f   : > { %v23088_v20 = vadd.f32 %v6705_v16, %v5798_v15  ;;  %v7643_v16 = vld [vmem:[#allocation5 + $0x8] sm:$0xff] }
 0x650   : > { %v6710_v23 = vmax.f32 %v23087_v17, 0.0  ;;  %v6723_v17 = vld [vmem:[%s27545_s7] sm:$0xf] }
 0x651   : > { %v6711_v26 = vmax.f32 %v23088_v20, 0.0  ;;  %v22827_v20 = vpack.c.bf16 %v7651_v18, %v7643_v16  ;;  %v7786_v18 = vld [vmem:[#allocation5 + $0x480] sm:$0xff] }
 0x653   : > { %v6714_v33 = vcombine.low %v6710_v23, %v6711_v26  ;;  %v7642_v23 = vld [vmem:[#allocation5] sm:$0xff]  ;;  %22828 = vmatprep.subr.bf16.mxu0 %v22827_v20 }
 0x654   : > { %v7650_v26 = vld [vmem:[#allocation5 + $0x40] sm:$0xff] }
 0x655   : > { %6715 = vrot.lane.b32.xlu1 %v6714_v33, %s27650_s22  ;;  %v22829_v31 = vpack.c.bf16 %v7650_v26, %v7642_v23  ;;  %v7667_v33 = vld [vmem:[#allocation5 + $0xc8] sm:$0xff]  ;;  %v7794_v20 = vld [vmem:[#allocation5 + $0x4c0] sm:$0xff]  ;;  %s27687_s22 = smov 64  }
 0x656   : > { %v22865_v23 = vpack.c.bf16 %v7794_v20, %v7786_v18  ;;  %v7803_v26 = vld [vmem:[#allocation5 + $0x508] sm:$0xff] }
 0x657   : > { %22830 = vmatpush1.bf16.msra.mxu0 %v22829_v31  ;;  %v7811_v31 = vld [vmem:[#allocation5 + $0x548] sm:$0xff] }
 0x659   : > { %7040 = vrot.lane.b32.xlu1 %v6743_v61, %s27649_s18  ;;  %s27686_s18 = smov 33  }
 0x65d   : > { %7341 = vrot.lane.b32.xlu1 %v6743_v61, %s27673_s5 }
 0x6c7   : > { %v6716_v22 = vpop.permute.xlu1 %6715 }
 0x6c8   : > { %v6717_v41 = vrot.slane %v6716_v22, 4 }
 0x6ca   : > { %v6718_v10 = vsel %vm1538_vm9, %v6717_v41, %v6716_v22  ;;  %6722 = vst.msk [vmem:[#allocation3 + $0x8] sm:$0xf] %vm620_vm4, %v6717_v41  ;;  %v7658_v22 = vld [vmem:[#allocation5 + $0x80] sm:$0xff]  ;;  %vm27679_vm4 = vmmov %vm27678_vm10 }
 0x6cb   : > { %6721 = vst.msk [vmem:[#allocation3] sm:$0xff] %vm24797_vm13, %v6718_v10  ;;  %v7041_v39 = vpop.permute.xlu1 %7040  ;;  %v7666_v41 = vld [vmem:[#allocation5 + $0xc0] sm:$0xff]  ;;  %vm27680_vm13 = vcmask 900096  }
 0x6cc   : > { %v7042_v44 = vrot.slane %v7041_v39, 4  ;;  %v22833_v10 = vpack.c.bf16 %v7666_v41, %v7658_v22  ;;  %v7819_v41 = vld [vmem:[#allocation5 + $0x588] sm:$0xff]  ;;  %vm27681_vm12 = vmmov %vm27680_vm13 }
 0x6ce   : > { %v7043_v48 = vsel %vm1433_vm7, %v7042_v44, %v7041_v39  ;;  %vm27676_vm7 = vcmask 916480  }
 0x6cf   : > { %v7342_v54 = vpop.permute.xlu1 %7341  ;;  %vm27677_vm9 = vmmov %vm27676_vm7 }
 0x6d0   : > { %v7343_v25 = vrot.slane %v7342_v54, 4 }
 0x6d1   : > { %v6830_v38 = vld [vmem:[#allocation3 + $0x8] sm:$0xf] }
 0x6d2   : > { %v24937_v29 = vld [vmem:[#allocation3] sm:$0xff]  ;;  %6840 = vrot.lane.b32.xlu0 %v6830_v38, %s27674_s3  ;;  %v6925_v49 = vld [vmem:[#allocation3 + $0x8] sm:$0xf]  ;;  %v7344_v59 = vsel %vm2159_vm14, %v7343_v25, %v7342_v54  ;;  %v7682_v38 = vld [vmem:[#allocation5 + $0x140] sm:$0xff] }
 0x6d3   : > { %v6835_v42 = vcombine.high %v24937_v29, %v24937_v29  ;;  %v6943_v21 = vmul.f32 %v24937_v29, %v6940_v37  ;;  %v6745_v43 = vmul.f32 %v24937_v29, %v6743_v61  ;;  %v7039_v40 = vld [vmem:[#allocation3 + $0x8] sm:$0xf]  ;;  %v7046_v50 = vmul.f32 %v24937_v29, %v7043_v48  ;;  %v7715_v48 = vld [vmem:[#allocation5 + $0x248] sm:$0xff]  ;;  %v7722_v54 = vld [vmem:[#allocation5 + $0x280] sm:$0xff] }
 0x6d4   : > { %v6944_v51 = vmul.f32 %v6939_v36, %v6925_v49  ;;  %v7047_v45 = vmul.f32 %v7042_v44, %v7039_v40  ;;  %v7237_v58 = vld [vmem:[#allocation3 + $0x8] sm:$0xf]  ;;  %v7244_v57 = vmul.f32 %v7241_v56, %v24937_v29  ;;  %v7347_v63 = vmul.f32 %v7344_v59, %v24937_v29  ;;  %v7683_v36 = vld [vmem:[#allocation5 + $0x148] sm:$0xff]  ;;  %v7690_v44 = vld [vmem:[#allocation5 + $0x180] sm:$0xff] }
 0x6d5   : > { %6838 = vrot.lane.b32.xlu1 %v6835_v42, %s27674_s3  ;;  %v6949_v34 = vcombine.high %v6943_v21, %v6943_v21  ;;  %v6748_v46 = vcombine.high %v6745_v43, %v6745_v43  ;;  %v7052_v53 = vcombine.high %v7046_v50, %v7046_v50  ;;  %v7142_v60 = vld [vmem:[#allocation3 + $0x8] sm:$0xf]  ;;  %v7245_v62 = vmul.f32 %v7240_v55, %v7237_v58  ;;  %v7706_v40 = vld [vmem:[#allocation5 + $0x200] sm:$0xff]  ;;  %v7739_v56 = vld [vmem:[#allocation5 + $0x308] sm:$0xff] }
 0x6d6   : > { %v7250_v0 = vcombine.high %v7244_v57, %v7244_v57  ;;  %v7353_v7 = vcombine.high %v7347_v63, %v7347_v63  ;;  %v7340_v9 = vld [vmem:[#allocation3 + $0x8] sm:$0xf]  ;;  %v7545_v5 = vmul.f32 %v7542_v11, %v24937_v29  ;;  %v22831_v61 = vpack.c.bf16 %v7667_v33, %v7659_v32  ;;  %v7730_v55 = vld [vmem:[#allocation5 + $0x2c0] sm:$0xff]  ;;  %v7747_v58 = vld [vmem:[#allocation5 + $0x348] sm:$0xff] }
 0x6d7   : > { %6952 = vrot.lane.b32.xlu0 %v6949_v34, %s27675_s28  ;;  %22316 = vmatprep.subr.msk.mxu1 %vm670_vm8, %v6748_v46  ;;  %v7348_v12 = vmul.f32 %v7343_v25, %v7340_v9  ;;  %v7443_v13 = vld [vmem:[#allocation3 + $0x8] sm:$0xf]  ;;  %v22835_v37 = vpack.c.bf16 %v7683_v36, %v7675_v35  ;;  %v7698_v34 = vld [vmem:[#allocation5 + $0x1c0] sm:$0xff]  ;;  %v22849_v25 = vpack.c.bf16 %v7730_v55, %v7722_v54  ;;  %v7771_v11 = vld [vmem:[#allocation5 + $0x408] sm:$0xff] }
 0x6d8   : > { %22317 = vmatpush1.msk.msra.mxu1 %vm670_vm8, %v6745_v43  ;;  %v7551_v14 = vcombine.high %v7545_v5, %v7545_v5  ;;  %v7538_v15 = vld [vmem:[#allocation3 + $0x8] sm:$0xf]  ;;  %22832 = vmatprep.subr.bf16.mxu0 %v22831_v61  ;;  %v22841_v46 = vpack.c.bf16 %v7698_v34, %v7690_v44  ;;  %v22851_v59 = vpack.c.bf16 %v7747_v58, %v7739_v56  ;;  %v7802_v33 = vld [vmem:[#allocation5 + $0x500] sm:$0xff]  ;;  %v7851_v34 = vld [vmem:[#allocation5 + $0x688] sm:$0xff] }
 0x6d9   : > { %6836 = vrot.lane.b32.xlu1 %v24937_v29, %s27674_s3  ;;  %22318 = vmatmul.mubr.msk.f32.vlgmr.msra.gmra.mrb[4].mxu1 %vm666_vm2, %v6746_v47  ;;  %v7546_v28 = vmul.f32 %v7541_v8, %v7538_v15  ;;  %v7707_v47 = vld [vmem:[#allocation5 + $0x208] sm:$0xff]  ;;  %v7762_v8 = vld [vmem:[#allocation5 + $0x3c0] sm:$0xff]  ;;  %v22867_v32 = vpack.c.bf16 %v7811_v31, %v7803_v26 }
 0x6da   : > { %6915 = vmatprep.mubr.f32.mxu1 %v23785_v1  ;;  %22834 = vmatpush1.bf16.msra.mxu0 %v22833_v10  ;;  %v22843_v49 = vpack.c.bf16 %v7715_v48, %v7707_v47  ;;  %v7810_v61 = vld [vmem:[#allocation5 + $0x540] sm:$0xff]  ;;  %v7827_v10 = vld [vmem:[#allocation5 + $0x5c8] sm:$0xff] }
 0x6db   : > { %6950 = vrot.lane.b32.xlu0 %v6943_v21, %s27675_s28  ;;  %22836 = vmatprep.subr.bf16.mxu0 %v22835_v37  ;;  %v7699_v21 = vld [vmem:[#allocation5 + $0x1c8] sm:$0xff]  ;;  %v22869_v22 = vpack.c.bf16 %v7810_v61, %v7802_v33  ;;  %v22871_v35 = vpack.c.bf16 %v7827_v10, %v7819_v41  ;;  %v7818_v36 = vld [vmem:[#allocation5 + $0x580] sm:$0xff] }
 0x6dc   : > { %v7826_v37 = vld [vmem:[#allocation5 + $0x5c0] sm:$0xff] }
 0x6dd   : > { %6954 = vrot.lane.b32.xlu1 %v6944_v51, %s27675_s28  ;;  %v7850_v48 = vld [vmem:[#allocation5 + $0x680] sm:$0xff] }
 0x6df   : > { %7057 = vrot.lane.b32.xlu0 %v7047_v45, %s27655_s25  ;;  %v7723_v45 = vld [vmem:[#allocation5 + $0x288] sm:$0xff] }
 0x6e1   : > { %7055 = vrot.lane.b32.xlu1 %v7052_v53, %s27655_s25  ;;  %v22847_v53 = vpack.c.bf16 %v7731_v52, %v7723_v45  ;;  %v7866_v52 = vld [vmem:[#allocation5 + $0x700] sm:$0xff] }
 0x6e3   : > { %7150 = vrot.lane.b32.xlu0 %v6835_v42, %s27656_s21 }
 0x6e5   : > { %7053 = vrot.lane.b32.xlu1 %v7046_v50, %s27655_s25  ;;  %v7714_v50 = vld [vmem:[#allocation5 + $0x240] sm:$0xff]  ;;  %s27688_s25 = smov 66  }
 0x6e6   : > { %v22845_v51 = vpack.c.bf16 %v7714_v50, %v7706_v40  ;;  %v7867_v50 = vld [vmem:[#allocation5 + $0x708] sm:$0xff] }
 0x6e7   : > { %7148 = vrot.lane.b32.xlu0 %v24937_v29, %s27656_s21 }
 0x6e9   : > { %7152 = vrot.lane.b32.xlu1 %v7142_v60, %s27656_s21  ;;  %v7746_v60 = vld [vmem:[#allocation5 + $0x340] sm:$0xff]  ;;  %s27704_s21 = smov 62  }
 0x6eb   : > { %7255 = vrot.lane.b32.xlu0 %v7245_v62, %s27657_s29 }
 0x6ed   : > { %7253 = vrot.lane.b32.xlu1 %v7250_v0, %s27657_s29  ;;  %v7763_v0 = vld [vmem:[#allocation5 + $0x3c8] sm:$0xff] }
 0x6ef   : > { %7356 = vrot.lane.b32.xlu0 %v7353_v7, %s27658_s0  ;;  %v7754_v7 = vld [vmem:[#allocation5 + $0x380] sm:$0xff] }
 0x6f0   : > { %v22857_v9 = vpack.c.bf16 %v7762_v8, %v7754_v7 }
 0x6f1   : > { %7251 = vrot.lane.b32.xlu1 %v7244_v57, %s27657_s29  ;;  %v7738_v57 = vld [vmem:[#allocation5 + $0x300] sm:$0xff] }
 0x6f2   : > { %v22853_v62 = vpack.c.bf16 %v7746_v60, %v7738_v57  ;;  %v22319_v57 = vld [vmem:[%s27544_s6 + $0x4] sm:$0xf] }
 0x6f3   : > { %7354 = vrot.lane.b32.xlu0 %v7347_v63, %s27658_s0  ;;  %v7755_v63 = vld [vmem:[#allocation5 + $0x388] sm:$0xff] }
 0x6f4   : > { %v22855_v6 = vpack.c.bf16 %v7763_v0, %v7755_v63 }
 0x6f5   : > { %7358 = vrot.lane.b32.xlu1 %v7348_v12, %s27658_s0  ;;  %v7779_v12 = vld [vmem:[#allocation5 + $0x448] sm:$0xff] }
 0x6f7   : > { %7453 = vrot.lane.b32.xlu0 %v7443_v13, %s27659_s23  ;;  %v7770_v13 = vld [vmem:[#allocation5 + $0x400] sm:$0xff] }
 0x6f9   : > { %7451 = vrot.lane.b32.xlu1 %v6835_v42, %s27659_s23  ;;  %v7691_v42 = vld [vmem:[#allocation5 + $0x188] sm:$0xff] }
 0x6fa   : > { %v22839_v43 = vpack.c.bf16 %v7699_v21, %v7691_v42  ;;  %v7834_v21 = vld [vmem:[#allocation5 + $0x600] sm:$0xff] }
 0x6fb   : > { %7554 = vrot.lane.b32.xlu0 %v7551_v14, %s27660_s26  ;;  %v7778_v14 = vld [vmem:[#allocation5 + $0x440] sm:$0xff] }
 0x6fc   : > { %v22861_v15 = vpack.c.bf16 %v7778_v14, %v7770_v13 }
 0x6fd   : > { %7449 = vrot.lane.b32.xlu1 %v24937_v29, %s27659_s23  ;;  %v7674_v29 = vld [vmem:[#allocation5 + $0x100] sm:$0xff] }
 0x6fe   : > { %v22837_v39 = vpack.c.bf16 %v7682_v38, %v7674_v29  ;;  %v22873_v29 = vpack.c.bf16 %v7826_v37, %v7818_v36  ;;  %v7835_v38 = vld [vmem:[#allocation5 + $0x608] sm:$0xff] }
 0x6ff   : > { %7552 = vrot.lane.b32.xlu0 %v7545_v5, %s27660_s26  ;;  %v22859_v5 = vpack.c.bf16 %v7779_v12, %v7771_v11 }
 0x700   : > { %22838 = vmatpush1.bf16.msra.mxu0 %v22837_v39  ;;  %v7843_v39 = vld [vmem:[#allocation5 + $0x648] sm:$0xff] }
 0x701   : > { %7556 = vrot.lane.b32.xlu1 %v7546_v28, %s27660_s26  ;;  %22840 = vmatprep.subr.bf16.mxu0 %v22839_v43  ;;  %v7787_v28 = vld [vmem:[#allocation5 + $0x488] sm:$0xff]  ;;  %v22875_v42 = vpack.c.bf16 %v7843_v39, %v7835_v38  ;;  %v7842_v43 = vld [vmem:[#allocation5 + $0x640] sm:$0xff]  ;;  %v22340_v39 = vld [vmem:[%s27544_s6 + $0x18] sm:$0xf] }
 0x702   : > { %v22877_v44 = vpack.c.bf16 %v7842_v43, %v7834_v21 }
 0x704   : > { %22842 = vmatpush1.bf16.msra.mxu0 %v22841_v46  ;;  %v7859_v46 = vld [vmem:[#allocation5 + $0x6c8] sm:$0xff] }
 0x705   : > { %6726 = vperm.xlu1 %23645, %v6723_v17   ;;  %22844 = vmatprep.subr.bf16.mxu0 %v22843_v49  ;;  %v7795_v17 = vld [vmem:[#allocation5 + $0x4c8] sm:$0xff]  ;;  %v22879_v47 = vpack.c.bf16 %v7859_v46, %v7851_v34  ;;  %v7858_v49 = vld [vmem:[#allocation5 + $0x6c0] sm:$0xff]  ;;  %v7645_v34 = vld [vmem:[#allocation5 + $0x18] sm:$0xff] }
 0x706   : > { %v22863_v16 = vpack.c.bf16 %v7795_v17, %v7787_v28  ;;  %v22881_v40 = vpack.c.bf16 %v7858_v49, %v7850_v48  ;;  %v22328_v28 = vld [vmem:[%s27544_s6 + $0xc] sm:$0xf]  ;;  %v7653_v46 = vld [vmem:[#allocation5 + $0x58] sm:$0xff]  ;;  %v22344_v48 = vld [vmem:[%s27544_s6 + $0x1c] sm:$0xf] }
 0x707   : > { %v22891_v49 = vpack.c.bf16 %v7653_v46, %v7645_v34  ;;  %v7780_v34 = vld [vmem:[#allocation5 + $0x450] sm:$0xff]  ;;  %v7789_v46 = vld [vmem:[#allocation5 + $0x498] sm:$0xff] }
 0x708   : > { %22846 = vmatpush1.bf16.msra.mxu0 %v22845_v51  ;;  %v7875_v51 = vld [vmem:[#allocation5 + $0x748] sm:$0xff] }
 0x709   : > { %22848 = vmatprep.subr.bf16.mxu0 %v22847_v53  ;;  %v22883_v45 = vpack.c.bf16 %v7875_v51, %v7867_v50  ;;  %v7874_v53 = vld [vmem:[#allocation5 + $0x740] sm:$0xff]  ;;  %v7644_v50 = vld [vmem:[#allocation5 + $0x10] sm:$0xff] }
 0x70a   : > { %v22885_v54 = vpack.c.bf16 %v7874_v53, %v7866_v52  ;;  %v7652_v51 = vld [vmem:[#allocation5 + $0x50] sm:$0xff]  ;;  %v7669_v52 = vld [vmem:[#allocation5 + $0xd8] sm:$0xff]  ;;  %v22348_v53 = vld [vmem:[%s27544_s6 + $0x20] sm:$0xf] }
 0x70c   : > { %22850 = vmatpush1.bf16.msra.mxu0 %v22849_v25 }
 0x70d   : > { %22852 = vmatprep.subr.bf16.mxu0 %v22851_v59 }
 0x710   : > { %22854 = vmatpush1.bf16.msra.mxu0 %v22853_v62 }
 0x711   : > { %22856 = vmatprep.subr.bf16.mxu0 %v22855_v6 }
 0x714   : > { %22858 = vmatpush1.bf16.msra.mxu0 %v22857_v9  ;;  %v22324_v9 = vld [vmem:[%s27544_s6 + $0x8] sm:$0xf] }
 0x715   : > { %22860 = vmatprep.subr.bf16.mxu0 %v22859_v5 }
 0x718   : > { %22862 = vmatpush1.bf16.msra.mxu0 %v22861_v15 }
 0x719   : > { %22864 = vmatprep.subr.bf16.mxu0 %v22863_v16 }
 0x71c   : > { %22866 = vmatpush1.bf16.msra.mxu0 %v22865_v23 }
 0x71d   : > { %22868 = vmatprep.subr.bf16.mxu0 %v22867_v32  ;;  %v22332_v32 = vld [vmem:[%s27544_s6 + $0x10] sm:$0xf] }
 0x720   : > { %22870 = vmatpush1.bf16.msra.mxu0 %v22869_v22 }
 0x721   : > { %22872 = vmatprep.subr.bf16.mxu0 %v22871_v35  ;;  %v22336_v35 = vld [vmem:[%s27544_s6 + $0x14] sm:$0xf] }
 0x724   : > { %22874 = vmatpush1.bf16.msra.mxu0 %v22873_v29 }
 0x725   : > { %22876 = vmatprep.subr.bf16.mxu0 %v22875_v42 }
 0x728   : > { %22878 = vmatpush1.bf16.msra.mxu0 %v22877_v44 }
 0x729   : > { %22880 = vmatprep.subr.bf16.mxu0 %v22879_v47 }
 0x72c   : > { %22882 = vmatpush1.bf16.msra.mxu0 %v22881_v40 }
 0x72d   : > { %22884 = vmatprep.subr.bf16.mxu0 %v22883_v45  ;;  %v7661_v45 = vld [vmem:[#allocation5 + $0x98] sm:$0xff] }
 0x730   : > { %22886 = vmatpush1.bf16.msra.mxu0 %v22885_v54  ;;  %v22893_v54 = vpack.c.bf16 %v7652_v51, %v7644_v50  ;;  %v7796_v50 = vld [vmem:[#allocation5 + $0x4d0] sm:$0xff]  ;;  %v7805_v51 = vld [vmem:[#allocation5 + $0x518] sm:$0xff] }
 0x744   : > { %v6841_v55 = vpop.permute.xlu0 %6840 }
 0x747   : > { %v6839_v25 = vpop.permute.xlu1 %6838 }
 0x748   : > { %v6843_v56 = vsel %vm782_vm1, %v6839_v25, %v6841_v55  ;;  %v22895_v55 = vpack.c.bf16 %v7669_v52, %v7661_v45  ;;  %v7813_v45 = vld [vmem:[#allocation5 + $0x558] sm:$0xff] }
 0x749   : > { %v6953_v58 = vpop.permute.xlu0 %6952  ;;  %22320 = vmatprep.subr.msk.mxu1 %vm670_vm8, %v6843_v56  ;;  %v7668_v56 = vld [vmem:[#allocation5 + $0xd0] sm:$0xff] }
 0x74b   : > { %v6837_v59 = vpop.permute.xlu1 %6836 }
 0x74c   : > { %v6842_v60 = vsel %vm782_vm1, %v6837_v59, %v6839_v25  ;;  %v7660_v25 = vld [vmem:[#allocation5 + $0x90] sm:$0xff]  ;;  %v7685_v59 = vld [vmem:[#allocation5 + $0x158] sm:$0xff] }
 0x74d   : > { %v6951_v62 = vpop.permute.xlu0 %6950  ;;  %22321 = vmatpush1.msk.msra.mxu1 %vm670_vm8, %v6842_v60 }
 0x74e   : > { %22322 = vmatmul.mubr.msk.f32.vlgmr.msra.gmra.mrb[4].mxu1 %vm666_vm2, %v22319_v57  ;;  %v6956_v6 = vsel %vm899_vm6, %v6951_v62, %v6953_v58  ;;  %v22897_v57 = vpack.c.bf16 %v7668_v56, %v7660_v25  ;;  %v7676_v62 = vld [vmem:[#allocation5 + $0x110] sm:$0xff]  ;;  %v7821_v25 = vld [vmem:[#allocation5 + $0x598] sm:$0xff] }
 0x74f   : > { %v6955_v63 = vpop.permute.xlu1 %6954  ;;  %7029 = vmatprep.mubr.f32.mxu1 %v23785_v1  ;;  %v7829_v56 = vld [vmem:[#allocation5 + $0x5d8] sm:$0xff] }
 0x750   : > { %v6957_v0 = vsel %vm899_vm6, %v6953_v58, %v6955_v63  ;;  %v7677_v58 = vld [vmem:[#allocation5 + $0x118] sm:$0xff]  ;;  %v7684_v63 = vld [vmem:[#allocation5 + $0x150] sm:$0xff] }
 0x751   : > { %v7058_v7 = vpop.permute.xlu0 %7057  ;;  %22325 = vmatprep.subr.msk.mxu1 %vm670_vm8, %v6957_v0  ;;  %v22899_v60 = vpack.c.bf16 %v7685_v59, %v7677_v58  ;;  %v7693_v0 = vld [vmem:[#allocation5 + $0x198] sm:$0xff]  ;;  %v22935_v59 = vpack.c.bf16 %v7829_v56, %v7821_v25 }
 0x752   : > { %22326 = vmatpush1.msk.msra.mxu1 %vm670_vm8, %v6956_v6  ;;  %v7701_v6 = vld [vmem:[#allocation5 + $0x1d8] sm:$0xff] }
 0x753   : > { %v7056_v8 = vpop.permute.xlu1 %7055  ;;  %v8236_v25 = vld [vmem:[%s27555_s17] ss:$4 sm:$0xff] }
 0x754   : > { %v7060_v11 = vsel %vm27676_vm7, %v7056_v8, %v7058_v7  ;;  %vm27684_vm7 = vcmask 769024   ;;  %v22901_v7 = vpack.c.bf16 %v7684_v63, %v7676_v62  ;;  %v7837_v62 = vld [vmem:[#allocation5 + $0x618] sm:$0xff] }
 0x755   : > { %v7151_v12 = vpop.permute.xlu0 %7150  ;;  %22329 = vmatprep.subr.msk.mxu1 %vm670_vm8, %v7060_v11  ;;  %v7700_v11 = vld [vmem:[#allocation5 + $0x1d0] sm:$0xff]  ;;  %v7845_v63 = vld [vmem:[#allocation5 + $0x658] sm:$0xff] }
 0x756   : > { %22327 = vmatmul.mubr.msk.f32.vlgmr.msra.gmra.mrb[4].mxu1 %vm666_vm2, %v22324_v9  ;;  %v7692_v9 = vld [vmem:[#allocation5 + $0x190] sm:$0xff] }
 0x757   : > { %v7054_v5 = vpop.permute.xlu1 %7053  ;;  %7132 = vmatprep.mubr.f32.mxu1 %v23785_v1 }
 0x758   : > { %v7059_v13 = vsel %vm27677_vm9, %v7054_v5, %v7056_v8  ;;  %vm27685_vm9 = vmmov %vm27684_vm7  ;;  %v22903_v8 = vpack.c.bf16 %v7701_v6, %v7693_v0  ;;  %v7717_v5 = vld [vmem:[#allocation5 + $0x258] sm:$0xff]  ;;  %v22939_v6 = vpack.c.bf16 %v7845_v63, %v7837_v62  ;;  %v8245_v62 = vrot.slane %v8236_v25, %v24069_v4 }
 0x759   : > { %v7149_v14 = vpop.permute.xlu0 %7148  ;;  %22330 = vmatpush1.msk.msra.mxu1 %vm670_vm8, %v7059_v13  ;;  %v22905_v13 = vpack.c.bf16 %v7700_v11, %v7692_v9  ;;  %v7853_v9 = vld [vmem:[#allocation5 + $0x698] sm:$0xff] }
 0x75a   : > { %v7154_v18 = vsel %vm27679_vm4, %v7149_v14, %v7151_v12  ;;  %v7861_v11 = vld [vmem:[#allocation5 + $0x6d8] sm:$0xff]  ;;  %vm626_vm4 = vcmask 535816  }
 0x75b   : > { %v7153_v15 = vpop.permute.xlu1 %7152  ;;  %627 = vst.msk [vmem:[#allocation4 + $0x20] sm:$0xf] %vm626_vm4, %v23785_v1 }
 0x75c   : > { %v7155_v17 = vsel %vm27678_vm10, %v7151_v12, %v7153_v15  ;;  %v7709_v12 = vld [vmem:[#allocation5 + $0x218] sm:$0xff]  ;;  %v7708_v15 = vld [vmem:[#allocation5 + $0x210] sm:$0xff]  ;;  %vm624_vm10 = vcmask 265216  }
 0x75d   : > { %v7256_v16 = vpop.permute.xlu0 %7255  ;;  %22333 = vmatprep.subr.msk.mxu1 %vm670_vm8, %v7155_v17  ;;  %v22907_v14 = vpack.c.bf16 %v7717_v5, %v7709_v12  ;;  %v7725_v17 = vld [vmem:[#allocation5 + $0x298] sm:$0xff]  ;;  %v22943_v5 = vpack.c.bf16 %v7861_v11, %v7853_v9  ;;  %625 = vst.msk [vmem:[#allocation4] sm:$0xf] %vm624_vm10, %v23785_v1 }
 0x75e   : > { %22331 = vmatmul.mubr.msk.f32.vlgmr.msra.gmra.mrb[4].mxu1 %vm666_vm2, %v22328_v28  ;;  %v7716_v28 = vld [vmem:[#allocation5 + $0x250] sm:$0xff] }
 0x75f   : > { %22334 = vmatpush1.msk.msra.mxu1 %vm670_vm8, %v7154_v18  ;;  %v7254_v20 = vpop.permute.xlu1 %7253  ;;  %7227 = vmatprep.mubr.f32.mxu1 %v23785_v1  ;;  %v22909_v18 = vpack.c.bf16 %v7716_v28, %v7708_v15  ;;  %v7869_v15 = vld [vmem:[#allocation5 + $0x718] sm:$0xff] }
 0x760   : > { %v7258_v23 = vsel %vm27680_vm13, %v7254_v20, %v7256_v16  ;;  %v7733_v16 = vld [vmem:[#allocation5 + $0x2d8] sm:$0xff]  ;;  %vm8218_vm13 = vcmask 1043720  }
 0x761   : > { %22337 = vmatprep.subr.msk.mxu1 %vm670_vm8, %v7258_v23  ;;  %v7357_v26 = vpop.permute.xlu0 %7356  ;;  %v7724_v23 = vld [vmem:[#allocation5 + $0x290] sm:$0xff]  ;;  %v7877_v28 = vld [vmem:[#allocation5 + $0x758] sm:$0xff] }
 0x763   : > { %v7252_v31 = vpop.permute.xlu1 %7251 }
 0x764   : > { %v7257_v33 = vsel %vm27681_vm12, %v7252_v31, %v7254_v20  ;;  %v22911_v20 = vpack.c.bf16 %v7733_v16, %v7725_v17  ;;  %v7741_v31 = vld [vmem:[#allocation5 + $0x318] sm:$0xff]  ;;  %v22947_v16 = vpack.c.bf16 %v7877_v28, %v7869_v15  ;;  %vm27689_vm12 = vcmask 1047556  }
 0x765   : > { %v7355_v22 = vpop.permute.xlu0 %7354 }
 0x766   : > { %22335 = vmatmul.mubr.msk.f32.vlgmr.msra.gmra.mrb[4].mxu1 %vm666_vm2, %v22332_v32  ;;  %v7360_v36 = vsel %vm2176_vm5, %v7355_v22, %v7357_v26  ;;  %v7749_v32 = vld [vmem:[#allocation5 + $0x358] sm:$0xff]  ;;  %v7740_v22 = vld [vmem:[#allocation5 + $0x310] sm:$0xff] }
 0x767   : > { %22338 = vmatpush1.msk.msra.mxu1 %vm670_vm8, %v7257_v33  ;;  %v7359_v61 = vpop.permute.xlu1 %7358  ;;  %7330 = vmatprep.mubr.f32.mxu1 %v23785_v1 }
 0x768   : > { %v7361_v41 = vsel %vm2176_vm5, %v7357_v26, %v7359_v61  ;;  %v7732_v26 = vld [vmem:[#allocation5 + $0x2d0] sm:$0xff]  ;;  %v22915_v61 = vpack.c.bf16 %v7749_v32, %v7741_v31  ;;  %v7891_v31 = vld [vmem:[#allocation5 + $0x7c8] sm:$0xff]  ;;  %v7885_v32 = vld [vmem:[#allocation5 + $0x798] sm:$0xff] }
 0x769   : > { %22341 = vmatprep.subr.msk.mxu1 %vm670_vm8, %v7361_v41  ;;  %v7454_v37 = vpop.permute.xlu0 %7453  ;;  %v22913_v33 = vpack.c.bf16 %v7732_v26, %v7724_v23  ;;  %v7748_v41 = vld [vmem:[#allocation5 + $0x350] sm:$0xff]  ;;  %v7883_v26 = vld [vmem:[#allocation5 + $0x788] sm:$0xff] }
 0x76b   : > { %v7452_v10 = vpop.permute.xlu1 %7451 }
 0x76c   : > { %v7456_v29 = vsel %vm27682_vm3, %v7452_v10, %v7454_v37  ;;  %vm25193_vm3 = vmor %vm27689_vm12, %vm8218_vm13  ;;  %vm27696_vm13 = vcmask 523264  }
 0x76d   : > { %v7555_v21 = vpop.permute.xlu0 %7554  ;;  %vm27697_vm12 = vmmov %vm27696_vm13 }
 0x76e   : > { %22339 = vmatmul.mubr.msk.f32.vlgmr.msra.gmra.mrb[4].mxu1 %vm666_vm2, %v22336_v35  ;;  %v7765_v35 = vld [vmem:[#allocation5 + $0x3d8] sm:$0xff] }
 0x76f   : > { %22342 = vmatpush1.msk.msra.mxu1 %vm670_vm8, %v7360_v36  ;;  %v7450_v38 = vpop.permute.xlu1 %7449  ;;  %7433 = vmatprep.mubr.f32.mxu1 %v23785_v1  ;;  %v22917_v36 = vpack.c.bf16 %v7748_v41, %v7740_v22  ;;  %v7882_v22 = vld [vmem:[#allocation5 + $0x780] sm:$0xff] }
 0x770   : > { %22345 = vmatprep.subr.msk.mxu1 %vm670_vm8, %v7456_v29  ;;  %v7455_v43 = vsel %vm27683_vm11, %v7450_v38, %v7452_v10  ;;  %v7757_v10 = vld [vmem:[#allocation5 + $0x398] sm:$0xff]  ;;  %v7756_v29 = vld [vmem:[#allocation5 + $0x390] sm:$0xff]  ;;  %v7890_v41 = vld [vmem:[#allocation5 + $0x7c0] sm:$0xff]  ;;  %vm27692_vm11 = vcmask 269312  }
 0x771   : > { %v7553_v47 = vpop.permute.xlu0 %7552  ;;  %v22919_v37 = vpack.c.bf16 %v7765_v35, %v7757_v10  ;;  %v7764_v38 = vld [vmem:[#allocation5 + $0x3d0] sm:$0xff]  ;;  %v22889_v35 = vpack.c.bf16 %v7890_v41, %v7882_v22  ;;  %v7671_v22 = vld [vmem:[#allocation5 + $0xe8] sm:$0xff]  ;;  %v7665_v41 = vld [vmem:[#allocation5 + $0xb8] sm:$0xff] }
 0x772   : > { %v7558_v40 = vsel %vm27685_vm9, %v7553_v47, %v7555_v21  ;;  %v7797_v47 = vld [vmem:[#allocation5 + $0x4d8] sm:$0xff] }
 0x773   : > { %v7557_v42 = vpop.permute.xlu1 %7556 }
 0x774   : > { %v7559_v44 = vsel %vm27684_vm7, %v7555_v21, %v7557_v42  ;;  %v7781_v42 = vld [vmem:[#allocation5 + $0x458] sm:$0xff]  ;;  %v22921_v21 = vpack.c.bf16 %v7764_v38, %v7756_v29  ;;  %v7647_v29 = vld [vmem:[#allocation5 + $0x28] sm:$0xff]  ;;  %vm27693_vm7 = vmmov %vm27692_vm11 }
 0x775   : > { %vm27694_vm9 = vmmov %vm27693_vm7 }
 0x776   : > { %22343 = vmatmul.mubr.msk.f32.vlgmr.msra.gmra.mrb[4].mxu1 %vm666_vm2, %v22340_v39  ;;  %v7773_v39 = vld [vmem:[#allocation5 + $0x418] sm:$0xff]  ;;  %vm27695_vm4 = vmmov %vm27693_vm7 }
 0x777   : > { %22346 = vmatpush1.msk.msra.mxu1 %vm670_vm8, %v7455_v43  ;;  %7528 = vmatprep.mubr.f32.mxu1 %v23785_v1  ;;  %v22923_v43 = vpack.c.bf16 %v7781_v42, %v7773_v39  ;;  %v7655_v39 = vld [vmem:[#allocation5 + $0x68] sm:$0xff]  ;;  %v7649_v42 = vld [vmem:[#allocation5 + $0x38] sm:$0xff] }
 0x778   : > { %22349 = vmatprep.subr.msk.mxu1 %vm670_vm8, %v7559_v44  ;;  %v7772_v44 = vld [vmem:[#allocation5 + $0x410] sm:$0xff] }
 0x77e   : > { %22347 = vmatmul.mubr.msk.f32.vlgmr.msra.gmra.mrb[4].mxu1 %vm666_vm2, %v22344_v48  ;;  %v22925_v48 = vpack.c.bf16 %v7780_v34, %v7772_v44  ;;  %v25060_v34 = vsub.s32 2, %v24062_v2 }
 0x77f   : > { %22350 = vmatpush1.msk.msra.mxu1 %vm670_vm8, %v7558_v40  ;;  %7631 = vmatprep.mubr.f32.mxu1 %v23785_v1  ;;  %v7788_v40 = vld [vmem:[#allocation5 + $0x490] sm:$0xff] }
 0x780   : > { %22892 = vmatprep.subr.bf16.mxu1 %v22891_v49  ;;  %v22927_v49 = vpack.c.bf16 %v7797_v47, %v7789_v46  ;;  %v22929_v52 = vpack.c.bf16 %v7796_v50, %v7788_v40  ;;  %v25063_v46 = vsub.s32 3, %v24062_v2  ;;  %v22377_v47 = vld [vmem:[%s27555_s17 + $0x2] ss:$4 sm:$0xff] }
 0x781   : > { %v8966_v40 = vrot.slane %v22377_v47, %v24066_v3  ;;  %v8970_v50 = vrot.slane %v22377_v47, %v24069_v4 }
 0x783   : > { %v25089_v56 = vcombine.low %v8966_v40, %v8970_v50  ;;  %v7678_v50 = vld [vmem:[#allocation5 + $0x120] sm:$0xff] }
 0x784   : > { %v6727_v15 = vpop.permute.xlu1 %6726 }
 0x785   : > { %8999 = vrot.lane.b32.xlu0 %v25089_v56, %s27672_s24  ;;  %v6730_v28 = vadd.f32 %v6727_v15, %v5779_v27  ;;  %v7670_v27 = vld [vmem:[#allocation5 + $0xe0] sm:$0xff] }
 0x786   : > { %22351 = vmatmul.mubr.msk.f32.vlgmr.msra.gmra.mrb[4].mxu1 %vm666_vm2, %v22348_v53  ;;  %v22931_v53 = vpack.c.bf16 %v7813_v45, %v7805_v51  ;;  %v25077_v51 = vsub.s32 4, %v24062_v2  ;;  %v25080_v45 = vsub.s32 5, %v24062_v2 }
 0x787   : > { %22894 = vmatpush1.bf16.msra.mxu1 %v22893_v54  ;;  %v7804_v54 = vld [vmem:[#allocation5 + $0x510] sm:$0xff] }
 0x788   : > { %22896 = vmatprep.subr.bf16.mxu1 %v22895_v55  ;;  %v7812_v55 = vld [vmem:[#allocation5 + $0x550] sm:$0xff]  ;;  %v8261_v9 = vrot.slane %v8236_v25, %v25080_v45 }
 0x789   : > { %v22933_v58 = vpack.c.bf16 %v7812_v55, %v7804_v54 }
 0x78b   : > { %22898 = vmatpush1.bf16.msra.mxu1 %v22897_v57  ;;  %v7820_v57 = vld [vmem:[#allocation5 + $0x590] sm:$0xff] }
 0x78c   : > { %22900 = vmatprep.subr.bf16.mxu1 %v22899_v60  ;;  %v7828_v60 = vld [vmem:[#allocation5 + $0x5d0] sm:$0xff] }
 0x78d   : > { %v22937_v0 = vpack.c.bf16 %v7828_v60, %v7820_v57  ;;  %v8241_v60 = vrot.slane %v8236_v25, %v24066_v3 }
 0x78f   : > { %22902 = vmatpush1.bf16.msra.mxu1 %v22901_v7  ;;  %v7836_v7 = vld [vmem:[#allocation5 + $0x610] sm:$0xff] }
 0x790   : > { %22904 = vmatprep.subr.bf16.mxu1 %v22903_v8  ;;  %v7844_v8 = vld [vmem:[#allocation5 + $0x650] sm:$0xff] }
 0x791   : > { %v22941_v12 = vpack.c.bf16 %v7844_v8, %v7836_v7  ;;  %v25109_v7 = vcombine.low %v8241_v60, %v8245_v62  ;;  %v8257_v8 = vrot.slane %v8236_v25, %v25077_v51  ;;  %v7697_v60 = vld [vmem:[#allocation5 + $0x1b8] sm:$0xff] }
 0x792   : > { %v7705_v62 = vld [vmem:[#allocation5 + $0x1f8] sm:$0xff] }
 0x793   : > { %22906 = vmatpush1.bf16.msra.mxu1 %v22905_v13  ;;  %v7852_v13 = vld [vmem:[#allocation5 + $0x690] sm:$0xff] }
 0x794   : > { %22908 = vmatprep.subr.bf16.mxu1 %v22907_v14  ;;  %v7860_v14 = vld [vmem:[#allocation5 + $0x6d0] sm:$0xff] }
 0x795   : > { %v22945_v17 = vpack.c.bf16 %v7860_v14, %v7852_v13  ;;  %v25121_v13 = vcombine.low %v8257_v8, %v8261_v9  ;;  %v7694_v8 = vld [vmem:[#allocation5 + $0x1a0] sm:$0xff] }
 0x796   : > { %v7702_v9 = vld [vmem:[#allocation5 + $0x1e0] sm:$0xff] }
 0x797   : > { %22910 = vmatpush1.bf16.msra.mxu1 %v22909_v18  ;;  %v7868_v18 = vld [vmem:[#allocation5 + $0x710] sm:$0xff] }
 0x798   : > { %22912 = vmatprep.subr.bf16.mxu1 %v22911_v20  ;;  %v7876_v20 = vld [vmem:[#allocation5 + $0x750] sm:$0xff] }
 0x799   : > { %v22949_v23 = vpack.c.bf16 %v7876_v20, %v7868_v18  ;;  %v7646_v18 = vld [vmem:[#allocation5 + $0x20] sm:$0xff] }
 0x79b   : > { %22914 = vmatpush1.bf16.msra.mxu1 %v22913_v33  ;;  %v22887_v33 = vpack.c.bf16 %v7891_v31, %v7883_v26  ;;  %v7654_v26 = vld [vmem:[#allocation5 + $0x60] sm:$0xff]  ;;  %v7648_v31 = vld [vmem:[#allocation5 + $0x30] sm:$0xff] }
 0x79c   : > { %22916 = vmatprep.subr.bf16.mxu1 %v22915_v61  ;;  %v7893_v61 = vld [vmem:[#allocation5 + $0x7d8] sm:$0xff] }
 0x79d   : > { %v22951_v10 = vpack.c.bf16 %v7893_v61, %v7885_v32  ;;  %22888 = vmatprep.subr.bf16.mxu0 %v22887_v33  ;;  %v7656_v32 = vld [vmem:[#allocation5 + $0x70] sm:$0xff]  ;;  %v7663_v61 = vld [vmem:[#allocation5 + $0xa8] sm:$0xff] }
 0x79e   : > { %22890 = vmatpush1.bf16.msra.mxu0 %v22889_v35 }
 0x79f   : > { %22918 = vmatpush1.bf16.msra.mxu1 %v22917_v36  ;;  %v7884_v36 = vld [vmem:[#allocation5 + $0x790] sm:$0xff] }
 0x7a0   : > { %22920 = vmatprep.subr.bf16.mxu1 %v22919_v37  ;;  %v7892_v37 = vld [vmem:[#allocation5 + $0x7d0] sm:$0xff] }
 0x7a1   : > { %v22953_v38 = vpack.c.bf16 %v7892_v37, %v7884_v36  ;;  %v22957_v36 = vpack.c.bf16 %v7654_v26, %v7646_v18  ;;  %v23021_v37 = vpack.c.bf16 %v7656_v32, %v7648_v31  ;;  %v7713_v18 = vld [vmem:[#allocation5 + $0x238] sm:$0xff]  ;;  %v7710_v31 = vld [vmem:[#allocation5 + $0x220] sm:$0xff] }
 0x7a2   : > { %v7718_v32 = vld [vmem:[#allocation5 + $0x260] sm:$0xff] }
 0x7a3   : > { %22922 = vmatpush1.bf16.msra.mxu1 %v22921_v21  ;;  %v7657_v21 = vld [vmem:[#allocation5 + $0x78] sm:$0xff] }
 0x7a4   : > { %22924 = vmatprep.subr.bf16.mxu1 %v22923_v43  ;;  %v22955_v43 = vpack.c.bf16 %v7655_v39, %v7647_v29  ;;  %v23019_v44 = vpack.c.bf16 %v7657_v21, %v7649_v42  ;;  %v22959_v39 = vpack.c.bf16 %v7671_v22, %v7663_v61  ;;  %v7687_v21 = vld [vmem:[#allocation5 + $0x168] sm:$0xff]  ;;  %v7712_v22 = vld [vmem:[#allocation5 + $0x230] sm:$0xff] }
 0x7a6   : > { %22956 = vmatprep.subr.bf16.mxu0 %v22955_v43  ;;  %v7681_v43 = vld [vmem:[#allocation5 + $0x138] sm:$0xff] }
 0x7a7   : > { %22926 = vmatpush1.bf16.msra.mxu1 %v22925_v48  ;;  %v25069_v48 = vsub.s32 6, %v24062_v2 }
 0x7a8   : > { %22928 = vmatprep.subr.bf16.mxu1 %v22927_v49  ;;  %v25072_v49 = vsub.s32 7, %v24062_v2 }
 0x7a9   : > { %v8990_v54 = vrot.slane %v22377_v47, %v25069_v48 }
 0x7aa   : > { %v8994_v55 = vrot.slane %v22377_v47, %v25072_v49 }
 0x7ab   : > { %22930 = vmatpush1.bf16.msra.mxu1 %v22929_v52  ;;  %v8974_v52 = vrot.slane %v22377_v47, %v25060_v34 }
 0x7ac   : > { %22932 = vmatprep.subr.bf16.mxu1 %v22931_v53  ;;  %v8978_v53 = vrot.slane %v22377_v47, %v25063_v46  ;;  %v25103_v63 = vcombine.low %v8990_v54, %v8994_v55  ;;  %v7680_v55 = vld [vmem:[#allocation5 + $0x130] sm:$0xff] }
 0x7ae   : > { %v25093_v2 = vcombine.low %v8974_v52, %v8978_v53  ;;  %v7686_v52 = vld [vmem:[#allocation5 + $0x160] sm:$0xff] }
 0x7af   : > { %22934 = vmatpush1.bf16.msra.mxu1 %v22933_v58  ;;  %v8982_v58 = vrot.slane %v22377_v47, %v25077_v51 }
 0x7b0   : > { %22936 = vmatprep.subr.bf16.mxu1 %v22935_v59  ;;  %v8986_v59 = vrot.slane %v22377_v47, %v25080_v45  ;;  %9001 = vrot.lane.b32.xlu1 %v25093_v2, %s27672_s24  ;;  %v22961_v47 = vpack.c.bf16 %v7670_v27, %v7662_v19  ;;  %v22973_v19 = vpack.c.bf16 %v7718_v32, %v7710_v31 }
 0x7b2   : > { %v25097_v57 = vcombine.low %v8982_v58, %v8986_v59  ;;  %v7695_v58 = vld [vmem:[#allocation5 + $0x1a8] sm:$0xff] }
 0x7b3   : > { %22938 = vmatpush1.bf16.msra.mxu1 %v22937_v0  ;;  %v8249_v0 = vrot.slane %v8236_v25, %v25060_v34  ;;  %v7703_v59 = vld [vmem:[#allocation5 + $0x1e8] sm:$0xff] }
 0x7b4   : > { %22940 = vmatprep.subr.bf16.mxu1 %v22939_v6  ;;  %v8253_v6 = vrot.slane %v8236_v25, %v25063_v46  ;;  %9003 = vrot.lane.b32.xlu0 %v25097_v57, %s27672_s24 }
 0x7b5   : > { %9005 = vrot.lane.b32.xlu1 %v25103_v63, %s27672_s24 }
 0x7b6   : > { %v25115_v11 = vcombine.low %v8249_v0, %v8253_v6  ;;  %v22965_v0 = vpack.c.bf16 %v7686_v52, %v7678_v50 }
 0x7b7   : > { %22942 = vmatpush1.bf16.msra.mxu1 %v22941_v12  ;;  %v8265_v12 = vrot.slane %v8236_v25, %v25069_v48 }
 0x7b8   : > { %22944 = vmatprep.subr.bf16.mxu1 %v22943_v5  ;;  %v8269_v5 = vrot.slane %v8236_v25, %v25072_v49  ;;  %9381 = vrot.lane.b32.xlu0 %v25109_v7, %s27673_s5  ;;  %v7688_v25 = vld [vmem:[#allocation5 + $0x170] sm:$0xff] }
 0x7b9   : > { %9383 = vrot.lane.b32.xlu1 %v25115_v11, %s27673_s5  ;;  %v23029_v6 = vpack.c.bf16 %v7688_v25, %v7680_v55 }
 0x7ba   : > { %v25125_v14 = vcombine.low %v8265_v12, %v8269_v5  ;;  %v22967_v12 = vpack.c.bf16 %v7703_v59, %v7695_v58  ;;  %v23031_v5 = vpack.c.bf16 %v7705_v62, %v7697_v60  ;;  %v7744_v58 = vld [vmem:[#allocation5 + $0x330] sm:$0xff]  ;;  %v7759_v60 = vld [vmem:[#allocation5 + $0x3a8] sm:$0xff] }
 0x7bb   : > { %22946 = vmatpush1.bf16.msra.mxu1 %v22945_v17  ;;  %v7752_v59 = vld [vmem:[#allocation5 + $0x370] sm:$0xff]  ;;  %v7767_v62 = vld [vmem:[#allocation5 + $0x3e8] sm:$0xff] }
 0x7bc   : > { %22948 = vmatprep.subr.bf16.mxu1 %v22947_v16  ;;  %9385 = vrot.lane.b32.xlu0 %v25121_v13, %s27673_s5  ;;  %v6731_v16 = vadd.f32 %v6727_v15, %v5780_v30  ;;  %v7672_v30 = vld [vmem:[#allocation5 + $0xf0] sm:$0xff] }
 0x7bd   : > { %9387 = vrot.lane.b32.xlu1 %v25125_v14, %s27673_s5  ;;  %v23025_v40 = vpack.c.bf16 %v7672_v30, %v7664_v24  ;;  %v7696_v15 = vld [vmem:[#allocation5 + $0x1b0] sm:$0xff]  ;;  %v7726_v24 = vld [vmem:[#allocation5 + $0x2a0] sm:$0xff] }
 0x7be   : > { %v7734_v30 = vld [vmem:[#allocation5 + $0x2e0] sm:$0xff] }
 0x7bf   : > { %22950 = vmatpush1.bf16.msra.mxu1 %v22949_v23  ;;  %v22977_v50 = vpack.c.bf16 %v7734_v30, %v7726_v24 }
 0x7c0   : > { %22952 = vmatprep.subr.bf16.mxu1 %v22951_v10  ;;  %10116 = vrot.lane.b32.xlu0 %v25089_v56, %s27652_s27  ;;  %v7673_v10 = vld [vmem:[#allocation5 + $0xf8] sm:$0xff] }
 0x7c1   : > { %10118 = vrot.lane.b32.xlu1 %v25093_v2, %s27652_s27  ;;  %v23023_v42 = vpack.c.bf16 %v7673_v10, %v7665_v41  ;;  %v7720_v41 = vld [vmem:[#allocation5 + $0x270] sm:$0xff]  ;;  %v7727_v10 = vld [vmem:[#allocation5 + $0x2a8] sm:$0xff] }
 0x7c2   : > { %v23037_v27 = vpack.c.bf16 %v7720_v41, %v7712_v22 }
 0x7c3   : > { %22954 = vmatpush1.bf16.msra.mxu1 %v22953_v38  ;;  %v7679_v38 = vld [vmem:[#allocation5 + $0x128] sm:$0xff] }
 0x7c4   : > { %23020 = vmatprep.subr.bf16.mxu1 %v23019_v44  ;;  %v7689_v44 = vld [vmem:[#allocation5 + $0x178] sm:$0xff]  ;;  %v22963_v53 = vpack.c.bf16 %v7687_v21, %v7679_v38  ;;  %v7736_v21 = vld [vmem:[#allocation5 + $0x2f0] sm:$0xff] }
 0x7c5   : > { %v23027_v54 = vpack.c.bf16 %v7689_v44, %v7681_v43  ;;  %v7743_v43 = vld [vmem:[#allocation5 + $0x328] sm:$0xff] }
 0x7c6   : > { %v7751_v44 = vld [vmem:[#allocation5 + $0x368] sm:$0xff] }
 0x7c7   : > { %v22979_v55 = vpack.c.bf16 %v7751_v44, %v7743_v43  ;;  %v7792_v43 = vld [vmem:[#allocation5 + $0x4b0] sm:$0xff] }
 0x7c8   : > { %v7800_v44 = vld [vmem:[#allocation5 + $0x4f0] sm:$0xff] }
 0x859   : > { %v7633_v17 = vpop.f32.mrb[4].mxu1 }
 0x85a   : > { %v23089_v20 = vadd.f32 %v7633_v17, %v6730_v28  ;;  %v7635_v23 = vpop.f32.mrb[5].mxu1  ;;  %v7704_v28 = vld [vmem:[#allocation5 + $0x1f0] sm:$0xff]  ;;  %v7711_v17 = vld [vmem:[#allocation5 + $0x228] sm:$0xff] }
 0x85b   : > { %v23090_v33 = vadd.f32 %v7635_v23, %v6731_v16  ;;  %v7719_v16 = vld [vmem:[#allocation5 + $0x268] sm:$0xff]  ;;  %v22969_v23 = vpack.c.bf16 %v7702_v9, %v7694_v8  ;;  %v23033_v26 = vpack.c.bf16 %v7704_v28, %v7696_v15  ;;  %v23045_v9 = vpack.c.bf16 %v7752_v59, %v7744_v58 }
 0x85c   : > { %v25139_v29 = vmax.f32 %v23089_v20, 0.0  ;;  %v7721_v20 = vld [vmem:[#allocation5 + $0x278] sm:$0xff]  ;;  %v22983_v15 = vpack.c.bf16 %v7767_v62, %v7759_v60  ;;  %v7808_v60 = vld [vmem:[#allocation5 + $0x530] sm:$0xff] }
 0x85d   : > { %v7641_v35 = vmax.f32 %v23090_v33, 0.0  ;;  %v22971_v33 = vpack.c.bf16 %v7719_v16, %v7711_v17  ;;  %v23035_v61 = vpack.c.bf16 %v7721_v20, %v7713_v18  ;;  %v7760_v17 = vld [vmem:[#allocation5 + $0x3b0] sm:$0xff]  ;;  %v7775_v18 = vld [vmem:[#allocation5 + $0x428] sm:$0xff] }
 0x85e   : > { %v7768_v16 = vld [vmem:[#allocation5 + $0x3f0] sm:$0xff]  ;;  %v7783_v20 = vld [vmem:[#allocation5 + $0x468] sm:$0xff] }
 0x85f   : > { %7962 = vmatprep.mubr.f32.mxu0 %v7641_v35  ;;  %8033 = vmatprep.mubr.f32.mxu1 %v7641_v35  ;;  %v23049_v32 = vpack.c.bf16 %v7768_v16, %v7760_v17  ;;  %v22987_v22 = vpack.c.bf16 %v7783_v20, %v7775_v18  ;;  %v7816_v62 = vld [vmem:[#allocation5 + $0x570] sm:$0xff] }
 0x860   : > { %7963 = vmatmul.mubr.f32.vlgmr.msra.gmra.mrb[2].mxu0 %v25139_v29  ;;  %8034 = vmatmul.mubr.f32.vlgmr.msra.gmra.mrb[6].mxu1 %v25139_v29  ;;  %v7824_v18 = vld [vmem:[#allocation5 + $0x5b0] sm:$0xff] }
 0x861   : > { %22958 = vmatpush1.bf16.msra.mxu0 %v22957_v36  ;;  %23022 = vmatpush1.bf16.msra.mxu1 %v23021_v37  ;;  %v7729_v36 = vld [vmem:[#allocation5 + $0x2b8] sm:$0xff]  ;;  %v7832_v20 = vld [vmem:[#allocation5 + $0x5f0] sm:$0xff] }
 0x862   : > { %8104 = vmatprep.mubr.f32.mxu0 %v7641_v35  ;;  %8175 = vmatprep.mubr.f32.mxu1 %v7641_v35  ;;  %v7735_v35 = vld [vmem:[#allocation5 + $0x2e8] sm:$0xff]  ;;  %v7737_v37 = vld [vmem:[#allocation5 + $0x2f8] sm:$0xff] }
 0x863   : > { %22960 = vmatprep.subr.bf16.mxu0 %v22959_v39  ;;  %23024 = vmatprep.subr.bf16.mxu1 %v23023_v42  ;;  %v22975_v38 = vpack.c.bf16 %v7735_v35, %v7727_v10  ;;  %v23039_v39 = vpack.c.bf16 %v7737_v37, %v7729_v36  ;;  %v7728_v42 = vld [vmem:[#allocation5 + $0x2b0] sm:$0xff]  ;;  %v7791_v36 = vld [vmem:[#allocation5 + $0x4a8] sm:$0xff] }
 0x864   : > { %v23041_v52 = vpack.c.bf16 %v7736_v21, %v7728_v42  ;;  %v7776_v10 = vld [vmem:[#allocation5 + $0x430] sm:$0xff]  ;;  %v7799_v37 = vld [vmem:[#allocation5 + $0x4e8] sm:$0xff] }
 0x865   : > { %22962 = vmatpush1.bf16.msra.mxu0 %v22961_v47  ;;  %23026 = vmatpush1.bf16.msra.mxu1 %v23025_v40  ;;  %v7745_v47 = vld [vmem:[#allocation5 + $0x338] sm:$0xff]  ;;  %v7784_v35 = vld [vmem:[#allocation5 + $0x470] sm:$0xff]  ;;  %v22991_v42 = vpack.c.bf16 %v7799_v37, %v7791_v36 }
 0x866   : > { %22964 = vmatprep.subr.bf16.mxu0 %v22963_v53  ;;  %23028 = vmatprep.subr.bf16.mxu1 %v23027_v54  ;;  %v7753_v40 = vld [vmem:[#allocation5 + $0x378] sm:$0xff]  ;;  %v7742_v53 = vld [vmem:[#allocation5 + $0x320] sm:$0xff]  ;;  %v23053_v30 = vpack.c.bf16 %v7784_v35, %v7776_v10  ;;  %v7840_v36 = vld [vmem:[#allocation5 + $0x630] sm:$0xff] }
 0x867   : > { %v7750_v54 = vld [vmem:[#allocation5 + $0x360] sm:$0xff]  ;;  %v23043_v25 = vpack.c.bf16 %v7753_v40, %v7745_v47  ;;  %v7807_v47 = vld [vmem:[#allocation5 + $0x528] sm:$0xff]  ;;  %v7848_v37 = vld [vmem:[#allocation5 + $0x670] sm:$0xff] }
 0x868   : > { %v22981_v8 = vpack.c.bf16 %v7750_v54, %v7742_v53  ;;  %v7815_v40 = vld [vmem:[#allocation5 + $0x568] sm:$0xff]  ;;  %v23057_v54 = vpack.c.bf16 %v7800_v44, %v7792_v43 }
 0x869   : > { %22966 = vmatpush1.bf16.msra.mxu0 %v22965_v0  ;;  %23030 = vmatpush1.bf16.msra.mxu1 %v23029_v6  ;;  %v7761_v0 = vld [vmem:[#allocation5 + $0x3b8] sm:$0xff]  ;;  %v22995_v58 = vpack.c.bf16 %v7815_v40, %v7807_v47  ;;  %v7856_v47 = vld [vmem:[#allocation5 + $0x6b0] sm:$0xff] }
 0x86a   : > { %22968 = vmatprep.subr.bf16.mxu0 %v22967_v12  ;;  %23032 = vmatprep.subr.bf16.mxu1 %v23031_v5  ;;  %v7769_v6 = vld [vmem:[#allocation5 + $0x3f8] sm:$0xff]  ;;  %v7758_v12 = vld [vmem:[#allocation5 + $0x3a0] sm:$0xff]  ;;  %v7864_v40 = vld [vmem:[#allocation5 + $0x6f0] sm:$0xff] }
 0x86b   : > { %v7766_v5 = vld [vmem:[#allocation5 + $0x3e0] sm:$0xff]  ;;  %v23047_v28 = vpack.c.bf16 %v7769_v6, %v7761_v0  ;;  %v7823_v0 = vld [vmem:[#allocation5 + $0x5a8] sm:$0xff] }
 0x86c   : > { %v22985_v31 = vpack.c.bf16 %v7766_v5, %v7758_v12  ;;  %v7831_v6 = vld [vmem:[#allocation5 + $0x5e8] sm:$0xff]  ;;  %v23061_v5 = vpack.c.bf16 %v7816_v62, %v7808_v60 }
 0x86d   : > { %22970 = vmatpush1.bf16.msra.mxu0 %v22969_v23  ;;  %23034 = vmatpush1.bf16.msra.mxu1 %v23033_v26  ;;  %v7777_v23 = vld [vmem:[#allocation5 + $0x438] sm:$0xff]  ;;  %v22999_v17 = vpack.c.bf16 %v7831_v6, %v7823_v0  ;;  %v7872_v0 = vld [vmem:[#allocation5 + $0x730] sm:$0xff] }
 0x86e   : > { %22972 = vmatprep.subr.bf16.mxu0 %v22971_v33  ;;  %23036 = vmatprep.subr.bf16.mxu1 %v23035_v61  ;;  %v7785_v26 = vld [vmem:[#allocation5 + $0x478] sm:$0xff]  ;;  %v7774_v33 = vld [vmem:[#allocation5 + $0x420] sm:$0xff]  ;;  %v7880_v6 = vld [vmem:[#allocation5 + $0x770] sm:$0xff] }
 0x86f   : > { %v7782_v61 = vld [vmem:[#allocation5 + $0x460] sm:$0xff]  ;;  %v23051_v41 = vpack.c.bf16 %v7785_v26, %v7777_v23  ;;  %v7839_v23 = vld [vmem:[#allocation5 + $0x628] sm:$0xff] }
 0x870   : > { %v22989_v24 = vpack.c.bf16 %v7782_v61, %v7774_v33  ;;  %v7847_v26 = vld [vmem:[#allocation5 + $0x668] sm:$0xff]  ;;  %v23065_v61 = vpack.c.bf16 %v7832_v20, %v7824_v18  ;;  %v7894_v20 = vld [vmem:[#allocation5 + $0x7e0] sm:$0xff] }
 0x871   : > { %22974 = vmatpush1.bf16.msra.mxu0 %v22973_v19  ;;  %23038 = vmatpush1.bf16.msra.mxu1 %v23037_v27  ;;  %v7793_v19 = vld [vmem:[#allocation5 + $0x4b8] sm:$0xff]  ;;  %v23003_v10 = vpack.c.bf16 %v7847_v26, %v7839_v23  ;;  %v7888_v23 = vld [vmem:[#allocation5 + $0x7b0] sm:$0xff] }
 0x872   : > { %22976 = vmatprep.subr.bf16.mxu0 %v22975_v38  ;;  %23040 = vmatprep.subr.bf16.mxu1 %v23039_v39  ;;  %v7801_v27 = vld [vmem:[#allocation5 + $0x4f8] sm:$0xff]  ;;  %v7790_v38 = vld [vmem:[#allocation5 + $0x4a0] sm:$0xff]  ;;  %v7896_v26 = vld [vmem:[#allocation5 + $0x7f0] sm:$0xff] }
 0x873   : > { %v7798_v39 = vld [vmem:[#allocation5 + $0x4e0] sm:$0xff]  ;;  %v23055_v21 = vpack.c.bf16 %v7801_v27, %v7793_v19  ;;  %v7855_v19 = vld [vmem:[#allocation5 + $0x6a8] sm:$0xff] }
 0x874   : > { %v22993_v53 = vpack.c.bf16 %v7798_v39, %v7790_v38  ;;  %v7863_v27 = vld [vmem:[#allocation5 + $0x6e8] sm:$0xff]  ;;  %v23069_v39 = vpack.c.bf16 %v7848_v37, %v7840_v36 }
 0x875   : > { %22978 = vmatpush1.bf16.msra.mxu0 %v22977_v50  ;;  %23042 = vmatpush1.bf16.msra.mxu1 %v23041_v52  ;;  %v7809_v50 = vld [vmem:[#allocation5 + $0x538] sm:$0xff]  ;;  %v23007_v43 = vpack.c.bf16 %v7863_v27, %v7855_v19 }
 0x876   : > { %22980 = vmatprep.subr.bf16.mxu0 %v22979_v55  ;;  %23044 = vmatprep.subr.bf16.mxu1 %v23043_v25  ;;  %v7817_v52 = vld [vmem:[#allocation5 + $0x578] sm:$0xff]  ;;  %v7806_v55 = vld [vmem:[#allocation5 + $0x520] sm:$0xff] }
 0x877   : > { %v7814_v25 = vld [vmem:[#allocation5 + $0x560] sm:$0xff]  ;;  %v23059_v59 = vpack.c.bf16 %v7817_v52, %v7809_v50  ;;  %v7871_v50 = vld [vmem:[#allocation5 + $0x728] sm:$0xff] }
 0x878   : > { %v22997_v12 = vpack.c.bf16 %v7814_v25, %v7806_v55  ;;  %v7879_v52 = vld [vmem:[#allocation5 + $0x768] sm:$0xff]  ;;  %v23073_v25 = vpack.c.bf16 %v7864_v40, %v7856_v47 }
 0x879   : > { %22982 = vmatpush1.bf16.msra.mxu0 %v22981_v8  ;;  %23046 = vmatpush1.bf16.msra.mxu1 %v23045_v9  ;;  %v7825_v8 = vld [vmem:[#allocation5 + $0x5b8] sm:$0xff]  ;;  %v23011_v60 = vpack.c.bf16 %v7879_v52, %v7871_v50 }
 0x87a   : > { %22984 = vmatprep.subr.bf16.mxu0 %v22983_v15  ;;  %23048 = vmatprep.subr.bf16.mxu1 %v23047_v28  ;;  %v7833_v9 = vld [vmem:[#allocation5 + $0x5f8] sm:$0xff]  ;;  %v7822_v15 = vld [vmem:[#allocation5 + $0x5a0] sm:$0xff] }
 0x87b   : > { %v7830_v28 = vld [vmem:[#allocation5 + $0x5e0] sm:$0xff]  ;;  %v23063_v16 = vpack.c.bf16 %v7833_v9, %v7825_v8  ;;  %v7887_v8 = vld [vmem:[#allocation5 + $0x7a8] sm:$0xff] }
 0x87c   : > { %v23001_v33 = vpack.c.bf16 %v7830_v28, %v7822_v15  ;;  %v7895_v9 = vld [vmem:[#allocation5 + $0x7e8] sm:$0xff]  ;;  %v23077_v28 = vpack.c.bf16 %v7880_v6, %v7872_v0  ;;  %v25227_v6 = vld [vmem:[%s27547_s9] sm:$0xf] }
 0x87d   : > { %22986 = vmatpush1.bf16.msra.mxu0 %v22985_v31  ;;  %23050 = vmatpush1.bf16.msra.mxu1 %v23049_v32  ;;  %v7841_v31 = vld [vmem:[#allocation5 + $0x638] sm:$0xff] }
 0x87e   : > { %22988 = vmatprep.subr.bf16.mxu0 %v22987_v22  ;;  %23052 = vmatprep.subr.bf16.mxu1 %v23051_v41  ;;  %v7849_v32 = vld [vmem:[#allocation5 + $0x678] sm:$0xff]  ;;  %v7838_v22 = vld [vmem:[#allocation5 + $0x620] sm:$0xff] }
 0x87f   : > { %v7846_v41 = vld [vmem:[#allocation5 + $0x660] sm:$0xff]  ;;  %v23067_v35 = vpack.c.bf16 %v7849_v32, %v7841_v31  ;;  %v23081_v32 = vpack.c.bf16 %v7896_v26, %v7888_v23 }
 0x880   : > { %v23005_v38 = vpack.c.bf16 %v7846_v41, %v7838_v22 }
 0x881   : > { %22990 = vmatpush1.bf16.msra.mxu0 %v22989_v24  ;;  %23054 = vmatpush1.bf16.msra.mxu1 %v23053_v30  ;;  %v7857_v24 = vld [vmem:[#allocation5 + $0x6b8] sm:$0xff] }
 0x882   : > { %22992 = vmatprep.subr.bf16.mxu0 %v22991_v42  ;;  %23056 = vmatprep.subr.bf16.mxu1 %v23055_v21  ;;  %v7865_v30 = vld [vmem:[#allocation5 + $0x6f8] sm:$0xff]  ;;  %v7854_v42 = vld [vmem:[#allocation5 + $0x6a0] sm:$0xff] }
 0x883   : > { %v7862_v21 = vld [vmem:[#allocation5 + $0x6e0] sm:$0xff]  ;;  %v23071_v44 = vpack.c.bf16 %v7865_v30, %v7857_v24  ;;  %v9000_v30 = vpop.permute.xlu0 %8999 }
 0x884   : > { %v23009_v55 = vpack.c.bf16 %v7862_v21, %v7854_v42 }
 0x885   : > { %22994 = vmatpush1.bf16.msra.mxu0 %v22993_v53  ;;  %23058 = vmatpush1.bf16.msra.mxu1 %v23057_v54  ;;  %v7873_v53 = vld [vmem:[#allocation5 + $0x738] sm:$0xff] }
 0x886   : > { %22996 = vmatprep.subr.bf16.mxu0 %v22995_v58  ;;  %23060 = vmatprep.subr.bf16.mxu1 %v23059_v59  ;;  %v7881_v54 = vld [vmem:[#allocation5 + $0x778] sm:$0xff]  ;;  %v7870_v58 = vld [vmem:[#allocation5 + $0x720] sm:$0xff] }
 0x887   : > { %v7878_v59 = vld [vmem:[#allocation5 + $0x760] sm:$0xff]  ;;  %v23075_v62 = vpack.c.bf16 %v7881_v54, %v7873_v53 }
 0x888   : > { %v23013_v15 = vpack.c.bf16 %v7878_v59, %v7870_v58  ;;  %v9007_v58 = vrot.slane %v9000_v30, 4 }
 0x889   : > { %22998 = vmatpush1.bf16.msra.mxu0 %v22997_v12  ;;  %23062 = vmatpush1.bf16.msra.mxu1 %v23061_v5  ;;  %v7889_v12 = vld [vmem:[#allocation5 + $0x7b8] sm:$0xff] }
 0x88a   : > { %23000 = vmatprep.subr.bf16.mxu0 %v22999_v17  ;;  %23064 = vmatprep.subr.bf16.mxu1 %v23063_v16  ;;  %v7897_v5 = vld [vmem:[#allocation5 + $0x7f8] sm:$0xff]  ;;  %v7886_v17 = vld [vmem:[#allocation5 + $0x7a0] sm:$0xff]  ;;  %v23015_v16 = vpack.c.bf16 %v7895_v9, %v7887_v8  ;;  %v9011_v8 = vsel %vm882_vm15, %v9007_v58, %v9000_v30 }
 0x88b   : > { %v23079_v18 = vpack.c.bf16 %v7897_v5, %v7889_v12  ;;  %v23017_v31 = vpack.c.bf16 %v7894_v20, %v7886_v17 }
 0x88d   : > { %23002 = vmatpush1.bf16.msra.mxu0 %v23001_v33  ;;  %23066 = vmatpush1.bf16.msra.mxu1 %v23065_v61 }
 0x88e   : > { %23004 = vmatprep.subr.bf16.mxu0 %v23003_v10  ;;  %23068 = vmatprep.subr.bf16.mxu1 %v23067_v35 }
 0x891   : > { %23006 = vmatpush1.bf16.msra.mxu0 %v23005_v38  ;;  %23070 = vmatpush1.bf16.msra.mxu1 %v23069_v39  ;;  %v25170_v38 = vpop.permute.xlu1 %9001  ;;  %v25174_v39 = vpop.permute.xlu0 %9003 }
 0x892   : > { %23008 = vmatprep.subr.bf16.mxu0 %v23007_v43  ;;  %23072 = vmatprep.subr.bf16.mxu1 %v23071_v44  ;;  %v9008_v17 = vrot.slane %v25170_v38, 4 }
 0x894   : > { %v9012_v26 = vsel %vm670_vm8, %v9007_v58, %v9008_v17 }
 0x895   : > { %23010 = vmatpush1.bf16.msra.mxu0 %v23009_v55  ;;  %23074 = vmatpush1.bf16.msra.mxu1 %v23073_v25  ;;  %v9382_v42 = vpop.permute.xlu0 %9381 }
 0x896   : > { %23012 = vmatprep.subr.bf16.mxu0 %v23011_v60  ;;  %23076 = vmatprep.subr.bf16.mxu1 %v23075_v62  ;;  %v9389_v9 = vrot.slane %v9382_v42, 4 }
 0x898   : > { %v9393_v12 = vsel %vm2159_vm14, %v9389_v9, %v9382_v42 }
 0x899   : > { %23014 = vmatpush1.bf16.msra.mxu0 %v23013_v15  ;;  %23078 = vmatpush1.bf16.msra.mxu1 %v23077_v28  ;;  %v25182_v43 = vpop.permute.xlu0 %9385 }
 0x89a   : > { %23016 = vmatprep.subr.bf16.mxu0 %v23015_v16  ;;  %23080 = vmatprep.subr.bf16.mxu1 %v23079_v18 }
 0x89d   : > { %23018 = vmatpush1.bf16.msra.mxu0 %v23017_v31  ;;  %23082 = vmatpush1.bf16.msra.mxu1 %v23081_v32 }
 0x8a0   : > { %8105 = vmatmul.mubr.f32.vlgmr.msra.gmra.mrb[4].mxu0 %v25139_v29  ;;  %8176 = vmatmul.mubr.f32.vlgmr.msra.gmra.mrb[8].mxu1 %v25139_v29 }
 0x8a1   : > { %8374 = vmatprep.mubr.f32.mxu0 %v23785_v1  ;;  %8516 = vmatprep.mubr.f32.mxu1 %v23785_v1 }
 0x933   : > { %v7964_v33 = vpop.f32.mrb[2].mxu0  ;;  %v8035_v61 = vpop.f32.mrb[6].mxu1 }
 0x934   : > { %v7966_v22 = vpop.f32.mrb[3].mxu0  ;;  %v8037_v41 = vpop.f32.mrb[7].mxu1 }
 0x935   : > { %v8190_v10 = vcombine.low %v7964_v33, %v7966_v22  ;;  %v8191_v35 = vcombine.low %v8035_v61, %v8037_v41  ;;  %v9013_v61 = vsel %vm882_vm15, %v9012_v26, %v25170_v38 }
 0x937   : > { %8196 = vrot.lane.b32.xlu1 %v8191_v35, %s27686_s18  ;;  %8194 = vrot.lane.b32.xlu0 %v8190_v10, %s27686_s18 }
 0x93b   : > { %10122 = vrot.lane.b32.xlu1 %v25103_v63, %s27652_s27 }
 0x973   : > { %v8106_v29 = vpop.f32.mrb[4].mxu0  ;;  %v8177_v36 = vpop.f32.mrb[8].mxu1 }
 0x974   : > { %v8108_v37 = vpop.f32.mrb[5].mxu0  ;;  %v8179_v19 = vpop.f32.mrb[9].mxu1 }
 0x975   : > { %v8192_v27 = vcombine.low %v8106_v29, %v8108_v37  ;;  %v8193_v24 = vcombine.low %v8177_v36, %v8179_v19 }
 0x977   : > { %8200 = vrot.lane.b32.xlu1 %v8193_v24, %s27686_s18  ;;  %8198 = vrot.lane.b32.xlu0 %v8192_v27, %s27686_s18 }
 0x97b   : > { %10500 = vrot.lane.b32.xlu1 %v25115_v11, %s27687_s22  ;;  %10120 = vrot.lane.b32.xlu0 %v25097_v57, %s27652_s27 }
 0x97f   : > { %11233 = vrot.lane.b32.xlu1 %v25089_v56, %s27688_s25  ;;  %10498 = vrot.lane.b32.xlu0 %v25109_v7, %s27687_s22  ;;  %v25176_v56 = vpop.permute.xlu1 %9005 }
 0x983   : > { %10502 = vrot.lane.b32.xlu0 %v25121_v13, %s27687_s22  ;;  %v25180_v21 = vpop.permute.xlu1 %9383 }
 0x984   : > { %v9390_v28 = vrot.slane %v25180_v21, 4 }
 0x986   : > { %v9394_v23 = vsel %vm670_vm8, %v9389_v9, %v9390_v28 }
 0x987   : > { %10504 = vrot.lane.b32.xlu0 %v25125_v14, %s27687_s22  ;;  %v25184_v44 = vpop.permute.xlu1 %9387  ;;  %v9395_v33 = vsel %vm2159_vm14, %v9394_v23, %v25180_v21 }
 0x98b   : > { %11235 = vrot.lane.b32.xlu0 %v25093_v2, %s27688_s25  ;;  %v25186_v2 = vpop.permute.xlu0 %10116  ;;  %v25188_v47 = vpop.permute.xlu1 %10118 }
 0x98c   : > { %v10124_v16 = vrot.slane %v25186_v2, 4  ;;  %v10125_v22 = vrot.slane %v25188_v47, 4 }
 0x98e   : > { %v10128_v20 = vsel %vm2369_vm0, %v10124_v16, %v25186_v2  ;;  %v10129_v29 = vsel %vm670_vm8, %v10124_v16, %v10125_v22 }
 0x98f   : > { %11237 = vrot.lane.b32.xlu0 %v25097_v57, %s27688_s25  ;;  %v10130_v37 = vsel %vm2369_vm0, %v10129_v29, %v25188_v47 }
 0x993   : > { %11239 = vrot.lane.b32.xlu0 %v25103_v63, %s27688_s25 }
 0x9a9   : > { %v8195_v57 = vpop.permute.xlu0 %8194  ;;  %v25190_v40 = vpop.permute.xlu1 %8196 }
 0x9aa   : > { %v8202_v63 = vrot.slane %v8195_v57, 4  ;;  %v8203_v52 = vrot.slane %v25190_v40, 4 }
 0x9ac   : > { %v8206_v53 = vsel %vm27692_vm11, %v8202_v63, %v8195_v57  ;;  %v8207_v54 = vsel %vm670_vm8, %v8202_v63, %v8203_v52  ;;  %vm27698_vm11 = vmmov %vm27697_vm12 }
 0x9ad   : > { %8220 = vst.msk [vmem:[#allocation4] sm:$0xff] %vm25193_vm3, %v8206_v53  ;;  %v25206_v55 = vsel %vm27693_vm7, %v8207_v54, %v25190_v40  ;;  %v25299_v24 = vpop.permute.xlu1 %10122  ;;  %vm27699_vm7 = vmmov %vm27698_vm11 }
 0x9ae   : > { %9778 = vrot.lane.b32.xlu0 %v25206_v55, %s27659_s23  ;;  %v8279_v62 = vmul.f32 %v25115_v11, %v25206_v55  ;;  %v25246_v5 = vcombine.high %v25206_v55, %v25206_v55  ;;  %v9406_v10 = vmul.f32 %v9395_v33, %v25206_v55  ;;  %v9024_v35 = vmul.f32 %v9013_v61, %v25206_v55 }
 0x9af   : > { %v25294_v19 = vmul.f32 %v10130_v37, %v25206_v55  ;;  %v10127_v29 = vrot.slane %v25299_v24, 4 }
 0x9b0   : > { %v9418_v36 = vcombine.high %v9406_v10, %v9406_v10  ;;  %v9036_v27 = vcombine.high %v9024_v35, %v9024_v35 }
 0x9b4   : > { %v25210_v25 = vld [vmem:[#allocation4] sm:$0xff] }
 0x9b5   : > { %8618 = vrot.lane.b32.xlu1 %v25210_v25, %s27674_s3  ;;  %v25216_v59 = vcombine.high %v25210_v25, %v25210_v25  ;;  %v8278_v60 = vmul.f32 %v25210_v25, %v25109_v7  ;;  %v8288_v7 = vcombine.high %v8279_v62, %v8279_v62  ;;  %v9023_v11 = vmul.f32 %v9011_v8, %v25210_v25 }
 0x9b6   : > { %v9405_v15 = vmul.f32 %v9393_v12, %v25210_v25  ;;  %v25270_v32 = vmul.f32 %v10128_v20, %v25210_v25  ;;  %v9392_v12 = vrot.slane %v25184_v44, 4  ;;  %v9391_v20 = vrot.slane %v25182_v43, 4 }
 0x9b7   : > { %v8287_v0 = vcombine.high %v8278_v60, %v8278_v60  ;;  %8620 = vrot.lane.b32.xlu0 %v25216_v59, %s27674_s3  ;;  %v9035_v18 = vcombine.high %v9023_v11, %v9023_v11 }
 0x9b8   : > { %v9417_v31 = vcombine.high %v9405_v15, %v9405_v15  ;;  %v10152_v41 = vcombine.high %v25270_v32, %v25270_v32 }
 0x9b9   : > { %9774 = vrot.lane.b32.xlu1 %v25210_v25, %s27659_s23  ;;  %22352 = vmatprep.subr.msk.mxu0 %vm670_vm8, %v8287_v0  ;;  %v9010_v0 = vrot.slane %v25176_v56, 4 }
 0x9ba   : > { %22353 = vmatpush1.msk.msra.mxu0 %vm670_vm8, %v8278_v60 }
 0x9bb   : > { %22355 = vmatprep.subr.msk.mxu0 %vm670_vm8, %v8288_v7  ;;  %22354 = vmatmul.mubr.msk.f32.vlgmr.msra.gmra.mrb[6].mxu0 %vm666_vm2, %v25227_v6 }
 0x9bc   : > { %22356 = vmatpush1.msk.msra.mxu0 %vm670_vm8, %v8279_v62  ;;  %9039 = vrot.lane.b32.xlu0 %v9023_v11, %s27675_s28 }
 0x9bd   : > { %8622 = vrot.lane.b32.xlu1 %v25206_v55, %s27674_s3  ;;  %8445 = vmatprep.mubr.f32.mxu0 %v23785_v1 }
 0x9bf   : > { %22357 = vmatmul.mubr.msk.f32.vlgmr.msra.gmra.mrb[8].mxu0 %vm666_vm2, %v25227_v6 }
 0x9c0   : > { %9780 = vrot.lane.b32.xlu0 %v25246_v5, %s27659_s23  ;;  %8587 = vmatprep.mubr.f32.mxu0 %v23785_v1 }
 0x9c1   : > { %9421 = vrot.lane.b32.xlu1 %v9405_v15, %s27658_s0 }
 0x9c4   : > { %9041 = vrot.lane.b32.xlu0 %v9035_v18, %s27675_s28 }
 0x9c5   : > { %9776 = vrot.lane.b32.xlu1 %v25216_v59, %s27659_s23 }
 0x9c8   : > { %9423 = vrot.lane.b32.xlu0 %v9417_v31, %s27658_s0 }
 0x9c9   : > { %8624 = vrot.lane.b32.xlu1 %v25246_v5, %s27674_s3 }
 0x9cc   : > { %10158 = vrot.lane.b32.xlu0 %v10152_v41, %s27660_s26 }
 0x9cd   : > { %9043 = vrot.lane.b32.xlu1 %v9024_v35, %s27675_s28 }
 0x9d0   : > { %9427 = vrot.lane.b32.xlu0 %v9418_v36, %s27658_s0 }
 0x9d1   : > { %9425 = vrot.lane.b32.xlu1 %v9406_v10, %s27658_s0 }
 0x9d5   : > { %10160 = vrot.lane.b32.xlu1 %v25294_v19, %s27660_s26 }
 0x9d9   : > { %9045 = vrot.lane.b32.xlu1 %v9036_v27, %s27675_s28 }
 0x9e9   : > { %v8199_v30 = vpop.permute.xlu0 %8198  ;;  %v8201_v42 = vpop.permute.xlu1 %8200 }
 0x9ea   : > { %v8204_v2 = vrot.slane %v8199_v30, 4  ;;  %v8205_v57 = vrot.slane %v8201_v42, 4 }
 0x9ec   : > { %v8209_v63 = vsel %vm670_vm8, %v8203_v52, %v8204_v2  ;;  %v8211_v53 = vsel %vm670_vm8, %v8204_v2, %v8205_v57  ;;  %8224 = vst.msk [vmem:[#allocation4 + $0x20] sm:$0xf] %vm624_vm10, %v8205_v57 }
 0x9ed   : > { %v25307_v54 = vsel %vm27694_vm9, %v8209_v63, %v8199_v30  ;;  %v25310_v58 = vsel %vm27695_vm4, %v8211_v53, %v8201_v42  ;;  %v10121_v38 = vpop.permute.xlu0 %10120  ;;  %v10153_v42 = vcombine.high %v25294_v19, %v25294_v19  ;;  %vm27701_vm9 = vcmask 539648  }
 0x9ee   : > { %8630 = vrot.lane.b32.xlu1 %v25310_v58, %s27674_s3  ;;  %v8280_v60 = vmul.f32 %v25121_v13, %v25307_v54  ;;  %v8281_v40 = vmul.f32 %v25125_v14, %v25310_v58  ;;  %v9009_v14 = vrot.slane %v25174_v39, 4  ;;  %v25350_v23 = vcombine.high %v25310_v58, %v25310_v58  ;;  %vm27702_vm4 = vmmov %vm27701_vm9 }
 0x9ef   : > { %v25364_v33 = vcombine.high %v25307_v54, %v25307_v54  ;;  %v10126_v10 = vrot.slane %v10121_v38, 4 }
 0x9f0   : > { %v8289_v52 = vcombine.high %v8280_v60, %v8280_v60  ;;  %v8290_v62 = vcombine.high %v8281_v40, %v8281_v40  ;;  %v9016_v18 = vsel %vm670_vm8, %v9009_v14, %v9010_v0 }
 0x9f1   : > { %v9017_v26 = vsel %vm882_vm15, %v9016_v18, %v25176_v56  ;;  %v10499_v41 = vpop.permute.xlu0 %10498  ;;  %v9398_v56 = vsel %vm670_vm8, %v9391_v20, %v9392_v12  ;;  %v10131_v37 = vsel %vm670_vm8, %v10125_v22, %v10126_v10  ;;  %v10133_v30 = vsel %vm670_vm8, %v10126_v10, %v10127_v29 }
 0x9f2   : > { %22358 = vmatprep.subr.msk.mxu1 %vm670_vm8, %v8289_v52  ;;  %22361 = vmatprep.subr.msk.mxu0 %vm670_vm8, %v8290_v62  ;;  %v9026_v31 = vmul.f32 %v9017_v26, %v25310_v58  ;;  %v9399_v35 = vsel %vm2159_vm14, %v9398_v56, %v25184_v44  ;;  %v10506_v27 = vrot.slane %v10499_v41, 4  ;;  %v10132_v44 = vsel %vm2369_vm0, %v10131_v37, %v10121_v38 }
 0x9f3   : > { %v8606_v8 = vld [vmem:[#allocation4 + $0x20] sm:$0xf]  ;;  %22359 = vmatpush1.msk.msra.mxu1 %vm670_vm8, %v8280_v60  ;;  %22362 = vmatpush1.msk.msra.mxu0 %vm670_vm8, %v8281_v40  ;;  %v10134_v47 = vsel %vm2369_vm0, %v10133_v30, %v25299_v24  ;;  %v25399_v57 = vmul.f32 %v10132_v44, %v25307_v54  ;;  %v10501_v60 = vpop.permute.xlu1 %10500 }
 0x9f4   : > { %8634 = vrot.lane.b32.xlu0 %v8606_v8, %s27674_s3  ;;  %v8959_v7 = vld [vmem:[#allocation4 + $0x20] sm:$0xf]  ;;  %22363 = vmatmul.mubr.msk.f32.vlgmr.msra.gmra.mrb[10].mxu0 %vm666_vm2, %v25227_v6  ;;  %v10510_v2 = vsel %vm27696_vm13, %v10506_v27, %v10499_v41  ;;  %v10143_v63 = vmul.f32 %v10134_v47, %v25310_v58  ;;  %v10507_v52 = vrot.slane %v10501_v60, 4  ;;  %vm27703_vm13 = vmmov %vm27702_vm4 }
 0x9f5   : > { %v9027_v11 = vmul.f32 %v9010_v0, %v8959_v7  ;;  %22360 = vmatmul.mubr.msk.f32.vlgmr.msra.gmra.mrb[10].mxu1 %vm666_vm2, %v25227_v6  ;;  %v9762_v13 = vld [vmem:[#allocation4 + $0x20] sm:$0xf]  ;;  %8727 = vmatprep.mubr.f32.mxu0 %v23785_v1  ;;  %v9014_v6 = vsel %vm670_vm8, %v9008_v17, %v9009_v14  ;;  %v10503_v36 = vpop.permute.xlu0 %10502 }
 0x9f6   : > { %8869 = vmatprep.mubr.f32.mxu1 %v23785_v1  ;;  %v9380_v9 = vld [vmem:[#allocation4 + $0x20] sm:$0xf]  ;;  %v9015_v16 = vsel %vm882_vm15, %v9014_v6, %v25174_v39  ;;  %v9396_v39 = vsel %vm670_vm8, %v9390_v28, %v9391_v20  ;;  %v9038_v28 = vcombine.high %v9026_v31, %v9026_v31  ;;  %v10508_v62 = vrot.slane %v10503_v36, 4 }
 0x9f7   : > { %9055 = vrot.lane.b32.xlu1 %v9027_v11, %s27675_s28  ;;  %v9409_v15 = vmul.f32 %v9392_v12, %v9380_v9  ;;  %v9025_v17 = vmul.f32 %v9015_v16, %v25307_v54  ;;  %v9397_v61 = vsel %vm2159_vm14, %v9396_v39, %v25182_v43  ;;  %v9408_v43 = vmul.f32 %v9399_v35, %v25310_v58  ;;  %v10115_v53 = vld [vmem:[#allocation4 + $0x20] sm:$0xf]  ;;  %v11234_v12 = vpop.permute.xlu1 %11233 }
 0x9f8   : > { %9790 = vrot.lane.b32.xlu0 %v9762_v13, %s27659_s23  ;;  %v25373_v21 = vmul.f32 %v9397_v61, %v25307_v54  ;;  %v10144_v19 = vmul.f32 %v10127_v29, %v10115_v53  ;;  %v10511_v8 = vsel %vm670_vm8, %v10506_v27, %v10507_v52  ;;  %v10513_v7 = vsel %vm670_vm8, %v10507_v52, %v10508_v62  ;;  %v10497_v41 = vld [vmem:[#allocation4 + $0x20] sm:$0xf]  ;;  %v25445_v29 = vld [vmem:[%s27547_s9 + $0x4] sm:$0xf] }
 0x9f9   : > { %v10505_v22 = vpop.permute.xlu0 %10504  ;;  %v9420_v0 = vcombine.high %v9408_v43, %v9408_v43  ;;  %v9037_v14 = vcombine.high %v9025_v17, %v9025_v17  ;;  %v10512_v9 = vsel %vm27697_vm12, %v10511_v8, %v10501_v60  ;;  %v10514_v6 = vsel %vm27698_vm11, %v10513_v7, %v10503_v36  ;;  %v10879_v30 = vld [vmem:[#allocation4 + $0x20] sm:$0xf]  ;;  %vm27705_vm12 = vmmov %vm27702_vm4 }
 0x9fa   : > { %v10509_v11 = vrot.slane %v10505_v22, 4  ;;  %v10523_v16 = vmul.f32 %v10512_v9, %v25206_v55  ;;  %v10524_v18 = vmul.f32 %v10514_v6, %v25307_v54  ;;  %v10155_v10 = vcombine.high %v10143_v63, %v10143_v63 }
 0x9fb   : > { %9782 = vrot.lane.b32.xlu1 %v25307_v54, %s27659_s23  ;;  %v9419_v37 = vcombine.high %v25373_v21, %v25373_v21  ;;  %vm27706_vm11 = vcmask 777216  }
 0x9fc   : > { %8626 = vrot.lane.b32.xlu0 %v25307_v54, %s27674_s3  ;;  %v10535_v26 = vcombine.high %v10523_v16, %v10523_v16  ;;  %v10526_v56 = vmul.f32 %v10509_v11, %v10497_v41 }
 0x9fd   : > { %v25406_v24 = vpop.permute.xlu0 %11235 }
 0x9fe   : > { %v11242_v44 = vrot.slane %v25406_v24, 4 }
 0x9ff   : > { %9786 = vrot.lane.b32.xlu1 %v25310_v58, %s27659_s23 }
 0xa00   : > { %9437 = vrot.lane.b32.xlu0 %v9409_v15, %s27658_s0  ;;  %v10515_v15 = vsel %vm670_vm8, %v10508_v62, %v10509_v11 }
 0xa01   : > { %v25413_v13 = vpop.permute.xlu0 %11237  ;;  %v10516_v38 = vsel %vm27699_vm7, %v10515_v15, %v10505_v22  ;;  %vm27707_vm7 = vmmov %vm27706_vm11 }
 0xa02   : > { %v10525_v39 = vmul.f32 %v10516_v38, %v25310_v58 }
 0xa03   : > { %8632 = vrot.lane.b32.xlu1 %v25350_v23, %s27674_s3 }
 0xa04   : > { %9047 = vrot.lane.b32.xlu0 %v9025_v17, %s27675_s28  ;;  %v10537_v27 = vcombine.high %v10525_v39, %v10525_v39 }
 0xa05   : > { %v25424_v20 = vpop.permute.xlu0 %11239 }
 0xa07   : > { %9051 = vrot.lane.b32.xlu1 %v9026_v31, %s27675_s28 }
 0xa08   : > { %8628 = vrot.lane.b32.xlu0 %v25364_v33, %s27674_s3 }
 0xa0b   : > { %9429 = vrot.lane.b32.xlu1 %v25373_v21, %s27658_s0 }
 0xa0c   : > { %9053 = vrot.lane.b32.xlu0 %v9038_v28, %s27675_s28 }
 0xa0f   : > { %9433 = vrot.lane.b32.xlu1 %v9408_v43, %s27658_s0 }
 0xa10   : > { %10156 = vrot.lane.b32.xlu0 %v25270_v32, %s27660_s26  ;;  %v10522_v32 = vmul.f32 %v10510_v2, %v25210_v25  ;;  %v10536_v2 = vcombine.high %v10524_v18, %v10524_v18 }
 0xa12   : > { %v10534_v40 = vcombine.high %v10522_v32, %v10522_v32 }
 0xa13   : > { %9788 = vrot.lane.b32.xlu1 %v25350_v23, %s27659_s23 }
 0xa14   : > { %10162 = vrot.lane.b32.xlu0 %v10153_v42, %s27660_s26  ;;  %v11241_v42 = vrot.slane %v11234_v12, 4 }
 0xa16   : > { %v11246_v22 = vsel %vm670_vm8, %v11241_v42, %v11242_v44 }
 0xa17   : > { %10164 = vrot.lane.b32.xlu1 %v25399_v57, %s27660_s26  ;;  %v11247_v53 = vsel %vm27702_vm4, %v11246_v22, %v25406_v24  ;;  %vm27709_vm4 = vmmov %vm27707_vm7 }
 0xa18   : > { %10168 = vrot.lane.b32.xlu0 %v10143_v63, %s27660_s26  ;;  %v11258_v52 = vmul.f32 %v11247_v53, %v25206_v55 }
 0xa1a   : > { %v11270_v8 = vcombine.high %v11258_v52, %v11258_v52 }
 0xa1b   : > { %10172 = vrot.lane.b32.xlu1 %v10144_v19, %s27660_s26  ;;  %v11244_v19 = vrot.slane %v25424_v20, 4 }
 0xa1c   : > { %10540 = vrot.lane.b32.xlu0 %v10534_v40, %s27687_s22 }
 0xa1f   : > { %9435 = vrot.lane.b32.xlu1 %v9420_v0, %s27658_s0 }
 0xa20   : > { %10538 = vrot.lane.b32.xlu0 %v10522_v32, %s27687_s22  ;;  %v25430_v31 = vpop.permute.xlu0 %9778  ;;  %v11243_v32 = vrot.slane %v25413_v13, 4 }
 0xa23   : > { %9784 = vrot.lane.b32.xlu1 %v25364_v33, %s27659_s23 }
 0xa24   : > { %9049 = vrot.lane.b32.xlu0 %v9037_v14, %s27675_s28 }
 0xa27   : > { %v8619_v17 = vpop.permute.xlu1 %8618  ;;  %10542 = vrot.lane.b32.xlu1 %v10523_v16, %s27687_s22 }
 0xa28   : > { %10546 = vrot.lane.b32.xlu0 %v10524_v18, %s27687_s22 }
 0xa29   : > { %v8621_v28 = vpop.permute.xlu0 %8620 }
 0xa2a   : > { %v8636_v36 = vsel %vm782_vm1, %v8619_v17, %v8621_v28 }
 0xa2b   : > { %v25432_v61 = vpop.permute.xlu1 %9774  ;;  %10544 = vrot.lane.b32.xlu1 %v10535_v26, %s27687_s22 }
 0xa2c   : > { %10550 = vrot.lane.b32.xlu0 %v10525_v39, %s27687_s22 }
 0xa2e   : > { %v25478_v63 = vpop.permute.xlu0 %9039 }
 0xa2f   : > { %v25436_v35 = vpop.permute.xlu1 %8622  ;;  %10554 = vrot.lane.b32.xlu1 %v10526_v56, %s27687_s22 }
 0xa30   : > { %10170 = vrot.lane.b32.xlu0 %v10155_v10, %s27660_s26  ;;  %v8637_v43 = vsel %vm782_vm1, %v8621_v28, %v25436_v35 }
 0xa31   : > { %22365 = vmatprep.subr.msk.mxu0 %vm670_vm8, %v8637_v43 }
 0xa32   : > { %22366 = vmatpush1.msk.msra.mxu0 %vm670_vm8, %v8636_v36  ;;  %v25492_v62 = vpop.permute.xlu0 %9780 }
 0xa33   : > { %9431 = vrot.lane.b32.xlu1 %v9419_v37, %s27658_s0  ;;  %22367 = vmatmul.mubr.msk.f32.vlgmr.msra.gmra.mrb[6].mxu0 %vm666_vm2, %v25445_v29  ;;  %v25465_v21 = vpop.permute.xlu1 %9421 }
 0xa34   : > { %10895 = vrot.lane.b32.xlu0 %v25206_v55, %s27700_s19  ;;  %8798 = vmatprep.mubr.f32.mxu0 %v23785_v1 }
 0xa36   : > { %v9042_v7 = vpop.permute.xlu0 %9041 }
 0xa37   : > { %10893 = vrot.lane.b32.xlu1 %v25216_v59, %s27700_s19  ;;  %v10154_v59 = vcombine.high %v25399_v57, %v25399_v57  ;;  %v25473_v47 = vpop.permute.xlu1 %9776  ;;  %v11248_v57 = vsel %vm670_vm8, %v11242_v44, %v11243_v32 }
 0xa38   : > { %10899 = vrot.lane.b32.xlu0 %v25307_v54, %s27700_s19  ;;  %v11249_v24 = vsel %vm27703_vm13, %v11248_v57, %v25413_v13  ;;  %vm27710_vm13 = vmmov %vm27709_vm4 }
 0xa3b   : > { %10891 = vrot.lane.b32.xlu1 %v25210_v25, %s27700_s19  ;;  %v8625_v40 = vpop.permute.xlu1 %8624 }
 0xa3c   : > { %10552 = vrot.lane.b32.xlu0 %v10537_v27, %s27687_s22  ;;  %v8638_v10 = vsel %vm782_vm1, %v25436_v35, %v8625_v40 }
 0xa3f   : > { %10897 = vrot.lane.b32.xlu1 %v25246_v5, %s27700_s19  ;;  %v11245_v5 = vsel %vm27701_vm9, %v11241_v42, %v11234_v12  ;;  %v9044_v55 = vpop.permute.xlu1 %9043  ;;  %v8225_v12 = vld [vmem:[%s27548_s10] sm:$0xf]  ;;  %vm27708_vm9 = vmmov %vm27707_vm7 }
 0xa40   : > { %10907 = vrot.lane.b32.xlu0 %v10879_v30, %s27700_s19  ;;  %v11257_v60 = vmul.f32 %v11245_v5, %v25210_v25  ;;  %v9058_v44 = vsel %vm899_vm6, %v9042_v7, %v9044_v55 }
 0xa42   : > { %v11269_v0 = vcombine.high %v11257_v60, %v11257_v60 }
 0xa43   : > { %10166 = vrot.lane.b32.xlu1 %v10154_v59, %s27660_s26  ;;  %v25508_v14 = vpop.permute.xlu1 %9425  ;;  %v9057_v59 = vsel %vm899_vm6, %v25478_v63, %v9042_v7 }
 0xa44   : > { %10548 = vrot.lane.b32.xlu0 %v10536_v2, %s27687_s22 }
 0xa47   : > { %10905 = vrot.lane.b32.xlu1 %v25350_v23, %s27700_s19  ;;  %v11250_v23 = vsel %vm670_vm8, %v11243_v32, %v11244_v19  ;;  %v25517_v6 = vpop.permute.xlu1 %10160  ;;  %v25562_v32 = vld [vmem:[%s27547_s9 + $0x8] sm:$0xf] }
 0xa48   : > { %10901 = vrot.lane.b32.xlu0 %v25364_v33, %s27700_s19  ;;  %v11259_v33 = vmul.f32 %v11249_v24, %v25307_v54  ;;  %v11251_v25 = vsel %vm27705_vm12, %v11250_v23, %v25424_v20  ;;  %v25510_v54 = vpop.permute.xlu0 %9423  ;;  %vm27711_vm12 = vmmov %vm27709_vm4 }
 0xa49   : > { %v11260_v13 = vmul.f32 %v11251_v25, %v25310_v58  ;;  %v9440_v23 = vsel %vm2176_vm5, %v25510_v54, %v25508_v14  ;;  %v25610_v25 = vld [vmem:[%s27547_s9 + $0xc] sm:$0xf] }
 0xa4a   : > { %v11271_v11 = vcombine.high %v11259_v33, %v11259_v33 }
 0xa4b   : > { %10903 = vrot.lane.b32.xlu1 %v25310_v58, %s27700_s19  ;;  %v11272_v9 = vcombine.high %v11260_v13, %v11260_v13  ;;  %v11232_v58 = vld [vmem:[#allocation4 + $0x20] sm:$0xf]  ;;  %v9046_v18 = vpop.permute.xlu1 %9045 }
 0xa4c   : > { %11277 = vrot.lane.b32.xlu0 %v11258_v52, %s27704_s21  ;;  %v25520_v15 = vpop.permute.xlu0 %10158  ;;  %v11261_v16 = vmul.f32 %v11244_v19, %v11232_v58  ;;  %v9059_v53 = vsel %vm899_vm6, %v9044_v55, %v9046_v18  ;;  %v9793_v58 = vsel %vm27706_vm11, %v25473_v47, %v25430_v31  ;;  %vm27712_vm11 = vcmask 769024  }
 0xa4f   : > { %11275 = vrot.lane.b32.xlu1 %v11269_v0, %s27704_s21 }
 0xa50   : > { %11279 = vrot.lane.b32.xlu0 %v11270_v8, %s27704_s21  ;;  %v25523_v20 = vpop.permute.xlu0 %9427 }
 0xa53   : > { %11273 = vrot.lane.b32.xlu1 %v11257_v60, %s27704_s21 }
 0xa54   : > { %11283 = vrot.lane.b32.xlu0 %v11271_v11, %s27704_s21 }
 0xa57   : > { %11281 = vrot.lane.b32.xlu1 %v11259_v33, %s27704_s21 }
 0xa58   : > { %11287 = vrot.lane.b32.xlu0 %v11272_v9, %s27704_s21 }
 0xa5b   : > { %11285 = vrot.lane.b32.xlu1 %v11260_v13, %s27704_s21 }
 0xa5c   : > { %8228 = vperm.xlu0 %23644, %v8225_v12  }
 0xa5f   : > { %11289 = vrot.lane.b32.xlu1 %v11261_v16, %s27704_s21  ;;  %v9792_v16 = vsel %vm27707_vm7, %v25432_v61, %v25473_v47  ;;  %vm27713_vm7 = vmmov %vm27712_vm11 }
 0xa60   : > { %v8631_v38 = vpop.permute.xlu1 %8630 }
 0xa66   : > { %v8635_v17 = vpop.permute.xlu0 %8634 }
 0xa69   : > { %v9056_v26 = vpop.permute.xlu1 %9055 }
 0xa6a   : > { %v25525_v39 = vpop.permute.xlu0 %9790 }
 0xa6d   : > { %v25527_v41 = vpop.permute.xlu1 %9782 }
 0xa6e   : > { %v8627_v56 = vpop.permute.xlu0 %8626 }
 0xa6f   : > { %v8639_v28 = vsel %vm782_vm1, %v8625_v40, %v8627_v56 }
 0xa70   : > { %22368 = vmatprep.subr.msk.mxu0 %vm670_vm8, %v8639_v28 }
 0xa71   : > { %22369 = vmatpush1.msk.msra.mxu0 %vm670_vm8, %v8638_v10  ;;  %v25534_v43 = vpop.permute.xlu1 %9786 }
 0xa72   : > { %v25536_v36 = vpop.permute.xlu0 %9437  ;;  %22370 = vmatmul.mubr.msk.f32.vlgmr.msra.gmra.mrb[8].mxu0 %vm666_vm2, %v25445_v29 }
 0xa73   : > { %8940 = vmatprep.mubr.f32.mxu0 %v23785_v1 }
 0xa75   : > { %v8633_v37 = vpop.permute.xlu1 %8632 }
 0xa76   : > { %v25541_v27 = vpop.permute.xlu0 %9047  ;;  %v8642_v30 = vsel %vm782_vm1, %v8631_v38, %v8633_v37  ;;  %v8643_v35 = vsel %vm782_vm1, %v8633_v37, %v8635_v17  ;;  %v25654_v17 = vld [vmem:[%s27547_s9 + $0x10] sm:$0xf] }
 0xa77   : > { %22374 = vmatprep.subr.msk.mxu0 %vm670_vm8, %v8643_v35  ;;  %v9060_v22 = vsel %vm899_vm6, %v9046_v18, %v25541_v27 }
 0xa78   : > { %22375 = vmatpush1.msk.msra.mxu0 %vm670_vm8, %v8642_v30 }
 0xa79   : > { %22376 = vmatmul.mubr.msk.f32.vlgmr.msra.gmra.mrb[10].mxu0 %vm666_vm2, %v25445_v29  ;;  %22379 = vmatprep.subr.msk.mxu0 %vm670_vm8, %v9058_v44  ;;  %v25553_v42 = vpop.permute.xlu1 %9051  ;;  %v22417_v44 = vld [vmem:[%s27547_s9 + $0x14] sm:$0xf] }
 0xa7a   : > { %v8629_v2 = vpop.permute.xlu0 %8628  ;;  %22380 = vmatpush1.msk.msra.mxu0 %vm670_vm8, %v9057_v59  ;;  %9148 = vmatprep.mubr.f32.mxu0 %v23785_v1 }
 0xa7b   : > { %v8640_v63 = vsel %vm782_vm1, %v8627_v56, %v8629_v2  ;;  %v8641_v5 = vsel %vm782_vm1, %v8629_v2, %v8631_v38  ;;  %22382 = vmatprep.subr.msk.mxu0 %vm670_vm8, %v9060_v22  ;;  %v9795_v38 = vsel %vm27708_vm9, %v25492_v62, %v25527_v41  ;;  %vm27714_vm9 = vmmov %vm27713_vm7 }
 0xa7c   : > { %22371 = vmatprep.subr.msk.mxu1 %vm670_vm8, %v8641_v5 }
 0xa7d   : > { %22372 = vmatpush1.msk.msra.mxu1 %vm670_vm8, %v8640_v63  ;;  %22381 = vmatmul.mubr.msk.f32.vlgmr.msra.gmra.mrb[6].mxu0 %vm666_vm2, %v25562_v32  ;;  %v25572_v57 = vpop.permute.xlu1 %9429 }
 0xa7e   : > { %v9054_v19 = vpop.permute.xlu0 %9053  ;;  %22383 = vmatpush1.msk.msra.mxu0 %vm670_vm8, %v9059_v53  ;;  %9219 = vmatprep.mubr.f32.mxu0 %v23785_v1  ;;  %v9442_v33 = vsel %vm2176_vm5, %v25523_v20, %v25572_v57 }
 0xa7f   : > { %v9063_v60 = vsel %vm899_vm6, %v25553_v42, %v9054_v19  ;;  %v9064_v40 = vsel %vm899_vm6, %v9054_v19, %v9056_v26  ;;  %22373 = vmatmul.mubr.msk.f32.vlgmr.msra.gmra.mrb[10].mxu1 %vm666_vm2, %v25445_v29  ;;  %v9439_v29 = vsel %vm2176_vm5, %v25465_v21, %v25510_v54  ;;  %v9441_v21 = vsel %vm2176_vm5, %v25508_v14, %v25523_v20 }
 0xa80   : > { %22388 = vmatprep.subr.msk.mxu0 %vm670_vm8, %v9064_v40  ;;  %9290 = vmatprep.mubr.f32.mxu1 %v23785_v1  ;;  %v9794_v26 = vsel %vm27709_vm4, %v25430_v31, %v25492_v62  ;;  %vm27715_vm4 = vmmov %vm27713_vm7 }
 0xa81   : > { %22384 = vmatmul.mubr.msk.f32.vlgmr.msra.gmra.mrb[8].mxu0 %vm666_vm2, %v25562_v32  ;;  %v25585_v52 = vpop.permute.xlu1 %9433 }
 0xa82   : > { %v25587_v24 = vpop.permute.xlu0 %10156  ;;  %22389 = vmatpush1.msk.msra.mxu0 %vm670_vm8, %v9063_v60  ;;  %9361 = vmatprep.mubr.f32.mxu0 %v23785_v1 }
 0xa83   : > { %22392 = vmatprep.subr.msk.mxu0 %vm670_vm8, %v9440_v23  ;;  %v10174_v37 = vsel %vm27713_vm7, %v25587_v24, %v25520_v15  ;;  %vm27718_vm7 = vmmov %vm27715_vm4 }
 0xa85   : > { %22390 = vmatmul.mubr.msk.f32.vlgmr.msra.gmra.mrb[10].mxu0 %vm666_vm2, %v25562_v32  ;;  %v9789_v0 = vpop.permute.xlu1 %9788 }
 0xa86   : > { %v25600_v8 = vpop.permute.xlu0 %10162  ;;  %22393 = vmatpush1.msk.msra.mxu0 %vm670_vm8, %v9439_v29  ;;  %9530 = vmatprep.mubr.f32.mxu0 %v23785_v1  ;;  %v9799_v10 = vsel %vm27710_vm13, %v9789_v0, %v25525_v39  ;;  %v9798_v31 = vsel %vm27711_vm12, %v25534_v43, %v9789_v0  ;;  %v10175_v39 = vsel %vm27712_vm11, %v25520_v15, %v25517_v6  ;;  %vm27716_vm13 = vmmov %vm27715_vm4 }
 0xa87   : > { %22395 = vmatprep.subr.msk.mxu0 %vm670_vm8, %v9442_v33  ;;  %v10176_v59 = vsel %vm27716_vm13, %v25517_v6, %v25600_v8  ;;  %vm27717_vm11 = vmmov %vm27711_vm12 }
 0xa89   : > { %22394 = vmatmul.mubr.msk.f32.vlgmr.msra.gmra.mrb[6].mxu0 %vm666_vm2, %v25610_v25  ;;  %v25618_v55 = vpop.permute.xlu1 %10164 }
 0xa8a   : > { %v25620_v7 = vpop.permute.xlu0 %10168  ;;  %22396 = vmatpush1.msk.msra.mxu0 %vm670_vm8, %v9441_v21  ;;  %9601 = vmatprep.mubr.f32.mxu0 %v23785_v1  ;;  %v10177_v35 = vsel %vm27714_vm9, %v25600_v8, %v25618_v55  ;;  %vm27719_vm9 = vcmask 523264  }
 0xa8d   : > { %v10173_v11 = vpop.permute.xlu1 %10172  ;;  %22397 = vmatmul.mubr.msk.f32.vlgmr.msra.gmra.mrb[8].mxu0 %vm666_vm2, %v25610_v25 }
 0xa8e   : > { %v25626_v13 = vpop.permute.xlu0 %10540  ;;  %9743 = vmatprep.mubr.f32.mxu0 %v23785_v1 }
 0xa91   : > { %v9436_v14 = vpop.permute.xlu1 %9435 }
 0xa92   : > { %v25629_v9 = vpop.permute.xlu0 %10538  ;;  %v9445_v54 = vsel %vm2176_vm5, %v25585_v52, %v9436_v14  ;;  %v9446_v12 = vsel %vm2176_vm5, %v9436_v14, %v25536_v36 }
 0xa93   : > { %22401 = vmatprep.subr.msk.mxu0 %vm670_vm8, %v9446_v12 }
 0xa94   : > { %22402 = vmatpush1.msk.msra.mxu0 %vm670_vm8, %v9445_v54 }
 0xa95   : > { %22403 = vmatmul.mubr.msk.f32.vlgmr.msra.gmra.mrb[10].mxu0 %vm666_vm2, %v25610_v25  ;;  %22405 = vmatprep.subr.msk.mxu0 %vm670_vm8, %v9793_v58  ;;  %v9785_v18 = vpop.permute.xlu1 %9784  ;;  %v22443_v58 = vld [vmem:[%s27547_s9 + $0x1c] sm:$0xf] }
 0xa96   : > { %v9050_v20 = vpop.permute.xlu0 %9049  ;;  %22406 = vmatpush1.msk.msra.mxu0 %vm670_vm8, %v9792_v16  ;;  %9883 = vmatprep.mubr.f32.mxu0 %v23785_v1  ;;  %v9797_v6 = vsel %vm27711_vm12, %v9785_v18, %v25534_v43  ;;  %v9796_v63 = vsel %vm27717_vm11, %v25527_v41, %v9785_v18 }
 0xa97   : > { %v9061_v61 = vsel %vm899_vm6, %v25541_v27, %v9050_v20  ;;  %v9062_v47 = vsel %vm899_vm6, %v9050_v20, %v25553_v42  ;;  %22408 = vmatprep.subr.msk.mxu0 %vm670_vm8, %v9795_v38 }
 0xa98   : > { %22385 = vmatprep.subr.msk.mxu1 %vm670_vm8, %v9062_v47 }
 0xa99   : > { %22386 = vmatpush1.msk.msra.mxu1 %vm670_vm8, %v9061_v61  ;;  %22407 = vmatmul.mubr.msk.f32.vlgmr.msra.gmra.mrb[6].mxu0 %vm666_vm2, %v25654_v17  ;;  %v25668_v56 = vpop.permute.xlu1 %10542 }
 0xa9a   : > { %v25670_v28 = vpop.permute.xlu0 %10546  ;;  %22409 = vmatpush1.msk.msra.mxu0 %vm670_vm8, %v9794_v26  ;;  %9954 = vmatprep.mubr.f32.mxu0 %v23785_v1  ;;  %v10557_v41 = vsel %vm27719_vm9, %v25626_v13, %v25668_v56 }
 0xa9b   : > { %22414 = vmatprep.subr.msk.mxu0 %vm670_vm8, %v9799_v10  ;;  %22387 = vmatmul.mubr.msk.f32.vlgmr.msra.gmra.mrb[10].mxu1 %vm666_vm2, %v25562_v32 }
 0xa9c   : > { %9672 = vmatprep.mubr.f32.mxu1 %v23785_v1 }
 0xa9d   : > { %22410 = vmatmul.mubr.msk.f32.vlgmr.msra.gmra.mrb[8].mxu0 %vm666_vm2, %v25654_v17  ;;  %v10545_v62 = vpop.permute.xlu1 %10544 }
 0xa9e   : > { %v25684_v36 = vpop.permute.xlu0 %10550  ;;  %22415 = vmatpush1.msk.msra.mxu0 %vm670_vm8, %v9798_v31  ;;  %10096 = vmatprep.mubr.f32.mxu0 %v23785_v1 }
 0xa9f   : > { %22418 = vmatprep.subr.msk.mxu0 %vm670_vm8, %v10175_v39 }
 0xaa1   : > { %22416 = vmatmul.mubr.msk.f32.vlgmr.msra.gmra.mrb[10].mxu0 %vm666_vm2, %v25654_v17  ;;  %v10555_v27 = vpop.permute.xlu1 %10554 }
 0xaa2   : > { %v10171_v30 = vpop.permute.xlu0 %10170  ;;  %22419 = vmatpush1.msk.msra.mxu0 %vm670_vm8, %v10174_v37  ;;  %10265 = vmatprep.mubr.f32.mxu0 %v23785_v1 }
 0xaa3   : > { %22421 = vmatprep.subr.msk.mxu0 %vm670_vm8, %v10177_v35  ;;  %v10181_v15 = vsel %vm27715_vm4, %v10171_v30, %v10173_v11  ;;  %v10180_v53 = vsel %vm27718_vm7, %v25620_v7, %v10171_v30  ;;  %vm27720_vm4 = vmmov %vm27719_vm9  ;;  %vm27725_vm9 = vcmask 769024  }
 0xaa4   : > { %v10556_v19 = vsel %vm27720_vm4, %v25629_v9, %v25626_v13  ;;  %vm27721_vm13 = vmmov %vm27720_vm4 }
 0xaa5   : > { %22420 = vmatmul.mubr.msk.f32.vlgmr.msra.gmra.mrb[6].mxu0 %vm666_vm2, %v22417_v44  ;;  %v9432_v42 = vpop.permute.xlu1 %9431  ;;  %v10559_v40 = vsel %vm27721_vm13, %v10545_v62, %v25670_v28  ;;  %vm27722_vm12 = vmmov %vm27720_vm4  ;;  %vm27727_vm13 = vcmask 515072  }
 0xaa6   : > { %v25711_v2 = vpop.permute.xlu0 %10895  ;;  %22422 = vmatpush1.msk.msra.mxu0 %vm670_vm8, %v10176_v59  ;;  %v9443_v22 = vsel %vm2176_vm5, %v25572_v57, %v9432_v42  ;;  %v9444_v32 = vsel %vm2176_vm5, %v9432_v42, %v25585_v52  ;;  %10336 = vmatprep.mubr.f32.mxu0 %v23785_v1  ;;  %v22430_v52 = vld [vmem:[%s27547_s9 + $0x18] sm:$0xf]  ;;  %vm27723_vm11 = vmmov %vm27720_vm4 }
 0xaa7   : > { %22427 = vmatprep.subr.msk.mxu0 %vm670_vm8, %v10181_v15  ;;  %22398 = vmatprep.subr.msk.mxu1 %vm670_vm8, %v9444_v32  ;;  %v10558_v29 = vsel %vm27723_vm11, %v25668_v56, %v10545_v62  ;;  %vm27724_vm7 = vmmov %vm27720_vm4  ;;  %v22456_v62 = vld [vmem:[%s27547_s9 + $0x20] sm:$0xf] }
 0xaa8   : > { %22399 = vmatpush1.msk.msra.mxu1 %vm670_vm8, %v9443_v22  ;;  %vm27726_vm4 = vmmov %vm27725_vm9 }
 0xaa9   : > { %22400 = vmatmul.mubr.msk.f32.vlgmr.msra.gmra.mrb[10].mxu1 %vm666_vm2, %v25610_v25  ;;  %22411 = vmatprep.subr.msk.mxu1 %vm670_vm8, %v9797_v6  ;;  %v10894_v5 = vpop.permute.xlu1 %10893  ;;  %vm27729_vm11 = vmmov %vm27724_vm7 }
 0xaaa   : > { %v25731_v57 = vpop.permute.xlu0 %10899  ;;  %22423 = vmatmul.mubr.msk.f32.vlgmr.msra.gmra.mrb[8].mxu0 %vm666_vm2, %v22417_v44  ;;  %22412 = vmatpush1.msk.msra.mxu1 %vm670_vm8, %v9796_v63  ;;  %v10910_v13 = vsel %vm27727_vm13, %v10894_v5, %v25711_v2 }
 0xaab   : > { %22428 = vmatpush1.msk.msra.mxu0 %vm670_vm8, %v10180_v53  ;;  %10478 = vmatprep.mubr.f32.mxu0 %v23785_v1 }
 0xaac   : > { %22431 = vmatprep.subr.msk.mxu0 %vm670_vm8, %v10557_v41  ;;  %10025 = vmatprep.mubr.f32.mxu1 %v23785_v1 }
 0xaad   : > { %v10892_v43 = vpop.permute.xlu1 %10891 }
 0xaae   : > { %v10553_v60 = vpop.permute.xlu0 %10552  ;;  %22429 = vmatmul.mubr.msk.f32.vlgmr.msra.gmra.mrb[10].mxu0 %vm666_vm2, %v22417_v44 }
 0xaaf   : > { %22432 = vmatpush1.msk.msra.mxu0 %vm670_vm8, %v10556_v19  ;;  %10647 = vmatprep.mubr.f32.mxu0 %v23785_v1  ;;  %v10563_v23 = vsel %vm27722_vm12, %v10553_v60, %v10555_v27  ;;  %v10562_v33 = vsel %vm27724_vm7, %v25684_v36, %v10553_v60  ;;  %vm27728_vm12 = vmmov %vm27724_vm7 }
 0xab0   : > { %22434 = vmatprep.subr.msk.mxu0 %vm670_vm8, %v10559_v40  ;;  %vm27730_vm7 = vmmov %vm27727_vm13 }
 0xab1   : > { %22413 = vmatmul.mubr.msk.f32.vlgmr.msra.gmra.mrb[10].mxu1 %vm666_vm2, %v25654_v17  ;;  %v10898_v24 = vpop.permute.xlu1 %10897 }
 0xab2   : > { %v10908_v0 = vpop.permute.xlu0 %10907  ;;  %22433 = vmatmul.mubr.msk.f32.vlgmr.msra.gmra.mrb[6].mxu0 %vm666_vm2, %v22430_v52  ;;  %10407 = vmatprep.mubr.f32.mxu1 %v23785_v1 }
 0xab3   : > { %22435 = vmatpush1.msk.msra.mxu0 %vm670_vm8, %v10558_v29  ;;  %10718 = vmatprep.mubr.f32.mxu0 %v23785_v1 }
 0xab4   : > { %22440 = vmatprep.subr.msk.mxu0 %vm670_vm8, %v10563_v23 }
 0xab5   : > { %v10167_v8 = vpop.permute.xlu1 %10166 }
 0xab6   : > { %v10549_v25 = vpop.permute.xlu0 %10548  ;;  %22436 = vmatmul.mubr.msk.f32.vlgmr.msra.gmra.mrb[8].mxu0 %vm666_vm2, %v22430_v52  ;;  %v10178_v21 = vsel %vm27725_vm9, %v25618_v55, %v10167_v8  ;;  %v10179_v11 = vsel %vm27726_vm4, %v10167_v8, %v25620_v7  ;;  %v10909_v7 = vsel %vm27730_vm7, %v10892_v43, %v10894_v5  ;;  %vm27731_vm9 = vmmov %vm27730_vm7  ;;  %v22494_v8 = vld [vmem:[%s27555_s17 + $0x2] ss:$4 sm:$0xff] }
 0xab7   : > { %22441 = vmatpush1.msk.msra.mxu0 %vm670_vm8, %v10562_v33  ;;  %22424 = vmatprep.subr.msk.mxu1 %vm670_vm8, %v10179_v11  ;;  %v10561_v14 = vsel %vm27728_vm12, %v10549_v25, %v25684_v36  ;;  %v10560_v9 = vsel %vm27729_vm11, %v25670_v28, %v10549_v25  ;;  %v10912_v12 = vsel %vm27731_vm9, %v10898_v24, %v25731_v57  ;;  %vm27732_vm4 = vmmov %vm27730_vm7  ;;  %vm27737_vm9 = vcmask 506880  }
 0xab8   : > { %22444 = vmatprep.subr.msk.mxu0 %vm670_vm8, %v10910_v13  ;;  %22425 = vmatpush1.msk.msra.mxu1 %vm670_vm8, %v10178_v21  ;;  %v10911_v18 = vsel %vm27732_vm4, %v25711_v2, %v10898_v24  ;;  %vm27733_vm13 = vmmov %vm27732_vm4 }
 0xab9   : > { %10860 = vmatprep.mubr.f32.mxu0 %v23785_v1  ;;  %22426 = vmatmul.mubr.msk.f32.vlgmr.msra.gmra.mrb[10].mxu1 %vm666_vm2, %v22417_v44  ;;  %v10906_v55 = vpop.permute.xlu1 %10905  ;;  %vm27734_vm12 = vmmov %vm27732_vm4 }
 0xaba   : > { %v10902_v54 = vpop.permute.xlu0 %10901  ;;  %22437 = vmatprep.subr.msk.mxu1 %vm670_vm8, %v10561_v14  ;;  %22442 = vmatmul.mubr.msk.f32.vlgmr.msra.gmra.mrb[10].mxu0 %vm666_vm2, %v22430_v52  ;;  %v10916_v17 = vsel %vm27734_vm12, %v10906_v55, %v10908_v0  ;;  %vm27735_vm11 = vmmov %vm27732_vm4  ;;  %v12399_v14 = vrot.slane %v22494_v8, %v24066_v3 }
 0xabb   : > { %22445 = vmatpush1.msk.msra.mxu0 %vm670_vm8, %v10909_v7  ;;  %22438 = vmatpush1.msk.msra.mxu1 %vm670_vm8, %v10560_v9  ;;  %v10913_v61 = vsel %vm27735_vm11, %v25731_v57, %v10902_v54  ;;  %vm27736_vm7 = vmmov %vm27732_vm4  ;;  %v12403_v9 = vrot.slane %v22494_v8, %v24069_v4 }
 0xabc   : > { %22447 = vmatprep.subr.msk.mxu0 %vm670_vm8, %v10912_v12  ;;  %11000 = vmatprep.mubr.f32.mxu0 %v23785_v1  ;;  %vm27738_vm4 = vmmov %vm27737_vm9 }
 0xabd   : > { %v10904_v16 = vpop.permute.xlu1 %10903  ;;  %10789 = vmatprep.mubr.f32.mxu1 %v23785_v1  ;;  %vm27740_vm12 = vmmov %vm27738_vm4 }
 0xabe   : > { %22446 = vmatmul.mubr.msk.f32.vlgmr.msra.gmra.mrb[6].mxu0 %vm666_vm2, %v22443_v58  ;;  %v10914_v20 = vsel %vm27733_vm13, %v10902_v54, %v10904_v16  ;;  %v11278_v38 = vpop.permute.xlu0 %11277  ;;  %v10915_v26 = vsel %vm27736_vm7, %v10904_v16, %v10906_v55  ;;  %vm27739_vm13 = vmmov %vm27738_vm4  ;;  %v12415_v16 = vrot.slane %v22494_v8, %v25077_v51 }
 0xabf   : > { %22448 = vmatpush1.msk.msra.mxu0 %vm670_vm8, %v10911_v18  ;;  %22450 = vmatprep.subr.msk.mxu1 %vm670_vm8, %v10914_v20  ;;  %vm27741_vm11 = vmmov %vm27738_vm4  ;;  %v12419_v18 = vrot.slane %v22494_v8, %v25080_v45 }
 0xac0   : > { %22453 = vmatprep.subr.msk.mxu0 %vm670_vm8, %v10916_v17  ;;  %11071 = vmatprep.mubr.f32.mxu0 %v23785_v1  ;;  %vm27742_vm7 = vmmov %vm27738_vm4  ;;  %v12407_v17 = vrot.slane %v22494_v8, %v25060_v34 }
 0xac1   : > { %22439 = vmatmul.mubr.msk.f32.vlgmr.msra.gmra.mrb[10].mxu1 %vm666_vm2, %v22430_v52  ;;  %v11276_v47 = vpop.permute.xlu1 %11275 }
 0xac2   : > { %22449 = vmatmul.mubr.msk.f32.vlgmr.msra.gmra.mrb[8].mxu0 %vm666_vm2, %v22443_v58  ;;  %22451 = vmatpush1.msk.msra.mxu1 %vm670_vm8, %v10913_v61  ;;  %v11292_v56 = vsel %vm27737_vm9, %v11276_v47, %v11278_v38  ;;  %v11280_v28 = vpop.permute.xlu0 %11279  ;;  %vm27743_vm9 = vmmov %vm27738_vm4  ;;  %v12411_v61 = vrot.slane %v22494_v8, %v25063_v46 }
 0xac3   : > { %22454 = vmatpush1.msk.msra.mxu0 %vm670_vm8, %v10915_v26  ;;  %11213 = vmatprep.mubr.f32.mxu0 %v23785_v1  ;;  %v11293_v37 = vsel %vm27740_vm12, %v11278_v38, %v11280_v28  ;;  %v25891_v38 = vcombine.low %v12399_v14, %v12403_v9 }
 0xac4   : > { %22457 = vmatprep.subr.msk.mxu0 %vm670_vm8, %v11292_v56  ;;  %11142 = vmatprep.mubr.f32.mxu1 %v23785_v1  ;;  %v25902_v56 = vcombine.low %v12415_v16, %v12419_v18 }
 0xac5   : > { %v11274_v10 = vpop.permute.xlu1 %11273 }
 0xac6   : > { %22455 = vmatmul.mubr.msk.f32.vlgmr.msra.gmra.mrb[10].mxu0 %vm666_vm2, %v22443_v58  ;;  %v11291_v31 = vsel %vm27738_vm4, %v11274_v10, %v11276_v47  ;;  %v11284_v27 = vpop.permute.xlu0 %11283  ;;  %v11670_v47 = vld [vmem:[%s27555_s17] ss:$4 sm:$0xff] }
 0xac7   : > { %22458 = vmatpush1.msk.msra.mxu0 %vm670_vm8, %v11291_v31  ;;  %11382 = vmatprep.mubr.f32.mxu0 %v23785_v1  ;;  %v11679_v10 = vrot.slane %v11670_v47, %v24069_v4  ;;  %v25909_v31 = vcombine.low %v12407_v17, %v12411_v61 }
 0xac9   : > { %22452 = vmatmul.mubr.msk.f32.vlgmr.msra.gmra.mrb[10].mxu1 %vm666_vm2, %v22443_v58  ;;  %v11282_v36 = vpop.permute.xlu1 %11281 }
 0xaca   : > { %22459 = vmatmul.mubr.msk.f32.vlgmr.msra.gmra.mrb[6].mxu0 %vm666_vm2, %v22456_v62  ;;  %v11294_v39 = vsel %vm27739_vm13, %v11280_v28, %v11282_v36  ;;  %11524 = vmatprep.mubr.f32.mxu1 %v23785_v1  ;;  %v11295_v44 = vsel %vm27742_vm7, %v11282_v36, %v11284_v27  ;;  %v11288_v15 = vpop.permute.xlu0 %11287  ;;  %v11675_v28 = vrot.slane %v11670_v47, %v24066_v3  ;;  %vm27744_vm13 = vcmask 269312  }
 0xacb   : > { %22460 = vmatprep.subr.msk.mxu0 %vm670_vm8, %v11294_v39  ;;  %11453 = vmatprep.mubr.f32.mxu0 %v23785_v1  ;;  %v12427_v36 = vrot.slane %v22494_v8, %v25072_v49  ;;  %vm27745_vm12 = vmmov %vm27744_vm13 }
 0xacc   : > { %22461 = vmatpush1.msk.msra.mxu0 %vm670_vm8, %v11293_v37  ;;  %v11704_v39 = vcombine.low %v11675_v28, %v11679_v10  ;;  %v11691_v37 = vrot.slane %v11670_v47, %v25077_v51 }
 0xacd   : > { %v11286_v30 = vpop.permute.xlu1 %11285 }
 0xace   : > { %22462 = vmatmul.mubr.msk.f32.vlgmr.msra.gmra.mrb[8].mxu0 %vm666_vm2, %v22456_v62  ;;  %v11296_v35 = vsel %vm27741_vm11, %v11284_v27, %v11286_v30  ;;  %v11297_v2 = vsel %vm27738_vm4, %v11286_v30, %v11288_v15  ;;  %v11695_v27 = vrot.slane %v11670_v47, %v25080_v45  ;;  %vm27746_vm11 = vmmov %vm27745_vm12 }
 0xacf   : > { %22463 = vmatprep.subr.msk.mxu1 %vm670_vm8, %v11296_v35  ;;  %11595 = vmatprep.mubr.f32.mxu0 %v23785_v1  ;;  %v11683_v35 = vrot.slane %v11670_v47, %v25060_v34  ;;  %vm27747_vm7 = vmmov %vm27746_vm11 }
 0xad0   : > { %22464 = vmatpush1.msk.msra.mxu1 %vm670_vm8, %v11295_v44  ;;  %v11687_v44 = vrot.slane %v11670_v47, %v25063_v46 }
 0xad1   : > { %22465 = vmatmul.mubr.msk.f32.vlgmr.msra.gmra.mrb[10].mxu1 %vm666_vm2, %v22456_v62  ;;  %v11290_v59 = vpop.permute.xlu1 %11289 }
 0xad2   : > { %v11298_v42 = vsel %vm27743_vm9, %v11288_v15, %v11290_v59  ;;  %11808 = vmatprep.mubr.f32.mxu1 %v23785_v1  ;;  %v11706_v15 = vcombine.low %v11691_v37, %v11695_v27  ;;  %v11705_v59 = vcombine.low %v11683_v35, %v11687_v44  ;;  %vm27748_vm9 = vcmask 523264  }
 0xad3   : > { %22466 = vmatprep.subr.msk.mxu0 %vm670_vm8, %v11298_v42  ;;  %v11699_v42 = vrot.slane %v11670_v47, %v25069_v48  ;;  %vm27749_vm4 = vmmov %vm27748_vm9 }
 0xad4   : > { %22467 = vmatpush1.msk.msra.mxu0 %vm670_vm8, %v11297_v2  ;;  %v11703_v2 = vrot.slane %v11670_v47, %v25072_v49 }
 0xad5   : > { %22468 = vmatmul.mubr.msk.f32.vlgmr.msra.gmra.mrb[10].mxu0 %vm666_vm2, %v22456_v62  ;;  %v12423_v62 = vrot.slane %v22494_v8, %v25069_v48 }
 0xad6   : > { %15249 = vmatprep.mubr.f32.mxu0 %v23785_v1 }
 0xad7   : > { %v25919_v30 = vcombine.low %v12423_v62, %v12427_v36 }
 0xadb   : > { %v8229_v22 = vpop.permute.xlu0 %8228 }
 0xb9d   : > { %v11384_v32 = vpop.f32.mrb[6].mxu0 }
 0xb9e   : > { %v25845_v6 = vadd.f32 %v11384_v32, %v8229_v22  ;;  %v11386_v63 = vpop.f32.mrb[7].mxu0 }
 0xb9f   : > { %v25847_v5 = vadd.f32 %v11386_v63, %v8229_v22 }
 0xba0   : > { %v11610_v53 = vmax.f32 %v25845_v6, 0.0 }
 0xba1   : > { %v11611_v57 = vmax.f32 %v25847_v5, 0.0  ;;  %v11455_v41 = vpop.f32.mrb[8].mxu0 }
 0xba2   : > { %v25851_v43 = vadd.f32 %v11455_v41, %v8229_v22  ;;  %v11457_v19 = vpop.f32.mrb[9].mxu0 }
 0xba3   : > { %v11626_v60 = vcombine.low %v11610_v53, %v11611_v57  ;;  %v25857_v40 = vadd.f32 %v11457_v19, %v8229_v22 }
 0xba4   : > { %v11612_v52 = vmax.f32 %v25851_v43, 0.0  ;;  %v11526_v24 = vpop.f32.mrb[10].mxu1 }
 0xba5   : > { %v11613_v23 = vmax.f32 %v25857_v40, 0.0  ;;  %11630 = vrot.lane.b32.xlu1 %v11626_v60, %s27686_s18  ;;  %v25862_v29 = vadd.f32 %v11526_v24, %v8229_v22  ;;  %v11528_v0 = vpop.f32.mrb[11].mxu1 }
 0xba6   : > { %v25867_v33 = vadd.f32 %v11528_v0, %v8229_v22 }
 0xba7   : > { %v11627_v25 = vcombine.low %v11612_v52, %v11613_v23  ;;  %v11614_v21 = vmax.f32 %v25862_v29, 0.0 }
 0xba8   : > { %v11615_v11 = vmax.f32 %v25867_v33, 0.0  ;;  %v11597_v13 = vpop.f32.mrb[10].mxu0 }
 0xba9   : > { %11632 = vrot.lane.b32.xlu0 %v11627_v25, %s27686_s18  ;;  %v25878_v55 = vadd.f32 %v11597_v13, %v8229_v22  ;;  %v11599_v7 = vpop.f32.mrb[11].mxu0 }
 0xbaa   : > { %v11628_v54 = vcombine.low %v11614_v21, %v11615_v11  ;;  %v25884_v12 = vadd.f32 %v11599_v7, %v8229_v22  ;;  %v11707_v22 = vcombine.low %v11699_v42, %v11703_v2 }
 0xbab   : > { %v11616_v58 = vmax.f32 %v25878_v55, 0.0 }
 0xbac   : > { %v11617_v20 = vmax.f32 %v25884_v12, 0.0  ;;  %11634 = vrot.lane.b32.xlu1 %v11628_v54, %s27686_s18 }
 0xbae   : > { %v11629_v26 = vcombine.low %v11616_v58, %v11617_v20 }
 0xbb0   : > { %12432 = vrot.lane.b32.xlu1 %v25891_v38, %s27672_s24  ;;  %11636 = vrot.lane.b32.xlu0 %v11629_v26, %s27686_s18 }
 0xbb4   : > { %12436 = vrot.lane.b32.xlu1 %v25902_v56, %s27672_s24  ;;  %12434 = vrot.lane.b32.xlu0 %v25909_v31, %s27672_s24 }
 0xbb8   : > { %12814 = vrot.lane.b32.xlu1 %v11704_v39, %s27673_s5  ;;  %12438 = vrot.lane.b32.xlu0 %v25919_v30, %s27672_s24 }
 0xbbc   : > { %12818 = vrot.lane.b32.xlu1 %v11706_v15, %s27673_s5  ;;  %12816 = vrot.lane.b32.xlu0 %v11705_v59, %s27673_s5 }
 0xbc0   : > { %13549 = vrot.lane.b32.xlu1 %v25891_v38, %s27652_s27  ;;  %12820 = vrot.lane.b32.xlu0 %v11707_v22, %s27673_s5 }
 0xbc4   : > { %13555 = vrot.lane.b32.xlu1 %v25919_v30, %s27652_s27  ;;  %13551 = vrot.lane.b32.xlu0 %v25909_v31, %s27652_s27 }
 0xbc8   : > { %13933 = vrot.lane.b32.xlu1 %v11705_v59, %s27687_s22  ;;  %13553 = vrot.lane.b32.xlu0 %v25902_v56, %s27652_s27 }
 0xbcc   : > { %13935 = vrot.lane.b32.xlu1 %v11706_v15, %s27687_s22  ;;  %13931 = vrot.lane.b32.xlu0 %v11704_v39, %s27687_s22 }
 0xbd0   : > { %13937 = vrot.lane.b32.xlu0 %v11707_v22, %s27687_s22 }
 0xc17   : > { %v11631_v32 = vpop.permute.xlu1 %11630 }
 0xc18   : > { %v11638_v63 = vrot.slane %v11631_v32, 4 }
 0xc1a   : > { %v11642_v41 = vsel %vm27744_vm13, %v11638_v63, %v11631_v32  ;;  %vm27750_vm13 = vmmov %vm27749_vm4 }
 0xc1b   : > { %11654 = vst.msk [vmem:[#allocation4] sm:$0xff] %vm25193_vm3, %v11642_v41  ;;  %v11633_v19 = vpop.permute.xlu0 %11632 }
 0xc1c   : > { %v11639_v60 = vrot.slane %v11633_v19, 4 }
 0xc1e   : > { %v11643_v24 = vsel %vm670_vm8, %v11638_v63, %v11639_v60  ;;  %v11635_v0 = vpop.permute.xlu1 %11634 }
 0xc1f   : > { %v25948_v8 = vsel %vm27745_vm12, %v11643_v24, %v11633_v19  ;;  %v11640_v25 = vrot.slane %v11635_v0, 4  ;;  %vm27751_vm12 = vmmov %vm27749_vm4 }
 0xc20   : > { %v11713_v16 = vmul.f32 %v11705_v59, %v25948_v8  ;;  %v11716_v59 = vld [vmem:[%s27549_s11] sm:$0xf] }
 0xc21   : > { %v11645_v13 = vsel %vm670_vm8, %v11639_v60, %v11640_v25  ;;  %v25992_v60 = vcombine.high %v25948_v8, %v25948_v8 }
 0xc22   : > { %v25952_v14 = vsel %vm27746_vm11, %v11645_v13, %v11635_v0  ;;  %v11637_v9 = vpop.permute.xlu0 %11636  ;;  %v25954_v7 = vld [vmem:[#allocation4] sm:$0xff]  ;;  %v12433_v54 = vpop.permute.xlu1 %12432  ;;  %v11722_v44 = vcombine.high %v11713_v16, %v11713_v16  ;;  %vm27752_vm11 = vcmask 539648  }
 0xc23   : > { %v11641_v18 = vrot.slane %v11637_v9, 4  ;;  %12052 = vrot.lane.b32.xlu1 %v25954_v7, %s27674_s3  ;;  %v25961_v17 = vcombine.high %v25954_v7, %v25954_v7  ;;  %v12440_v61 = vrot.slane %v12433_v54, 4  ;;  %v11712_v47 = vmul.f32 %v25954_v7, %v11704_v39 }
 0xc24   : > { %v11714_v27 = vmul.f32 %v11706_v15, %v25952_v14 }
 0xc25   : > { %v11647_v26 = vsel %vm670_vm8, %v11640_v25, %v11641_v18  ;;  %11658 = vst.msk [vmem:[#allocation4 + $0x20] sm:$0xf] %vm624_vm10, %v11641_v18  ;;  %v12444_v28 = vsel %vm882_vm15, %v12440_v61, %v12433_v54  ;;  %12054 = vrot.lane.b32.xlu0 %v25961_v17, %s27674_s3  ;;  %v11721_v10 = vcombine.high %v11712_v47, %v11712_v47 }
 0xc26   : > { %v12456_v62 = vmul.f32 %v12444_v28, %v25954_v7  ;;  %v12435_v36 = vpop.permute.xlu0 %12434  ;;  %v25970_v37 = vpop.permute.xlu1 %12436  ;;  %v25974_v35 = vsel %vm27747_vm7, %v11647_v26, %v11637_v9  ;;  %v11723_v63 = vcombine.high %v11714_v27, %v11714_v27  ;;  %vm27753_vm7 = vmmov %vm27752_vm11 }
 0xc27   : > { %v12441_v39 = vrot.slane %v12435_v36, 4  ;;  %22469 = vmatprep.subr.msk.mxu1 %vm670_vm8, %v11721_v10  ;;  %v12442_v2 = vrot.slane %v25970_v37, 4  ;;  %v11715_v41 = vmul.f32 %v11707_v22, %v25974_v35 }
 0xc28   : > { %22470 = vmatpush1.msk.msra.mxu1 %vm670_vm8, %v11712_v47  ;;  %v12468_v26 = vcombine.high %v12456_v62, %v12456_v62 }
 0xc29   : > { %v12445_v42 = vsel %vm670_vm8, %v12440_v61, %v12441_v39  ;;  %12472 = vrot.lane.b32.xlu0 %v12456_v62, %s27675_s28  ;;  %22472 = vmatprep.subr.msk.mxu1 %vm670_vm8, %v11722_v44  ;;  %v12447_v0 = vsel %vm670_vm8, %v12441_v39, %v12442_v2  ;;  %v11724_v13 = vcombine.high %v11715_v41, %v11715_v41 }
 0xc2a   : > { %v25985_v15 = vpop.permute.xlu0 %12438  ;;  %v12815_v32 = vpop.permute.xlu1 %12814  ;;  %22471 = vmatmul.mubr.msk.f32.vlgmr.msra.gmra.mrb[12].mxu1 %vm666_vm2, %v11716_v59  ;;  %v12446_v24 = vsel %vm882_vm15, %v12445_v42, %v12435_v36  ;;  %v12448_v18 = vsel %vm882_vm15, %v12447_v0, %v25970_v37 }
 0xc2b   : > { %v12822_v19 = vrot.slane %v12815_v32, 4  ;;  %22473 = vmatpush1.msk.msra.mxu1 %vm670_vm8, %v11713_v16  ;;  %11879 = vmatprep.mubr.f32.mxu1 %v23785_v1  ;;  %v12457_v9 = vmul.f32 %v12446_v24, %v25948_v8  ;;  %v12458_v47 = vmul.f32 %v12448_v18, %v25952_v14  ;;  %v12443_v39 = vrot.slane %v25985_v15, 4 }
 0xc2c   : > { %22475 = vmatprep.subr.msk.mxu1 %vm670_vm8, %v11723_v63  ;;  %v12393_v44 = vld [vmem:[#allocation4 + $0x20] sm:$0xf] }
 0xc2d   : > { %12058 = vrot.lane.b32.xlu0 %v25992_v60, %s27674_s3  ;;  %v12826_v22 = vsel %vm2159_vm14, %v12822_v19, %v12815_v32  ;;  %v12460_v42 = vmul.f32 %v12443_v39, %v12393_v44  ;;  %v26036_v32 = vcombine.high %v25952_v14, %v25952_v14  ;;  %v12040_v24 = vld [vmem:[#allocation4 + $0x20] sm:$0xf]  ;;  %v12449_v18 = vsel %vm670_vm8, %v12442_v2, %v12443_v39 }
 0xc2e   : > { %v12817_v25 = vpop.permute.xlu0 %12816  ;;  %22474 = vmatmul.mubr.msk.f32.vlgmr.msra.gmra.mrb[14].mxu1 %vm666_vm2, %v11716_v59  ;;  %v12838_v54 = vmul.f32 %v12826_v22, %v25954_v7  ;;  %v12819_v62 = vpop.permute.xlu1 %12818 }
 0xc2f   : > { %v12823_v16 = vrot.slane %v12817_v25, 4  ;;  %22476 = vmatpush1.msk.msra.mxu1 %vm670_vm8, %v11714_v27  ;;  %11950 = vmatprep.mubr.f32.mxu1 %v23785_v1  ;;  %v12470_v27 = vcombine.high %v12458_v47, %v12458_v47 }
 0xc30   : > { %22478 = vmatprep.subr.msk.mxu1 %vm670_vm8, %v11724_v13  ;;  %12854 = vrot.lane.b32.xlu1 %v12838_v54, %s27658_s0  ;;  %v12850_v36 = vcombine.high %v12838_v54, %v12838_v54 }
 0xc31   : > { %v12827_v61 = vsel %vm670_vm8, %v12822_v19, %v12823_v16  ;;  %12476 = vrot.lane.b32.xlu0 %v12457_v9, %s27675_s28 }
 0xc32   : > { %22477 = vmatmul.mubr.msk.f32.vlgmr.msra.gmra.mrb[16].mxu1 %vm666_vm2, %v11716_v59  ;;  %v12828_v28 = vsel %vm2159_vm14, %v12827_v61, %v12817_v25  ;;  %v12469_v25 = vcombine.high %v12457_v9, %v12457_v9  ;;  %v12821_v13 = vpop.permute.xlu0 %12820  ;;  %v12813_v61 = vld [vmem:[#allocation4 + $0x20] sm:$0xf]  ;;  %v12450_v9 = vsel %vm882_vm15, %v12449_v18, %v25985_v15 }
 0xc33   : > { %22479 = vmatpush1.msk.msra.mxu1 %vm670_vm8, %v11715_v41  ;;  %12021 = vmatprep.mubr.f32.mxu1 %v23785_v1  ;;  %v12839_v10 = vmul.f32 %v12828_v28, %v25948_v8  ;;  %v26044_v41 = vcombine.high %v25974_v35, %v25974_v35  ;;  %v12459_v28 = vmul.f32 %v12450_v9, %v25974_v35 }
 0xc34   : > { %12474 = vrot.lane.b32.xlu1 %v12468_v26, %s27675_s28 }
 0xc35   : > { %12480 = vrot.lane.b32.xlu0 %v12458_v47, %s27675_s28  ;;  %v12851_v0 = vcombine.high %v12839_v10, %v12839_v10 }
 0xc36   : > { %22480 = vmatmul.mubr.msk.f32.vlgmr.msra.gmra.mrb[18].mxu1 %vm666_vm2, %v11716_v59  ;;  %v12824_v59 = vrot.slane %v12819_v62, 4  ;;  %v13552_v15 = vpop.permute.xlu0 %13551 }
 0xc37   : > { %12161 = vmatprep.mubr.f32.mxu1 %v23785_v1 }
 0xc38   : > { %12856 = vrot.lane.b32.xlu1 %v12850_v36, %s27658_s0  ;;  %v12829_v63 = vsel %vm670_vm8, %v12823_v16, %v12824_v59  ;;  %v12825_v16 = vrot.slane %v12821_v13, 4  ;;  %v13550_v36 = vpop.permute.xlu1 %13549 }
 0xc39   : > { %12858 = vrot.lane.b32.xlu0 %v12839_v10, %s27658_s0  ;;  %v12830_v19 = vsel %vm2159_vm14, %v12829_v63, %v12819_v62  ;;  %v13558_v62 = vrot.slane %v13552_v15, 4  ;;  %v13557_v39 = vrot.slane %v13550_v36, 4  ;;  %v13195_v63 = vld [vmem:[#allocation4 + $0x20] sm:$0xf] }
 0xc3a   : > { %v12840_v22 = vmul.f32 %v12830_v19, %v25952_v14  ;;  %v12842_v47 = vmul.f32 %v12825_v16, %v12813_v61  ;;  %v12831_v26 = vsel %vm670_vm8, %v12824_v59, %v12825_v16 }
 0xc3b   : > { %v12832_v37 = vsel %vm2159_vm14, %v12831_v26, %v12821_v13  ;;  %v13562_v44 = vsel %vm670_vm8, %v13557_v39, %v13558_v62 }
 0xc3c   : > { %12056 = vrot.lane.b32.xlu1 %v25948_v8, %s27674_s3  ;;  %v12852_v54 = vcombine.high %v12840_v22, %v12840_v22  ;;  %v12841_v2 = vmul.f32 %v12832_v37, %v25974_v35 }
 0xc3d   : > { %12064 = vrot.lane.b32.xlu0 %v25974_v35, %s27674_s3 }
 0xc3e   : > { %v12853_v10 = vcombine.high %v12841_v2, %v12841_v2 }
 0xc40   : > { %12060 = vrot.lane.b32.xlu1 %v25952_v14, %s27674_s3 }
 0xc41   : > { %12482 = vrot.lane.b32.xlu0 %v12470_v27, %s27675_s28  ;;  %v13554_v27 = vpop.permute.xlu0 %13553 }
 0xc42   : > { %v13559_v59 = vrot.slane %v13554_v27, 4 }
 0xc44   : > { %12062 = vrot.lane.b32.xlu1 %v26036_v32, %s27674_s3  ;;  %v13564_v19 = vsel %vm670_vm8, %v13558_v62, %v13559_v59 }
 0xc45   : > { %12488 = vrot.lane.b32.xlu0 %v12460_v42, %s27675_s28  ;;  %v13563_v42 = vsel %vm2369_vm0, %v13562_v44, %v13552_v15 }
 0xc48   : > { %12068 = vrot.lane.b32.xlu1 %v12040_v24, %s27674_s3  ;;  %v13932_v24 = vpop.permute.xlu0 %13931 }
 0xc49   : > { %12066 = vrot.lane.b32.xlu0 %v26044_v41, %s27674_s3 }
 0xc4c   : > { %12478 = vrot.lane.b32.xlu1 %v12469_v25, %s27675_s28  ;;  %v13561_v25 = vsel %vm2369_vm0, %v13557_v39, %v13550_v36  ;;  %v13938_v36 = vpop.permute.xlu0 %13937 }
 0xc4d   : > { %12860 = vrot.lane.b32.xlu0 %v12851_v0, %s27658_s0  ;;  %v13556_v0 = vpop.permute.xlu1 %13555  ;;  %v13573_v16 = vmul.f32 %v13561_v25, %v25954_v7  ;;  %v13942_v39 = vrot.slane %v13938_v36, 4 }
 0xc4e   : > { %v13560_v61 = vrot.slane %v13556_v0, 4 }
 0xc4f   : > { %v13585_v26 = vcombine.high %v13573_v16, %v13573_v16 }
 0xc50   : > { %12862 = vrot.lane.b32.xlu1 %v12840_v22, %s27658_s0  ;;  %v13565_v22 = vsel %vm2369_vm0, %v13564_v19, %v13554_v27  ;;  %v13548_v19 = vld [vmem:[#allocation4 + $0x20] sm:$0xf] }
 0xc51   : > { %12864 = vrot.lane.b32.xlu0 %v12852_v54, %s27658_s0  ;;  %v13575_v54 = vmul.f32 %v13565_v22, %v25952_v14  ;;  %v13934_v18 = vpop.permute.xlu1 %13933 }
 0xc52   : > { %v13940_v15 = vrot.slane %v13934_v18, 4 }
 0xc54   : > { %12870 = vrot.lane.b32.xlu1 %v12842_v47, %s27658_s0  ;;  %v13587_v47 = vcombine.high %v13575_v54, %v13575_v54 }
 0xc55   : > { %14666 = vrot.lane.b32.xlu0 %v25891_v38, %s27688_s25  ;;  %v12471_v38 = vcombine.high %v12459_v28, %v12459_v28  ;;  %v13936_v37 = vpop.permute.xlu1 %13935 }
 0xc58   : > { %12484 = vrot.lane.b32.xlu1 %v12459_v28, %s27675_s28  ;;  %v13566_v28 = vsel %vm670_vm8, %v13559_v59, %v13560_v61 }
 0xc59   : > { %13211 = vrot.lane.b32.xlu0 %v25948_v8, %s27659_s23 }
 0xc5c   : > { %12866 = vrot.lane.b32.xlu1 %v12841_v2, %s27658_s0 }
 0xc5d   : > { %13207 = vrot.lane.b32.xlu0 %v25954_v7, %s27659_s23 }
 0xc60   : > { %12486 = vrot.lane.b32.xlu1 %v12471_v38, %s27675_s28  ;;  %v13567_v38 = vsel %vm2369_vm0, %v13566_v28, %v13556_v0  ;;  %v13577_v0 = vmul.f32 %v13560_v61, %v13548_v19 }
 0xc61   : > { %13215 = vrot.lane.b32.xlu0 %v25952_v14, %s27659_s23  ;;  %v13576_v62 = vmul.f32 %v13567_v38, %v25974_v35 }
 0xc63   : > { %v13588_v44 = vcombine.high %v13576_v62, %v13576_v62 }
 0xc64   : > { %13209 = vrot.lane.b32.xlu1 %v25961_v17, %s27659_s23 }
 0xc65   : > { %13217 = vrot.lane.b32.xlu0 %v26036_v32, %s27659_s23 }
 0xc68   : > { %14668 = vrot.lane.b32.xlu1 %v25909_v31, %s27688_s25  ;;  %v13574_v31 = vmul.f32 %v13563_v42, %v25948_v8 }
 0xc69   : > { %12868 = vrot.lane.b32.xlu0 %v12853_v10, %s27658_s0  ;;  %v13941_v10 = vrot.slane %v13936_v37, 4 }
 0xc6a   : > { %v13586_v13 = vcombine.high %v13574_v31, %v13574_v31 }
 0xc6b   : > { %v13946_v27 = vsel %vm670_vm8, %v13940_v15, %v13941_v10  ;;  %v13948_v42 = vsel %vm670_vm8, %v13941_v10, %v13942_v39  ;;  %v14312_v10 = vld [vmem:[#allocation4 + $0x20] sm:$0xf] }
 0xc6c   : > { %13213 = vrot.lane.b32.xlu1 %v25992_v60, %s27659_s23  ;;  %v13947_v59 = vsel %vm27749_vm4, %v13946_v27, %v13936_v37 }
 0xc6d   : > { %14672 = vrot.lane.b32.xlu0 %v25919_v30, %s27688_s25  ;;  %v13939_v30 = vrot.slane %v13932_v24, 4 }
 0xc70   : > { %14670 = vrot.lane.b32.xlu1 %v25902_v56, %s27688_s25  ;;  %v13943_v56 = vsel %vm27748_vm9, %v13939_v30, %v13932_v24  ;;  %v13957_v24 = vmul.f32 %v13947_v59, %v25952_v14  ;;  %vm27754_vm9 = vcmask 777216  }
 0xc71   : > { %13223 = vrot.lane.b32.xlu0 %v13195_v63, %s27659_s23  ;;  %v13955_v9 = vmul.f32 %v13943_v56, %v25954_v7  ;;  %v13944_v63 = vsel %vm670_vm8, %v13939_v30, %v13940_v15  ;;  %v13930_v30 = vld [vmem:[#allocation4 + $0x20] sm:$0xf]  ;;  %vm27755_vm4 = vmmov %vm27754_vm9 }
 0xc72   : > { %v13945_v22 = vsel %vm27751_vm12, %v13944_v63, %v13934_v18  ;;  %v13969_v61 = vcombine.high %v13957_v24, %v13957_v24  ;;  %vm27757_vm12 = vmmov %vm27753_vm7 }
 0xc73   : > { %v13967_v2 = vcombine.high %v13955_v9, %v13955_v9 }
 0xc74   : > { %13219 = vrot.lane.b32.xlu1 %v25974_v35, %s27659_s23 }
 0xc75   : > { %13593 = vrot.lane.b32.xlu0 %v13574_v31, %s27660_s26  ;;  %v13949_v31 = vsel %vm27750_vm13, %v13948_v42, %v13938_v36  ;;  %v22481_v36 = vld [vmem:[%s27549_s11 + $0x4] sm:$0xf]  ;;  %vm27756_vm13 = vmmov %vm27753_vm7 }
 0xc76   : > { %v13958_v25 = vmul.f32 %v13949_v31, %v25974_v35 }
 0xc78   : > { %13221 = vrot.lane.b32.xlu1 %v26044_v41, %s27659_s23 }
 0xc79   : > { %13595 = vrot.lane.b32.xlu0 %v13586_v13, %s27660_s26  ;;  %v13956_v13 = vmul.f32 %v13945_v22, %v25948_v8 }
 0xc7c   : > { %13591 = vrot.lane.b32.xlu1 %v13585_v26, %s27660_s26 }
 0xc7d   : > { %13599 = vrot.lane.b32.xlu0 %v13587_v47, %s27660_s26 }
 0xc80   : > { %13589 = vrot.lane.b32.xlu1 %v13573_v16, %s27660_s26  ;;  %v13968_v16 = vcombine.high %v13956_v13, %v13956_v13 }
 0xc81   : > { %13973 = vrot.lane.b32.xlu0 %v13967_v2, %s27687_s22 }
 0xc84   : > { %13597 = vrot.lane.b32.xlu1 %v13575_v54, %s27660_s26  ;;  %v13959_v54 = vmul.f32 %v13942_v39, %v13930_v30 }
 0xc85   : > { %13971 = vrot.lane.b32.xlu0 %v13955_v9, %s27687_s22  ;;  %v13970_v9 = vcombine.high %v13958_v25, %v13958_v25 }
 0xc88   : > { %13601 = vrot.lane.b32.xlu1 %v13576_v62, %s27660_s26 }
 0xc89   : > { %13603 = vrot.lane.b32.xlu0 %v13588_v44, %s27660_s26 }
 0xc8c   : > { %13605 = vrot.lane.b32.xlu1 %v13577_v0, %s27660_s26 }
 0xc8d   : > { %13979 = vrot.lane.b32.xlu0 %v13957_v24, %s27687_s22 }
 0xc90   : > { %13975 = vrot.lane.b32.xlu1 %v13956_v13, %s27687_s22 }
 0xc91   : > { %13983 = vrot.lane.b32.xlu0 %v13958_v25, %s27687_s22 }
 0xc94   : > { %13977 = vrot.lane.b32.xlu1 %v13968_v16, %s27687_s22 }
 0xc95   : > { %13987 = vrot.lane.b32.xlu0 %v13959_v54, %s27687_s22  ;;  %v12053_v26 = vpop.permute.xlu1 %12052 }
 0xc97   : > { %v12055_v56 = vpop.permute.xlu0 %12054 }
 0xc98   : > { %13981 = vrot.lane.b32.xlu1 %v13969_v61, %s27687_s22  ;;  %v12070_v62 = vsel %vm782_vm1, %v12053_v26, %v12055_v56  ;;  %v22495_v61 = vld [vmem:[%s27549_s11 + $0x8] sm:$0xf] }
 0xc99   : > { %14328 = vrot.lane.b32.xlu0 %v25948_v8, %s27700_s19 }
 0xc9b   : > { %v12473_v18 = vpop.permute.xlu0 %12472 }
 0xc9c   : > { %14326 = vrot.lane.b32.xlu1 %v25961_v17, %s27700_s19 }
 0xc9d   : > { %14330 = vrot.lane.b32.xlu0 %v25992_v60, %s27700_s19 }
 0xc9f   : > { %v12059_v47 = vpop.permute.xlu0 %12058 }
 0xca0   : > { %13985 = vrot.lane.b32.xlu1 %v13970_v9, %s27687_s22 }
 0xca1   : > { %14334 = vrot.lane.b32.xlu0 %v26036_v32, %s27700_s19 }
 0xca2   : > { %v26142_v37 = vpop.permute.xlu1 %12854 }
 0xca3   : > { %v12477_v28 = vpop.permute.xlu0 %12476 }
 0xca4   : > { %14324 = vrot.lane.b32.xlu1 %v25954_v7, %s27700_s19 }
 0xca5   : > { %14338 = vrot.lane.b32.xlu0 %v26044_v41, %s27700_s19 }
 0xca6   : > { %v12475_v17 = vpop.permute.xlu1 %12474 }
 0xca7   : > { %v26148_v60 = vpop.permute.xlu0 %12480  ;;  %v12491_v30 = vsel %vm899_vm6, %v12475_v17, %v12477_v28  ;;  %v12490_v54 = vsel %vm899_vm6, %v12473_v18, %v12475_v17 }
 0xca8   : > { %14332 = vrot.lane.b32.xlu1 %v25952_v14, %s27700_s19 }
 0xcaa   : > { %v26154_v32 = vpop.permute.xlu1 %12856 }
 0xcab   : > { %v26152_v2 = vpop.permute.xlu0 %12858 }
 0xcac   : > { %14336 = vrot.lane.b32.xlu1 %v25974_v35, %s27700_s19 }
 0xcae   : > { %v12057_v15 = vpop.permute.xlu1 %12056 }
 0xcaf   : > { %v12065_v38 = vpop.permute.xlu0 %12064  ;;  %v12071_v41 = vsel %vm782_vm1, %v12055_v56, %v12057_v15  ;;  %v12072_v59 = vsel %vm782_vm1, %v12057_v15, %v12059_v47 }
 0xcb0   : > { %14340 = vrot.lane.b32.xlu1 %v14312_v10, %s27700_s19  ;;  %22482 = vmatprep.subr.msk.mxu1 %vm670_vm8, %v12071_v41 }
 0xcb1   : > { %22483 = vmatpush1.msk.msra.mxu1 %vm670_vm8, %v12070_v62 }
 0xcb2   : > { %22484 = vmatmul.mubr.msk.f32.vlgmr.msra.gmra.mrb[12].mxu1 %vm666_vm2, %v22481_v36  ;;  %v12061_v39 = vpop.permute.xlu1 %12060 }
 0xcb3   : > { %v12483_v27 = vpop.permute.xlu0 %12482  ;;  %v12073_v44 = vsel %vm782_vm1, %v12059_v47, %v12061_v39  ;;  %12232 = vmatprep.mubr.f32.mxu1 %v23785_v1 }
 0xcb4   : > { %22485 = vmatprep.subr.msk.mxu1 %vm670_vm8, %v12073_v44 }
 0xcb5   : > { %22486 = vmatpush1.msk.msra.mxu1 %vm670_vm8, %v12072_v59 }
 0xcb6   : > { %22487 = vmatmul.mubr.msk.f32.vlgmr.msra.gmra.mrb[14].mxu1 %vm666_vm2, %v22481_v36  ;;  %v12063_v63 = vpop.permute.xlu1 %12062 }
 0xcb7   : > { %v12489_v42 = vpop.permute.xlu0 %12488  ;;  %v12074_v19 = vsel %vm782_vm1, %v12061_v39, %v12063_v63  ;;  %v12075_v24 = vsel %vm782_vm1, %v12063_v63, %v12065_v38  ;;  %12303 = vmatprep.mubr.f32.mxu1 %v23785_v1  ;;  %v12494_v39 = vsel %vm899_vm6, %v26148_v60, %v12483_v27 }
 0xcb8   : > { %22488 = vmatprep.subr.msk.mxu1 %vm670_vm8, %v12075_v24  ;;  %v12873_v24 = vsel %vm2176_vm5, %v26154_v32, %v26152_v2 }
 0xcb9   : > { %22489 = vmatpush1.msk.msra.mxu1 %vm670_vm8, %v12074_v19 }
 0xcba   : > { %22490 = vmatmul.mubr.msk.f32.vlgmr.msra.gmra.mrb[16].mxu1 %vm666_vm2, %v22481_v36  ;;  %v12069_v22 = vpop.permute.xlu1 %12068 }
 0xcbb   : > { %v12067_v0 = vpop.permute.xlu0 %12066  ;;  %12374 = vmatprep.mubr.f32.mxu1 %v23785_v1 }
 0xcbc   : > { %v12076_v31 = vsel %vm782_vm1, %v12065_v38, %v12067_v0  ;;  %v12077_v25 = vsel %vm782_vm1, %v12067_v0, %v12069_v22  ;;  %v12872_v0 = vsel %vm2176_vm5, %v26142_v37, %v26154_v32  ;;  %v22508_v22 = vld [vmem:[%s27549_s11 + $0xc] sm:$0xf] }
 0xcbd   : > { %22491 = vmatprep.subr.msk.mxu1 %vm670_vm8, %v12077_v25 }
 0xcbe   : > { %22492 = vmatpush1.msk.msra.mxu1 %vm670_vm8, %v12076_v31  ;;  %v12479_v16 = vpop.permute.xlu1 %12478 }
 0xcbf   : > { %v12861_v13 = vpop.permute.xlu0 %12860  ;;  %22493 = vmatmul.mubr.msk.f32.vlgmr.msra.gmra.mrb[18].mxu1 %vm666_vm2, %v22481_v36  ;;  %22496 = vmatprep.subr.msk.mxu1 %vm670_vm8, %v12491_v30  ;;  %v12493_v56 = vsel %vm899_vm6, %v12479_v16, %v26148_v60  ;;  %v12492_v18 = vsel %vm899_vm6, %v12477_v28, %v12479_v16 }
 0xcc0   : > { %22497 = vmatpush1.msk.msra.mxu1 %vm670_vm8, %v12490_v54  ;;  %12581 = vmatprep.mubr.f32.mxu1 %v23785_v1  ;;  %v12874_v37 = vsel %vm2176_vm5, %v26152_v2, %v12861_v13 }
 0xcc1   : > { %22499 = vmatprep.subr.msk.mxu1 %vm670_vm8, %v12493_v56 }
 0xcc2   : > { %v12863_v9 = vpop.permute.xlu1 %12862 }
 0xcc3   : > { %v12865_v47 = vpop.permute.xlu0 %12864  ;;  %22498 = vmatmul.mubr.msk.f32.vlgmr.msra.gmra.mrb[12].mxu1 %vm666_vm2, %v22495_v61 }
 0xcc4   : > { %22500 = vmatpush1.msk.msra.mxu1 %vm670_vm8, %v12492_v18  ;;  %12652 = vmatprep.mubr.f32.mxu1 %v23785_v1 }
 0xcc6   : > { %v12871_v38 = vpop.permute.xlu1 %12870 }
 0xcc7   : > { %v14667_v26 = vpop.permute.xlu0 %14666  ;;  %22501 = vmatmul.mubr.msk.f32.vlgmr.msra.gmra.mrb[14].mxu1 %vm666_vm2, %v22495_v61 }
 0xcc8   : > { %v14674_v17 = vrot.slane %v14667_v26, 4  ;;  %12723 = vmatprep.mubr.f32.mxu1 %v23785_v1 }
 0xcca   : > { %v14678_v15 = vsel %vm27752_vm11, %v14674_v17, %v14667_v26  ;;  %v12485_v28 = vpop.permute.xlu1 %12484  ;;  %vm27758_vm11 = vmmov %vm27755_vm4 }
 0xccb   : > { %v14690_v10 = vmul.f32 %v14678_v15, %v25954_v7  ;;  %v26204_v41 = vpop.permute.xlu0 %13211  ;;  %v12495_v62 = vsel %vm899_vm6, %v12483_v27, %v12485_v28 }
 0xccc   : > { %22502 = vmatprep.subr.msk.mxu1 %vm670_vm8, %v12495_v62 }
 0xccd   : > { %v14702_v36 = vcombine.high %v14690_v10, %v14690_v10  ;;  %22503 = vmatpush1.msk.msra.mxu1 %vm670_vm8, %v12494_v39 }
 0xcce   : > { %v12867_v59 = vpop.permute.xlu1 %12866  ;;  %22504 = vmatmul.mubr.msk.f32.vlgmr.msra.gmra.mrb[16].mxu1 %vm666_vm2, %v22495_v61 }
 0xccf   : > { %v13208_v44 = vpop.permute.xlu0 %13207  ;;  %14708 = vrot.lane.b32.xlu0 %v14702_v36, %s27704_s21  ;;  %12794 = vmatprep.mubr.f32.mxu1 %v23785_v1  ;;  %v12877_v54 = vsel %vm2176_vm5, %v12865_v47, %v12867_v59 }
 0xcd2   : > { %v12487_v63 = vpop.permute.xlu1 %12486 }
 0xcd3   : > { %v26214_v7 = vpop.permute.xlu0 %13215  ;;  %14706 = vrot.lane.b32.xlu0 %v14690_v10, %s27704_s21  ;;  %v12496_v19 = vsel %vm899_vm6, %v12485_v28, %v12487_v63  ;;  %v12497_v60 = vsel %vm899_vm6, %v12487_v63, %v12489_v42  ;;  %v12875_v42 = vsel %vm2176_vm5, %v12861_v13, %v12863_v9 }
 0xcd4   : > { %22505 = vmatprep.subr.msk.mxu1 %vm670_vm8, %v12497_v60 }
 0xcd5   : > { %22506 = vmatpush1.msk.msra.mxu1 %vm670_vm8, %v12496_v19 }
 0xcd6   : > { %22507 = vmatmul.mubr.msk.f32.vlgmr.msra.gmra.mrb[18].mxu1 %vm666_vm2, %v22495_v61  ;;  %22509 = vmatprep.subr.msk.mxu1 %vm670_vm8, %v12873_v24  ;;  %v13210_v31 = vpop.permute.xlu1 %13209  ;;  %v12876_v61 = vsel %vm2176_vm5, %v12863_v9, %v12865_v47 }
 0xcd7   : > { %v26221_v27 = vpop.permute.xlu0 %13217  ;;  %22510 = vmatpush1.msk.msra.mxu1 %vm670_vm8, %v12872_v0  ;;  %12963 = vmatprep.mubr.f32.mxu1 %v23785_v1  ;;  %v13225_v39 = vsel %vm27755_vm4, %v13208_v44, %v13210_v31  ;;  %v22521_v44 = vld [vmem:[%s27549_s11 + $0x10] sm:$0xf] }
 0xcd8   : > { %22512 = vmatprep.subr.msk.mxu1 %vm670_vm8, %v12875_v42 }
 0xcda   : > { %22511 = vmatmul.mubr.msk.f32.vlgmr.msra.gmra.mrb[12].mxu1 %vm666_vm2, %v22508_v22  ;;  %v14669_v32 = vpop.permute.xlu1 %14668 }
 0xcdb   : > { %v12869_v25 = vpop.permute.xlu0 %12868  ;;  %22513 = vmatpush1.msk.msra.mxu1 %vm670_vm8, %v12874_v37  ;;  %v14675_v30 = vrot.slane %v14669_v32, 4  ;;  %13034 = vmatprep.mubr.f32.mxu1 %v23785_v1 }
 0xcdc   : > { %22515 = vmatprep.subr.msk.mxu1 %vm670_vm8, %v12877_v54  ;;  %v12879_v26 = vsel %vm2176_vm5, %v12869_v25, %v12871_v38  ;;  %v12878_v47 = vsel %vm2176_vm5, %v12867_v59, %v12869_v25  ;;  %v13226_v38 = vsel %vm27754_vm9, %v13210_v31, %v26204_v41  ;;  %vm27760_vm9 = vmmov %vm27755_vm4 }
 0xcdd   : > { %v14679_v16 = vsel %vm670_vm8, %v14674_v17, %v14675_v30 }
 0xcde   : > { %v14680_v18 = vsel %vm27753_vm7, %v14679_v16, %v14669_v32  ;;  %22514 = vmatmul.mubr.msk.f32.vlgmr.msra.gmra.mrb[14].mxu1 %vm666_vm2, %v22508_v22  ;;  %v13214_v2 = vpop.permute.xlu1 %13213  ;;  %vm27759_vm7 = vmmov %vm27755_vm4  ;;  %v14665_v32 = vld [vmem:[#allocation4 + $0x20] sm:$0xf] }
 0xcdf   : > { %v14673_v56 = vpop.permute.xlu0 %14672  ;;  %v14691_v13 = vmul.f32 %v14680_v18, %v25948_v8  ;;  %22516 = vmatpush1.msk.msra.mxu1 %vm670_vm8, %v12876_v61  ;;  %13105 = vmatprep.mubr.f32.mxu1 %v23785_v1  ;;  %v13228_v24 = vsel %vm27758_vm11, %v13214_v2, %v26214_v7  ;;  %vm27763_vm11 = vcmask 769024  }
 0xce0   : > { %22518 = vmatprep.subr.msk.mxu1 %vm670_vm8, %v12879_v26  ;;  %v14677_v10 = vrot.slane %v14673_v56, 4 }
 0xce1   : > { %14710 = vrot.lane.b32.xlu1 %v14691_v13, %s27704_s21  ;;  %v14703_v15 = vcombine.high %v14691_v13, %v14691_v13 }
 0xce2   : > { %22517 = vmatmul.mubr.msk.f32.vlgmr.msra.gmra.mrb[16].mxu1 %vm666_vm2, %v22508_v22  ;;  %v14671_v9 = vpop.permute.xlu1 %14670  ;;  %v14694_v54 = vmul.f32 %v14677_v10, %v14665_v32 }
 0xce3   : > { %v13224_v17 = vpop.permute.xlu0 %13223  ;;  %22519 = vmatpush1.msk.msra.mxu1 %vm670_vm8, %v12878_v47  ;;  %v14676_v8 = vrot.slane %v14671_v9, 4  ;;  %13176 = vmatprep.mubr.f32.mxu1 %v23785_v1  ;;  %v22534_v47 = vld [vmem:[%s27549_s11 + $0x14] sm:$0xf] }
 0xce4   : > { %22522 = vmatprep.subr.msk.mxu1 %vm670_vm8, %v13226_v38 }
 0xce5   : > { %v14681_v28 = vsel %vm670_vm8, %v14675_v30, %v14676_v8  ;;  %v14683_v36 = vsel %vm670_vm8, %v14676_v8, %v14677_v10  ;;  %14712 = vrot.lane.b32.xlu1 %v14703_v15, %s27704_s21 }
 0xce6   : > { %v14682_v59 = vsel %vm27756_vm13, %v14681_v28, %v14671_v9  ;;  %22520 = vmatmul.mubr.msk.f32.vlgmr.msra.gmra.mrb[18].mxu1 %vm666_vm2, %v22508_v22  ;;  %v13220_v63 = vpop.permute.xlu1 %13219  ;;  %v14684_v19 = vsel %vm27757_vm12, %v14683_v36, %v14673_v56  ;;  %vm27761_vm13 = vmmov %vm27755_vm4  ;;  %v11659_v56 = vld [vmem:[%s27550_s12] sm:$0xf] }
 0xce7   : > { %v13594_v62 = vpop.permute.xlu0 %13593  ;;  %v14692_v60 = vmul.f32 %v14682_v59, %v25952_v14  ;;  %22523 = vmatpush1.msk.msra.mxu1 %vm670_vm8, %v13225_v39  ;;  %13316 = vmatprep.mubr.f32.mxu1 %v23785_v1  ;;  %v14693_v42 = vmul.f32 %v14684_v19, %v25974_v35  ;;  %v13227_v14 = vsel %vm27759_vm7, %v26204_v41, %v13214_v2  ;;  %vm27762_vm12 = vmmov %vm27755_vm4 }
 0xce8   : > { %22525 = vmatprep.subr.msk.mxu1 %vm670_vm8, %v13228_v24  ;;  %v13230_v25 = vsel %vm27760_vm9, %v26221_v27, %v13220_v63  ;;  %v13229_v41 = vsel %vm27755_vm4, %v26214_v7, %v26221_v27  ;;  %vm27764_vm7 = vmmov %vm27763_vm11 }
 0xce9   : > { %v14704_v0 = vcombine.high %v14692_v60, %v14692_v60  ;;  %14714 = vrot.lane.b32.xlu0 %v14692_v60, %s27704_s21  ;;  %v14705_v37 = vcombine.high %v14693_v42, %v14693_v42  ;;  %vm27765_vm9 = vmmov %vm27764_vm7 }
 0xcea   : > { %22524 = vmatmul.mubr.msk.f32.vlgmr.msra.gmra.mrb[12].mxu1 %vm666_vm2, %v22521_v44  ;;  %v13222_v22 = vpop.permute.xlu1 %13221  ;;  %vm27766_vm4 = vmmov %vm27764_vm7 }
 0xceb   : > { %v13596_v31 = vpop.permute.xlu0 %13595  ;;  %22526 = vmatpush1.msk.msra.mxu1 %vm670_vm8, %v13227_v14  ;;  %14716 = vrot.lane.b32.xlu1 %v14704_v0, %s27704_s21  ;;  %v13232_v16 = vsel %vm27761_vm13, %v13222_v22, %v13224_v17  ;;  %v13231_v27 = vsel %vm27762_vm12, %v13220_v63, %v13222_v22  ;;  %vm27767_vm13 = vmmov %vm27766_vm4  ;;  %v22547_v0 = vld [vmem:[%s27549_s11 + $0x18] sm:$0xf] }
 0xcec   : > { %22528 = vmatprep.subr.msk.mxu1 %vm670_vm8, %v13230_v25  ;;  %13387 = vmatprep.mubr.f32.mxu1 %v23785_v1  ;;  %v13609_v15 = vsel %vm27766_vm4, %v13594_v62, %v13596_v31  ;;  %vm27768_vm12 = vmmov %vm27766_vm4 }
 0xced   : > { %14718 = vrot.lane.b32.xlu0 %v14693_v42, %s27704_s21 }
 0xcee   : > { %22527 = vmatmul.mubr.msk.f32.vlgmr.msra.gmra.mrb[14].mxu1 %vm666_vm2, %v22521_v44  ;;  %v13592_v30 = vpop.permute.xlu1 %13591 }
 0xcef   : > { %v13600_v35 = vpop.permute.xlu0 %13599  ;;  %22529 = vmatpush1.msk.msra.mxu1 %vm670_vm8, %v13229_v41  ;;  %14720 = vrot.lane.b32.xlu1 %v14705_v37, %s27704_s21  ;;  %v13608_v18 = vsel %vm27763_vm11, %v13592_v30, %v13594_v62  ;;  %vm27769_vm11 = vmmov %vm27766_vm4 }
 0xcf0   : > { %22531 = vmatprep.subr.msk.mxu1 %vm670_vm8, %v13232_v16  ;;  %13458 = vmatprep.mubr.f32.mxu1 %v23785_v1 }
 0xcf1   : > { %14722 = vrot.lane.b32.xlu0 %v14694_v54, %s27704_s21 }
 0xcf2   : > { %22530 = vmatmul.mubr.msk.f32.vlgmr.msra.gmra.mrb[16].mxu1 %vm666_vm2, %v22521_v44  ;;  %v13590_v61 = vpop.permute.xlu1 %13589 }
 0xcf3   : > { %v13974_v7 = vpop.permute.xlu0 %13973  ;;  %22532 = vmatpush1.msk.msra.mxu1 %vm670_vm8, %v13231_v27  ;;  %11662 = vperm.xlu1 %23645, %v11659_v56   ;;  %v13607_v13 = vsel %vm27764_vm7, %v13590_v61, %v13592_v30  ;;  %vm27770_vm7 = vmmov %vm27766_vm4  ;;  %v22560_v27 = vld [vmem:[%s27549_s11 + $0x1c] sm:$0xf] }
 0xcf4   : > { %22535 = vmatprep.subr.msk.mxu1 %vm670_vm8, %v13608_v18  ;;  %13529 = vmatprep.mubr.f32.mxu1 %v23785_v1 }
 0xcf6   : > { %22533 = vmatmul.mubr.msk.f32.vlgmr.msra.gmra.mrb[18].mxu1 %vm666_vm2, %v22521_v44  ;;  %v13598_v26 = vpop.permute.xlu1 %13597 }
 0xcf7   : > { %v13972_v2 = vpop.permute.xlu0 %13971  ;;  %22536 = vmatpush1.msk.msra.mxu1 %vm670_vm8, %v13607_v13  ;;  %v13610_v17 = vsel %vm27765_vm9, %v13596_v31, %v13598_v26  ;;  %13698 = vmatprep.mubr.f32.mxu1 %v23785_v1  ;;  %v13611_v38 = vsel %vm27768_vm12, %v13598_v26, %v13600_v35  ;;  %vm27771_vm9 = vcmask 523264  }
 0xcf8   : > { %22538 = vmatprep.subr.msk.mxu1 %vm670_vm8, %v13610_v17  ;;  %vm27772_vm4 = vmmov %vm27771_vm9 }
 0xcf9   : > { %v13989_v60 = vsel %vm27772_vm4, %v13972_v2, %v13974_v7  ;;  %vm27774_vm12 = vmmov %vm27772_vm4 }
 0xcfa   : > { %22537 = vmatmul.mubr.msk.f32.vlgmr.msra.gmra.mrb[12].mxu1 %vm666_vm2, %v22534_v47  ;;  %v13602_v10 = vpop.permute.xlu1 %13601 }
 0xcfb   : > { %v13604_v9 = vpop.permute.xlu0 %13603  ;;  %22539 = vmatpush1.msk.msra.mxu1 %vm670_vm8, %v13609_v15  ;;  %v13612_v8 = vsel %vm27767_vm13, %v13600_v35, %v13602_v10  ;;  %13769 = vmatprep.mubr.f32.mxu1 %v23785_v1  ;;  %vm27773_vm13 = vmmov %vm27772_vm4 }
 0xcfc   : > { %22541 = vmatprep.subr.msk.mxu1 %vm670_vm8, %v13612_v8  ;;  %v13613_v39 = vsel %vm27770_vm7, %v13602_v10, %v13604_v9  ;;  %vm27776_vm7 = vmmov %vm27772_vm4 }
 0xcfe   : > { %22540 = vmatmul.mubr.msk.f32.vlgmr.msra.gmra.mrb[14].mxu1 %vm666_vm2, %v22534_v47  ;;  %v13606_v36 = vpop.permute.xlu1 %13605 }
 0xcff   : > { %v13980_v28 = vpop.permute.xlu0 %13979  ;;  %22542 = vmatpush1.msk.msra.mxu1 %vm670_vm8, %v13611_v38  ;;  %v13614_v62 = vsel %vm27769_vm11, %v13604_v9, %v13606_v36  ;;  %13840 = vmatprep.mubr.f32.mxu1 %v23785_v1  ;;  %vm27775_vm11 = vmmov %vm27772_vm4 }
 0xd00   : > { %22544 = vmatprep.subr.msk.mxu1 %vm670_vm8, %v13614_v62 }
 0xd02   : > { %22543 = vmatmul.mubr.msk.f32.vlgmr.msra.gmra.mrb[16].mxu1 %vm666_vm2, %v22534_v47  ;;  %v13976_v59 = vpop.permute.xlu1 %13975 }
 0xd03   : > { %22545 = vmatpush1.msk.msra.mxu1 %vm670_vm8, %v13613_v39  ;;  %v13990_v63 = vsel %vm27771_vm9, %v13974_v7, %v13976_v59  ;;  %13911 = vmatprep.mubr.f32.mxu1 %v23785_v1  ;;  %v13984_v19 = vpop.permute.xlu0 %13983  ;;  %vm27777_vm9 = vmmov %vm27772_vm4  ;;  %v22573_v39 = vld [vmem:[%s27549_s11 + $0x20] sm:$0xf] }
 0xd04   : > { %22548 = vmatprep.subr.msk.mxu1 %vm670_vm8, %v13990_v63 }
 0xd06   : > { %22546 = vmatmul.mubr.msk.f32.vlgmr.msra.gmra.mrb[18].mxu1 %vm666_vm2, %v22534_v47  ;;  %v13978_v24 = vpop.permute.xlu1 %13977 }
 0xd07   : > { %22549 = vmatpush1.msk.msra.mxu1 %vm670_vm8, %v13989_v60  ;;  %v13992_v44 = vsel %vm27773_vm13, %v13978_v24, %v13980_v28  ;;  %14080 = vmatprep.mubr.f32.mxu1 %v23785_v1  ;;  %v13988_v31 = vpop.permute.xlu0 %13987  ;;  %v13991_v42 = vsel %vm27774_vm12, %v13976_v59, %v13978_v24  ;;  %vm27778_vm13 = vcmask 515072  }
 0xd08   : > { %22551 = vmatprep.subr.msk.mxu1 %vm670_vm8, %v13992_v44  ;;  %vm27779_vm12 = vmmov %vm27778_vm13 }
 0xd0a   : > { %22550 = vmatmul.mubr.msk.f32.vlgmr.msra.gmra.mrb[12].mxu1 %vm666_vm2, %v22547_v0  ;;  %v13982_v14 = vpop.permute.xlu1 %13981 }
 0xd0b   : > { %22552 = vmatpush1.msk.msra.mxu1 %vm670_vm8, %v13991_v42  ;;  %v13994_v22 = vsel %vm27775_vm11, %v13982_v14, %v13984_v19  ;;  %14151 = vmatprep.mubr.f32.mxu1 %v23785_v1  ;;  %v13993_v25 = vsel %vm27776_vm7, %v13980_v28, %v13982_v14  ;;  %v14329_v37 = vpop.permute.xlu0 %14328  ;;  %vm27780_vm11 = vmmov %vm27779_vm12 }
 0xd0c   : > { %22554 = vmatprep.subr.msk.mxu1 %vm670_vm8, %v13994_v22  ;;  %vm27781_vm7 = vmmov %vm27780_vm11 }
 0xd0e   : > { %22553 = vmatmul.mubr.msk.f32.vlgmr.msra.gmra.mrb[14].mxu1 %vm666_vm2, %v22547_v0  ;;  %v14327_v35 = vpop.permute.xlu1 %14326 }
 0xd0f   : > { %22555 = vmatpush1.msk.msra.mxu1 %vm670_vm8, %v13993_v25  ;;  %14222 = vmatprep.mubr.f32.mxu1 %v23785_v1  ;;  %v14343_v54 = vsel %vm27778_vm13, %v14327_v35, %v14329_v37  ;;  %v14331_v16 = vpop.permute.xlu0 %14330 }
 0xd10   : > { %v14344_v2 = vsel %vm27781_vm7, %v14329_v37, %v14331_v16 }
 0xd12   : > { %v13986_v41 = vpop.permute.xlu1 %13985  ;;  %22556 = vmatmul.mubr.msk.f32.vlgmr.msra.gmra.mrb[16].mxu1 %vm666_vm2, %v22547_v0 }
 0xd13   : > { %v13995_v32 = vsel %vm27777_vm9, %v13984_v19, %v13986_v41  ;;  %v13996_v30 = vsel %vm27772_vm4, %v13986_v41, %v13988_v31  ;;  %14293 = vmatprep.mubr.f32.mxu1 %v23785_v1  ;;  %v14335_v13 = vpop.permute.xlu0 %14334  ;;  %vm27782_vm9 = vmmov %vm27781_vm7 }
 0xd14   : > { %22557 = vmatprep.subr.msk.mxu1 %vm670_vm8, %v13996_v30  ;;  %vm27783_vm4 = vmmov %vm27781_vm7 }
 0xd15   : > { %22558 = vmatpush1.msk.msra.mxu1 %vm670_vm8, %v13995_v32  ;;  %vm27784_vm13 = vmmov %vm27783_vm4 }
 0xd16   : > { %22561 = vmatprep.subr.msk.mxu1 %vm670_vm8, %v14343_v54  ;;  %v14325_v56 = vpop.permute.xlu1 %14324  ;;  %22559 = vmatmul.mubr.msk.f32.vlgmr.msra.gmra.mrb[18].mxu1 %vm666_vm2, %v22547_v0 }
 0xd17   : > { %v14342_v7 = vsel %vm27779_vm12, %v14325_v56, %v14327_v35  ;;  %14433 = vmatprep.mubr.f32.mxu1 %v23785_v1  ;;  %v14339_v9 = vpop.permute.xlu0 %14338  ;;  %vm27785_vm12 = vmmov %vm27783_vm4 }
 0xd18   : > { %22562 = vmatpush1.msk.msra.mxu1 %vm670_vm8, %v14342_v7 }
 0xd1a   : > { %v14333_v61 = vpop.permute.xlu1 %14332  ;;  %22563 = vmatmul.mubr.msk.f32.vlgmr.msra.gmra.mrb[12].mxu1 %vm666_vm2, %v22560_v27 }
 0xd1b   : > { %v14345_v18 = vsel %vm27780_vm11, %v14331_v16, %v14333_v61  ;;  %14504 = vmatprep.mubr.f32.mxu1 %v23785_v1  ;;  %v14346_v47 = vsel %vm27783_vm4, %v14333_v61, %v14335_v13  ;;  %vm27786_vm11 = vcmask 506880  }
 0xd1c   : > { %22564 = vmatprep.subr.msk.mxu1 %vm670_vm8, %v14345_v18  ;;  %vm27787_vm7 = vmmov %vm27786_vm11 }
 0xd1d   : > { %22565 = vmatpush1.msk.msra.mxu1 %vm670_vm8, %v14344_v2  ;;  %vm27789_vm4 = vmmov %vm27787_vm7 }
 0xd1e   : > { %v14337_v26 = vpop.permute.xlu1 %14336  ;;  %22566 = vmatmul.mubr.msk.f32.vlgmr.msra.gmra.mrb[14].mxu1 %vm666_vm2, %v22560_v27 }
 0xd1f   : > { %v14347_v17 = vsel %vm27782_vm9, %v14335_v13, %v14337_v26  ;;  %14575 = vmatprep.mubr.f32.mxu1 %v23785_v1  ;;  %v14348_v8 = vsel %vm27785_vm12, %v14337_v26, %v14339_v9  ;;  %vm27788_vm9 = vmmov %vm27787_vm7 }
 0xd20   : > { %22567 = vmatprep.subr.msk.mxu1 %vm670_vm8, %v14347_v17  ;;  %vm27791_vm12 = vmmov %vm27789_vm4 }
 0xd21   : > { %22568 = vmatpush1.msk.msra.mxu1 %vm670_vm8, %v14346_v47 }
 0xd22   : > { %v14341_v15 = vpop.permute.xlu1 %14340  ;;  %22569 = vmatmul.mubr.msk.f32.vlgmr.msra.gmra.mrb[16].mxu1 %vm666_vm2, %v22560_v27 }
 0xd23   : > { %v14349_v10 = vsel %vm27784_vm13, %v14339_v9, %v14341_v15  ;;  %14646 = vmatprep.mubr.f32.mxu1 %v23785_v1  ;;  %vm27790_vm13 = vmmov %vm27789_vm4  ;;  %v22611_v15 = vld [vmem:[%s27555_s17 + $0x2] ss:$4 sm:$0xff] }
 0xd24   : > { %22570 = vmatprep.subr.msk.mxu1 %vm670_vm8, %v14349_v10 }
 0xd25   : > { %22571 = vmatpush1.msk.msra.mxu1 %vm670_vm8, %v14348_v8 }
 0xd26   : > { %22572 = vmatmul.mubr.msk.f32.vlgmr.msra.gmra.mrb[18].mxu1 %vm666_vm2, %v22560_v27 }
 0xd27   : > { %14815 = vmatprep.mubr.f32.mxu1 %v23785_v1 }
 0xd41   : > { %v14709_v38 = vpop.permute.xlu0 %14708 }
 0xd45   : > { %v14707_v28 = vpop.permute.xlu0 %14706 }
 0xd46   : > { %v14724_v59 = vsel %vm27787_vm7, %v14707_v28, %v14709_v38  ;;  %vm27793_vm7 = vmmov %vm27789_vm4 }
 0xd53   : > { %v14711_v36 = vpop.permute.xlu1 %14710 }
 0xd54   : > { %v14725_v62 = vsel %vm27786_vm11, %v14709_v38, %v14711_v36  ;;  %vm27792_vm11 = vmmov %vm27789_vm4 }
 0xd55   : > { %22574 = vmatprep.subr.msk.mxu1 %vm670_vm8, %v14725_v62  ;;  %v15840_v62 = vrot.slane %v22611_v15, %v24066_v3 }
 0xd56   : > { %22575 = vmatpush1.msk.msra.mxu1 %vm670_vm8, %v14724_v59 }
 0xd57   : > { %22576 = vmatmul.mubr.msk.f32.vlgmr.msra.gmra.mrb[12].mxu1 %vm666_vm2, %v22573_v39  ;;  %v14713_v63 = vpop.permute.xlu1 %14712 }
 0xd58   : > { %14886 = vmatprep.mubr.f32.mxu1 %v23785_v1  ;;  %v14726_v24 = vsel %vm27789_vm4, %v14711_v36, %v14713_v63 }
 0xd5b   : > { %v14715_v19 = vpop.permute.xlu0 %14714 }
 0xd5c   : > { %v14727_v60 = vsel %vm27788_vm9, %v14713_v63, %v14715_v19  ;;  %vm27794_vm9 = vcmask 269312  }
 0xd5d   : > { %22577 = vmatprep.subr.msk.mxu1 %vm670_vm8, %v14727_v60  ;;  %v14717_v44 = vpop.permute.xlu1 %14716  ;;  %vm27795_vm4 = vmmov %vm27794_vm9 }
 0xd5e   : > { %22578 = vmatpush1.msk.msra.mxu1 %vm670_vm8, %v14726_v24  ;;  %v14728_v42 = vsel %vm27791_vm12, %v14715_v19, %v14717_v44  ;;  %vm27797_vm12 = vmmov %vm27795_vm4 }
 0xd5f   : > { %v14719_v0 = vpop.permute.xlu0 %14718  ;;  %22579 = vmatmul.mubr.msk.f32.vlgmr.msra.gmra.mrb[14].mxu1 %vm666_vm2, %v22573_v39 }
 0xd60   : > { %v14729_v31 = vsel %vm27790_vm13, %v14717_v44, %v14719_v0  ;;  %14957 = vmatprep.mubr.f32.mxu1 %v23785_v1  ;;  %v15848_v44 = vrot.slane %v22611_v15, %v25060_v34  ;;  %vm27796_vm13 = vmmov %vm27795_vm4 }
 0xd61   : > { %22580 = vmatprep.subr.msk.mxu1 %vm670_vm8, %v14729_v31  ;;  %v14721_v14 = vpop.permute.xlu1 %14720 }
 0xd62   : > { %22581 = vmatpush1.msk.msra.mxu1 %vm670_vm8, %v14728_v42  ;;  %v14730_v35 = vsel %vm27793_vm7, %v14719_v0, %v14721_v14  ;;  %v15852_v0 = vrot.slane %v22611_v15, %v25063_v46 }
 0xd63   : > { %v14723_v22 = vpop.permute.xlu0 %14722  ;;  %22582 = vmatmul.mubr.msk.f32.vlgmr.msra.gmra.mrb[16].mxu1 %vm666_vm2, %v22573_v39 }
 0xd64   : > { %v14731_v25 = vsel %vm27792_vm11, %v14721_v14, %v14723_v22  ;;  %15028 = vmatprep.mubr.f32.mxu1 %v23785_v1  ;;  %v15856_v14 = vrot.slane %v22611_v15, %v25077_v51  ;;  %v15860_v22 = vrot.slane %v22611_v15, %v25080_v45  ;;  %vm27798_vm11 = vcmask 523264  }
 0xd65   : > { %22583 = vmatprep.subr.msk.mxu1 %vm670_vm8, %v14731_v25  ;;  %v15111_v25 = vld [vmem:[%s27555_s17] ss:$4 sm:$0xff]  ;;  %vm27799_vm7 = vmmov %vm27798_vm11 }
 0xd66   : > { %22584 = vmatpush1.msk.msra.mxu1 %vm670_vm8, %v14730_v35 }
 0xd67   : > { %22585 = vmatmul.mubr.msk.f32.vlgmr.msra.gmra.mrb[18].mxu1 %vm666_vm2, %v22573_v39  ;;  %v15844_v39 = vrot.slane %v22611_v15, %v24069_v4 }
 0xd68   : > { %18682 = vmatprep.mubr.f32.mxu1 %v23785_v1 }
 0xd69   : > { %v26427_v42 = vcombine.low %v15840_v62, %v15844_v39 }
 0xd72   : > { %v11663_v37 = vpop.permute.xlu1 %11662 }
 0xe2a   : > { %v14817_v41 = vpop.f32.mrb[12].mxu1 }
 0xe2b   : > { %v23099_v32 = vadd.f32 %v14817_v41, %v11663_v37  ;;  %v14819_v30 = vpop.f32.mrb[13].mxu1  ;;  %v15864_v41 = vrot.slane %v22611_v15, %v25069_v48 }
 0xe2c   : > { %v23100_v54 = vadd.f32 %v14819_v30, %v11663_v37  ;;  %v26441_v30 = vcombine.low %v15856_v14, %v15860_v22  ;;  %v15157_v14 = vld [vmem:[%s27551_s13] sm:$0xf] }
 0xe2d   : > { %v15043_v16 = vmax.f32 %v23099_v32, 0.0  ;;  %v15868_v32 = vrot.slane %v22611_v15, %v25072_v49 }
 0xe2e   : > { %v15044_v56 = vmax.f32 %v23100_v54, 0.0  ;;  %v15116_v54 = vrot.slane %v15111_v25, %v24066_v3 }
 0xe30   : > { %v15059_v7 = vcombine.low %v15043_v16, %v15044_v56  ;;  %v15120_v16 = vrot.slane %v15111_v25, %v24069_v4  ;;  %v26445_v56 = vcombine.low %v15864_v41, %v15868_v32 }
 0xe32   : > { %v14888_v27 = vpop.f32.mrb[14].mxu1  ;;  %15063 = vrot.lane.b32.xlu0 %v15059_v7, %s27686_s18  ;;  %v15124_v7 = vrot.slane %v15111_v25, %v25060_v34 }
 0xe33   : > { %v23101_v61 = vadd.f32 %v14888_v27, %v11663_v37  ;;  %v14890_v18 = vpop.f32.mrb[15].mxu1  ;;  %v15128_v27 = vrot.slane %v15111_v25, %v25063_v46 }
 0xe34   : > { %v23102_v2 = vadd.f32 %v14890_v18, %v11663_v37  ;;  %v15132_v18 = vrot.slane %v15111_v25, %v25077_v51 }
 0xe35   : > { %v15045_v13 = vmax.f32 %v23101_v61, 0.0  ;;  %v15145_v61 = vcombine.low %v15116_v54, %v15120_v16 }
 0xe36   : > { %v15046_v26 = vmax.f32 %v23102_v2, 0.0  ;;  %v14959_v17 = vpop.f32.mrb[16].mxu1  ;;  %v15136_v2 = vrot.slane %v15111_v25, %v25080_v45 }
 0xe37   : > { %v23103_v47 = vadd.f32 %v14959_v17, %v11663_v37  ;;  %v14961_v9 = vpop.f32.mrb[17].mxu1  ;;  %v15140_v17 = vrot.slane %v15111_v25, %v25069_v48 }
 0xe38   : > { %v15060_v10 = vcombine.low %v15045_v13, %v15046_v26  ;;  %v23104_v8 = vadd.f32 %v14961_v9, %v11663_v37  ;;  %v15146_v13 = vcombine.low %v15124_v7, %v15128_v27  ;;  %v15147_v26 = vcombine.low %v15132_v18, %v15136_v2 }
 0xe39   : > { %v15047_v38 = vmax.f32 %v23103_v47, 0.0  ;;  %v15144_v47 = vrot.slane %v15111_v25, %v25072_v49 }
 0xe3a   : > { %v15048_v28 = vmax.f32 %v23104_v8, 0.0  ;;  %v15030_v36 = vpop.f32.mrb[18].mxu1  ;;  %15065 = vrot.lane.b32.xlu1 %v15060_v10, %s27686_s18 }
 0xe3b   : > { %v23105_v59 = vadd.f32 %v15030_v36, %v11663_v37  ;;  %v15032_v63 = vpop.f32.mrb[19].mxu1  ;;  %v15148_v9 = vcombine.low %v15140_v17, %v15144_v47 }
 0xe3c   : > { %v15061_v19 = vcombine.low %v15047_v38, %v15048_v28  ;;  %v23106_v60 = vadd.f32 %v15032_v63, %v11663_v37  ;;  %v26434_v37 = vcombine.low %v15848_v44, %v15852_v0 }
 0xe3d   : > { %v15049_v24 = vmax.f32 %v23105_v59, 0.0 }
 0xe3e   : > { %v15050_v31 = vmax.f32 %v23106_v60, 0.0  ;;  %15067 = vrot.lane.b32.xlu0 %v15061_v19, %s27686_s18 }
 0xe40   : > { %v15062_v35 = vcombine.low %v15049_v24, %v15050_v31 }
 0xe42   : > { %15069 = vrot.lane.b32.xlu1 %v15062_v35, %s27686_s18  ;;  %15873 = vrot.lane.b32.xlu0 %v26427_v42, %s27672_s24 }
 0xe46   : > { %15875 = vrot.lane.b32.xlu1 %v26434_v37, %s27672_s24  ;;  %15877 = vrot.lane.b32.xlu0 %v26441_v30, %s27672_s24 }
 0xe4a   : > { %15879 = vrot.lane.b32.xlu1 %v26445_v56, %s27672_s24  ;;  %16255 = vrot.lane.b32.xlu0 %v15145_v61, %s27673_s5 }
 0xe4e   : > { %16257 = vrot.lane.b32.xlu1 %v15146_v13, %s27673_s5  ;;  %16259 = vrot.lane.b32.xlu0 %v15147_v26, %s27673_s5 }
 0xe52   : > { %16261 = vrot.lane.b32.xlu1 %v15148_v9, %s27673_s5  ;;  %16990 = vrot.lane.b32.xlu0 %v26427_v42, %s27652_s27 }
 0xe56   : > { %16992 = vrot.lane.b32.xlu1 %v26434_v37, %s27652_s27  ;;  %16996 = vrot.lane.b32.xlu0 %v26445_v56, %s27652_s27 }
 0xe5a   : > { %16994 = vrot.lane.b32.xlu1 %v26441_v30, %s27652_s27  ;;  %17374 = vrot.lane.b32.xlu0 %v15146_v13, %s27687_s22 }
 0xe5e   : > { %17372 = vrot.lane.b32.xlu1 %v15145_v61, %s27687_s22  ;;  %17376 = vrot.lane.b32.xlu0 %v15147_v26, %s27687_s22 }
 0xe62   : > { %17378 = vrot.lane.b32.xlu1 %v15148_v9, %s27687_s22 }
 0xea4   : > { %v15064_v15 = vpop.permute.xlu0 %15063 }
 0xea5   : > { %v15071_v10 = vrot.slane %v15064_v15, 4 }
 0xea7   : > { %v15075_v8 = vsel %vm27794_vm9, %v15071_v10, %v15064_v15  ;;  %vm27800_vm9 = vmmov %vm27799_vm7 }
 0xea8   : > { %15087 = vst.msk [vmem:[#allocation4] sm:$0xff] %vm25193_vm3, %v15075_v8 }
 0xeac   : > { %v15066_v38 = vpop.permute.xlu1 %15065 }
 0xead   : > { %v15072_v28 = vrot.slane %v15066_v38, 4 }
 0xeaf   : > { %v15076_v36 = vsel %vm670_vm8, %v15071_v10, %v15072_v28  ;;  %v26479_v62 = vld [vmem:[#allocation4] sm:$0xff] }
 0xeb0   : > { %v26482_v39 = vsel %vm27795_vm4, %v15076_v36, %v15066_v38  ;;  %15493 = vrot.lane.b32.xlu0 %v26479_v62, %s27674_s3  ;;  %v26488_v59 = vcombine.high %v26479_v62, %v26479_v62  ;;  %v15068_v63 = vpop.permute.xlu0 %15067  ;;  %v15153_v19 = vmul.f32 %v26479_v62, %v15145_v61  ;;  %vm27801_vm4 = vmmov %vm27799_vm7 }
 0xeb1   : > { %v15073_v60 = vrot.slane %v15068_v63, 4  ;;  %v15154_v24 = vmul.f32 %v15146_v13, %v26482_v39  ;;  %v26528_v38 = vcombine.high %v26482_v39, %v26482_v39 }
 0xeb2   : > { %15495 = vrot.lane.b32.xlu1 %v26488_v59, %s27674_s3  ;;  %v15162_v44 = vcombine.high %v15153_v19, %v15153_v19 }
 0xeb3   : > { %v15078_v0 = vsel %vm670_vm8, %v15072_v28, %v15073_v60  ;;  %v15163_v31 = vcombine.high %v15154_v24, %v15154_v24 }
 0xeb4   : > { %v26499_v22 = vsel %vm27796_vm13, %v15078_v0, %v15068_v63  ;;  %v15070_v25 = vpop.permute.xlu1 %15069  ;;  %22586 = vmatprep.subr.msk.mxu0 %vm670_vm8, %v15162_v44  ;;  %v15874_v35 = vpop.permute.xlu0 %15873  ;;  %vm27802_vm13 = vcmask 539648  }
 0xeb5   : > { %v15074_v41 = vrot.slane %v15070_v25, 4  ;;  %v15881_v32 = vrot.slane %v15874_v35, 4  ;;  %22587 = vmatpush1.msk.msra.mxu0 %vm670_vm8, %v15153_v19  ;;  %v15155_v54 = vmul.f32 %v15147_v26, %v26499_v22 }
 0xeb6   : > { %22589 = vmatprep.subr.msk.mxu0 %vm670_vm8, %v15163_v31  ;;  %22588 = vmatmul.mubr.msk.f32.vlgmr.msra.gmra.mrb[12].mxu0 %vm666_vm2, %v15157_v14 }
 0xeb7   : > { %v15080_v16 = vsel %vm670_vm8, %v15073_v60, %v15074_v41  ;;  %15091 = vst.msk [vmem:[#allocation4 + $0x20] sm:$0xf] %vm624_vm10, %v15074_v41  ;;  %v15885_v7 = vsel %vm882_vm15, %v15881_v32, %v15874_v35  ;;  %22590 = vmatpush1.msk.msra.mxu0 %vm670_vm8, %v15154_v24  ;;  %15320 = vmatprep.mubr.f32.mxu0 %v23785_v1 }
 0xeb8   : > { %v15164_v27 = vcombine.high %v15155_v54, %v15155_v54  ;;  %v26512_v61 = vsel %vm27797_vm12, %v15080_v16, %v15070_v25  ;;  %v15897_v18 = vmul.f32 %v15885_v7, %v26479_v62  ;;  %v15876_v2 = vpop.permute.xlu1 %15875  ;;  %v26515_v13 = vpop.permute.xlu0 %15877  ;;  %vm27803_vm12 = vmmov %vm27802_vm13 }
 0xeb9   : > { %v15882_v26 = vrot.slane %v15876_v2, 4  ;;  %v15156_v17 = vmul.f32 %v15148_v9, %v26512_v61  ;;  %v15883_v63 = vrot.slane %v26515_v13, 4 }
 0xeba   : > { %22592 = vmatprep.subr.msk.mxu0 %vm670_vm8, %v15164_v27  ;;  %15913 = vrot.lane.b32.xlu1 %v15897_v18, %s27675_s28  ;;  %v15909_v35 = vcombine.high %v15897_v18, %v15897_v18 }
 0xebb   : > { %22591 = vmatmul.mubr.msk.f32.vlgmr.msra.gmra.mrb[14].mxu0 %vm666_vm2, %v15157_v14  ;;  %v15886_v47 = vsel %vm670_vm8, %v15881_v32, %v15882_v26  ;;  %v15165_v15 = vcombine.high %v15156_v17, %v15156_v17  ;;  %v15888_v31 = vsel %vm670_vm8, %v15882_v26, %v15883_v63 }
 0xebc   : > { %22593 = vmatpush1.msk.msra.mxu0 %vm670_vm8, %v15155_v54  ;;  %15391 = vmatprep.mubr.f32.mxu0 %v23785_v1  ;;  %v26524_v10 = vpop.permute.xlu1 %15879  ;;  %v16256_v8 = vpop.permute.xlu0 %16255  ;;  %v15887_v9 = vsel %vm882_vm15, %v15886_v47, %v15876_v2  ;;  %v15889_v32 = vsel %vm882_vm15, %v15888_v31, %v26515_v13  ;;  %v26569_v47 = vcombine.high %v26499_v22, %v26499_v22 }
 0xebd   : > { %v16263_v28 = vrot.slane %v16256_v8, 4  ;;  %22595 = vmatprep.subr.msk.mxu0 %vm670_vm8, %v15165_v15  ;;  %v15898_v36 = vmul.f32 %v15887_v9, %v26482_v39  ;;  %v15899_v54 = vmul.f32 %v15889_v32, %v26499_v22  ;;  %v15884_v27 = vrot.slane %v26524_v10, 4 }
 0xebe   : > { %15499 = vrot.lane.b32.xlu1 %v26528_v38, %s27674_s3  ;;  %v15834_v18 = vld [vmem:[#allocation4 + $0x20] sm:$0xf]  ;;  %v26573_v15 = vcombine.high %v26512_v61, %v26512_v61 }
 0xebf   : > { %22594 = vmatmul.mubr.msk.f32.vlgmr.msra.gmra.mrb[16].mxu0 %vm666_vm2, %v15157_v14  ;;  %v16267_v19 = vsel %vm2159_vm14, %v16263_v28, %v16256_v8  ;;  %v15911_v7 = vcombine.high %v15899_v54, %v15899_v54  ;;  %v15910_v13 = vcombine.high %v15898_v36, %v15898_v36  ;;  %v15901_v26 = vmul.f32 %v15884_v27, %v15834_v18 }
 0xec0   : > { %22596 = vmatpush1.msk.msra.mxu0 %vm670_vm8, %v15156_v17  ;;  %v16258_v60 = vpop.permute.xlu1 %16257  ;;  %15462 = vmatprep.mubr.f32.mxu0 %v23785_v1  ;;  %v16279_v24 = vmul.f32 %v16267_v19, %v26479_v62  ;;  %v16260_v16 = vpop.permute.xlu0 %16259  ;;  %v15481_v19 = vld [vmem:[#allocation4 + $0x20] sm:$0xf] }
 0xec1   : > { %v16264_v44 = vrot.slane %v16258_v60, 4  ;;  %v16265_v2 = vrot.slane %v16260_v16, 4 }
 0xec2   : > { %15917 = vrot.lane.b32.xlu1 %v15898_v36, %s27675_s28  ;;  %16295 = vrot.lane.b32.xlu0 %v16279_v24, %s27658_s0 }
 0xec3   : > { %22597 = vmatmul.mubr.msk.f32.vlgmr.msra.gmra.mrb[18].mxu0 %vm666_vm2, %v15157_v14  ;;  %v16268_v0 = vsel %vm670_vm8, %v16263_v28, %v16264_v44  ;;  %v16291_v14 = vcombine.high %v16279_v24, %v16279_v24  ;;  %v16270_v17 = vsel %vm670_vm8, %v16264_v44, %v16265_v2  ;;  %v15890_v44 = vsel %vm670_vm8, %v15883_v63, %v15884_v27 }
 0xec4   : > { %v16269_v25 = vsel %vm2159_vm14, %v16268_v0, %v16258_v60  ;;  %15602 = vmatprep.mubr.f32.mxu0 %v23785_v1  ;;  %v16271_v8 = vsel %vm2159_vm14, %v16270_v17, %v16260_v16  ;;  %v16262_v36 = vpop.permute.xlu1 %16261  ;;  %v16254_v0 = vld [vmem:[#allocation4 + $0x20] sm:$0xf] }
 0xec5   : > { %v16280_v41 = vmul.f32 %v16269_v25, %v26482_v39  ;;  %v16281_v28 = vmul.f32 %v16271_v8, %v26499_v22  ;;  %v16266_v60 = vrot.slane %v16262_v36, 4  ;;  %v15891_v25 = vsel %vm882_vm15, %v15890_v44, %v26524_v10 }
 0xec6   : > { %15915 = vrot.lane.b32.xlu0 %v15909_v35, %s27675_s28 }
 0xec7   : > { %16299 = vrot.lane.b32.xlu1 %v16280_v41, %s27658_s0  ;;  %v16292_v9 = vcombine.high %v16280_v41, %v16280_v41  ;;  %v16293_v24 = vcombine.high %v16281_v28, %v16281_v28  ;;  %v16283_v31 = vmul.f32 %v16266_v60, %v16254_v0  ;;  %v16272_v35 = vsel %vm670_vm8, %v16265_v2, %v16266_v60 }
 0xec8   : > { %v15900_v41 = vmul.f32 %v15891_v25, %v26512_v61  ;;  %v16273_v63 = vsel %vm2159_vm14, %v16272_v35, %v16262_v36 }
 0xec9   : > { %v16282_v32 = vmul.f32 %v16273_v63, %v26512_v61 }
 0xeca   : > { %16297 = vrot.lane.b32.xlu0 %v16291_v14, %s27658_s0  ;;  %v15912_v10 = vcombine.high %v15900_v41, %v15900_v41 }
 0xecb   : > { %15921 = vrot.lane.b32.xlu1 %v15899_v54, %s27675_s28  ;;  %v16294_v14 = vcombine.high %v16282_v32, %v16282_v32  ;;  %v16991_v54 = vpop.permute.xlu0 %16990 }
 0xecc   : > { %v16998_v27 = vrot.slane %v16991_v54, 4 }
 0xece   : > { %15497 = vrot.lane.b32.xlu0 %v26482_v39, %s27674_s3 }
 0xecf   : > { %15505 = vrot.lane.b32.xlu1 %v26512_v61, %s27674_s3  ;;  %v16997_v8 = vpop.permute.xlu0 %16996 }
 0xed2   : > { %15501 = vrot.lane.b32.xlu0 %v26499_v22, %s27674_s3 }
 0xed3   : > { %15923 = vrot.lane.b32.xlu1 %v15911_v7, %s27675_s28 }
 0xed6   : > { %15919 = vrot.lane.b32.xlu0 %v15910_v13, %s27675_s28 }
 0xed7   : > { %15929 = vrot.lane.b32.xlu1 %v15901_v26, %s27675_s28 }
 0xeda   : > { %15503 = vrot.lane.b32.xlu0 %v26569_v47, %s27674_s3 }
 0xedb   : > { %15507 = vrot.lane.b32.xlu1 %v26573_v15, %s27674_s3 }
 0xede   : > { %15509 = vrot.lane.b32.xlu0 %v15481_v19, %s27674_s3 }
 0xedf   : > { %16301 = vrot.lane.b32.xlu1 %v16292_v9, %s27658_s0  ;;  %v17002_v9 = vsel %vm2369_vm0, %v16998_v27, %v16991_v54 }
 0xee2   : > { %16303 = vrot.lane.b32.xlu0 %v16281_v28, %s27658_s0 }
 0xee3   : > { %16305 = vrot.lane.b32.xlu1 %v16293_v24, %s27658_s0  ;;  %v17375_v24 = vpop.permute.xlu0 %17374 }
 0xee6   : > { %16311 = vrot.lane.b32.xlu0 %v16283_v31, %s27658_s0  ;;  %v17001_v31 = vrot.slane %v16997_v8, 4 }
 0xee7   : > { %18107 = vrot.lane.b32.xlu1 %v26427_v42, %s27688_s25  ;;  %v16993_v42 = vpop.permute.xlu1 %16992  ;;  %v17377_v63 = vpop.permute.xlu0 %17376 }
 0xee8   : > { %v16999_v16 = vrot.slane %v16993_v42, 4 }
 0xeea   : > { %15925 = vrot.lane.b32.xlu0 %v15900_v41, %s27675_s28  ;;  %v17003_v18 = vsel %vm670_vm8, %v16998_v27, %v16999_v16 }
 0xeeb   : > { %16652 = vrot.lane.b32.xlu1 %v26482_v39, %s27659_s23  ;;  %v16995_v7 = vpop.permute.xlu1 %16994  ;;  %v17004_v13 = vsel %vm2369_vm0, %v17003_v18, %v16993_v42  ;;  %v17381_v42 = vrot.slane %v17375_v24, 4 }
 0xeec   : > { %v17000_v2 = vrot.slane %v16995_v7, 4  ;;  %v17015_v28 = vmul.f32 %v17004_v13, %v26482_v39 }
 0xeee   : > { %16307 = vrot.lane.b32.xlu0 %v16282_v32, %s27658_s0  ;;  %v17005_v26 = vsel %vm670_vm8, %v16999_v16, %v17000_v2  ;;  %v17007_v41 = vsel %vm670_vm8, %v17000_v2, %v17001_v31 }
 0xeef   : > { %16648 = vrot.lane.b32.xlu1 %v26479_v62, %s27659_s23  ;;  %v17373_v17 = vpop.permute.xlu1 %17372  ;;  %v17006_v36 = vsel %vm2369_vm0, %v17005_v26, %v16995_v7 }
 0xef0   : > { %v17380_v19 = vrot.slane %v17373_v17, 4  ;;  %v17016_v60 = vmul.f32 %v17006_v36, %v26499_v22 }
 0xef2   : > { %15927 = vrot.lane.b32.xlu0 %v15912_v10, %s27675_s28  ;;  %v17384_v44 = vsel %vm27798_vm11, %v17380_v19, %v17373_v17  ;;  %v17028_v25 = vcombine.high %v17016_v60, %v17016_v60  ;;  %v17008_v10 = vsel %vm2369_vm0, %v17007_v41, %v16997_v8  ;;  %v17385_v2 = vsel %vm670_vm8, %v17380_v19, %v17381_v42 }
 0xef3   : > { %16656 = vrot.lane.b32.xlu1 %v26499_v22, %s27659_s23  ;;  %v17396_v35 = vmul.f32 %v17384_v44, %v26479_v62  ;;  %v17379_v54 = vpop.permute.xlu1 %17378  ;;  %v17017_v16 = vmul.f32 %v17008_v10, %v26512_v61  ;;  %vm27804_vm11 = vcmask 777216  }
 0xef4   : > { %v17383_v27 = vrot.slane %v17379_v54, 4 }
 0xef5   : > { %v17408_v32 = vcombine.high %v17396_v35, %v17396_v35  ;;  %v17029_v18 = vcombine.high %v17017_v16, %v17017_v16 }
 0xef6   : > { %16650 = vrot.lane.b32.xlu0 %v26488_v59, %s27659_s23 }
 0xef7   : > { %16658 = vrot.lane.b32.xlu1 %v26569_v47, %s27659_s23 }
 0xefa   : > { %18109 = vrot.lane.b32.xlu0 %v26434_v37, %s27688_s25  ;;  %v16636_v37 = vld [vmem:[#allocation4 + $0x20] sm:$0xf] }
 0xefb   : > { %16309 = vrot.lane.b32.xlu1 %v16294_v14, %s27658_s0  ;;  %v17382_v14 = vrot.slane %v17377_v63, 4 }
 0xefd   : > { %v17387_v7 = vsel %vm670_vm8, %v17381_v42, %v17382_v14  ;;  %v17389_v26 = vsel %vm670_vm8, %v17382_v14, %v17383_v27  ;;  %v17753_v14 = vld [vmem:[#allocation4 + $0x20] sm:$0xf] }
 0xefe   : > { %16654 = vrot.lane.b32.xlu0 %v26528_v38, %s27659_s23  ;;  %v17388_v13 = vsel %vm27799_vm7, %v17387_v7, %v17377_v63  ;;  %vm27805_vm7 = vmmov %vm27804_vm11 }
 0xeff   : > { %18113 = vrot.lane.b32.xlu1 %v26445_v56, %s27688_s25  ;;  %v17027_v56 = vcombine.high %v17015_v28, %v17015_v28  ;;  %v17398_v8 = vmul.f32 %v17388_v13, %v26499_v22 }
 0xf01   : > { %v17410_v44 = vcombine.high %v17398_v8, %v17398_v8 }
 0xf02   : > { %18111 = vrot.lane.b32.xlu0 %v26441_v30, %s27688_s25  ;;  %v17014_v30 = vmul.f32 %v17002_v9, %v26479_v62  ;;  %v17386_v9 = vsel %vm27800_vm9, %v17385_v2, %v17375_v24  ;;  %vm27806_vm9 = vmmov %vm27803_vm12 }
 0xf03   : > { %16664 = vrot.lane.b32.xlu1 %v16636_v37, %s27659_s23  ;;  %v16989_v37 = vld [vmem:[#allocation4 + $0x20] sm:$0xf]  ;;  %v17397_v36 = vmul.f32 %v17386_v9, %v26482_v39 }
 0xf04   : > { %v17026_v0 = vcombine.high %v17014_v30, %v17014_v30  ;;  %v17018_v17 = vmul.f32 %v17001_v31, %v16989_v37 }
 0xf06   : > { %16660 = vrot.lane.b32.xlu0 %v26512_v61, %s27659_s23 }
 0xf07   : > { %17034 = vrot.lane.b32.xlu1 %v17015_v28, %s27660_s26  ;;  %v17390_v28 = vsel %vm27801_vm4, %v17389_v26, %v17379_v54  ;;  %vm27807_vm4 = vmmov %vm27806_vm9 }
 0xf08   : > { %v17399_v19 = vmul.f32 %v17390_v28, %v26512_v61 }
 0xf0a   : > { %16662 = vrot.lane.b32.xlu0 %v26573_v15, %s27659_s23 }
 0xf0b   : > { %17036 = vrot.lane.b32.xlu1 %v17027_v56, %s27660_s26  ;;  %v17409_v56 = vcombine.high %v17397_v36, %v17397_v36 }
 0xf0e   : > { %17032 = vrot.lane.b32.xlu0 %v17026_v0, %s27660_s26 }
 0xf0f   : > { %17040 = vrot.lane.b32.xlu1 %v17028_v25, %s27660_s26  ;;  %v17411_v25 = vcombine.high %v17399_v19, %v17399_v19 }
 0xf12   : > { %17030 = vrot.lane.b32.xlu0 %v17014_v30, %s27660_s26  ;;  %v17371_v30 = vld [vmem:[#allocation4 + $0x20] sm:$0xf] }
 0xf13   : > { %17414 = vrot.lane.b32.xlu1 %v17408_v32, %s27687_s22 }
 0xf16   : > { %17038 = vrot.lane.b32.xlu0 %v17016_v60, %s27660_s26  ;;  %v17400_v60 = vmul.f32 %v17383_v27, %v17371_v30 }
 0xf17   : > { %17412 = vrot.lane.b32.xlu1 %v17396_v35, %s27687_s22 }
 0xf1a   : > { %17042 = vrot.lane.b32.xlu0 %v17017_v16, %s27660_s26 }
 0xf1b   : > { %17044 = vrot.lane.b32.xlu1 %v17029_v18, %s27660_s26 }
 0xf1e   : > { %17046 = vrot.lane.b32.xlu0 %v17018_v17, %s27660_s26 }
 0xf1f   : > { %17420 = vrot.lane.b32.xlu1 %v17398_v8, %s27687_s22 }
 0xf22   : > { %17416 = vrot.lane.b32.xlu0 %v17397_v36, %s27687_s22  ;;  %v15494_v35 = vpop.permute.xlu0 %15493 }
 0xf23   : > { %17424 = vrot.lane.b32.xlu1 %v17399_v19, %s27687_s22 }
 0xf24   : > { %v15496_v24 = vpop.permute.xlu1 %15495 }
 0xf25   : > { %v15511_v16 = vsel %vm782_vm1, %v15494_v35, %v15496_v24 }
 0xf26   : > { %17418 = vrot.lane.b32.xlu0 %v17409_v56, %s27687_s22 }
 0xf27   : > { %17428 = vrot.lane.b32.xlu1 %v17400_v60, %s27687_s22 }
 0xf2a   : > { %17422 = vrot.lane.b32.xlu0 %v17410_v44, %s27687_s22 }
 0xf2b   : > { %17769 = vrot.lane.b32.xlu1 %v26482_v39, %s27700_s19 }
 0xf2c   : > { %v15914_v0 = vpop.permute.xlu1 %15913 }
 0xf2e   : > { %17767 = vrot.lane.b32.xlu0 %v26488_v59, %s27700_s19 }
 0xf2f   : > { %17771 = vrot.lane.b32.xlu1 %v26528_v38, %s27700_s19 }
 0xf30   : > { %v15500_v31 = vpop.permute.xlu1 %15499 }
 0xf32   : > { %17426 = vrot.lane.b32.xlu0 %v17411_v25, %s27687_s22  ;;  %v22612_v25 = vld [vmem:[%s27551_s13 + $0x8] sm:$0xf] }
 0xf33   : > { %17775 = vrot.lane.b32.xlu1 %v26569_v47, %s27700_s19 }
 0xf34   : > { %v15918_v41 = vpop.permute.xlu1 %15917  ;;  %v26670_v63 = vpop.permute.xlu0 %16295 }
 0xf36   : > { %17765 = vrot.lane.b32.xlu0 %v26479_v62, %s27700_s19 }
 0xf37   : > { %17779 = vrot.lane.b32.xlu1 %v26573_v15, %s27700_s19  ;;  %v22598_v15 = vld [vmem:[%s27551_s13 + $0x4] sm:$0xf] }
 0xf38   : > { %v15916_v59 = vpop.permute.xlu0 %15915 }
 0xf39   : > { %v26676_v32 = vpop.permute.xlu1 %16299  ;;  %v15932_v56 = vsel %vm899_vm6, %v15916_v59, %v15918_v41  ;;  %v15931_v60 = vsel %vm899_vm6, %v15914_v0, %v15916_v59 }
 0xf3a   : > { %17773 = vrot.lane.b32.xlu0 %v26499_v22, %s27700_s19 }
 0xf3c   : > { %v26680_v38 = vpop.permute.xlu0 %16297 }
 0xf3d   : > { %v26682_v10 = vpop.permute.xlu1 %15921 }
 0xf3e   : > { %17777 = vrot.lane.b32.xlu0 %v26512_v61, %s27700_s19 }
 0xf40   : > { %v15498_v47 = vpop.permute.xlu0 %15497 }
 0xf41   : > { %v15506_v42 = vpop.permute.xlu1 %15505  ;;  %v15512_v54 = vsel %vm782_vm1, %v15496_v24, %v15498_v47  ;;  %v15513_v2 = vsel %vm782_vm1, %v15498_v47, %v15500_v31 }
 0xf42   : > { %17781 = vrot.lane.b32.xlu0 %v17753_v14, %s27700_s19  ;;  %22599 = vmatprep.subr.msk.mxu0 %vm670_vm8, %v15512_v54 }
 0xf43   : > { %22600 = vmatpush1.msk.msra.mxu0 %vm670_vm8, %v15511_v16 }
 0xf44   : > { %v15502_v7 = vpop.permute.xlu0 %15501  ;;  %22601 = vmatmul.mubr.msk.f32.vlgmr.msra.gmra.mrb[12].mxu0 %vm666_vm2, %v22598_v15 }
 0xf45   : > { %v15924_v27 = vpop.permute.xlu1 %15923  ;;  %v15514_v18 = vsel %vm782_vm1, %v15500_v31, %v15502_v7  ;;  %15673 = vmatprep.mubr.f32.mxu0 %v23785_v1 }
 0xf46   : > { %22602 = vmatprep.subr.msk.mxu0 %vm670_vm8, %v15514_v18  ;;  %v15935_v16 = vsel %vm899_vm6, %v26682_v10, %v15924_v27 }
 0xf47   : > { %22603 = vmatpush1.msk.msra.mxu0 %vm670_vm8, %v15513_v2 }
 0xf48   : > { %v15920_v13 = vpop.permute.xlu0 %15919  ;;  %22604 = vmatmul.mubr.msk.f32.vlgmr.msra.gmra.mrb[14].mxu0 %vm666_vm2, %v22598_v15 }
 0xf49   : > { %v15930_v37 = vpop.permute.xlu1 %15929  ;;  %15744 = vmatprep.mubr.f32.mxu0 %v23785_v1  ;;  %v15934_v31 = vsel %vm899_vm6, %v15920_v13, %v26682_v10  ;;  %v15933_v0 = vsel %vm899_vm6, %v15918_v41, %v15920_v13 }
 0xf4c   : > { %v15504_v26 = vpop.permute.xlu0 %15503 }
 0xf4d   : > { %v15515_v17 = vsel %vm782_vm1, %v15502_v7, %v15504_v26  ;;  %v15508_v8 = vpop.permute.xlu1 %15507  ;;  %v15516_v9 = vsel %vm782_vm1, %v15504_v26, %v15506_v42 }
 0xf4e   : > { %22605 = vmatprep.subr.msk.mxu0 %vm670_vm8, %v15516_v9  ;;  %v15517_v30 = vsel %vm782_vm1, %v15506_v42, %v15508_v8 }
 0xf4f   : > { %22606 = vmatpush1.msk.msra.mxu0 %vm670_vm8, %v15515_v17  ;;  %v16313_v17 = vsel %vm2176_vm5, %v26670_v63, %v26680_v38 }
 0xf50   : > { %22607 = vmatmul.mubr.msk.f32.vlgmr.msra.gmra.mrb[16].mxu0 %vm666_vm2, %v22598_v15  ;;  %v15510_v28 = vpop.permute.xlu0 %15509 }
 0xf51   : > { %v15518_v36 = vsel %vm782_vm1, %v15508_v8, %v15510_v28  ;;  %v16302_v19 = vpop.permute.xlu1 %16301  ;;  %15815 = vmatprep.mubr.f32.mxu0 %v23785_v1  ;;  %v22625_v28 = vld [vmem:[%s27551_s13 + $0xc] sm:$0xf] }
 0xf52   : > { %22608 = vmatprep.subr.msk.mxu0 %vm670_vm8, %v15518_v36  ;;  %v16315_v63 = vsel %vm2176_vm5, %v26676_v32, %v16302_v19 }
 0xf53   : > { %22609 = vmatpush1.msk.msra.mxu0 %vm670_vm8, %v15517_v30 }
 0xf54   : > { %22610 = vmatmul.mubr.msk.f32.vlgmr.msra.gmra.mrb[18].mxu0 %vm666_vm2, %v22598_v15  ;;  %22613 = vmatprep.subr.msk.mxu0 %vm670_vm8, %v15932_v56  ;;  %v16304_v24 = vpop.permute.xlu0 %16303 }
 0xf55   : > { %v16306_v44 = vpop.permute.xlu1 %16305  ;;  %22614 = vmatpush1.msk.msra.mxu0 %vm670_vm8, %v15931_v60  ;;  %16022 = vmatprep.mubr.f32.mxu0 %v23785_v1 }
 0xf56   : > { %22616 = vmatprep.subr.msk.mxu0 %vm670_vm8, %v15934_v31  ;;  %v16317_v31 = vsel %vm2176_vm5, %v16304_v24, %v16306_v44 }
 0xf58   : > { %22615 = vmatmul.mubr.msk.f32.vlgmr.msra.gmra.mrb[12].mxu0 %vm666_vm2, %v22612_v25  ;;  %v16312_v35 = vpop.permute.xlu0 %16311 }
 0xf59   : > { %22617 = vmatpush1.msk.msra.mxu0 %vm670_vm8, %v15933_v0  ;;  %v18108_v59 = vpop.permute.xlu1 %18107  ;;  %16093 = vmatprep.mubr.f32.mxu0 %v23785_v1 }
 0xf5a   : > { %v18115_v47 = vrot.slane %v18108_v59, 4 }
 0xf5c   : > { %v18119_v42 = vsel %vm27802_vm13, %v18115_v47, %v18108_v59  ;;  %v15926_v14 = vpop.permute.xlu0 %15925  ;;  %22618 = vmatmul.mubr.msk.f32.vlgmr.msra.gmra.mrb[14].mxu0 %vm666_vm2, %v22612_v25  ;;  %vm27808_vm13 = vmmov %vm27805_vm7 }
 0xf5d   : > { %v18131_v54 = vmul.f32 %v18119_v42, %v26479_v62  ;;  %v26731_v15 = vpop.permute.xlu1 %16652  ;;  %v15936_v41 = vsel %vm899_vm6, %v15924_v27, %v15926_v14  ;;  %16164 = vmatprep.mubr.f32.mxu0 %v23785_v1  ;;  %v16314_v27 = vsel %vm2176_vm5, %v26680_v38, %v26676_v32 }
 0xf5e   : > { %22619 = vmatprep.subr.msk.mxu0 %vm670_vm8, %v15936_v41 }
 0xf5f   : > { %v18143_v7 = vcombine.high %v18131_v54, %v18131_v54  ;;  %22620 = vmatpush1.msk.msra.mxu0 %vm670_vm8, %v15935_v16 }
 0xf60   : > { %v16308_v18 = vpop.permute.xlu0 %16307  ;;  %22621 = vmatmul.mubr.msk.f32.vlgmr.msra.gmra.mrb[16].mxu0 %vm666_vm2, %v22612_v25 }
 0xf61   : > { %v16649_v2 = vpop.permute.xlu1 %16648  ;;  %18149 = vrot.lane.b32.xlu1 %v18143_v7, %s27704_s21  ;;  %16235 = vmatprep.mubr.f32.mxu0 %v23785_v1  ;;  %v16318_v56 = vsel %vm2176_vm5, %v16306_v44, %v16308_v18 }
 0xf64   : > { %v15928_v62 = vpop.permute.xlu0 %15927 }
 0xf65   : > { %v15937_v13 = vsel %vm899_vm6, %v15926_v14, %v15928_v62  ;;  %v26743_v26 = vpop.permute.xlu1 %16656  ;;  %18147 = vrot.lane.b32.xlu1 %v18131_v54, %s27704_s21  ;;  %v15938_v10 = vsel %vm899_vm6, %v15928_v62, %v15930_v37  ;;  %v16316_v37 = vsel %vm2176_vm5, %v16302_v19, %v16304_v24 }
 0xf66   : > { %22622 = vmatprep.subr.msk.mxu0 %vm670_vm8, %v15938_v10 }
 0xf67   : > { %22623 = vmatpush1.msk.msra.mxu0 %vm670_vm8, %v15937_v13 }
 0xf68   : > { %22624 = vmatmul.mubr.msk.f32.vlgmr.msra.gmra.mrb[18].mxu0 %vm666_vm2, %v22612_v25  ;;  %22626 = vmatprep.subr.msk.mxu0 %vm670_vm8, %v16314_v27  ;;  %v16651_v8 = vpop.permute.xlu0 %16650 }
 0xf69   : > { %v26757_v9 = vpop.permute.xlu1 %16658  ;;  %22627 = vmatpush1.msk.msra.mxu0 %vm670_vm8, %v16313_v17  ;;  %16404 = vmatprep.mubr.f32.mxu0 %v23785_v1  ;;  %v16666_v16 = vsel %vm27805_vm7, %v16649_v2, %v16651_v8  ;;  %v22638_v2 = vld [vmem:[%s27551_s13 + $0x10] sm:$0xf] }
 0xf6a   : > { %22629 = vmatprep.subr.msk.mxu0 %vm670_vm8, %v16316_v37 }
 0xf6c   : > { %22628 = vmatmul.mubr.msk.f32.vlgmr.msra.gmra.mrb[12].mxu0 %vm666_vm2, %v22625_v28  ;;  %v18110_v38 = vpop.permute.xlu0 %18109 }
 0xf6d   : > { %22630 = vmatpush1.msk.msra.mxu0 %vm670_vm8, %v16315_v63  ;;  %v18116_v36 = vrot.slane %v18110_v38, 4  ;;  %v16310_v30 = vpop.permute.xlu1 %16309  ;;  %16475 = vmatprep.mubr.f32.mxu0 %v23785_v1 }
 0xf6e   : > { %22632 = vmatprep.subr.msk.mxu0 %vm670_vm8, %v16318_v56  ;;  %v16320_v59 = vsel %vm2176_vm5, %v16310_v30, %v16312_v35  ;;  %v16319_v24 = vsel %vm2176_vm5, %v16308_v18, %v16310_v30  ;;  %v16667_v35 = vsel %vm27804_vm11, %v16651_v8, %v26731_v15  ;;  %vm27810_vm11 = vmmov %vm27805_vm7 }
 0xf6f   : > { %v18120_v60 = vsel %vm670_vm8, %v18115_v47, %v18116_v36 }
 0xf70   : > { %v18121_v25 = vsel %vm27803_vm12, %v18120_v60, %v18110_v38  ;;  %22631 = vmatmul.mubr.msk.f32.vlgmr.msra.gmra.mrb[14].mxu0 %vm666_vm2, %v22625_v28  ;;  %v16655_v32 = vpop.permute.xlu0 %16654  ;;  %vm27809_vm12 = vmmov %vm27805_vm7  ;;  %v18106_v38 = vld [vmem:[#allocation4 + $0x20] sm:$0xf] }
 0xf71   : > { %v18132_v19 = vmul.f32 %v18121_v25, %v26482_v39  ;;  %22633 = vmatpush1.msk.msra.mxu0 %vm670_vm8, %v16317_v31  ;;  %v18114_v0 = vpop.permute.xlu1 %18113  ;;  %16546 = vmatprep.mubr.f32.mxu0 %v23785_v1  ;;  %v16669_v27 = vsel %vm27808_vm13, %v16655_v32, %v26743_v26  ;;  %vm27813_vm13 = vcmask 769024  }
 0xf72   : > { %22635 = vmatprep.subr.msk.mxu0 %vm670_vm8, %v16320_v59  ;;  %v18118_v42 = vrot.slane %v18114_v0, 4 }
 0xf73   : > { %18151 = vrot.lane.b32.xlu0 %v18132_v19, %s27704_s21  ;;  %v18144_v47 = vcombine.high %v18132_v19, %v18132_v19 }
 0xf74   : > { %22634 = vmatmul.mubr.msk.f32.vlgmr.msra.gmra.mrb[16].mxu0 %vm666_vm2, %v22625_v28  ;;  %v18112_v44 = vpop.permute.xlu0 %18111  ;;  %v18135_v30 = vmul.f32 %v18118_v42, %v18106_v38 }
 0xf75   : > { %22636 = vmatpush1.msk.msra.mxu0 %vm670_vm8, %v16319_v24  ;;  %v18117_v39 = vrot.slane %v18112_v44, 4  ;;  %v16665_v14 = vpop.permute.xlu1 %16664  ;;  %16617 = vmatprep.mubr.f32.mxu0 %v23785_v1 }
 0xf76   : > { %22639 = vmatprep.subr.msk.mxu0 %vm670_vm8, %v16667_v35 }
 0xf77   : > { %v18122_v54 = vsel %vm670_vm8, %v18116_v36, %v18117_v39  ;;  %v18124_v41 = vsel %vm670_vm8, %v18117_v39, %v18118_v42  ;;  %18153 = vrot.lane.b32.xlu0 %v18144_v47, %s27704_s21 }
 0xf78   : > { %v18123_v7 = vsel %vm27806_vm9, %v18122_v54, %v18112_v44  ;;  %22637 = vmatmul.mubr.msk.f32.vlgmr.msra.gmra.mrb[18].mxu0 %vm666_vm2, %v22625_v28  ;;  %v16661_v18 = vpop.permute.xlu0 %16660  ;;  %v18125_v62 = vsel %vm27807_vm4, %v18124_v41, %v18114_v0  ;;  %vm27811_vm9 = vmmov %vm27805_vm7  ;;  %v22651_v44 = vld [vmem:[%s27551_s13 + $0x14] sm:$0xf] }
 0xf79   : > { %v18133_v13 = vmul.f32 %v18123_v7, %v26499_v22  ;;  %22640 = vmatpush1.msk.msra.mxu0 %vm670_vm8, %v16666_v16  ;;  %v17035_v10 = vpop.permute.xlu1 %17034  ;;  %16757 = vmatprep.mubr.f32.mxu0 %v23785_v1  ;;  %v18134_v8 = vmul.f32 %v18125_v62, %v26512_v61  ;;  %v16668_v22 = vsel %vm27809_vm12, %v26731_v15, %v16655_v32  ;;  %vm27812_vm4 = vmmov %vm27805_vm7 }
 0xf7a   : > { %22642 = vmatprep.subr.msk.mxu0 %vm670_vm8, %v16669_v27  ;;  %v16671_v63 = vsel %vm27810_vm11, %v26757_v9, %v16661_v18  ;;  %v16670_v15 = vsel %vm27805_vm7, %v26743_v26, %v26757_v9  ;;  %v15092_v26 = vld [vmem:[%s27552_s14] sm:$0xf]  ;;  %vm27814_vm12 = vmmov %vm27813_vm13 }
 0xf7b   : > { %v18145_v17 = vcombine.high %v18133_v13, %v18133_v13  ;;  %18155 = vrot.lane.b32.xlu1 %v18133_v13, %s27704_s21  ;;  %v18146_v61 = vcombine.high %v18134_v8, %v18134_v8  ;;  %vm27815_vm11 = vmmov %vm27814_vm12 }
 0xf7c   : > { %22641 = vmatmul.mubr.msk.f32.vlgmr.msra.gmra.mrb[12].mxu0 %vm666_vm2, %v22638_v2  ;;  %v16663_v37 = vpop.permute.xlu0 %16662  ;;  %vm27816_vm7 = vmmov %vm27815_vm11 }
 0xf7d   : > { %22643 = vmatpush1.msk.msra.mxu0 %vm670_vm8, %v16668_v22  ;;  %v17037_v28 = vpop.permute.xlu1 %17036  ;;  %18157 = vrot.lane.b32.xlu0 %v18145_v17, %s27704_s21  ;;  %v16673_v60 = vsel %vm27811_vm9, %v16663_v37, %v16665_v14  ;;  %v16672_v9 = vsel %vm27812_vm4, %v16661_v18, %v16663_v37  ;;  %vm27817_vm9 = vmmov %vm27816_vm7  ;;  %v22664_v17 = vld [vmem:[%s27551_s13 + $0x18] sm:$0xf] }
 0xf7e   : > { %22645 = vmatprep.subr.msk.mxu0 %vm670_vm8, %v16671_v63  ;;  %16828 = vmatprep.mubr.f32.mxu0 %v23785_v1  ;;  %v17050_v47 = vsel %vm27816_vm7, %v17035_v10, %v17037_v28  ;;  %vm27818_vm4 = vmmov %vm27816_vm7 }
 0xf7f   : > { %18159 = vrot.lane.b32.xlu1 %v18134_v8, %s27704_s21 }
 0xf80   : > { %22644 = vmatmul.mubr.msk.f32.vlgmr.msra.gmra.mrb[14].mxu0 %vm666_vm2, %v22638_v2  ;;  %v17033_v36 = vpop.permute.xlu0 %17032 }
 0xf81   : > { %22646 = vmatpush1.msk.msra.mxu0 %vm670_vm8, %v16670_v15  ;;  %v17041_v56 = vpop.permute.xlu1 %17040  ;;  %18161 = vrot.lane.b32.xlu0 %v18146_v61, %s27704_s21  ;;  %v17049_v32 = vsel %vm27813_vm13, %v17033_v36, %v17035_v10  ;;  %vm27819_vm13 = vmmov %vm27818_vm4 }
 0xf82   : > { %22648 = vmatprep.subr.msk.mxu0 %vm670_vm8, %v16673_v60  ;;  %16899 = vmatprep.mubr.f32.mxu0 %v23785_v1 }
 0xf83   : > { %18163 = vrot.lane.b32.xlu1 %v18135_v30, %s27704_s21 }
 0xf84   : > { %22647 = vmatmul.mubr.msk.f32.vlgmr.msra.gmra.mrb[16].mxu0 %vm666_vm2, %v22638_v2  ;;  %v17031_v31 = vpop.permute.xlu0 %17030 }
 0xf85   : > { %22649 = vmatpush1.msk.msra.mxu0 %vm670_vm8, %v16672_v9  ;;  %v17415_v25 = vpop.permute.xlu1 %17414  ;;  %15095 = vperm.xlu0 %23644, %v15092_v26   ;;  %v17048_v19 = vsel %vm27814_vm12, %v17031_v31, %v17033_v36  ;;  %vm27820_vm12 = vmmov %vm27818_vm4  ;;  %v22677_v31 = vld [vmem:[%s27551_s13 + $0x1c] sm:$0xf] }
 0xf86   : > { %22652 = vmatprep.subr.msk.mxu0 %vm670_vm8, %v17049_v32  ;;  %16970 = vmatprep.mubr.f32.mxu0 %v23785_v1 }
 0xf88   : > { %22650 = vmatmul.mubr.msk.f32.vlgmr.msra.gmra.mrb[18].mxu0 %vm666_vm2, %v22638_v2  ;;  %v17039_v0 = vpop.permute.xlu0 %17038 }
 0xf89   : > { %22653 = vmatpush1.msk.msra.mxu0 %vm670_vm8, %v17048_v19  ;;  %v17413_v59 = vpop.permute.xlu1 %17412  ;;  %v17051_v24 = vsel %vm27815_vm11, %v17037_v28, %v17039_v0  ;;  %17139 = vmatprep.mubr.f32.mxu0 %v23785_v1  ;;  %v17052_v35 = vsel %vm27818_vm4, %v17039_v0, %v17041_v56  ;;  %vm27821_vm11 = vcmask 523264  }
 0xf8a   : > { %22655 = vmatprep.subr.msk.mxu0 %vm670_vm8, %v17051_v24  ;;  %vm27822_vm7 = vmmov %vm27821_vm11 }
 0xf8b   : > { %v17430_v10 = vsel %vm27822_vm7, %v17413_v59, %v17415_v25  ;;  %vm27824_vm4 = vmmov %vm27822_vm7 }
 0xf8c   : > { %22654 = vmatmul.mubr.msk.f32.vlgmr.msra.gmra.mrb[12].mxu0 %vm666_vm2, %v22651_v44  ;;  %v17043_v42 = vpop.permute.xlu0 %17042 }
 0xf8d   : > { %22656 = vmatpush1.msk.msra.mxu0 %vm670_vm8, %v17050_v47  ;;  %v17045_v39 = vpop.permute.xlu1 %17044  ;;  %v17053_v14 = vsel %vm27817_vm9, %v17041_v56, %v17043_v42  ;;  %17210 = vmatprep.mubr.f32.mxu0 %v23785_v1  ;;  %vm27823_vm9 = vmmov %vm27822_vm7 }
 0xf8e   : > { %22658 = vmatprep.subr.msk.mxu0 %vm670_vm8, %v17053_v14  ;;  %v17054_v7 = vsel %vm27820_vm12, %v17043_v42, %v17045_v39  ;;  %vm27826_vm12 = vmmov %vm27824_vm4 }
 0xf8f   : > { %vm27828_vm7 = vmmov %vm27824_vm4 }
 0xf90   : > { %22657 = vmatmul.mubr.msk.f32.vlgmr.msra.gmra.mrb[14].mxu0 %vm666_vm2, %v22651_v44  ;;  %v17047_v54 = vpop.permute.xlu0 %17046 }
 0xf91   : > { %22659 = vmatpush1.msk.msra.mxu0 %vm670_vm8, %v17052_v35  ;;  %v17055_v41 = vsel %vm27819_vm13, %v17045_v39, %v17047_v54  ;;  %v17421_v16 = vpop.permute.xlu1 %17420  ;;  %17281 = vmatprep.mubr.f32.mxu0 %v23785_v1  ;;  %vm27825_vm13 = vmmov %vm27824_vm4 }
 0xf92   : > { %22661 = vmatprep.subr.msk.mxu0 %vm670_vm8, %v17055_v41 }
 0xf94   : > { %22660 = vmatmul.mubr.msk.f32.vlgmr.msra.gmra.mrb[16].mxu0 %vm666_vm2, %v22651_v44  ;;  %v17417_v18 = vpop.permute.xlu0 %17416 }
 0xf95   : > { %22662 = vmatpush1.msk.msra.mxu0 %vm670_vm8, %v17054_v7  ;;  %v17431_v62 = vsel %vm27821_vm11, %v17415_v25, %v17417_v18  ;;  %17352 = vmatprep.mubr.f32.mxu0 %v23785_v1  ;;  %v17425_v13 = vpop.permute.xlu1 %17424  ;;  %vm27827_vm11 = vmmov %vm27824_vm4  ;;  %v22690_v7 = vld [vmem:[%s27551_s13 + $0x20] sm:$0xf] }
 0xf96   : > { %22665 = vmatprep.subr.msk.mxu0 %vm670_vm8, %v17431_v62 }
 0xf98   : > { %22663 = vmatmul.mubr.msk.f32.vlgmr.msra.gmra.mrb[18].mxu0 %vm666_vm2, %v22651_v44  ;;  %v17419_v27 = vpop.permute.xlu0 %17418 }
 0xf99   : > { %22666 = vmatpush1.msk.msra.mxu0 %vm670_vm8, %v17430_v10  ;;  %v17433_v2 = vsel %vm27823_vm9, %v17419_v27, %v17421_v16  ;;  %17521 = vmatprep.mubr.f32.mxu0 %v23785_v1  ;;  %v17432_v8 = vsel %vm27824_vm4, %v17417_v18, %v17419_v27  ;;  %v17429_v22 = vpop.permute.xlu1 %17428  ;;  %vm27829_vm9 = vcmask 515072  }
 0xf9a   : > { %22668 = vmatprep.subr.msk.mxu0 %vm670_vm8, %v17433_v2  ;;  %vm27830_vm4 = vmmov %vm27829_vm9 }
 0xf9c   : > { %22667 = vmatmul.mubr.msk.f32.vlgmr.msra.gmra.mrb[12].mxu0 %vm666_vm2, %v22664_v17  ;;  %v17423_v37 = vpop.permute.xlu0 %17422 }
 0xf9d   : > { %22669 = vmatpush1.msk.msra.mxu0 %vm670_vm8, %v17432_v8  ;;  %v17435_v28 = vsel %vm27825_vm13, %v17423_v37, %v17425_v13  ;;  %17592 = vmatprep.mubr.f32.mxu0 %v23785_v1  ;;  %v17434_v63 = vsel %vm27826_vm12, %v17421_v16, %v17423_v37  ;;  %v17770_v15 = vpop.permute.xlu1 %17769  ;;  %vm27831_vm13 = vmmov %vm27830_vm4 }
 0xf9e   : > { %22671 = vmatprep.subr.msk.mxu0 %vm670_vm8, %v17435_v28  ;;  %vm27832_vm12 = vmmov %vm27830_vm4 }
 0xfa0   : > { %22670 = vmatmul.mubr.msk.f32.vlgmr.msra.gmra.mrb[14].mxu0 %vm666_vm2, %v22664_v17  ;;  %v17768_v61 = vpop.permute.xlu0 %17767 }
 0xfa1   : > { %22672 = vmatpush1.msk.msra.mxu0 %vm670_vm8, %v17434_v63  ;;  %17663 = vmatprep.mubr.f32.mxu0 %v23785_v1  ;;  %v17784_v56 = vsel %vm27829_vm9, %v17768_v61, %v17770_v15  ;;  %v17772_v60 = vpop.permute.xlu1 %17771  ;;  %vm27835_vm9 = vmmov %vm27830_vm4 }
 0xfa2   : > { %v17785_v19 = vsel %vm27832_vm12, %v17770_v15, %v17772_v60 }
 0xfa4   : > { %v17427_v38 = vpop.permute.xlu0 %17426  ;;  %22673 = vmatmul.mubr.msk.f32.vlgmr.msra.gmra.mrb[16].mxu0 %vm666_vm2, %v22664_v17 }
 0xfa5   : > { %v17436_v36 = vsel %vm27827_vm11, %v17425_v13, %v17427_v38  ;;  %v17437_v30 = vsel %vm27828_vm7, %v17427_v38, %v17429_v22  ;;  %17734 = vmatprep.mubr.f32.mxu0 %v23785_v1  ;;  %v17776_v0 = vpop.permute.xlu1 %17775  ;;  %vm27833_vm11 = vmmov %vm27830_vm4 }
 0xfa6   : > { %22674 = vmatprep.subr.msk.mxu0 %vm670_vm8, %v17437_v30  ;;  %vm27834_vm7 = vmmov %vm27830_vm4 }
 0xfa7   : > { %22675 = vmatpush1.msk.msra.mxu0 %vm670_vm8, %v17436_v36 }
 0xfa8   : > { %22678 = vmatprep.subr.msk.mxu0 %vm670_vm8, %v17784_v56  ;;  %v17766_v26 = vpop.permute.xlu0 %17765  ;;  %22676 = vmatmul.mubr.msk.f32.vlgmr.msra.gmra.mrb[18].mxu0 %vm666_vm2, %v22664_v17 }
 0xfa9   : > { %v17783_v9 = vsel %vm27830_vm4, %v17766_v26, %v17768_v61  ;;  %17874 = vmatprep.mubr.f32.mxu0 %v23785_v1  ;;  %v17780_v47 = vpop.permute.xlu1 %17779 }
 0xfaa   : > { %22679 = vmatpush1.msk.msra.mxu0 %vm670_vm8, %v17783_v9 }
 0xfac   : > { %v17774_v25 = vpop.permute.xlu0 %17773  ;;  %22680 = vmatmul.mubr.msk.f32.vlgmr.msra.gmra.mrb[12].mxu0 %vm666_vm2, %v22677_v31 }
 0xfad   : > { %v17786_v32 = vsel %vm27831_vm13, %v17772_v60, %v17774_v25  ;;  %17945 = vmatprep.mubr.f32.mxu0 %v23785_v1  ;;  %v17787_v44 = vsel %vm27834_vm7, %v17774_v25, %v17776_v0  ;;  %vm27836_vm13 = vcmask 506880  }
 0xfae   : > { %22681 = vmatprep.subr.msk.mxu0 %vm670_vm8, %v17786_v32  ;;  %vm27837_vm12 = vmmov %vm27836_vm13 }
 0xfaf   : > { %22682 = vmatpush1.msk.msra.mxu0 %vm670_vm8, %v17785_v19 }
 0xfb0   : > { %v17778_v59 = vpop.permute.xlu0 %17777  ;;  %22683 = vmatmul.mubr.msk.f32.vlgmr.msra.gmra.mrb[14].mxu0 %vm666_vm2, %v22677_v31 }
 0xfb1   : > { %v17788_v24 = vsel %vm27833_vm11, %v17776_v0, %v17778_v59  ;;  %18016 = vmatprep.mubr.f32.mxu0 %v23785_v1  ;;  %v17789_v14 = vsel %vm27830_vm4, %v17778_v59, %v17780_v47  ;;  %vm27838_vm11 = vmmov %vm27837_vm12 }
 0xfb2   : > { %22684 = vmatprep.subr.msk.mxu0 %vm670_vm8, %v17788_v24  ;;  %vm27839_vm7 = vmmov %vm27838_vm11 }
 0xfb3   : > { %22685 = vmatpush1.msk.msra.mxu0 %vm670_vm8, %v17787_v44  ;;  %vm27841_vm4 = vmmov %vm27839_vm7 }
 0xfb4   : > { %v17782_v42 = vpop.permute.xlu0 %17781  ;;  %22686 = vmatmul.mubr.msk.f32.vlgmr.msra.gmra.mrb[16].mxu0 %vm666_vm2, %v22677_v31 }
 0xfb5   : > { %v17790_v39 = vsel %vm27835_vm9, %v17780_v47, %v17782_v42  ;;  %18087 = vmatprep.mubr.f32.mxu0 %v23785_v1  ;;  %vm27840_vm9 = vmmov %vm27839_vm7  ;;  %v22728_v42 = vld [vmem:[%s27555_s17 + $0x2] ss:$4 sm:$0xff] }
 0xfb6   : > { %22687 = vmatprep.subr.msk.mxu0 %vm670_vm8, %v17790_v39  ;;  %v19285_v55 = vrot.slane %v22728_v42, %v25063_v46  ;;  %v19289_v12 = vrot.slane %v22728_v42, %v25077_v51 }
 0xfb7   : > { %22688 = vmatpush1.msk.msra.mxu0 %vm670_vm8, %v17789_v14 }
 0xfb8   : > { %22689 = vmatmul.mubr.msk.f32.vlgmr.msra.gmra.mrb[18].mxu0 %vm666_vm2, %v22677_v31 }
 0xfb9   : > { %18256 = vmatprep.mubr.f32.mxu0 %v23785_v1 }
 0xfd3   : > { %v18150_v35 = vpop.permute.xlu1 %18149 }
 0xfd7   : > { %v18148_v54 = vpop.permute.xlu1 %18147 }
 0xfd8   : > { %v18165_v18 = vsel %vm27837_vm12, %v18148_v54, %v18150_v35  ;;  %vm27843_vm12 = vmmov %vm27841_vm4 }
 0xfe5   : > { %v18152_v41 = vpop.permute.xlu0 %18151 }
 0xfe6   : > { %v18166_v16 = vsel %vm27836_vm13, %v18150_v35, %v18152_v41  ;;  %vm27842_vm13 = vmmov %vm27841_vm4 }
 0xfe7   : > { %22691 = vmatprep.subr.msk.mxu0 %vm670_vm8, %v18166_v16 }
 0xfe8   : > { %22692 = vmatpush1.msk.msra.mxu0 %vm670_vm8, %v18165_v18 }
 0xfe9   : > { %22693 = vmatmul.mubr.msk.f32.vlgmr.msra.gmra.mrb[12].mxu0 %vm666_vm2, %v22690_v7  ;;  %v18154_v62 = vpop.permute.xlu0 %18153 }
 0xfea   : > { %18327 = vmatprep.mubr.f32.mxu0 %v23785_v1  ;;  %v18167_v27 = vsel %vm27839_vm7, %v18152_v41, %v18154_v62 }
 0xfed   : > { %v18156_v13 = vpop.permute.xlu1 %18155 }
 0xfee   : > { %v18168_v10 = vsel %vm27838_vm11, %v18154_v62, %v18156_v13  ;;  %v19281_v62 = vrot.slane %v22728_v42, %v25060_v34  ;;  %vm27844_vm11 = vcmask 269312  }
 0xfef   : > { %22694 = vmatprep.subr.msk.mxu0 %vm670_vm8, %v18168_v10  ;;  %v18158_v2 = vpop.permute.xlu0 %18157  ;;  %v18544_v10 = vld [vmem:[%s27555_s17] ss:$4 sm:$0xff]  ;;  %vm27845_vm7 = vmmov %vm27844_vm11 }
 0xff0   : > { %22695 = vmatpush1.msk.msra.mxu0 %vm670_vm8, %v18167_v27  ;;  %v18169_v22 = vsel %vm27841_vm4, %v18156_v13, %v18158_v2  ;;  %vm27854_vm4 = vcmask 777216  }
 0xff1   : > { %v18160_v17 = vpop.permute.xlu1 %18159  ;;  %22696 = vmatmul.mubr.msk.f32.vlgmr.msra.gmra.mrb[14].mxu0 %vm666_vm2, %v22690_v7 }
 0xff2   : > { %v18170_v8 = vsel %vm27840_vm9, %v18158_v2, %v18160_v17  ;;  %18398 = vmatprep.mubr.f32.mxu0 %v23785_v1  ;;  %v26977_v2 = vcombine.low %v19281_v62, %v19285_v55 }
 0xff3   : > { %22697 = vmatprep.subr.msk.mxu0 %vm670_vm8, %v18170_v8  ;;  %v18162_v37 = vpop.permute.xlu0 %18161  ;;  %v19301_v8 = vrot.slane %v22728_v42, %v25072_v49 }
 0xff4   : > { %22698 = vmatpush1.msk.msra.mxu0 %vm670_vm8, %v18169_v22  ;;  %v18171_v61 = vsel %vm27843_vm12, %v18160_v17, %v18162_v37  ;;  %v19297_v17 = vrot.slane %v22728_v42, %v25069_v48 }
 0xff5   : > { %v18164_v28 = vpop.permute.xlu1 %18163  ;;  %22699 = vmatmul.mubr.msk.f32.vlgmr.msra.gmra.mrb[16].mxu0 %vm666_vm2, %v22690_v7 }
 0xff6   : > { %v18172_v63 = vsel %vm27842_vm13, %v18162_v37, %v18164_v28  ;;  %18469 = vmatprep.mubr.f32.mxu0 %v23785_v1  ;;  %v18549_v37 = vrot.slane %v18544_v10, %v24066_v3  ;;  %v18553_v28 = vrot.slane %v18544_v10, %v24069_v4 }
 0xff7   : > { %22700 = vmatprep.subr.msk.mxu0 %vm670_vm8, %v18172_v63  ;;  %v26988_v63 = vcombine.low %v19297_v17, %v19301_v8 }
 0xff8   : > { %22701 = vmatpush1.msk.msra.mxu0 %vm670_vm8, %v18171_v61  ;;  %v18557_v61 = vrot.slane %v18544_v10, %v25060_v34  ;;  %v18573_v34 = vrot.slane %v18544_v10, %v25069_v48 }
 0xff9   : > { %22702 = vmatmul.mubr.msk.f32.vlgmr.msra.gmra.mrb[18].mxu0 %vm666_vm2, %v22690_v7 }
0x1004   : > { %v15096_v15 = vpop.permute.xlu0 %15095 }
0x1005   : > { %v15099_v38 = vadd.f32 %v15096_v15, %v11610_v53  ;;  %v15100_v30 = vadd.f32 %v15096_v15, %v11611_v57  ;;  %v15101_v32 = vadd.f32 %v15096_v15, %v11612_v52  ;;  %v15102_v6 = vadd.f32 %v15096_v15, %v11613_v23 }
0x1006   : > { %v15103_v57 = vadd.f32 %v15096_v15, %v11614_v21  ;;  %v15104_v47 = vadd.f32 %v15096_v15, %v11615_v11  ;;  %v15105_v14 = vadd.f32 %v15096_v15, %v11616_v58  ;;  %v15106_v33 = vadd.f32 %v15096_v15, %v11617_v20 }
0x1007   : > { %v19273_v21 = vrot.slane %v22728_v42, %v24066_v3  ;;  %v19277_v11 = vrot.slane %v22728_v42, %v24069_v4  ;;  %v19293_v20 = vrot.slane %v22728_v42, %v25080_v45  ;;  %v18561_v15 = vrot.slane %v18544_v10, %v25063_v46 }
0x1008   : > { %v18577_v46 = vrot.slane %v18544_v10, %v25072_v49 }
0x1009   : > { %v26970_v13 = vcombine.low %v19273_v21, %v19277_v11  ;;  %v26984_v22 = vcombine.low %v19289_v12, %v19293_v20  ;;  %v18579_v3 = vcombine.low %v18557_v61, %v18561_v15 }
0x10bc   : > { %v18258_v36 = vpop.f32.mrb[12].mxu0 }
0x10bd   : > { %v23107_v56 = vadd.f32 %v18258_v36, %v15099_v38  ;;  %v18260_v60 = vpop.f32.mrb[13].mxu0  ;;  %v18578_v38 = vcombine.low %v18549_v37, %v18553_v28  ;;  %v18565_v36 = vrot.slane %v18544_v10, %v25077_v51 }
0x10be   : > { %v23108_v26 = vadd.f32 %v18260_v60, %v15100_v30  ;;  %v18569_v30 = vrot.slane %v18544_v10, %v25080_v45 }
0x10bf   : > { %v18484_v9 = vmax.f32 %v23107_v56, 0.0  ;;  %v18581_v56 = vcombine.low %v18573_v34, %v18577_v46 }
0x10c0   : > { %v18485_v31 = vmax.f32 %v23108_v26, 0.0  ;;  %v18580_v4 = vcombine.low %v18565_v36, %v18569_v30 }
0x10c2   : > { %v18500_v25 = vcombine.low %v18484_v9, %v18485_v31 }
0x10c4   : > { %v18329_v19 = vpop.f32.mrb[14].mxu0  ;;  %18504 = vrot.lane.b32.xlu1 %v18500_v25, %s27686_s18 }
0x10c5   : > { %v23109_v53 = vadd.f32 %v18329_v19, %v15101_v32  ;;  %v18331_v0 = vpop.f32.mrb[15].mxu0 }
0x10c6   : > { %v23110_v59 = vadd.f32 %v18331_v0, %v15102_v6 }
0x10c7   : > { %v18486_v5 = vmax.f32 %v23109_v53, 0.0 }
0x10c8   : > { %v18487_v24 = vmax.f32 %v23110_v59, 0.0  ;;  %v18400_v44 = vpop.f32.mrb[16].mxu0 }
0x10c9   : > { %v23111_v43 = vadd.f32 %v18400_v44, %v15103_v57  ;;  %v18402_v52 = vpop.f32.mrb[17].mxu0 }
0x10ca   : > { %v18501_v40 = vcombine.low %v18486_v5, %v18487_v24  ;;  %v23112_v23 = vadd.f32 %v18402_v52, %v15104_v47  ;;  %v18590_v5 = vld [vmem:[%s27553_s15] sm:$0xf] }
0x10cb   : > { %v18488_v39 = vmax.f32 %v23111_v43, 0.0 }
0x10cc   : > { %v18489_v35 = vmax.f32 %v23112_v23, 0.0  ;;  %v18471_v29 = vpop.f32.mrb[18].mxu0  ;;  %18506 = vrot.lane.b32.xlu0 %v18501_v40, %s27686_s18 }
0x10cd   : > { %v23113_v54 = vadd.f32 %v18471_v29, %v15105_v14  ;;  %v18473_v41 = vpop.f32.mrb[19].mxu0 }
0x10ce   : > { %v18502_v16 = vcombine.low %v18488_v39, %v18489_v35  ;;  %v23114_v7 = vadd.f32 %v18473_v41, %v15106_v33 }
0x10cf   : > { %v18490_v18 = vmax.f32 %v23113_v54, 0.0 }
0x10d0   : > { %v18491_v58 = vmax.f32 %v23114_v7, 0.0  ;;  %18508 = vrot.lane.b32.xlu1 %v18502_v16, %s27686_s18 }
0x10d2   : > { %v18503_v27 = vcombine.low %v18490_v18, %v18491_v58 }
0x10d4   : > { %18510 = vrot.lane.b32.xlu0 %v18503_v27, %s27686_s18  ;;  %19306 = vrot.lane.b32.xlu1 %v26970_v13, %s27672_s24  ;;  %s22826_s18 = sshll.u32 %s23994_s1, 9 }
0x10d8   : > { %19308 = vrot.lane.b32.xlu0 %v26977_v2, %s27672_s24  ;;  %19310 = vrot.lane.b32.xlu1 %v26984_v22, %s27672_s24 }
0x10dc   : > { %19312 = vrot.lane.b32.xlu0 %v26988_v63, %s27672_s24  ;;  %19688 = vrot.lane.b32.xlu1 %v18578_v38, %s27673_s5 }
0x10e0   : > { %19690 = vrot.lane.b32.xlu0 %v18579_v3, %s27673_s5  ;;  %19692 = vrot.lane.b32.xlu1 %v18580_v4, %s27673_s5 }
0x10e4   : > { %19694 = vrot.lane.b32.xlu0 %v18581_v56, %s27673_s5  ;;  %20423 = vrot.lane.b32.xlu1 %v26970_v13, %s27652_s27 }
0x10e8   : > { %20425 = vrot.lane.b32.xlu0 %v26977_v2, %s27652_s27  ;;  %20429 = vrot.lane.b32.xlu1 %v26988_v63, %s27652_s27 }
0x10ec   : > { %20427 = vrot.lane.b32.xlu0 %v26984_v22, %s27652_s27  ;;  %20807 = vrot.lane.b32.xlu1 %v18579_v3, %s27687_s22  ;;  %s23872_s27 = smov [#allocation8]  }
0x10ed   : > { %s23718_s24 = sshll.u32 %s23872_s27, 4  ;;  %s23719_s24 = int_to_ptr.vmem [resolvable:$false] %s23718_s24 }
0x10f0   : > { %20805 = vrot.lane.b32.xlu0 %v18578_v38, %s27687_s22  ;;  %20809 = vrot.lane.b32.xlu1 %v18580_v4, %s27687_s22 }
0x10f4   : > { %20811 = vrot.lane.b32.xlu0 %v18581_v56, %s27687_s22 }
0x1136   : > { %v18505_v48 = vpop.permute.xlu1 %18504 }
0x1137   : > { %v18512_v49 = vrot.slane %v18505_v48, 4 }
0x1139   : > { %v18516_v51 = vsel %vm27844_vm11, %v18512_v49, %v18505_v48  ;;  %vm27858_vm11 = vmmov %vm27854_vm4 }
0x113a   : > { %18528 = vst.msk [vmem:[#allocation4] sm:$0xff] %vm25193_vm3, %v18516_v51  ;;  %vm27846_vm3 = vmmov %vm27845_vm7 }
0x113b   : > { %vm27847_vm9 = vmmov %vm27846_vm3 }
0x113e   : > { %v18507_v45 = vpop.permute.xlu0 %18506 }
0x113f   : > { %v18513_v60 = vrot.slane %v18507_v45, 4 }
0x1141   : > { %v18517_v26 = vsel %vm670_vm8, %v18512_v49, %v18513_v60  ;;  %v27022_v9 = vld [vmem:[#allocation4] sm:$0xff] }
0x1142   : > { %v27025_v31 = vsel %vm27845_vm7, %v18517_v26, %v18507_v45  ;;  %18926 = vrot.lane.b32.xlu1 %v27022_v9, %s27674_s3  ;;  %v27031_v25 = vcombine.high %v27022_v9, %v27022_v9  ;;  %v18509_v32 = vpop.permute.xlu1 %18508  ;;  %v18586_v50 = vmul.f32 %v27022_v9, %v18578_v38  ;;  %vm27859_vm7 = vmmov %vm27854_vm4 }
0x1143   : > { %v18514_v19 = vrot.slane %v18509_v32, 4  ;;  %v18587_v6 = vmul.f32 %v18579_v3, %v27025_v31  ;;  %v27071_v7 = vcombine.high %v27025_v31, %v27025_v31 }
0x1144   : > { %18928 = vrot.lane.b32.xlu0 %v27031_v25, %s27674_s3  ;;  %v18595_v53 = vcombine.high %v18586_v50, %v18586_v50 }
0x1145   : > { %v18519_v0 = vsel %vm670_vm8, %v18513_v60, %v18514_v19  ;;  %v18596_v59 = vcombine.high %v18587_v6, %v18587_v6 }
0x1146   : > { %v27042_v57 = vsel %vm27846_vm3, %v18519_v0, %v18509_v32  ;;  %v18511_v24 = vpop.permute.xlu0 %18510  ;;  %22703 = vmatprep.subr.msk.mxu1 %vm670_vm8, %v18595_v53  ;;  %v19307_v44 = vpop.permute.xlu1 %19306  ;;  %vm27860_vm3 = vmmov %vm27854_vm4 }
0x1147   : > { %v18515_v47 = vrot.slane %v18511_v24, 4  ;;  %v19314_v43 = vrot.slane %v19307_v44, 4  ;;  %22704 = vmatpush1.msk.msra.mxu1 %vm670_vm8, %v18586_v50  ;;  %v18588_v52 = vmul.f32 %v18580_v4, %v27042_v57  ;;  %v27112_v51 = vcombine.high %v27042_v57, %v27042_v57 }
0x1148   : > { %22706 = vmatprep.subr.msk.mxu1 %vm670_vm8, %v18596_v59  ;;  %22705 = vmatmul.mubr.msk.f32.vlgmr.msra.gmra.mrb[20].mxu1 %vm666_vm2, %v18590_v5 }
0x1149   : > { %v18521_v42 = vsel %vm670_vm8, %v18514_v19, %v18515_v47  ;;  %18532 = vst.msk [vmem:[#allocation4 + $0x20] sm:$0xf] %vm624_vm10, %v18515_v47  ;;  %v19318_v40 = vsel %vm882_vm15, %v19314_v43, %v19307_v44  ;;  %22707 = vmatpush1.msk.msra.mxu1 %vm670_vm8, %v18587_v6  ;;  %18753 = vmatprep.mubr.f32.mxu1 %v23785_v1 }
0x114a   : > { %v18597_v23 = vcombine.high %v18588_v52, %v18588_v52  ;;  %v27055_v39 = vsel %vm27847_vm9, %v18521_v42, %v18511_v24  ;;  %v19330_v14 = vmul.f32 %v19318_v40, %v27022_v9  ;;  %v19309_v35 = vpop.permute.xlu0 %19308  ;;  %v27058_v29 = vpop.permute.xlu1 %19310  ;;  %vm27861_vm9 = vmmov %vm27860_vm3 }
0x114b   : > { %v19315_v33 = vrot.slane %v19309_v35, 4  ;;  %v18589_v21 = vmul.f32 %v18581_v56, %v27055_v39  ;;  %v19316_v58 = vrot.slane %v27058_v29, 4  ;;  %v27116_v45 = vcombine.high %v27055_v39, %v27055_v39 }
0x114c   : > { %22709 = vmatprep.subr.msk.mxu1 %vm670_vm8, %v18597_v23  ;;  %19346 = vrot.lane.b32.xlu0 %v19330_v14, %s27675_s28  ;;  %v19342_v28 = vcombine.high %v19330_v14, %v19330_v14 }
0x114d   : > { %22708 = vmatmul.mubr.msk.f32.vlgmr.msra.gmra.mrb[22].mxu1 %vm666_vm2, %v18590_v5  ;;  %v19319_v11 = vsel %vm670_vm8, %v19314_v43, %v19315_v33  ;;  %v18598_v54 = vcombine.high %v18589_v21, %v18589_v21  ;;  %v19321_v8 = vsel %vm670_vm8, %v19315_v33, %v19316_v58 }
0x114e   : > { %22710 = vmatpush1.msk.msra.mxu1 %vm670_vm8, %v18588_v52  ;;  %18824 = vmatprep.mubr.f32.mxu1 %v23785_v1  ;;  %v27067_v41 = vpop.permute.xlu0 %19312  ;;  %v19689_v16 = vpop.permute.xlu1 %19688  ;;  %v19320_v18 = vsel %vm882_vm15, %v19319_v11, %v19309_v35  ;;  %v19322_v15 = vsel %vm882_vm15, %v19321_v8, %v27058_v29 }
0x114f   : > { %v19696_v62 = vrot.slane %v19689_v16, 4  ;;  %22712 = vmatprep.subr.msk.mxu1 %vm670_vm8, %v18598_v54  ;;  %v19331_v55 = vmul.f32 %v19320_v18, %v27025_v31  ;;  %v19332_v36 = vmul.f32 %v19322_v15, %v27042_v57  ;;  %v19317_v4 = vrot.slane %v27067_v41, 4 }
0x1150   : > { %18932 = vrot.lane.b32.xlu0 %v27071_v7, %s27674_s3  ;;  %v19267_v34 = vld [vmem:[#allocation4 + $0x20] sm:$0xf] }
0x1151   : > { %22711 = vmatmul.mubr.msk.f32.vlgmr.msra.gmra.mrb[24].mxu1 %vm666_vm2, %v18590_v5  ;;  %v19700_v12 = vsel %vm2159_vm14, %v19696_v62, %v19689_v16  ;;  %v19344_v3 = vcombine.high %v19332_v36, %v19332_v36  ;;  %v19343_v56 = vcombine.high %v19331_v55, %v19331_v55  ;;  %v19334_v48 = vmul.f32 %v19317_v4, %v19267_v34  ;;  %v18914_v19 = vld [vmem:[#allocation4 + $0x20] sm:$0xf] }
0x1152   : > { %22713 = vmatpush1.msk.msra.mxu1 %vm670_vm8, %v18589_v21  ;;  %v19691_v20 = vpop.permute.xlu0 %19690  ;;  %18895 = vmatprep.mubr.f32.mxu1 %v23785_v1  ;;  %v19712_v10 = vmul.f32 %v19700_v12, %v27022_v9  ;;  %v19693_v30 = vpop.permute.xlu1 %19692  ;;  %v19323_v0 = vsel %vm670_vm8, %v19316_v58, %v19317_v4  ;;  %v19687_v59 = vld [vmem:[#allocation4 + $0x20] sm:$0xf] }
0x1153   : > { %v19697_v27 = vrot.slane %v19691_v20, 4  ;;  %v19698_v46 = vrot.slane %v19693_v30, 4  ;;  %v19324_v24 = vsel %vm882_vm15, %v19323_v0, %v27067_v41 }
0x1154   : > { %19350 = vrot.lane.b32.xlu0 %v19331_v55, %s27675_s28  ;;  %19728 = vrot.lane.b32.xlu1 %v19712_v10, %s27658_s0  ;;  %v19724_v38 = vcombine.high %v19712_v10, %v19712_v10  ;;  %v19333_v47 = vmul.f32 %v19324_v24, %v27055_v39 }
0x1155   : > { %22714 = vmatmul.mubr.msk.f32.vlgmr.msra.gmra.mrb[26].mxu1 %vm666_vm2, %v18590_v5  ;;  %v19701_v17 = vsel %vm670_vm8, %v19696_v62, %v19697_v27  ;;  %v19703_v49 = vsel %vm670_vm8, %v19697_v27, %v19698_v46 }
0x1156   : > { %v19702_v37 = vsel %vm2159_vm14, %v19701_v17, %v19691_v20  ;;  %19035 = vmatprep.mubr.f32.mxu1 %v23785_v1  ;;  %v19704_v60 = vsel %vm2159_vm14, %v19703_v49, %v19693_v30  ;;  %v19695_v50 = vpop.permute.xlu0 %19694  ;;  %v19345_v42 = vcombine.high %v19333_v47, %v19333_v47  ;;  %v20424_v23 = vpop.permute.xlu1 %20423 }
0x1157   : > { %v19713_v61 = vmul.f32 %v19702_v37, %v27025_v31  ;;  %v19714_v32 = vmul.f32 %v19704_v60, %v27042_v57  ;;  %v19699_v6 = vrot.slane %v19695_v50, 4  ;;  %v20431_v29 = vrot.slane %v20424_v23, 4  ;;  %v20422_v60 = vld [vmem:[#allocation4 + $0x20] sm:$0xf] }
0x1158   : > { %19348 = vrot.lane.b32.xlu1 %v19342_v28, %s27675_s28 }
0x1159   : > { %19732 = vrot.lane.b32.xlu0 %v19713_v61, %s27658_s0  ;;  %v19725_v26 = vcombine.high %v19713_v61, %v19713_v61  ;;  %v19726_v53 = vcombine.high %v19714_v32, %v19714_v32  ;;  %v19716_v5 = vmul.f32 %v19699_v6, %v19687_v59  ;;  %v19705_v44 = vsel %vm670_vm8, %v19698_v46, %v19699_v6  ;;  %v20804_v59 = vld [vmem:[#allocation4 + $0x20] sm:$0xf] }
0x115a   : > { %v19706_v43 = vsel %vm2159_vm14, %v19705_v44, %v19695_v50  ;;  %v20430_v16 = vpop.permute.xlu1 %20429  ;;  %v20435_v18 = vsel %vm2369_vm0, %v20431_v29, %v20424_v23  ;;  %vm27848_vm14 = vcmask 523264  }
0x115b   : > { %v19715_v52 = vmul.f32 %v19706_v43, %v27055_v39  ;;  %v20434_v17 = vrot.slane %v20430_v16, 4  ;;  %vm27849_vm15 = vmmov %vm27848_vm14 }
0x115c   : > { %19730 = vrot.lane.b32.xlu1 %v19724_v38, %s27658_s0 }
0x115d   : > { %19354 = vrot.lane.b32.xlu0 %v19332_v36, %s27675_s28  ;;  %v19727_v40 = vcombine.high %v19715_v52, %v19715_v52 }
0x115e   : > { %v20808_v20 = vpop.permute.xlu1 %20807 }
0x115f   : > { %v20814_v36 = vrot.slane %v20808_v20, 4 }
0x1160   : > { %18930 = vrot.lane.b32.xlu1 %v27025_v31, %s27674_s3 }
0x1161   : > { %18938 = vrot.lane.b32.xlu0 %v27055_v39, %s27674_s3 }
0x1162   : > { %v20810_v61 = vpop.permute.xlu1 %20809 }
0x1163   : > { %v20815_v30 = vrot.slane %v20810_v61, 4 }
0x1164   : > { %18934 = vrot.lane.b32.xlu1 %v27042_v57, %s27674_s3 }
0x1165   : > { %19356 = vrot.lane.b32.xlu0 %v19344_v3, %s27675_s28  ;;  %v20820_v34 = vsel %vm670_vm8, %v20814_v36, %v20815_v30 }
0x1166   : > { %v20821_v49 = vsel %vm27849_vm15, %v20820_v34, %v20810_v61  ;;  %vm27863_vm15 = vmmov %vm27860_vm3 }
0x1167   : > { %v20831_v50 = vmul.f32 %v20821_v49, %v27042_v57 }
0x1168   : > { %19352 = vrot.lane.b32.xlu1 %v19343_v56, %s27675_s28 }
0x1169   : > { %19362 = vrot.lane.b32.xlu0 %v19334_v48, %s27675_s28 }
0x116c   : > { %18936 = vrot.lane.b32.xlu1 %v27112_v51, %s27674_s3 }
0x116d   : > { %18940 = vrot.lane.b32.xlu0 %v27116_v45, %s27674_s3 }
0x1170   : > { %18942 = vrot.lane.b32.xlu1 %v18914_v19, %s27674_s3 }
0x1171   : > { %19734 = vrot.lane.b32.xlu0 %v19725_v26, %s27658_s0 }
0x1174   : > { %19736 = vrot.lane.b32.xlu1 %v19714_v32, %s27658_s0  ;;  %v20451_v32 = vmul.f32 %v20434_v17, %v20422_v60 }
0x1175   : > { %19738 = vrot.lane.b32.xlu0 %v19726_v53, %s27658_s0 }
0x1178   : > { %19744 = vrot.lane.b32.xlu1 %v19716_v5, %s27658_s0 }
0x1179   : > { %21540 = vrot.lane.b32.xlu0 %v26970_v13, %s27688_s25  ;;  %v20426_v13 = vpop.permute.xlu0 %20425 }
0x117a   : > { %v20432_v14 = vrot.slane %v20426_v13, 4 }
0x117c   : > { %19358 = vrot.lane.b32.xlu1 %v19333_v47, %s27675_s28  ;;  %v20436_v33 = vsel %vm670_vm8, %v20431_v29, %v20432_v14  ;;  %v20843_v47 = vcombine.high %v20831_v50, %v20831_v50 }
0x117d   : > { %20085 = vrot.lane.b32.xlu0 %v27025_v31, %s27659_s23  ;;  %v20428_v35 = vpop.permute.xlu0 %20427  ;;  %v20437_v11 = vsel %vm2369_vm0, %v20436_v33, %v20426_v13 }
0x117e   : > { %v20433_v21 = vrot.slane %v20428_v35, 4  ;;  %v20448_v62 = vmul.f32 %v20437_v11, %v27025_v31 }
0x1180   : > { %19740 = vrot.lane.b32.xlu1 %v19715_v52, %s27658_s0  ;;  %v20438_v54 = vsel %vm670_vm8, %v20432_v14, %v20433_v21  ;;  %v20440_v28 = vsel %vm670_vm8, %v20433_v21, %v20434_v17  ;;  %v21186_v21 = vld [vmem:[#allocation4 + $0x20] sm:$0xf] }
0x1181   : > { %20081 = vrot.lane.b32.xlu0 %v27022_v9, %s27659_s23  ;;  %v20806_v41 = vpop.permute.xlu0 %20805  ;;  %v20439_v55 = vsel %vm2369_vm0, %v20438_v54, %v20428_v35  ;;  %v20441_v38 = vsel %vm2369_vm0, %v20440_v28, %v20430_v16  ;;  %vm27850_vm0 = vmmov %vm27848_vm14 }
0x1182   : > { %v20813_v58 = vrot.slane %v20806_v41, 4  ;;  %v20449_v12 = vmul.f32 %v20439_v55, %v27042_v57  ;;  %v20450_v4 = vmul.f32 %v20441_v38, %v27055_v39  ;;  %vm27851_vm10 = vmmov %vm27850_vm0 }
0x1184   : > { %19360 = vrot.lane.b32.xlu1 %v19345_v42, %s27675_s28  ;;  %v20817_v10 = vsel %vm27848_vm14, %v20813_v58, %v20806_v41  ;;  %v20461_v8 = vcombine.high %v20449_v12, %v20449_v12  ;;  %v20462_v56 = vcombine.high %v20450_v4, %v20450_v4  ;;  %v20818_v48 = vsel %vm670_vm8, %v20813_v58, %v20814_v36  ;;  %vm27862_vm14 = vmmov %vm27860_vm3  ;;  %s27896_s28 = sld [smem:[#allocation16_spill]] }
0x1185   : > { %20089 = vrot.lane.b32.xlu0 %v27042_v57, %s27659_s23  ;;  %v20829_v37 = vmul.f32 %v20817_v10, %v27022_v9  ;;  %v20812_v3 = vpop.permute.xlu0 %20811  ;;  %v20819_v19 = vsel %vm27850_vm0, %v20818_v48, %v20808_v20  ;;  %vm27864_vm0 = vcmask 769024  }
0x1186   : > { %v20816_v46 = vrot.slane %v20812_v3, 4  ;;  %v20830_v53 = vmul.f32 %v20819_v19, %v27025_v31 }
0x1187   : > { %v20841_v15 = vcombine.high %v20829_v37, %v20829_v37 }
0x1188   : > { %20083 = vrot.lane.b32.xlu1 %v27031_v25, %s27659_s23  ;;  %v20822_v26 = vsel %vm670_vm8, %v20815_v30, %v20816_v46  ;;  %v20842_v5 = vcombine.high %v20830_v53, %v20830_v53  ;;  %v20833_v24 = vmul.f32 %v20816_v46, %v20804_v59 }
0x1189   : > { %20091 = vrot.lane.b32.xlu0 %v27112_v51, %s27659_s23  ;;  %v20823_v6 = vsel %vm27851_vm10, %v20822_v26, %v20812_v3  ;;  %vm27865_vm10 = vmmov %vm27864_vm0 }
0x118a   : > { %v20832_v0 = vmul.f32 %v20823_v6, %v27055_v39  ;;  %p27899_p9 = scmp.ne.s32.totalorder %s27896_s28, 0 }
0x118c   : > { %21542 = vrot.lane.b32.xlu1 %v26977_v2, %s27688_s25  ;;  %v20069_v2 = vld [vmem:[#allocation4 + $0x20] sm:$0xf]  ;;  %v20844_v42 = vcombine.high %v20832_v0, %v20832_v0 }
0x118d   : > { %19742 = vrot.lane.b32.xlu0 %v19727_v40, %s27658_s0  ;;  %s608_s0 = sand.u32 1, %s23772_s30  }
0x118e   : > { %s22077_s5 = sshll.u32 %s608_s0, 5  ;;  %s21986_s2 = scalar_lea.sflag [#allocation7], %s608_s0 }
0x118f   : > { %s610_s3 = scalar_lea.vmem [#allocation8], %s22077_s5 }
0x1190   : > { %20087 = vrot.lane.b32.xlu1 %v27071_v7, %s27659_s23 }
0x1191   : > { %21546 = vrot.lane.b32.xlu0 %v26988_v63, %s27688_s25  ;;  %v20460_v63 = vcombine.high %v20448_v62, %v20448_v62 }
0x1194   : > { %21544 = vrot.lane.b32.xlu1 %v26984_v22, %s27688_s25  ;;  %v20447_v22 = vmul.f32 %v20435_v18, %v27022_v9 }
0x1195   : > { %20097 = vrot.lane.b32.xlu0 %v20069_v2, %s27659_s23 }
0x1196   : > { %v20459_v27 = vcombine.high %v20447_v22, %v20447_v22 }
0x1198   : > { %20093 = vrot.lane.b32.xlu1 %v27055_v39, %s27659_s23 }
0x1199   : > { %20467 = vrot.lane.b32.xlu0 %v20448_v62, %s27660_s26 }
0x119c   : > { %20095 = vrot.lane.b32.xlu1 %v27116_v45, %s27659_s23 }
0x119d   : > { %20469 = vrot.lane.b32.xlu0 %v20460_v63, %s27660_s26 }
0x11a0   : > { %20465 = vrot.lane.b32.xlu1 %v20459_v27, %s27660_s26 }
0x11a1   : > { %20473 = vrot.lane.b32.xlu0 %v20461_v8, %s27660_s26 }
0x11a4   : > { %20463 = vrot.lane.b32.xlu1 %v20447_v22, %s27660_s26 }
0x11a5   : > { %20847 = vrot.lane.b32.xlu0 %v20841_v15, %s27687_s22  ;;  %v22729_v15 = vld [vmem:[%s27553_s15 + $0x8] sm:$0xf] }
0x11a8   : > { %20471 = vrot.lane.b32.xlu1 %v20449_v12, %s27660_s26 }
0x11a9   : > { %20845 = vrot.lane.b32.xlu0 %v20829_v37, %s27687_s22 }
0x11ac   : > { %20475 = vrot.lane.b32.xlu1 %v20450_v4, %s27660_s26 }
0x11ad   : > { %20477 = vrot.lane.b32.xlu0 %v20462_v56, %s27660_s26 }
0x11b0   : > { %20479 = vrot.lane.b32.xlu1 %v20451_v32, %s27660_s26  ;;  %s23720_s26 = scalar_lea.vmem %s23719_s24, 1024 }
0x11b1   : > { %20853 = vrot.lane.b32.xlu0 %v20831_v50, %s27687_s22 }
0x11b4   : > { %20849 = vrot.lane.b32.xlu1 %v20830_v53, %s27687_s22  ;;  %v18927_v13 = vpop.permute.xlu1 %18926 }
0x11b5   : > { %20857 = vrot.lane.b32.xlu0 %v20832_v0, %s27687_s22 }
0x11b6   : > { %v18929_v44 = vpop.permute.xlu0 %18928 }
0x11b7   : > { %v18944_v11 = vsel %vm782_vm1, %v18927_v13, %v18929_v44 }
0x11b8   : > { %20851 = vrot.lane.b32.xlu1 %v20842_v5, %s27687_s22 }
0x11b9   : > { %20861 = vrot.lane.b32.xlu0 %v20833_v24, %s27687_s22 }
0x11bc   : > { %20855 = vrot.lane.b32.xlu1 %v20843_v47, %s27687_s22 }
0x11bd   : > { %21202 = vrot.lane.b32.xlu0 %v27025_v31, %s27700_s19 }
0x11be   : > { %v19347_v43 = vpop.permute.xlu0 %19346 }
0x11c0   : > { %21200 = vrot.lane.b32.xlu1 %v27031_v25, %s27700_s19 }
0x11c1   : > { %21204 = vrot.lane.b32.xlu0 %v27071_v7, %s27700_s19 }
0x11c2   : > { %v18933_v52 = vpop.permute.xlu0 %18932 }
0x11c4   : > { %20859 = vrot.lane.b32.xlu1 %v20844_v42, %s27687_s22  ;;  %s22000_s22 = sshll.u32 %s610_s3, 4  ;;  %s27496_s22 = int_to_ptr.vmem [resolvable:$true] %s22000_s22 }
0x11c5   : > { %21208 = vrot.lane.b32.xlu0 %v27112_v51, %s27700_s19  ;;  %s23714_s1 = scalar_lea.vmem %s27496_s22, 512  ;;  %p23721_p2 = scmp.lt.s32.totalorder %s27496_s22, %s23719_s24 }
0x11c6   : > { %v19351_v40 = vpop.permute.xlu0 %19350  ;;  %v27213_v23 = vpop.permute.xlu1 %19728  ;;  %p23715_p6 = scmp.ne.s32.totalorder %s27496_s22, %s23714_s1  ;;  %p23722_p3 = scmp.lt.s32.totalorder %s23720_s26, %s23714_s1 }
0x11c8   : > { %21198 = vrot.lane.b32.xlu1 %v27022_v9, %s27700_s19  ;;  %p23716_p10 = pnand %p23715_p6, %p27899_p9  ;;  %p23723_p4 = por %p23722_p3, %p23721_p2 }
0x11c9   : > { %21212 = vrot.lane.b32.xlu0 %v27116_v45, %s27700_s19  ;;  %v22715_v45 = vld [vmem:[%s27553_s15 + $0x4] sm:$0xf] }
0x11ca   : > { %v19349_v25 = vpop.permute.xlu1 %19348  ;;  %p23717_p12 = pneg %p23716_p10 }
0x11cb   : > { %v27219_v14 = vpop.permute.xlu0 %19732  ;;  %v19365_v17 = vsel %vm899_vm6, %v19349_v25, %v19351_v40  ;;  %v19364_v8 = vsel %vm899_vm6, %v19347_v43, %v19349_v25 }
0x11cc   : > { %21206 = vrot.lane.b32.xlu1 %v27042_v57, %s27700_s19  ;;  %p23724_p7 = pnand %p23723_p4, %p23717_p12 }
0x11ce   : > { %v27223_v7 = vpop.permute.xlu1 %19730 }
0x11cf   : > { %v27225_v35 = vpop.permute.xlu0 %19354  ;;  %v19747_v53 = vsel %vm2176_vm5, %v27223_v7, %v27219_v14  ;;  %v19746_v0 = vsel %vm2176_vm5, %v27213_v23, %v27223_v7 }
0x11d0   : > { %21210 = vrot.lane.b32.xlu1 %v27055_v39, %s27700_s19 }
0x11d2   : > { %v18931_v51 = vpop.permute.xlu1 %18930 }
0x11d3   : > { %v18945_v29 = vsel %vm782_vm1, %v18929_v44, %v18931_v51  ;;  %v18939_v33 = vpop.permute.xlu0 %18938  ;;  %v18946_v16 = vsel %vm782_vm1, %v18931_v51, %v18933_v52  ;;  %v22742_v44 = vld [vmem:[%s27553_s15 + $0xc] sm:$0xf] }
0x11d4   : > { %21214 = vrot.lane.b32.xlu1 %v21186_v21, %s27700_s19  ;;  %22716 = vmatprep.subr.msk.mxu1 %vm670_vm8, %v18945_v29 }
0x11d5   : > { %22717 = vmatpush1.msk.msra.mxu1 %vm670_vm8, %v18944_v11 }
0x11d6   : > { %v18935_v2 = vpop.permute.xlu1 %18934  ;;  %22718 = vmatmul.mubr.msk.f32.vlgmr.msra.gmra.mrb[20].mxu1 %vm666_vm2, %v22715_v45 }
0x11d7   : > { %v18947_v54 = vsel %vm782_vm1, %v18933_v52, %v18935_v2  ;;  %v19357_v41 = vpop.permute.xlu0 %19356  ;;  %19106 = vmatprep.mubr.f32.mxu1 %v23785_v1 }
0x11d8   : > { %22719 = vmatprep.subr.msk.mxu1 %vm670_vm8, %v18947_v54  ;;  %v19368_v49 = vsel %vm899_vm6, %v27225_v35, %v19357_v41 }
0x11d9   : > { %22720 = vmatpush1.msk.msra.mxu1 %vm670_vm8, %v18946_v16 }
0x11da   : > { %v19353_v18 = vpop.permute.xlu1 %19352  ;;  %22721 = vmatmul.mubr.msk.f32.vlgmr.msra.gmra.mrb[22].mxu1 %vm666_vm2, %v22715_v45 }
0x11db   : > { %v19363_v62 = vpop.permute.xlu0 %19362  ;;  %19177 = vmatprep.mubr.f32.mxu1 %v23785_v1  ;;  %v19367_v28 = vsel %vm899_vm6, %v19353_v18, %v27225_v35  ;;  %v19366_v38 = vsel %vm899_vm6, %v19351_v40, %v19353_v18 }
0x11de   : > { %v18937_v55 = vpop.permute.xlu1 %18936 }
0x11df   : > { %v18948_v58 = vsel %vm782_vm1, %v18935_v2, %v18937_v55  ;;  %v18949_v22 = vsel %vm782_vm1, %v18937_v55, %v18939_v33  ;;  %v18941_v63 = vpop.permute.xlu0 %18940 }
0x11e0   : > { %22722 = vmatprep.subr.msk.mxu1 %vm670_vm8, %v18949_v22  ;;  %v18950_v27 = vsel %vm782_vm1, %v18939_v33, %v18941_v63 }
0x11e1   : > { %22723 = vmatpush1.msk.msra.mxu1 %vm670_vm8, %v18948_v58 }
0x11e2   : > { %22724 = vmatmul.mubr.msk.f32.vlgmr.msra.gmra.mrb[24].mxu1 %vm666_vm2, %v22715_v45  ;;  %v18943_v12 = vpop.permute.xlu1 %18942 }
0x11e3   : > { %v18951_v20 = vsel %vm782_vm1, %v18941_v63, %v18943_v12  ;;  %v19735_v10 = vpop.permute.xlu0 %19734  ;;  %19248 = vmatprep.mubr.f32.mxu1 %v23785_v1  ;;  %vm27852_vm1 = vcmask 539648   ;;  %v22755_v12 = vld [vmem:[%s27553_s15 + $0x10] sm:$0xf] }
0x11e4   : > { %22725 = vmatprep.subr.msk.mxu1 %vm670_vm8, %v18951_v20  ;;  %v19748_v47 = vsel %vm2176_vm5, %v27219_v14, %v19735_v10  ;;  %vm27856_vm13 = vmmov %vm27852_vm1 }
0x11e5   : > { %22726 = vmatpush1.msk.msra.mxu1 %vm670_vm8, %v18950_v27  ;;  %vm27857_vm12 = vmmov %vm27852_vm1 }
0x11e6   : > { %22727 = vmatmul.mubr.msk.f32.vlgmr.msra.gmra.mrb[26].mxu1 %vm666_vm2, %v22715_v45  ;;  %22730 = vmatprep.subr.msk.mxu1 %vm670_vm8, %v19365_v17  ;;  %v19737_v37 = vpop.permute.xlu1 %19736 }
0x11e7   : > { %v19739_v61 = vpop.permute.xlu0 %19738  ;;  %22731 = vmatpush1.msk.msra.mxu1 %vm670_vm8, %v19364_v8  ;;  %19455 = vmatprep.mubr.f32.mxu1 %v23785_v1  ;;  %v19749_v5 = vsel %vm2176_vm5, %v19735_v10, %v19737_v37 }
0x11e8   : > { %22733 = vmatprep.subr.msk.mxu1 %vm670_vm8, %v19367_v28  ;;  %v19750_v23 = vsel %vm2176_vm5, %v19737_v37, %v19739_v61  ;;  %v21539_v28 = vld [vmem:[#allocation4 + $0x20] sm:$0xf] }
0x11ea   : > { %22732 = vmatmul.mubr.msk.f32.vlgmr.msra.gmra.mrb[20].mxu1 %vm666_vm2, %v22729_v15  ;;  %v19745_v36 = vpop.permute.xlu1 %19744 }
0x11eb   : > { %22734 = vmatpush1.msk.msra.mxu1 %vm670_vm8, %v19366_v38  ;;  %v21541_v30 = vpop.permute.xlu0 %21540  ;;  %19526 = vmatprep.mubr.f32.mxu1 %v23785_v1 }
0x11ec   : > { %v21548_v3 = vrot.slane %v21541_v30, 4 }
0x11ee   : > { %v21552_v4 = vsel %vm27852_vm1, %v21548_v3, %v21541_v30  ;;  %v19359_v34 = vpop.permute.xlu1 %19358  ;;  %22735 = vmatmul.mubr.msk.f32.vlgmr.msra.gmra.mrb[22].mxu1 %vm666_vm2, %v22729_v15  ;;  %v18533_v30 = vld [vmem:[%s27554_s16] sm:$0xf] }
0x11ef   : > { %v21564_v46 = vmul.f32 %v21552_v4, %v27022_v9  ;;  %v19369_v56 = vsel %vm899_vm6, %v19357_v41, %v19359_v34  ;;  %v27275_v48 = vpop.permute.xlu0 %20085  ;;  %19597 = vmatprep.mubr.f32.mxu1 %v23785_v1 }
0x11f0   : > { %22736 = vmatprep.subr.msk.mxu1 %vm670_vm8, %v19369_v56 }
0x11f1   : > { %v21576_v60 = vcombine.high %v21564_v46, %v21564_v46  ;;  %22737 = vmatpush1.msk.msra.mxu1 %vm670_vm8, %v19368_v49 }
0x11f2   : > { %v19741_v26 = vpop.permute.xlu1 %19740  ;;  %22738 = vmatmul.mubr.msk.f32.vlgmr.msra.gmra.mrb[24].mxu1 %vm666_vm2, %v22729_v15 }
0x11f3   : > { %v20082_v32 = vpop.permute.xlu0 %20081  ;;  %21582 = vrot.lane.b32.xlu0 %v21576_v60, %s27704_s21  ;;  %19668 = vmatprep.mubr.f32.mxu1 %v23785_v1  ;;  %v19751_v52 = vsel %vm2176_vm5, %v19739_v61, %v19741_v26 }
0x11f6   : > { %v19361_v9 = vpop.permute.xlu1 %19360 }
0x11f7   : > { %v19370_v50 = vsel %vm899_vm6, %v19359_v34, %v19361_v9  ;;  %v19371_v19 = vsel %vm899_vm6, %v19361_v9, %v19363_v62  ;;  %v27287_v6 = vpop.permute.xlu0 %20089  ;;  %21580 = vrot.lane.b32.xlu0 %v21564_v46, %s27704_s21  ;;  %vm27853_vm6 = vmmov %vm27852_vm1 }
0x11f8   : > { %22739 = vmatprep.subr.msk.mxu1 %vm670_vm8, %v19371_v19  ;;  %vm27866_vm1 = vmmov %vm27864_vm0 }
0x11f9   : > { %22740 = vmatpush1.msk.msra.mxu1 %vm670_vm8, %v19370_v50 }
0x11fa   : > { %22741 = vmatmul.mubr.msk.f32.vlgmr.msra.gmra.mrb[26].mxu1 %vm666_vm2, %v22729_v15  ;;  %22743 = vmatprep.subr.msk.mxu1 %vm670_vm8, %v19747_v53  ;;  %v20084_v59 = vpop.permute.xlu1 %20083 }
0x11fb   : > { %v27301_v24 = vpop.permute.xlu0 %20091  ;;  %22744 = vmatpush1.msk.msra.mxu1 %vm670_vm8, %v19746_v0  ;;  %19837 = vmatprep.mubr.f32.mxu1 %v23785_v1  ;;  %v20100_v21 = vsel %vm27854_vm4, %v20084_v59, %v27275_v48 }
0x11fc   : > { %22746 = vmatprep.subr.msk.mxu1 %vm670_vm8, %v19749_v5  ;;  %v20103_v37 = vsel %vm27861_vm9, %v27287_v6, %v27301_v24 }
0x11fe   : > { %22745 = vmatmul.mubr.msk.f32.vlgmr.msra.gmra.mrb[20].mxu1 %vm666_vm2, %v22742_v44  ;;  %v21543_v43 = vpop.permute.xlu1 %21542 }
0x11ff   : > { %22747 = vmatpush1.msk.msra.mxu1 %vm670_vm8, %v19748_v47  ;;  %v21549_v42 = vrot.slane %v21543_v43, 4  ;;  %v19743_v13 = vpop.permute.xlu0 %19742  ;;  %19908 = vmatprep.mubr.f32.mxu1 %v23785_v1 }
0x1200   : > { %22749 = vmatprep.subr.msk.mxu1 %vm670_vm8, %v19751_v52  ;;  %v19753_v35 = vsel %vm2176_vm5, %v19743_v13, %v19745_v36  ;;  %v19752_v29 = vsel %vm2176_vm5, %v19741_v26, %v19743_v13  ;;  %vm27855_vm5 = vmmov %vm27854_vm4  ;;  %v22768_v26 = vld [vmem:[%s27553_s15 + $0x14] sm:$0xf]  ;;  %v22781_v13 = vld [vmem:[%s27553_s15 + $0x18] sm:$0xf] }
0x1201   : > { %v21553_v40 = vsel %vm670_vm8, %v21548_v3, %v21549_v42  ;;  %v20099_v16 = vsel %vm27855_vm5, %v20082_v32, %v20084_v59  ;;  %vm27868_vm4 = vmmov %vm27864_vm0 }
0x1202   : > { %v21554_v25 = vsel %vm27853_vm6, %v21553_v40, %v21543_v43  ;;  %22748 = vmatmul.mubr.msk.f32.vlgmr.msra.gmra.mrb[22].mxu1 %vm666_vm2, %v22742_v44  ;;  %v20088_v14 = vpop.permute.xlu1 %20087  ;;  %vm27867_vm6 = vmmov %vm27864_vm0 }
0x1203   : > { %v21565_v7 = vmul.f32 %v21554_v25, %v27025_v31  ;;  %22750 = vmatpush1.msk.msra.mxu1 %vm670_vm8, %v19750_v23  ;;  %v21547_v51 = vpop.permute.xlu0 %21546  ;;  %19979 = vmatprep.mubr.f32.mxu1 %v23785_v1  ;;  %v20102_v58 = vsel %vm27858_vm11, %v20088_v14, %v27287_v6  ;;  %v20101_v27 = vsel %vm27859_vm7, %v27275_v48, %v20088_v14  ;;  %vm27869_vm5 = vmmov %vm27864_vm0  ;;  %vm27872_vm11 = vcmask 523264  }
0x1204   : > { %22752 = vmatprep.subr.msk.mxu1 %vm670_vm8, %v19753_v35  ;;  %v21551_v45 = vrot.slane %v21547_v51, 4  ;;  %vm27873_vm7 = vmmov %vm27872_vm11 }
0x1205   : > { %21584 = vrot.lane.b32.xlu1 %v21565_v7, %s27704_s21  ;;  %v21577_v31 = vcombine.high %v21565_v7, %v21565_v7 }
0x1206   : > { %22751 = vmatmul.mubr.msk.f32.vlgmr.msra.gmra.mrb[24].mxu1 %vm666_vm2, %v22742_v44  ;;  %v21545_v33 = vpop.permute.xlu1 %21544  ;;  %v21568_v15 = vmul.f32 %v21551_v45, %v21539_v28 }
0x1207   : > { %22753 = vmatpush1.msk.msra.mxu1 %vm670_vm8, %v19752_v29  ;;  %v21550_v11 = vrot.slane %v21545_v33, 4  ;;  %v20098_v2 = vpop.permute.xlu0 %20097  ;;  %20050 = vmatprep.mubr.f32.mxu1 %v23785_v1 }
0x1208   : > { %22756 = vmatprep.subr.msk.mxu1 %vm670_vm8, %v20100_v21 }
0x1209   : > { %v21555_v54 = vsel %vm670_vm8, %v21549_v42, %v21550_v11  ;;  %v21557_v41 = vsel %vm670_vm8, %v21550_v11, %v21551_v45  ;;  %21586 = vrot.lane.b32.xlu1 %v21577_v31, %s27704_s21 }
0x120a   : > { %v21556_v18 = vsel %vm27856_vm13, %v21555_v54, %v21545_v33  ;;  %22754 = vmatmul.mubr.msk.f32.vlgmr.msra.gmra.mrb[26].mxu1 %vm666_vm2, %v22742_v44  ;;  %v20094_v62 = vpop.permute.xlu1 %20093  ;;  %v21558_v55 = vsel %vm27857_vm12, %v21557_v41, %v21547_v51  ;;  %vm27870_vm13 = vmmov %vm27864_vm0  ;;  %v22794_v54 = vld [vmem:[%s27553_s15 + $0x1c] sm:$0xf] }
0x120b   : > { %v21566_v22 = vmul.f32 %v21556_v18, %v27042_v57  ;;  %22757 = vmatpush1.msk.msra.mxu1 %vm670_vm8, %v20099_v16  ;;  %v20468_v63 = vpop.permute.xlu0 %20467  ;;  %20190 = vmatprep.mubr.f32.mxu1 %v23785_v1  ;;  %v21567_v10 = vmul.f32 %v21558_v55, %v27055_v39  ;;  %v20104_v17 = vsel %vm27860_vm3, %v27301_v24, %v20094_v62  ;;  %vm27871_vm12 = vmmov %vm27864_vm0 }
0x120c   : > { %22759 = vmatprep.subr.msk.mxu1 %vm670_vm8, %v20102_v58  ;;  %vm27874_vm3 = vmmov %vm27873_vm7 }
0x120d   : > { %v21578_v20 = vcombine.high %v21566_v22, %v21566_v22  ;;  %21588 = vrot.lane.b32.xlu0 %v21566_v22, %s27704_s21  ;;  %v21579_v39 = vcombine.high %v21567_v10, %v21567_v10  ;;  %vm27875_vm9 = vmmov %vm27874_vm3 }
0x120e   : > { %22758 = vmatmul.mubr.msk.f32.vlgmr.msra.gmra.mrb[20].mxu1 %vm666_vm2, %v22755_v12  ;;  %v20096_v57 = vpop.permute.xlu1 %20095 }
0x120f   : > { %22760 = vmatpush1.msk.msra.mxu1 %vm670_vm8, %v20101_v27  ;;  %v20470_v8 = vpop.permute.xlu0 %20469  ;;  %21590 = vrot.lane.b32.xlu1 %v21578_v20, %s27704_s21  ;;  %v20106_v38 = vsel %vm27862_vm14, %v20096_v57, %v20098_v2  ;;  %v20105_v3 = vsel %vm27863_vm15, %v20094_v62, %v20096_v57  ;;  %vm27876_vm14 = vmmov %vm27874_vm3 }
0x1210   : > { %22762 = vmatprep.subr.msk.mxu1 %vm670_vm8, %v20104_v17  ;;  %20261 = vmatprep.mubr.f32.mxu1 %v23785_v1  ;;  %v20483_v32 = vsel %vm27867_vm6, %v20468_v63, %v20470_v8  ;;  %vm27877_vm15 = vmmov %vm27874_vm3 }
0x1211   : > { %21592 = vrot.lane.b32.xlu0 %v21567_v10, %s27704_s21 }
0x1212   : > { %22761 = vmatmul.mubr.msk.f32.vlgmr.msra.gmra.mrb[22].mxu1 %vm666_vm2, %v22755_v12  ;;  %v20466_v61 = vpop.permute.xlu1 %20465 }
0x1213   : > { %22763 = vmatpush1.msk.msra.mxu1 %vm670_vm8, %v20103_v37  ;;  %v20474_v36 = vpop.permute.xlu0 %20473  ;;  %21594 = vrot.lane.b32.xlu1 %v21579_v39, %s27704_s21  ;;  %v20482_v34 = vsel %vm27864_vm0, %v20466_v61, %v20468_v63  ;;  %vm27878_vm0 = vmmov %vm27874_vm3  ;;  %v22807_v39 = vld [vmem:[%s27553_s15 + $0x20] sm:$0xf] }
0x1214   : > { %22765 = vmatprep.subr.msk.mxu1 %vm670_vm8, %v20106_v38  ;;  %20332 = vmatprep.mubr.f32.mxu1 %v23785_v1 }
0x1215   : > { %21596 = vrot.lane.b32.xlu0 %v21568_v15, %s27704_s21  ;;  %s27897_s21 = sld [smem:[#allocation24_spill]] }
0x1216   : > { %22764 = vmatmul.mubr.msk.f32.vlgmr.msra.gmra.mrb[24].mxu1 %vm666_vm2, %v22755_v12  ;;  %v20464_v4 = vpop.permute.xlu1 %20463 }
0x1217   : > { %22766 = vmatpush1.msk.msra.mxu1 %vm670_vm8, %v20105_v3  ;;  %v20848_v46 = vpop.permute.xlu0 %20847  ;;  %18536 = vperm.xlu1 %23645, %v18533_v30   ;;  %v20481_v56 = vsel %vm27865_vm10, %v20464_v4, %v20466_v61  ;;  %vm27879_vm10 = vmmov %vm27878_vm0 }
0x1218   : > { %22769 = vmatprep.subr.msk.mxu1 %vm670_vm8, %v20482_v34  ;;  %20403 = vmatprep.mubr.f32.mxu1 %v23785_v1 }
0x121a   : > { %22767 = vmatmul.mubr.msk.f32.vlgmr.msra.gmra.mrb[26].mxu1 %vm666_vm2, %v22755_v12  ;;  %v20472_v48 = vpop.permute.xlu1 %20471 }
0x121b   : > { %22770 = vmatpush1.msk.msra.mxu1 %vm670_vm8, %v20481_v56  ;;  %v20484_v49 = vsel %vm27866_vm1, %v20470_v8, %v20472_v48  ;;  %v20846_v60 = vpop.permute.xlu0 %20845  ;;  %20572 = vmatprep.mubr.f32.mxu1 %v23785_v1  ;;  %v20485_v6 = vsel %vm27869_vm5, %v20472_v48, %v20474_v36  ;;  %vm27880_vm1 = vcmask 515072   ;;  %s27898_s29 = smov %s27897_s21  ;;  %s27494_s20 = scalar_lea.hbm %s27897_s21, %s22826_s18 }
0x121c   : > { %22772 = vmatprep.subr.msk.mxu1 %vm670_vm8, %v20484_v49  ;;  %v20863_v43 = vsel %vm27873_vm7, %v20846_v60, %v20848_v46  ;;  %vm27881_vm6 = vmmov %vm27880_vm1 }
0x121d   : > { %vm27883_vm5 = vmmov %vm27880_vm1 }
0x121e   : > { %22771 = vmatmul.mubr.msk.f32.vlgmr.msra.gmra.mrb[20].mxu1 %vm666_vm2, %v22768_v26  ;;  %v20476_v9 = vpop.permute.xlu1 %20475  ;;  %vm27887_vm7 = vmmov %vm27880_vm1 }
0x121f   : > { %22773 = vmatpush1.msk.msra.mxu1 %vm670_vm8, %v20483_v32  ;;  %v20486_v50 = vsel %vm27868_vm4, %v20474_v36, %v20476_v9  ;;  %v20478_v19 = vpop.permute.xlu0 %20477  ;;  %20643 = vmatprep.mubr.f32.mxu1 %v23785_v1  ;;  %vm27882_vm4 = vmmov %vm27880_vm1 }
0x1220   : > { %22775 = vmatprep.subr.msk.mxu1 %vm670_vm8, %v20486_v50  ;;  %v20487_v5 = vsel %vm27871_vm12, %v20476_v9, %v20478_v19  ;;  %vm27885_vm12 = vmmov %vm27880_vm1 }
0x1222   : > { %22774 = vmatmul.mubr.msk.f32.vlgmr.msra.gmra.mrb[22].mxu1 %vm666_vm2, %v22768_v26  ;;  %v20480_v53 = vpop.permute.xlu1 %20479 }
0x1223   : > { %22776 = vmatpush1.msk.msra.mxu1 %vm670_vm8, %v20485_v6  ;;  %v20488_v0 = vsel %vm27870_vm13, %v20478_v19, %v20480_v53  ;;  %v20854_v59 = vpop.permute.xlu0 %20853  ;;  %20714 = vmatprep.mubr.f32.mxu1 %v23785_v1  ;;  %vm27884_vm13 = vmmov %vm27880_vm1 }
0x1224   : > { %22778 = vmatprep.subr.msk.mxu1 %vm670_vm8, %v20488_v0 }
0x1226   : > { %22777 = vmatmul.mubr.msk.f32.vlgmr.msra.gmra.mrb[24].mxu1 %vm666_vm2, %v22768_v26  ;;  %v20850_v24 = vpop.permute.xlu1 %20849 }
0x1227   : > { %22779 = vmatpush1.msk.msra.mxu1 %vm670_vm8, %v20487_v5  ;;  %v20864_v44 = vsel %vm27872_vm11, %v20848_v46, %v20850_v24  ;;  %20785 = vmatprep.mubr.f32.mxu1 %v23785_v1  ;;  %v20858_v47 = vpop.permute.xlu0 %20857  ;;  %vm27886_vm11 = vmmov %vm27880_vm1 }
0x1228   : > { %22782 = vmatprep.subr.msk.mxu1 %vm670_vm8, %v20864_v44 }
0x122a   : > { %22780 = vmatmul.mubr.msk.f32.vlgmr.msra.gmra.mrb[26].mxu1 %vm666_vm2, %v22768_v26  ;;  %v20852_v52 = vpop.permute.xlu1 %20851 }
0x122b   : > { %22783 = vmatpush1.msk.msra.mxu1 %vm670_vm8, %v20863_v43  ;;  %v20866_v42 = vsel %vm27874_vm3, %v20852_v52, %v20854_v59  ;;  %20954 = vmatprep.mubr.f32.mxu1 %v23785_v1  ;;  %v20865_v40 = vsel %vm27875_vm9, %v20850_v24, %v20852_v52  ;;  %v20862_v23 = vpop.permute.xlu0 %20861  ;;  %vm27888_vm3 = vcmask 506880  }
0x122c   : > { %22785 = vmatprep.subr.msk.mxu1 %vm670_vm8, %v20866_v42  ;;  %vm27889_vm9 = vmmov %vm27888_vm3 }
0x122e   : > { %22784 = vmatmul.mubr.msk.f32.vlgmr.msra.gmra.mrb[20].mxu1 %vm666_vm2, %v22781_v13  ;;  %v20856_v25 = vpop.permute.xlu1 %20855 }
0x122f   : > { %22786 = vmatpush1.msk.msra.mxu1 %vm670_vm8, %v20865_v40  ;;  %v20868_v14 = vsel %vm27876_vm14, %v20856_v25, %v20858_v47  ;;  %21025 = vmatprep.mubr.f32.mxu1 %v23785_v1  ;;  %v20867_v7 = vsel %vm27877_vm15, %v20854_v59, %v20856_v25  ;;  %v21203_v51 = vpop.permute.xlu0 %21202  ;;  %vm27890_vm14 = vmmov %vm27888_vm3 }
0x1230   : > { %22788 = vmatprep.subr.msk.mxu1 %vm670_vm8, %v20868_v14  ;;  %vm27891_vm15 = vmmov %vm27888_vm3 }
0x1232   : > { %22787 = vmatmul.mubr.msk.f32.vlgmr.msra.gmra.mrb[22].mxu1 %vm666_vm2, %v22781_v13  ;;  %v21201_v35 = vpop.permute.xlu1 %21200 }
0x1233   : > { %22789 = vmatpush1.msk.msra.mxu1 %vm670_vm8, %v20867_v7  ;;  %21096 = vmatprep.mubr.f32.mxu1 %v23785_v1  ;;  %v21217_v31 = vsel %vm27880_vm1, %v21201_v35, %v21203_v51  ;;  %v21205_v45 = vpop.permute.xlu0 %21204 }
0x1234   : > { %v21218_v18 = vsel %vm27883_vm5, %v21203_v51, %v21205_v45 }
0x1236   : > { %v20860_v29 = vpop.permute.xlu1 %20859  ;;  %22790 = vmatmul.mubr.msk.f32.vlgmr.msra.gmra.mrb[24].mxu1 %vm666_vm2, %v22781_v13 }
0x1237   : > { %v20869_v33 = vsel %vm27878_vm0, %v20858_v47, %v20860_v29  ;;  %v20870_v21 = vsel %vm27879_vm10, %v20860_v29, %v20862_v23  ;;  %21167 = vmatprep.mubr.f32.mxu1 %v23785_v1  ;;  %v21209_v62 = vpop.permute.xlu0 %21208  ;;  %vm27892_vm0 = vmmov %vm27888_vm3 }
0x1238   : > { %22791 = vmatprep.subr.msk.mxu1 %vm670_vm8, %v20870_v21  ;;  %vm27893_vm10 = vmmov %vm27892_vm0 }
0x1239   : > { %22792 = vmatpush1.msk.msra.mxu1 %vm670_vm8, %v20869_v33  ;;  %vm27894_vm1 = vmmov %vm27892_vm0 }
0x123a   : > { %22795 = vmatprep.subr.msk.mxu1 %vm670_vm8, %v21217_v31  ;;  %v21199_v11 = vpop.permute.xlu1 %21198  ;;  %22793 = vmatmul.mubr.msk.f32.vlgmr.msra.gmra.mrb[26].mxu1 %vm666_vm2, %v22781_v13 }
0x123b   : > { %v21216_v2 = vsel %vm27881_vm6, %v21199_v11, %v21201_v35  ;;  %21307 = vmatprep.mubr.f32.mxu1 %v23785_v1  ;;  %v21213_v63 = vpop.permute.xlu0 %21212  ;;  %vm27895_vm6 = vmmov %vm27892_vm0 }
0x123c   : > { %22796 = vmatpush1.msk.msra.mxu1 %vm670_vm8, %v21216_v2 }
0x123e   : > { %v21207_v41 = vpop.permute.xlu1 %21206  ;;  %22797 = vmatmul.mubr.msk.f32.vlgmr.msra.gmra.mrb[20].mxu1 %vm666_vm2, %v22794_v54 }
0x123f   : > { %v21219_v16 = vsel %vm27882_vm4, %v21205_v45, %v21207_v41  ;;  %21378 = vmatprep.mubr.f32.mxu1 %v23785_v1  ;;  %v21220_v22 = vsel %vm27885_vm12, %v21207_v41, %v21209_v62 }
0x1240   : > { %22798 = vmatprep.subr.msk.mxu1 %vm670_vm8, %v21219_v16 }
0x1241   : > { %22799 = vmatpush1.msk.msra.mxu1 %vm670_vm8, %v21218_v18 }
0x1242   : > { %v21211_v55 = vpop.permute.xlu1 %21210  ;;  %22800 = vmatmul.mubr.msk.f32.vlgmr.msra.gmra.mrb[22].mxu1 %vm666_vm2, %v22794_v54 }
0x1243   : > { %v21221_v58 = vsel %vm27884_vm13, %v21209_v62, %v21211_v55  ;;  %21449 = vmatprep.mubr.f32.mxu1 %v23785_v1  ;;  %v21222_v10 = vsel %vm27887_vm7, %v21211_v55, %v21213_v63 }
0x1244   : > { %22801 = vmatprep.subr.msk.mxu1 %vm670_vm8, %v21221_v58 }
0x1245   : > { %22802 = vmatpush1.msk.msra.mxu1 %vm670_vm8, %v21220_v22 }
0x1246   : > { %v21215_v12 = vpop.permute.xlu1 %21214  ;;  %22803 = vmatmul.mubr.msk.f32.vlgmr.msra.gmra.mrb[24].mxu1 %vm666_vm2, %v22794_v54 }
0x1247   : > { %v21223_v20 = vsel %vm27886_vm11, %v21213_v63, %v21215_v12  ;;  %21520 = vmatprep.mubr.f32.mxu1 %v23785_v1 }
0x1248   : > { %22804 = vmatprep.subr.msk.mxu1 %vm670_vm8, %v21223_v20 }
0x1249   : > { %22805 = vmatpush1.msk.msra.mxu1 %vm670_vm8, %v21222_v10 }
0x124a   : > { %22806 = vmatmul.mubr.msk.f32.vlgmr.msra.gmra.mrb[26].mxu1 %vm666_vm2, %v22794_v54 }
0x124b   : > { %21689 = vmatprep.mubr.f32.mxu1 %v23785_v1 }
0x1265   : > { %v21583_v27 = vpop.permute.xlu0 %21582 }
0x1269   : > { %v21581_v57 = vpop.permute.xlu0 %21580 }
0x126a   : > { %v21598_v37 = vsel %vm27889_vm9, %v21581_v57, %v21583_v27 }
0x1277   : > { %v21585_v17 = vpop.permute.xlu1 %21584 }
0x1278   : > { %v21599_v8 = vsel %vm27888_vm3, %v21583_v27, %v21585_v17 }
0x1279   : > { %22808 = vmatprep.subr.msk.mxu1 %vm670_vm8, %v21599_v8 }
0x127a   : > { %22809 = vmatpush1.msk.msra.mxu1 %vm670_vm8, %v21598_v37 }
0x127b   : > { %22810 = vmatmul.mubr.msk.f32.vlgmr.msra.gmra.mrb[20].mxu1 %vm666_vm2, %v22807_v39  ;;  %v21587_v28 = vpop.permute.xlu1 %21586 }
0x127c   : > { %21760 = vmatprep.mubr.f32.mxu1 %v23785_v1  ;;  %v21600_v38 = vsel %vm27891_vm15, %v21585_v17, %v21587_v28 }
0x127f   : > { %v21589_v61 = vpop.permute.xlu0 %21588 }
0x1280   : > { %v21601_v15 = vsel %vm27890_vm14, %v21587_v28, %v21589_v61 }
0x1281   : > { %22811 = vmatprep.subr.msk.mxu1 %vm670_vm8, %v21601_v15  ;;  %v21591_v36 = vpop.permute.xlu1 %21590 }
0x1282   : > { %22812 = vmatpush1.msk.msra.mxu1 %vm670_vm8, %v21600_v38  ;;  %v21602_v4 = vsel %vm27893_vm10, %v21589_v61, %v21591_v36 }
0x1283   : > { %v21593_v30 = vpop.permute.xlu0 %21592  ;;  %22813 = vmatmul.mubr.msk.f32.vlgmr.msra.gmra.mrb[22].mxu1 %vm666_vm2, %v22807_v39 }
0x1284   : > { %v21603_v3 = vsel %vm27892_vm0, %v21591_v36, %v21593_v30  ;;  %21831 = vmatprep.mubr.f32.mxu1 %v23785_v1 }
0x1285   : > { %22814 = vmatprep.subr.msk.mxu1 %vm670_vm8, %v21603_v3  ;;  %v21595_v34 = vpop.permute.xlu1 %21594 }
0x1286   : > { %22815 = vmatpush1.msk.msra.mxu1 %vm670_vm8, %v21602_v4  ;;  %v21604_v48 = vsel %vm27895_vm6, %v21593_v30, %v21595_v34 }
0x1287   : > { %v21597_v46 = vpop.permute.xlu0 %21596  ;;  %22816 = vmatmul.mubr.msk.f32.vlgmr.msra.gmra.mrb[24].mxu1 %vm666_vm2, %v22807_v39 }
0x1288   : > { %v21605_v56 = vsel %vm27894_vm1, %v21595_v34, %v21597_v46  ;;  %21902 = vmatprep.mubr.f32.mxu1 %v23785_v1 }
0x1289   : > { %22817 = vmatprep.subr.msk.mxu1 %vm670_vm8, %v21605_v56 }
0x128a   : > { %22818 = vmatpush1.msk.msra.mxu1 %vm670_vm8, %v21604_v48 }
0x128b   : > { %22819 = vmatmul.mubr.msk.f32.vlgmr.msra.gmra.mrb[26].mxu1 %vm666_vm2, %v22807_v39 }
0x1296   : > { %v18537_v49 = vpop.permute.xlu1 %18536 }
0x134e   : > { %v21691_v60 = vpop.f32.mrb[20].mxu1 }
0x134f   : > { %v23115_v26 = vadd.f32 %v21691_v60, %v18537_v49  ;;  %v21693_v32 = vpop.f32.mrb[21].mxu1 }
0x1350   : > { %v23116_v9 = vadd.f32 %v21693_v32, %v18537_v49 }
0x1351   : > { %v21917_v50 = vsub.f32 0.0, %v23115_v26 }
0x1352   : > { %v21918_v19 = vsub.f32 0.0, %v23116_v9 }
0x1353   : > { %v21925_v6 = vmul.f32 1.442695, %v21917_v50 }
0x1354   : > { %v21927_v53 = vmul.f32 1.442695, %v21918_v19 }
0x1355   : > { %23654 = vpow2.f32 %v21925_v6 }
0x1356   : > { %23656 = vpow2.f32 %v21927_v53  ;;  %v21762_v1 = vpop.f32.mrb[22].mxu1 }
0x1357   : > { %v23117_v0 = vadd.f32 %v21762_v1, %v18537_v49  ;;  %v21764_v59 = vpop.f32.mrb[23].mxu1 }
0x1358   : > { %v23118_v5 = vadd.f32 %v21764_v59, %v18537_v49 }
0x1359   : > { %v21919_v24 = vsub.f32 0.0, %v23117_v0 }
0x135a   : > { %v21920_v44 = vsub.f32 0.0, %v23118_v5  ;;  %v21833_v47 = vpop.f32.mrb[24].mxu1 }
0x135b   : > { %v21929_v43 = vmul.f32 1.442695, %v21919_v24  ;;  %v23119_v52 = vadd.f32 %v21833_v47, %v18537_v49  ;;  %v21835_v42 = vpop.f32.mrb[25].mxu1 }
0x135c   : > { %v21931_v13 = vmul.f32 1.442695, %v21920_v44  ;;  %v23120_v40 = vadd.f32 %v21835_v42, %v18537_v49 }
0x135d   : > { %23658 = vpow2.f32 %v21929_v43  ;;  %v21921_v23 = vsub.f32 0.0, %v23119_v52 }
0x135e   : > { %23660 = vpow2.f32 %v21931_v13  ;;  %v21922_v25 = vsub.f32 0.0, %v23120_v40  ;;  %v21904_v14 = vpop.f32.mrb[26].mxu1 }
0x135f   : > { %v23655_v7 = vpop.eup %23654  ;;  %v21933_v35 = vmul.f32 1.442695, %v21921_v23  ;;  %v23121_v51 = vadd.f32 %v21904_v14, %v18537_v49  ;;  %v21906_v29 = vpop.f32.mrb[27].mxu1 }
0x1360   : > { %v23657_v33 = vpop.eup %23656  ;;  %v21941_v21 = vadd.f32 1.0, %v23655_v7  ;;  %v21935_v31 = vmul.f32 1.442695, %v21922_v25  ;;  %v23122_v45 = vadd.f32 %v21906_v29, %v18537_v49 }
0x1361   : > { %v21942_v11 = vadd.f32 1.0, %v23657_v33  ;;  %23662 = vpow2.f32 %v21933_v35  ;;  %v21923_v2 = vsub.f32 0.0, %v23121_v51 }
0x1362   : > { %23664 = vrcp.f32 %v21941_v21  ;;  %v21924_v54 = vsub.f32 0.0, %v23122_v45 }
0x1363   : > { %23666 = vrcp.f32 %v21942_v11  ;;  %v21937_v41 = vmul.f32 1.442695, %v21923_v2 }
0x1364   : > { %23668 = vpow2.f32 %v21935_v31  ;;  %v21939_v16 = vmul.f32 1.442695, %v21924_v54 }
0x1365   : > { %23670 = vpow2.f32 %v21937_v41 }
0x1366   : > { %23672 = vpow2.f32 %v21939_v16 }
0x1367   : > { %v23659_v18 = vpop.eup %23658 }
0x1368   : > { %v23661_v62 = vpop.eup %23660  ;;  %v21943_v55 = vadd.f32 1.0, %v23659_v18 }
0x1369   : > { %v21944_v58 = vadd.f32 1.0, %v23661_v62 }
0x136a   : > { %23674 = vrcp.f32 %v21943_v55 }
0x136b   : > { %v23663_v22 = vpop.eup %23662  ;;  %23676 = vrcp.f32 %v21944_v58 }
0x136c   : > { %v23665_v63 = vpop.eup %23664  ;;  %v21945_v12 = vadd.f32 1.0, %v23663_v22 }
0x136d   : > { %v23667_v20 = vpop.eup %23666 }
0x136e   : > { %v23669_v10 = vpop.eup %23668  ;;  %v21973_v27 = vcombine.low %v23665_v63, %v23667_v20  ;;  %23678 = vrcp.f32 %v21945_v12 }
0x136f   : > { %v23671_v57 = vpop.eup %23670  ;;  %v21946_v17 = vadd.f32 1.0, %v23669_v10 }
0x1370   : > { %v23673_v8 = vpop.eup %23672  ;;  %v21947_v39 = vadd.f32 1.0, %v23671_v57  ;;  %21981 = vst [vmem:[%s610_s3] sm:$0xff] %v21973_v27 }
0x1371   : > { %23680 = vrcp.f32 %v21946_v17  ;;  %v21948_v37 = vadd.f32 1.0, %v23673_v8 }
0x1372   : > { %23682 = vrcp.f32 %v21947_v39 }
0x1373   : > { %23684 = vrcp.f32 %v21948_v37 }
0x1374   : > { %v23675_v28 = vpop.eup %23674 }
0x1375   : > { %v23677_v61 = vpop.eup %23676 }
0x1376   : > { %v21974_v15 = vcombine.low %v23675_v28, %v23677_v61 }
0x1378   : > { %21982 = vst [vmem:[%s610_s3 + $0x8] sm:$0xff] %v21974_v15  ;;  %v23679_v38 = vpop.eup %23678 }
0x137b   : > { %v23681_v36 = vpop.eup %23680 }
0x137c   : > { %v23683_v30 = vpop.eup %23682  ;;  %v21975_v3 = vcombine.low %v23679_v38, %v23681_v36 }
0x137d   : > { %v23685_v4 = vpop.eup %23684 }
0x137e   : > { %v21976_v34 = vcombine.low %v23683_v30, %v23685_v4  ;;  %21983 = vst [vmem:[%s610_s3 + $0x10] sm:$0xff] %v21975_v3 }
0x1380   : > { %21984 = vst [vmem:[%s610_s3 + $0x18] sm:$0xff] %v21976_v34 }
0x1381   : > { %23727 = shalt.err (!%p23724_p7)
}
0x1382   : > { %s23728_s23 = scalar_lea.hbm %s27494_s20, 512  ;;  %s23732_s3 = scalar_lea.hbm %s27898_s29, 1024 }
0x1383   : > { %p23729_p8 = scmp.ne.s32.totalorder %s27494_s20, %s23728_s23  ;;  %p23733_p1 = scmp.lt.u32.totalorder %s27494_s20, %s27898_s29 }
0x1384   : > { %p23734_p0 = scmp.lt.u32.totalorder %s23732_s3, %s23728_s23  ;;  %p23736_p6 = scmp.lt.u32.totalorder %s23728_s23, %s27494_s20 }
0x1385   : > { %p23730_p11 = pnand %p23729_p8, %p27899_p9 }
0x1386   : > { %p23735_p5 = por %p23734_p0, %p23733_p1 }
0x1387   : > { %p23731_p13 = pneg %p23730_p11 }
0x1388   : > { %p23737_p10 = por %p23736_p6, %p23735_p5 }
0x138a   : > { %p23738_p12 = pnand %p23737_p10, %p23731_p13 }
0x138c   : > { %23741 = shalt.err (!%p23738_p12)
}
0x138d   : > { %23509 = dma.vmem_to_hbm [thread:$0]  (%p27899_p9), %s27496_s22, 512, %s27494_s20, %s21986_s2  }
0x138e PF: > { %s27900_s19 = sld [smem:[#allocation13_spill]]  ;;  %s27901_s21 = sld [smem:[#allocation11_spill]] }
0x138f   : > { %s27902_s1 = sld [smem:[#allocation17_spill]] }
0x1394   : > { %p23521_p2 = scmp.ge.s32.totalorder %s27900_s19, 2  ;;  %s22012_s27 = sand.u32 1, %s27901_s21  }
0x1395   : > { %p27903_p3 = scmp.ne.s32.totalorder %s27902_s1, 0  ;;  %s22013_s24 = scalar_lea.sflag [#allocation7], %s22012_s27 }
0x1397   : > { %p23516_p4 = pnand %p23521_p2, %p27903_p3 }
0x1399   : > { %23763 = dma.done.wait (!%p23516_p4), %s22013_s24, 512  }
0x139a   : > { %23765 = vsyncadd (!%p23516_p4), %s22013_s24, 4294966784  ;;  %s27904_s21 = sld [smem:[#allocation14_spill]]  ;;  %s27905_s26 = sld [smem:[#allocation12_spill]] }
0x139b   : > { %s27906_s20 = sld [smem:[#allocation15_spill]]  ;;  %s27907_s0 = smov %s23772_s30 }
0x13a0   : > { %p30_p7 = scmp.ge.s32.totalorder %s27904_s21, 4   ;;  %s27908_s30 = smov %s27905_s26 }
0x13a2   :  { %32 = sbr.rel (!%p30_p7) target bundleno = 12 (0xc), region = 239 }
0x13a9   :  { %22018 = vsyncpa [#allocation6], 1 }
0x13aa   :  { %22020 = vsyncpa [#allocation6 + $0x1], 1 }
0x13ab   :  { %22021 = vsyncpa [#allocation7], 1 }
0x13ac   :  { %22023 = vsyncpa [#allocation7 + $0x1], 1 }

</bundles_post_ra>
